<compile_context>
chip_gen: v7x
topology: tpu7x:2x2x1
jax: 0.10.0
libtpu: 0.0.40
codegen_flags: <defaults>
</compile_context>

<pallas_src>
import functools

import jax
import jax.numpy as jnp
from jax import lax
from jax.experimental import pallas as pl
from jax.experimental.pallas import tpu as pltpu


# ----------------------------------------------------------------------------
# shared in-kernel helpers (f32 math, matching torch semantics)
# ----------------------------------------------------------------------------
def _ln(x, g, b, eps):
    mean = jnp.mean(x, axis=-1, keepdims=True)
    xc = x - mean
    var = jnp.mean(xc * xc, axis=-1, keepdims=True)      # biased, like torch
    return xc * lax.rsqrt(var + eps) * g + b


def _gelu(x):
    # exact (erf) GELU, matching torch.nn.GELU default
    return 0.5 * x * (1.0 + lax.erf(x * 0.7071067811865475))


def _row_tile(rows, S, max_rows=256):
    """Rows per grid step: pack whole images, cap at max_rows (v6e/v7x MXU M),
    and keep >= 2 row tiles when possible so both v7x TensorCores get work."""
    imgs = rows // S
    per = max(1, min(imgs, max(1, max_rows // S)))
    if imgs // per < 2 and imgs >= 2:
        per = imgs // 2
    while imgs % per:
        per -= 1
    return per * S


# ----------------------------------------------------------------------------
# Kernel 1: patch embedding (conv k=s=P rewritten as matmul) + pos-emb add
# ----------------------------------------------------------------------------
def _embed_kernel(p_ref, w_ref, b_ref, pos_ref, o_ref, *, S):
    p = p_ref[...]                                         # (TM, C*P*P) f32
    h = jnp.dot(p.astype(jnp.bfloat16), w_ref[...],       # bf16 MXU, f32 acc
                preferred_element_type=jnp.float32)
    h = h + b_ref[...]                                     # (1, E) bias
    TM, E = h.shape
    h = (h.reshape(TM // S, S, E) + pos_ref[...][None]).reshape(TM, E)
    o_ref[...] = h.astype(o_ref.dtype)


def embed(patches, patch_w, patch_b, pos, *, S):
    rows, PD = patches.shape
    E = patch_w.shape[1]
    TM = _row_tile(rows, S)
    kernel = functools.partial(_embed_kernel, S=S)
    full = lambda i: (0, 0)
    return pl.pallas_call(
        kernel,
        out_shape=jax.ShapeDtypeStruct((rows, E), jnp.float32),
        grid=(rows // TM,),
        in_specs=[
            pl.BlockSpec((TM, PD), lambda i: (i, 0)),
            pl.BlockSpec((PD, E), full),
            pl.BlockSpec((1, E), full),
            pl.BlockSpec((S, E), full),
        ],
        out_specs=pl.BlockSpec((TM, E), lambda i: (i, 0)),
        compiler_params=pltpu.CompilerParams(dimension_semantics=("parallel",)),
    )(patches, patch_w, patch_b, pos)


# ----------------------------------------------------------------------------
# Kernel 2: ALL transformer layers fused in one pallas_call.
#   grid = (row_tiles ["parallel"], num_layers ["arbitrary"])
#   residual stream stays resident in a VMEM scratch across the layer axis.
# ----------------------------------------------------------------------------
def _block_kernel(h_ref, ln1g_ref, ln1b_ref, wqkv_ref, bqkv_ref,
                  wo_ref, bo_ref, ln2g_ref, ln2b_ref,
                  w1_ref, b1_ref, w2_ref, b2_ref,
                  o_ref, acc_ref, attn_ref,
                  *, num_heads, head_dim, S, eps):
    l = pl.program_id(1)

    # First layer of this row tile: pull the embedding into the resident
    # residual-stream scratch; later layers read/write only this VMEM buffer.
    @pl.when(l == 0)
    def _():
        acc_ref[...] = h_ref[...].astype(jnp.float32)

    x = acc_ref[...]                                       # (TM, E) f32
    TM, E = x.shape
    img = TM // S                                          # images in this tile

    # --- attention: LN1 -> fused QKV -> per-head batched attention ----------
    xn = _ln(x, ln1g_ref[0], ln1b_ref[0], eps)
    qkv = jnp.dot(xn.astype(jnp.bfloat16), wqkv_ref[0],
                  preferred_element_type=jnp.float32) + bqkv_ref[0]   # (TM,3E)
    qkv = qkv.reshape(img, S, 3 * E)

    for hh in range(num_heads):                            # static unroll
        lo = hh * head_dim
        q = qkv[:, :, lo:lo + head_dim].astype(jnp.bfloat16)          # (img,S,Dh)
        k = qkv[:, :, E + lo:E + lo + head_dim].astype(jnp.bfloat16)
        v = qkv[:, :, 2 * E + lo:2 * E + lo + head_dim].astype(jnp.bfloat16)
        # 1/sqrt(head_dim) already folded into the Q columns of wqkv at init.
        s = jnp.einsum('bqd,bkd->bqk', q, k,
                       preferred_element_type=jnp.float32)            # (img,S,S)
        m = jnp.max(s, axis=-1, keepdims=True)
        p = jnp.exp(s - m)
        denom = jnp.sum(p, axis=-1, keepdims=True)
        o = jnp.einsum('bqk,bkd->bqd', p.astype(jnp.bfloat16), v,
                       preferred_element_type=jnp.float32)
        o = o * pl.reciprocal(denom, approx=True)
        # head merge: write this head's 32-lane slice of the VMEM scratch
        attn_ref[:, lo:lo + head_dim] = o.reshape(TM, head_dim)

    proj = jnp.dot(attn_ref[...].astype(jnp.bfloat16), wo_ref[0],
                   preferred_element_type=jnp.float32) + bo_ref[0]
    h1 = x + proj                                          # residual add

    # --- feed-forward: LN2 -> W1 -> GELU -> W2 -------------------------------
    hn = _ln(h1, ln2g_ref[0], ln2b_ref[0], eps)
    m1 = jnp.dot(hn.astype(jnp.bfloat16), w1_ref[0],
                 preferred_element_type=jnp.float32) + b1_ref[0]
    m1 = _gelu(m1)
    m2 = jnp.dot(m1.astype(jnp.bfloat16), w2_ref[0],
                 preferred_element_type=jnp.float32) + b2_ref[0]
    new_h = h1 + m2                                        # residual add
    acc_ref[...] = new_h

    @pl.when(l == pl.num_programs(1) - 1)
    def _():
        o_ref[...] = new_h.astype(o_ref.dtype)


def transformer(h, layers, *, S, num_heads, eps=1e-5):
    rows, E = h.shape
    L = layers["wqkv"].shape[0]
    hidden = layers["w1"].shape[-1]
    head_dim = E // num_heads
    TM = _row_tile(rows, S)
    kernel = functools.partial(_block_kernel, num_heads=num_heads,
                               head_dim=head_dim, S=S, eps=eps)
    wmap = lambda i, l: (l, 0, 0)            # stacked (L, ...) weights / biases
    return pl.pallas_call(
        kernel,
        out_shape=jax.ShapeDtypeStruct((rows, E), h.dtype),
        grid=(rows // TM, L),
        in_specs=[
            pl.BlockSpec((TM, E), lambda i, l: (i, 0)),            # h (layer 0)
            pl.BlockSpec((1, 1, E), wmap), pl.BlockSpec((1, 1, E), wmap),   # ln1
            pl.BlockSpec((1, E, 3 * E), wmap), pl.BlockSpec((1, 1, 3 * E), wmap),
            pl.BlockSpec((1, E, E), wmap), pl.BlockSpec((1, 1, E), wmap),   # wo/bo
            pl.BlockSpec((1, 1, E), wmap), pl.BlockSpec((1, 1, E), wmap),   # ln2
            pl.BlockSpec((1, E, hidden), wmap), pl.BlockSpec((1, 1, hidden), wmap),
            pl.BlockSpec((1, hidden, E), wmap), pl.BlockSpec((1, 1, E), wmap),
        ],
        out_specs=pl.BlockSpec((TM, E), lambda i, l: (i, 0)),
        scratch_shapes=[pltpu.VMEM((TM, E), jnp.float32),   # residual stream
                        pltpu.VMEM((TM, E), jnp.float32)],  # attention merge
        compiler_params=pltpu.CompilerParams(
            dimension_semantics=("parallel", "arbitrary"),
            vmem_limit_bytes=64 * 1024 * 1024),  # explicit headroom (v7x: 64 MiB VMEM)
    )(h,
      layers["ln1_g"], layers["ln1_b"],
      layers["wqkv"], layers["bqkv"],
      layers["wo"], layers["bo"],
      layers["ln2_g"], layers["ln2_b"],
      layers["w1"], layers["b1"],
      layers["w2"], layers["b2"])


# ----------------------------------------------------------------------------
# Kernel 3: post-LayerNorm + token merge (weighted sublane reduction) + head.
#   Tiled over batch rows, lane-dense (128-wide padded) output.
# ----------------------------------------------------------------------------
def _head_kernel(h_ref, g_ref, b_ref, mw_ref, mb_ref, ow_ref, ob_ref, o_ref,
                 *, S, eps):
    x = h_ref[...].astype(jnp.float32)                     # (TM, E)
    xn = _ln(x, g_ref[...], b_ref[...], eps)
    TM, E = xn.shape
    img = TM // S
    # merged[b, e] = sum_s xn[b, s, e] * mw[s] + mb   (no transpose, no N=1 matmul)
    mw = mw_ref[...].reshape(1, S, 1)                      # stored lane-dense (1, S)
    merged = jnp.sum(xn.reshape(img, S, E) * mw, axis=1) + mb_ref[0, 0]
    out = jnp.dot(merged.astype(jnp.bfloat16), ow_ref[...],
                  preferred_element_type=jnp.float32) + ob_ref[...]
    o_ref[...] = out.astype(o_ref.dtype)                   # (img, 128) lane-dense


def head(h, params, *, S, eps=1e-5):
    rows, E = h.shape
    NOP = params["out_w"].shape[1]                         # padded to 128 lanes
    B = rows // S
    TM = _row_tile(rows, S)
    per = TM // S
    kernel = functools.partial(_head_kernel, S=S, eps=eps)
    full = lambda i: (0, 0)
    return pl.pallas_call(
        kernel,
        out_shape=jax.ShapeDtypeStruct((B, NOP), jnp.float32),
        grid=(rows // TM,),
        in_specs=[
            pl.BlockSpec((TM, E), lambda i: (i, 0)),
            pl.BlockSpec((1, E), full), pl.BlockSpec((1, E), full),
            pl.BlockSpec((1, S), full),
            pl.BlockSpec(memory_space=pltpu.MemorySpace.SMEM),   # merge_b scalar
            pl.BlockSpec((E, NOP), full), pl.BlockSpec((1, NOP), full),
        ],
        out_specs=pl.BlockSpec((per, NOP), lambda i: (i, 0)),
        compiler_params=pltpu.CompilerParams(dimension_semantics=("parallel",)),
    )(h, params["post_g"], params["post_b"], params["merge_w"],
      params["merge_b"], params["out_w"], params["out_b"])


# ----------------------------------------------------------------------------
# Model wrapper (host side only re-lays-out patches; all math is in kernels)
# ----------------------------------------------------------------------------
CONFIG = dict(
    image_size=32,
    patch_size=8,
    channels=3,
    embed_dim=128,
    num_heads=4,
    num_layers=2,
    mlp_ratio=4.0,
    num_outputs=8,
)


def init_params(key, cfg):
    E = cfg["embed_dim"]
    P = cfg["patch_size"]
    C = cfg["channels"]
    S = (cfg["image_size"] // P) ** 2
    hidden = int(E * cfg["mlp_ratio"])
    NH = cfg["num_heads"]
    NO = cfg["num_outputs"]
    NOP = max(128, ((NO + 127) // 128) * 128)              # lane-dense output head
    L = cfg["num_layers"]
    patch_dim = C * P * P
    scale = float(E // NH) ** -0.5
    bf16 = jnp.bfloat16

    def nrm(k, shape, s=0.02):
        return jax.random.normal(k, shape, dtype=jnp.float32) * s

    keys = jax.random.split(key, 4 + L)
    wqkv, wo, w1, w2 = [], [], [], []
    for li in range(L):
        lk = jax.random.split(keys[4 + li], 4)
        q = nrm(lk[0], (E, 3 * E))
        q = q.at[:, :E].multiply(scale)     # fold 1/sqrt(head_dim) into Q cols
        wqkv.append(q)
        wo.append(nrm(lk[1], (E, E)))
        w1.append(nrm(lk[2], (E, hidden)))
        w2.append(nrm(lk[3], (hidden, E)))

    out_w = jnp.zeros((E, NOP), jnp.float32).at[:, :NO].set(nrm(keys[3], (E, NO)))
    params = {
        # matmul weights stored bf16 (halves weight DMA, native MXU rate);
        # LN params / biases / pos-emb kept f32 (elementwise math stays f32).
        "patch_w": nrm(keys[0], (patch_dim, E)).astype(bf16),
        "patch_b": jnp.zeros((1, E), jnp.float32),
        "pos_emb": nrm(keys[1], (S, E)),
        "post_g": jnp.ones((1, E), jnp.float32),
        "post_b": jnp.zeros((1, E), jnp.float32),
        "merge_w": nrm(keys[2], (1, S)),                   # lane-dense (1, S)
        "merge_b": jnp.zeros((1, 1), jnp.float32),         # SMEM scalar
        "out_w": out_w.astype(bf16),
        "out_b": jnp.zeros((1, NOP), jnp.float32),
        "layers": {                                        # stacked over L
            "ln1_g": jnp.ones((L, 1, E), jnp.float32),
            "ln1_b": jnp.zeros((L, 1, E), jnp.float32),
            "wqkv": jnp.stack(wqkv).astype(bf16),
            # (if bqkv were nonzero, its Q part would carry the folded scale too)
            "bqkv": jnp.zeros((L, 1, 3 * E), jnp.float32),
            "wo": jnp.stack(wo).astype(bf16),
            "bo": jnp.zeros((L, 1, E), jnp.float32),
            "ln2_g": jnp.ones((L, 1, E), jnp.float32),
            "ln2_b": jnp.zeros((L, 1, E), jnp.float32),
            "w1": jnp.stack(w1).astype(bf16),
            "b1": jnp.zeros((L, 1, hidden), jnp.float32),
            "w2": jnp.stack(w2).astype(bf16),
            "b2": jnp.zeros((L, 1, E), jnp.float32),
        },
    }
    return params


def styleformer_forward(params, x, cfg):
    B, C, H, W = x.shape
    P = cfg["patch_size"]
    gh, gw = H // P, W // P
    S = gh * gw

    # EmbeddingStem (conv_patch, k=s=P): re-lay-out pixels to patch rows once;
    # the conv itself is the matmul inside the embed kernel.
    patches = x.reshape(B, C, gh, P, gw, P)
    patches = patches.transpose(0, 2, 4, 1, 3, 5).reshape(B * S, C * P * P)

    # patch embed + positional embedding (dropout rate 0.0 -> identity)
    h = embed(patches, params["patch_w"], params["patch_b"],
              params["pos_emb"], S=S)                          # (B*S, E)

    # all transformer layers in one fused pallas_call
    h = transformer(h, params["layers"], S=S, num_heads=cfg["num_heads"])

    # post-LayerNorm + token merge + output head (lane-dense, padded to 128)
    out = head(h, params, S=S)                                 # (B, 128)
    return out[:, :cfg["num_outputs"]]                         # strip lane padding


if __name__ == "__main__":
    cfg = CONFIG
    key = jax.random.PRNGKey(0)
    pkey, xkey = jax.random.split(key)
    params = init_params(pkey, cfg)

    # 16 images x 16 tokens = 256 activation rows -> two 128-row tiles
    # (MXU-friendly M, and >= 2 "parallel" tiles for v7x's two TensorCores).
    B = 16
    x = jax.random.normal(
        xkey, (B, cfg["channels"], cfg["image_size"], cfg["image_size"]),
        dtype=jnp.float32)

    fwd = jax.jit(functools.partial(styleformer_forward, cfg=cfg))
    out = jax.block_until_ready(fwd(params, x))
    assert out.shape == (B, cfg["num_outputs"])
    assert bool(jnp.all(jnp.isfinite(out)))
    print("KERNEL_OK")
</pallas_src>

<mosaic_0001>
module attributes {stable_mosaic.version = 11 : i64} {
  func.func @_embed_kernel(%arg0: i32, %arg1: memref<128x192xf32, #tpu.memory_space<vmem>>, %arg2: memref<192x128xbf16, #tpu.memory_space<vmem>>, %arg3: memref<1x128xf32, #tpu.memory_space<vmem>>, %arg4: memref<16x128xf32, #tpu.memory_space<vmem>>, %arg5: memref<128x128xf32, #tpu.memory_space<vmem>>) attributes {dimension_semantics = [#tpu.dimension_semantics<parallel>], iteration_bounds = array<i64: 2>, scalar_prefetch = 0 : i64, scratch_operands = 0 : i64, tpu.core_type = #tpu.core_type<tc>, window_params = [{transform_indices = @transform_0, window_bounds = array<i64: 128, 192>}, {pipeline_mode = #tpu.pipeline_mode<synchronous>, transform_indices = @transform_1, window_bounds = array<i64: 192, 128>}, {pipeline_mode = #tpu.pipeline_mode<synchronous>, transform_indices = @transform_2, window_bounds = array<i64: 1, 128>}, {pipeline_mode = #tpu.pipeline_mode<synchronous>, transform_indices = @transform_3, window_bounds = array<i64: 16, 128>}, {transform_indices = @transform_4, window_bounds = array<i64: 128, 128>}]} {
    %c0 = arith.constant 0 : index
    %c0_0 = arith.constant 0 : index
    %0 = vector.load %arg1[%c0, %c0_0] : memref<128x192xf32, #tpu.memory_space<vmem>>, vector<128x192xf32>
    %1 = arith.truncf %0 : vector<128x192xf32> to vector<128x192xbf16>
    %c0_1 = arith.constant 0 : index
    %c0_2 = arith.constant 0 : index
    %2 = vector.load %arg2[%c0_1, %c0_2] : memref<192x128xbf16, #tpu.memory_space<vmem>>, vector<192x128xbf16>
    %cst = arith.constant dense<0.000000e+00> : vector<128x128xf32>
    %3 = tpu.matmul %1, %2, %cst {dimension_numbers = #tpu.dot_dimension_numbers<[1], [0], [0], [1], [0, 0, 1, 1], [], []>} : vector<128x192xbf16>, vector<192x128xbf16>, vector<128x128xf32> -> vector<128x128xf32>
    %c0_3 = arith.constant 0 : index
    %c0_4 = arith.constant 0 : index
    %4 = vector.load %arg3[%c0_3, %c0_4] : memref<1x128xf32, #tpu.memory_space<vmem>>, vector<1x128xf32>
    %5 = vector.broadcast %4 : vector<1x128xf32> to vector<128x128xf32>
    %6 = arith.addf %3, %5 : vector<128x128xf32>
    %7 = vector.shape_cast %6 : vector<128x128xf32> to vector<8x16x128xf32>
    %c0_5 = arith.constant 0 : index
    %c0_6 = arith.constant 0 : index
    %8 = vector.load %arg4[%c0_5, %c0_6] : memref<16x128xf32, #tpu.memory_space<vmem>>, vector<16x128xf32>
    %9 = vector.shape_cast %8 : vector<16x128xf32> to vector<1x16x128xf32>
    %10 = vector.broadcast %9 : vector<1x16x128xf32> to vector<8x16x128xf32>
    %11 = arith.addf %7, %10 : vector<8x16x128xf32>
    %12 = vector.shape_cast %11 : vector<8x16x128xf32> to vector<128x128xf32>
    %c0_7 = arith.constant 0 : index
    %c0_8 = arith.constant 0 : index
    %13 = vector.load %arg5[%c0_7, %c0_8] : memref<128x128xf32, #tpu.memory_space<vmem>>, vector<128x128xf32>
    tpu.vector_store %arg5[%c0_7, %c0_8], %12 {strides = array<i32>} : memref<128x128xf32, #tpu.memory_space<vmem>>, vector<128x128xf32>,
    return
  }
  func.func @transform_0(%arg0: i32) -> (i32, i32) {
    %c0_i32 = arith.constant 0 : i32
    %c0_i32_0 = arith.constant 0 : i32
    return %arg0, %c0_i32 : i32, i32
  }
  func.func @transform_1(%arg0: i32) -> (i32, i32) {
    %c0_i32 = arith.constant 0 : i32
    %c0_i32_0 = arith.constant 0 : i32
    %c0_i32_1 = arith.constant 0 : i32
    return %c0_i32, %c0_i32_0 : i32, i32
  }
  func.func @transform_2(%arg0: i32) -> (i32, i32) {
    %c0_i32 = arith.constant 0 : i32
    %c0_i32_0 = arith.constant 0 : i32
    %c0_i32_1 = arith.constant 0 : i32
    return %c0_i32, %c0_i32_0 : i32, i32
  }
  func.func @transform_3(%arg0: i32) -> (i32, i32) {
    %c0_i32 = arith.constant 0 : i32
    %c0_i32_0 = arith.constant 0 : i32
    %c0_i32_1 = arith.constant 0 : i32
    return %c0_i32, %c0_i32_0 : i32, i32
  }
  func.func @transform_4(%arg0: i32) -> (i32, i32) {
    %c0_i32 = arith.constant 0 : i32
    %c0_i32_0 = arith.constant 0 : i32
    return %arg0, %c0_i32 : i32, i32
  }
}

module attributes {stable_mosaic.version = 11 : i64} {
  func.func @_block_kernel(%arg0: i32, %arg1: i32, %arg2: memref<128x128xf32, #tpu.memory_space<vmem>>, %arg3: memref<1x1x128xf32, #tpu.memory_space<vmem>>, %arg4: memref<1x1x128xf32, #tpu.memory_space<vmem>>, %arg5: memref<1x128x384xbf16, #tpu.memory_space<vmem>>, %arg6: memref<1x1x384xf32, #tpu.memory_space<vmem>>, %arg7: memref<1x128x128xbf16, #tpu.memory_space<vmem>>, %arg8: memref<1x1x128xf32, #tpu.memory_space<vmem>>, %arg9: memref<1x1x128xf32, #tpu.memory_space<vmem>>, %arg10: memref<1x1x128xf32, #tpu.memory_space<vmem>>, %arg11: memref<1x128x512xbf16, #tpu.memory_space<vmem>>, %arg12: memref<1x1x512xf32, #tpu.memory_space<vmem>>, %arg13: memref<1x512x128xbf16, #tpu.memory_space<vmem>>, %arg14: memref<1x1x128xf32, #tpu.memory_space<vmem>>, %arg15: memref<128x128xf32, #tpu.memory_space<vmem>>, %arg16: memref<128x128xf32, #tpu.memory_space<vmem>>, %arg17: memref<128x128xf32, #tpu.memory_space<vmem>>) attributes {dimension_semantics = [#tpu.dimension_semantics<parallel>, #tpu.dimension_semantics<arbitrary>], iteration_bounds = array<i64: 2, 2>, scalar_prefetch = 0 : i64, scratch_operands = 2 : i64, tpu.core_type = #tpu.core_type<tc>, window_params = [{transform_indices = @transform_0, window_bounds = array<i64: 128, 128>}, {transform_indices = @transform_1, window_bounds = array<i64: 1, 1, 128>}, {transform_indices = @transform_2, window_bounds = array<i64: 1, 1, 128>}, {transform_indices = @transform_3, window_bounds = array<i64: 1, 128, 384>}, {transform_indices = @transform_4, window_bounds = array<i64: 1, 1, 384>}, {transform_indices = @transform_5, window_bounds = array<i64: 1, 128, 128>}, {transform_indices = @transform_6, window_bounds = array<i64: 1, 1, 128>}, {transform_indices = @transform_7, window_bounds = array<i64: 1, 1, 128>}, {transform_indices = @transform_8, window_bounds = array<i64: 1, 1, 128>}, {transform_indices = @transform_9, window_bounds = array<i64: 1, 128, 512>}, {transform_indices = @transform_10, window_bounds = array<i64: 1, 1, 512>}, {transform_indices = @transform_11, window_bounds = array<i64: 1, 512, 128>}, {transform_indices = @transform_12, window_bounds = array<i64: 1, 1, 128>}, {transform_indices = @transform_13, window_bounds = array<i64: 128, 128>}]} {
    %c0_i32 = arith.constant 0 : i32
    %0 = arith.cmpi eq, %arg1, %c0_i32 : i32
    %1 = arith.extui %0 : i1 to i32
    %c0_i32_0 = arith.constant 0 : i32
    %2 = arith.cmpi ne, %1, %c0_i32_0 : i32
    scf.if %2 {
      %c0_80 = arith.constant 0 : index
      %c0_81 = arith.constant 0 : index
      %184 = vector.load %arg2[%c0_80, %c0_81] : memref<128x128xf32, #tpu.memory_space<vmem>>, vector<128x128xf32>
      %c0_82 = arith.constant 0 : index
      %c0_83 = arith.constant 0 : index
      %185 = vector.load %arg16[%c0_82, %c0_83] : memref<128x128xf32, #tpu.memory_space<vmem>>, vector<128x128xf32>
      tpu.vector_store %arg16[%c0_82, %c0_83], %184 {strides = array<i32>} : memref<128x128xf32, #tpu.memory_space<vmem>>, vector<128x128xf32>,
    } else {
    }
    %c0 = arith.constant 0 : index
    %c0_1 = arith.constant 0 : index
    %3 = vector.load %arg16[%c0, %c0_1] : memref<128x128xf32, #tpu.memory_space<vmem>>, vector<128x128xf32>
    %c0_2 = arith.constant 0 : index
    %c0_3 = arith.constant 0 : index
    %c0_4 = arith.constant 0 : index
    %4 = vector.load %arg3[%c0_2, %c0_3, %c0_4] : memref<1x1x128xf32, #tpu.memory_space<vmem>>, vector<1x1x128xf32>
    %5 = vector.shape_cast %4 : vector<1x1x128xf32> to vector<1x128xf32>
    %c0_5 = arith.constant 0 : index
    %c0_6 = arith.constant 0 : index
    %c0_7 = arith.constant 0 : index
    %6 = vector.load %arg4[%c0_5, %c0_6, %c0_7] : memref<1x1x128xf32, #tpu.memory_space<vmem>>, vector<1x1x128xf32>
    %7 = vector.shape_cast %6 : vector<1x1x128xf32> to vector<1x128xf32>
    %cst = arith.constant dense<0.000000e+00> : vector<128xf32>
    %8 = vector.multi_reduction <add>, %3, %cst [1] : vector<128x128xf32> to vector<128xf32>
    %9 = vector.shape_cast %8 : vector<128xf32> to vector<128x1xf32>
    %cst_8 = arith.constant 1.280000e+02 : f32
    %10 = vector.broadcast %cst_8 : f32 to vector<128x1xf32>
    %11 = arith.divf %9, %10 : vector<128x1xf32>
    %12 = vector.broadcast %11 : vector<128x1xf32> to vector<128x128xf32>
    %13 = arith.subf %3, %12 : vector<128x128xf32>
    %14 = arith.mulf %13, %13 : vector<128x128xf32>
    %cst_9 = arith.constant dense<0.000000e+00> : vector<128xf32>
    %15 = vector.multi_reduction <add>, %14, %cst_9 [1] : vector<128x128xf32> to vector<128xf32>
    %16 = vector.shape_cast %15 : vector<128xf32> to vector<128x1xf32>
    %cst_10 = arith.constant 1.280000e+02 : f32
    %17 = vector.broadcast %cst_10 : f32 to vector<128x1xf32>
    %18 = arith.divf %16, %17 : vector<128x1xf32>
    %cst_11 = arith.constant 9.99999974E-6 : f32
    %19 = vector.broadcast %cst_11 : f32 to vector<128x1xf32>
    %20 = arith.addf %18, %19 : vector<128x1xf32>
    %21 = math.rsqrt %20 : vector<128x1xf32>
    %22 = vector.broadcast %21 : vector<128x1xf32> to vector<128x128xf32>
    %23 = arith.mulf %13, %22 : vector<128x128xf32>
    %24 = vector.broadcast %5 : vector<1x128xf32> to vector<128x128xf32>
    %25 = arith.mulf %23, %24 : vector<128x128xf32>
    %26 = vector.broadcast %7 : vector<1x128xf32> to vector<128x128xf32>
    %27 = arith.addf %25, %26 : vector<128x128xf32>
    %28 = arith.truncf %27 : vector<128x128xf32> to vector<128x128xbf16>
    %c0_12 = arith.constant 0 : index
    %c0_13 = arith.constant 0 : index
    %c0_14 = arith.constant 0 : index
    %29 = vector.load %arg5[%c0_12, %c0_13, %c0_14] : memref<1x128x384xbf16, #tpu.memory_space<vmem>>, vector<1x128x384xbf16>
    %30 = vector.shape_cast %29 : vector<1x128x384xbf16> to vector<128x384xbf16>
    %cst_15 = arith.constant dense<0.000000e+00> : vector<128x384xf32>
    %31 = tpu.matmul %28, %30, %cst_15 {dimension_numbers = #tpu.dot_dimension_numbers<[1], [0], [0], [1], [0, 0, 1, 1], [], []>} : vector<128x128xbf16>, vector<128x384xbf16>, vector<128x384xf32> -> vector<128x384xf32>
    %c0_16 = arith.constant 0 : index
    %c0_17 = arith.constant 0 : index
    %c0_18 = arith.constant 0 : index
    %32 = vector.load %arg6[%c0_16, %c0_17, %c0_18] : memref<1x1x384xf32, #tpu.memory_space<vmem>>, vector<1x1x384xf32>
    %33 = vector.shape_cast %32 : vector<1x1x384xf32> to vector<1x384xf32>
    %34 = vector.broadcast %33 : vector<1x384xf32> to vector<128x384xf32>
    %35 = arith.addf %31, %34 : vector<128x384xf32>
    %36 = vector.shape_cast %35 : vector<128x384xf32> to vector<8x16x384xf32>
    %37 = vector.extract_strided_slice %36 {offsets = [0, 0, 0], sizes = [8, 16, 32], strides = [1, 1, 1]} : vector<8x16x384xf32> to vector<8x16x32xf32>
    %38 = arith.truncf %37 : vector<8x16x32xf32> to vector<8x16x32xbf16>
    %39 = vector.extract_strided_slice %36 {offsets = [0, 0, 128], sizes = [8, 16, 32], strides = [1, 1, 1]} : vector<8x16x384xf32> to vector<8x16x32xf32>
    %40 = arith.truncf %39 : vector<8x16x32xf32> to vector<8x16x32xbf16>
    %41 = vector.extract_strided_slice %36 {offsets = [0, 0, 256], sizes = [8, 16, 32], strides = [1, 1, 1]} : vector<8x16x384xf32> to vector<8x16x32xf32>
    %42 = arith.truncf %41 : vector<8x16x32xf32> to vector<8x16x32xbf16>
    "tpu.trace_start"() <{level = 10 : i32, message = "bqd,bkd->bqk"}> : () -> ()
    %cst_19 = arith.constant dense<0.000000e+00> : vector<8x16x16xf32>
    %43 = tpu.matmul %38, %40, %cst_19 {dimension_numbers = #tpu.dot_dimension_numbers<[2], [2], [1], [1], [0, 0, 0, 1, 1, 1], [0], [0]>} : vector<8x16x32xbf16>, vector<8x16x32xbf16>, vector<8x16x16xf32> -> vector<8x16x16xf32>
    "tpu.trace_stop"() : () -> ()
    %cst_20 = arith.constant dense<0xFF800000> : vector<8x16xf32>
    %44 = vector.multi_reduction <maximumf>, %43, %cst_20 [2] : vector<8x16x16xf32> to vector<8x16xf32>
    %45 = vector.shape_cast %44 : vector<8x16xf32> to vector<8x16x1xf32>
    %46 = vector.broadcast %45 : vector<8x16x1xf32> to vector<8x16x16xf32>
    %47 = arith.subf %43, %46 : vector<8x16x16xf32>
    %48 = math.exp %47 : vector<8x16x16xf32>
    %cst_21 = arith.constant dense<0.000000e+00> : vector<8x16xf32>
    %49 = vector.multi_reduction <add>, %48, %cst_21 [2] : vector<8x16x16xf32> to vector<8x16xf32>
    %50 = vector.shape_cast %49 : vector<8x16xf32> to vector<8x16x1xf32>
    %51 = arith.truncf %48 : vector<8x16x16xf32> to vector<8x16x16xbf16>
    "tpu.trace_start"() <{level = 10 : i32, message = "bqk,bkd->bqd"}> : () -> ()
    %cst_22 = arith.constant dense<0.000000e+00> : vector<8x16x32xf32>
    %52 = tpu.matmul %51, %42, %cst_22 {dimension_numbers = #tpu.dot_dimension_numbers<[2], [1], [1], [2], [0, 0, 0, 1, 1, 2], [0], [0]>} : vector<8x16x16xbf16>, vector<8x16x32xbf16>, vector<8x16x32xf32> -> vector<8x16x32xf32>
    "tpu.trace_stop"() : () -> ()
    %53 = tpu.reciprocal %50 {approx = true} : vector<8x16x1xf32> -> vector<8x16x1xf32>
    %54 = vector.broadcast %53 : vector<8x16x1xf32> to vector<8x16x32xf32>
    %55 = arith.mulf %52, %54 : vector<8x16x32xf32>
    %56 = vector.shape_cast %55 : vector<8x16x32xf32> to vector<128x32xf32>
    %c0_23 = arith.constant 0 : index
    %c0_24 = arith.constant 0 : index
    %57 = vector.load %arg17[%c0_23, %c0_24] : memref<128x128xf32, #tpu.memory_space<vmem>>, vector<128x32xf32>
    tpu.vector_store %arg17[%c0_23, %c0_24], %56 {strides = array<i32>} : memref<128x128xf32, #tpu.memory_space<vmem>>, vector<128x32xf32>,
    %58 = vector.extract_strided_slice %36 {offsets = [0, 0, 32], sizes = [8, 16, 32], strides = [1, 1, 1]} : vector<8x16x384xf32> to vector<8x16x32xf32>
    %59 = arith.truncf %58 : vector<8x16x32xf32> to vector<8x16x32xbf16>
    %60 = vector.extract_strided_slice %36 {offsets = [0, 0, 160], sizes = [8, 16, 32], strides = [1, 1, 1]} : vector<8x16x384xf32> to vector<8x16x32xf32>
    %61 = arith.truncf %60 : vector<8x16x32xf32> to vector<8x16x32xbf16>
    %62 = vector.extract_strided_slice %36 {offsets = [0, 0, 288], sizes = [8, 16, 32], strides = [1, 1, 1]} : vector<8x16x384xf32> to vector<8x16x32xf32>
    %63 = arith.truncf %62 : vector<8x16x32xf32> to vector<8x16x32xbf16>
    "tpu.trace_start"() <{level = 10 : i32, message = "bqd,bkd->bqk"}> : () -> ()
    %cst_25 = arith.constant dense<0.000000e+00> : vector<8x16x16xf32>
    %64 = tpu.matmul %59, %61, %cst_25 {dimension_numbers = #tpu.dot_dimension_numbers<[2], [2], [1], [1], [0, 0, 0, 1, 1, 1], [0], [0]>} : vector<8x16x32xbf16>, vector<8x16x32xbf16>, vector<8x16x16xf32> -> vector<8x16x16xf32>
    "tpu.trace_stop"() : () -> ()
    %cst_26 = arith.constant dense<0xFF800000> : vector<8x16xf32>
    %65 = vector.multi_reduction <maximumf>, %64, %cst_26 [2] : vector<8x16x16xf32> to vector<8x16xf32>
    %66 = vector.shape_cast %65 : vector<8x16xf32> to vector<8x16x1xf32>
    %67 = vector.broadcast %66 : vector<8x16x1xf32> to vector<8x16x16xf32>
    %68 = arith.subf %64, %67 : vector<8x16x16xf32>
    %69 = math.exp %68 : vector<8x16x16xf32>
    %cst_27 = arith.constant dense<0.000000e+00> : vector<8x16xf32>
    %70 = vector.multi_reduction <add>, %69, %cst_27 [2] : vector<8x16x16xf32> to vector<8x16xf32>
    %71 = vector.shape_cast %70 : vector<8x16xf32> to vector<8x16x1xf32>
    %72 = arith.truncf %69 : vector<8x16x16xf32> to vector<8x16x16xbf16>
    "tpu.trace_start"() <{level = 10 : i32, message = "bqk,bkd->bqd"}> : () -> ()
    %cst_28 = arith.constant dense<0.000000e+00> : vector<8x16x32xf32>
    %73 = tpu.matmul %72, %63, %cst_28 {dimension_numbers = #tpu.dot_dimension_numbers<[2], [1], [1], [2], [0, 0, 0, 1, 1, 2], [0], [0]>} : vector<8x16x16xbf16>, vector<8x16x32xbf16>, vector<8x16x32xf32> -> vector<8x16x32xf32>
    "tpu.trace_stop"() : () -> ()
    %74 = tpu.reciprocal %71 {approx = true} : vector<8x16x1xf32> -> vector<8x16x1xf32>
    %75 = vector.broadcast %74 : vector<8x16x1xf32> to vector<8x16x32xf32>
    %76 = arith.mulf %73, %75 : vector<8x16x32xf32>
    %77 = vector.shape_cast %76 : vector<8x16x32xf32> to vector<128x32xf32>
    %c0_29 = arith.constant 0 : index
    %c32 = arith.constant 32 : index
    %78 = vector.load %arg17[%c0_29, %c32] : memref<128x128xf32, #tpu.memory_space<vmem>>, vector<128x32xf32>
    tpu.vector_store %arg17[%c0_29, %c32], %77 {strides = array<i32>} : memref<128x128xf32, #tpu.memory_space<vmem>>, vector<128x32xf32>,
    %79 = vector.extract_strided_slice %36 {offsets = [0, 0, 64], sizes = [8, 16, 32], strides = [1, 1, 1]} : vector<8x16x384xf32> to vector<8x16x32xf32>
    %80 = arith.truncf %79 : vector<8x16x32xf32> to vector<8x16x32xbf16>
    %81 = vector.extract_strided_slice %36 {offsets = [0, 0, 192], sizes = [8, 16, 32], strides = [1, 1, 1]} : vector<8x16x384xf32> to vector<8x16x32xf32>
    %82 = arith.truncf %81 : vector<8x16x32xf32> to vector<8x16x32xbf16>
    %83 = vector.extract_strided_slice %36 {offsets = [0, 0, 320], sizes = [8, 16, 32], strides = [1, 1, 1]} : vector<8x16x384xf32> to vector<8x16x32xf32>
    %84 = arith.truncf %83 : vector<8x16x32xf32> to vector<8x16x32xbf16>
    "tpu.trace_start"() <{level = 10 : i32, message = "bqd,bkd->bqk"}> : () -> ()
    %cst_30 = arith.constant dense<0.000000e+00> : vector<8x16x16xf32>
    %85 = tpu.matmul %80, %82, %cst_30 {dimension_numbers = #tpu.dot_dimension_numbers<[2], [2], [1], [1], [0, 0, 0, 1, 1, 1], [0], [0]>} : vector<8x16x32xbf16>, vector<8x16x32xbf16>, vector<8x16x16xf32> -> vector<8x16x16xf32>
    "tpu.trace_stop"() : () -> ()
    %cst_31 = arith.constant dense<0xFF800000> : vector<8x16xf32>
    %86 = vector.multi_reduction <maximumf>, %85, %cst_31 [2] : vector<8x16x16xf32> to vector<8x16xf32>
    %87 = vector.shape_cast %86 : vector<8x16xf32> to vector<8x16x1xf32>
    %88 = vector.broadcast %87 : vector<8x16x1xf32> to vector<8x16x16xf32>
    %89 = arith.subf %85, %88 : vector<8x16x16xf32>
    %90 = math.exp %89 : vector<8x16x16xf32>
    %cst_32 = arith.constant dense<0.000000e+00> : vector<8x16xf32>
    %91 = vector.multi_reduction <add>, %90, %cst_32 [2] : vector<8x16x16xf32> to vector<8x16xf32>
    %92 = vector.shape_cast %91 : vector<8x16xf32> to vector<8x16x1xf32>
    %93 = arith.truncf %90 : vector<8x16x16xf32> to vector<8x16x16xbf16>
    "tpu.trace_start"() <{level = 10 : i32, message = "bqk,bkd->bqd"}> : () -> ()
    %cst_33 = arith.constant dense<0.000000e+00> : vector<8x16x32xf32>
    %94 = tpu.matmul %93, %84, %cst_33 {dimension_numbers = #tpu.dot_dimension_numbers<[2], [1], [1], [2], [0, 0, 0, 1, 1, 2], [0], [0]>} : vector<8x16x16xbf16>, vector<8x16x32xbf16>, vector<8x16x32xf32> -> vector<8x16x32xf32>
    "tpu.trace_stop"() : () -> ()
    %95 = tpu.reciprocal %92 {approx = true} : vector<8x16x1xf32> -> vector<8x16x1xf32>
    %96 = vector.broadcast %95 : vector<8x16x1xf32> to vector<8x16x32xf32>
    %97 = arith.mulf %94, %96 : vector<8x16x32xf32>
    %98 = vector.shape_cast %97 : vector<8x16x32xf32> to vector<128x32xf32>
    %c0_34 = arith.constant 0 : index
    %c64 = arith.constant 64 : index
    %99 = vector.load %arg17[%c0_34, %c64] : memref<128x128xf32, #tpu.memory_space<vmem>>, vector<128x32xf32>
    tpu.vector_store %arg17[%c0_34, %c64], %98 {strides = array<i32>} : memref<128x128xf32, #tpu.memory_space<vmem>>, vector<128x32xf32>,
    %100 = vector.extract_strided_slice %36 {offsets = [0, 0, 96], sizes = [8, 16, 32], strides = [1, 1, 1]} : vector<8x16x384xf32> to vector<8x16x32xf32>
    %101 = arith.truncf %100 : vector<8x16x32xf32> to vector<8x16x32xbf16>
    %102 = vector.extract_strided_slice %36 {offsets = [0, 0, 224], sizes = [8, 16, 32], strides = [1, 1, 1]} : vector<8x16x384xf32> to vector<8x16x32xf32>
    %103 = arith.truncf %102 : vector<8x16x32xf32> to vector<8x16x32xbf16>
    %104 = vector.extract_strided_slice %36 {offsets = [0, 0, 352], sizes = [8, 16, 32], strides = [1, 1, 1]} : vector<8x16x384xf32> to vector<8x16x32xf32>
    %105 = arith.truncf %104 : vector<8x16x32xf32> to vector<8x16x32xbf16>
    "tpu.trace_start"() <{level = 10 : i32, message = "bqd,bkd->bqk"}> : () -> ()
    %cst_35 = arith.constant dense<0.000000e+00> : vector<8x16x16xf32>
    %106 = tpu.matmul %101, %103, %cst_35 {dimension_numbers = #tpu.dot_dimension_numbers<[2], [2], [1], [1], [0, 0, 0, 1, 1, 1], [0], [0]>} : vector<8x16x32xbf16>, vector<8x16x32xbf16>, vector<8x16x16xf32> -> vector<8x16x16xf32>
    "tpu.trace_stop"() : () -> ()
    %cst_36 = arith.constant dense<0xFF800000> : vector<8x16xf32>
    %107 = vector.multi_reduction <maximumf>, %106, %cst_36 [2] : vector<8x16x16xf32> to vector<8x16xf32>
    %108 = vector.shape_cast %107 : vector<8x16xf32> to vector<8x16x1xf32>
    %109 = vector.broadcast %108 : vector<8x16x1xf32> to vector<8x16x16xf32>
    %110 = arith.subf %106, %109 : vector<8x16x16xf32>
    %111 = math.exp %110 : vector<8x16x16xf32>
    %cst_37 = arith.constant dense<0.000000e+00> : vector<8x16xf32>
    %112 = vector.multi_reduction <add>, %111, %cst_37 [2] : vector<8x16x16xf32> to vector<8x16xf32>
    %113 = vector.shape_cast %112 : vector<8x16xf32> to vector<8x16x1xf32>
    %114 = arith.truncf %111 : vector<8x16x16xf32> to vector<8x16x16xbf16>
    "tpu.trace_start"() <{level = 10 : i32, message = "bqk,bkd->bqd"}> : () -> ()
    %cst_38 = arith.constant dense<0.000000e+00> : vector<8x16x32xf32>
    %115 = tpu.matmul %114, %105, %cst_38 {dimension_numbers = #tpu.dot_dimension_numbers<[2], [1], [1], [2], [0, 0, 0, 1, 1, 2], [0], [0]>} : vector<8x16x16xbf16>, vector<8x16x32xbf16>, vector<8x16x32xf32> -> vector<8x16x32xf32>
    "tpu.trace_stop"() : () -> ()
    %116 = tpu.reciprocal %113 {approx = true} : vector<8x16x1xf32> -> vector<8x16x1xf32>
    %117 = vector.broadcast %116 : vector<8x16x1xf32> to vector<8x16x32xf32>
    %118 = arith.mulf %115, %117 : vector<8x16x32xf32>
    %119 = vector.shape_cast %118 : vector<8x16x32xf32> to vector<128x32xf32>
    %c0_39 = arith.constant 0 : index
    %c96 = arith.constant 96 : index
    %120 = vector.load %arg17[%c0_39, %c96] : memref<128x128xf32, #tpu.memory_space<vmem>>, vector<128x32xf32>
    tpu.vector_store %arg17[%c0_39, %c96], %119 {strides = array<i32>} : memref<128x128xf32, #tpu.memory_space<vmem>>, vector<128x32xf32>,
    %c0_40 = arith.constant 0 : index
    %c0_41 = arith.constant 0 : index
    %121 = vector.load %arg17[%c0_40, %c0_41] : memref<128x128xf32, #tpu.memory_space<vmem>>, vector<128x128xf32>
    %122 = arith.truncf %121 : vector<128x128xf32> to vector<128x128xbf16>
    %c0_42 = arith.constant 0 : index
    %c0_43 = arith.constant 0 : index
    %c0_44 = arith.constant 0 : index
    %123 = vector.load %arg7[%c0_42, %c0_43, %c0_44] : memref<1x128x128xbf16, #tpu.memory_space<vmem>>, vector<1x128x128xbf16>
    %124 = vector.shape_cast %123 : vector<1x128x128xbf16> to vector<128x128xbf16>
    %cst_45 = arith.constant dense<0.000000e+00> : vector<128x128xf32>
    %125 = tpu.matmul %122, %124, %cst_45 {dimension_numbers = #tpu.dot_dimension_numbers<[1], [0], [0], [1], [0, 0, 1, 1], [], []>} : vector<128x128xbf16>, vector<128x128xbf16>, vector<128x128xf32> -> vector<128x128xf32>
    %c0_46 = arith.constant 0 : index
    %c0_47 = arith.constant 0 : index
    %c0_48 = arith.constant 0 : index
    %126 = vector.load %arg8[%c0_46, %c0_47, %c0_48] : memref<1x1x128xf32, #tpu.memory_space<vmem>>, vector<1x1x128xf32>
    %127 = vector.shape_cast %126 : vector<1x1x128xf32> to vector<1x128xf32>
    %128 = vector.broadcast %127 : vector<1x128xf32> to vector<128x128xf32>
    %129 = arith.addf %125, %128 : vector<128x128xf32>
    %130 = arith.addf %3, %129 : vector<128x128xf32>
    %c0_49 = arith.constant 0 : index
    %c0_50 = arith.constant 0 : index
    %c0_51 = arith.constant 0 : index
    %131 = vector.load %arg9[%c0_49, %c0_50, %c0_51] : memref<1x1x128xf32, #tpu.memory_space<vmem>>, vector<1x1x128xf32>
    %132 = vector.shape_cast %131 : vector<1x1x128xf32> to vector<1x128xf32>
    %c0_52 = arith.constant 0 : index
    %c0_53 = arith.constant 0 : index
    %c0_54 = arith.constant 0 : index
    %133 = vector.load %arg10[%c0_52, %c0_53, %c0_54] : memref<1x1x128xf32, #tpu.memory_space<vmem>>, vector<1x1x128xf32>
    %134 = vector.shape_cast %133 : vector<1x1x128xf32> to vector<1x128xf32>
    %cst_55 = arith.constant dense<0.000000e+00> : vector<128xf32>
    %135 = vector.multi_reduction <add>, %130, %cst_55 [1] : vector<128x128xf32> to vector<128xf32>
    %136 = vector.shape_cast %135 : vector<128xf32> to vector<128x1xf32>
    %cst_56 = arith.constant 1.280000e+02 : f32
    %137 = vector.broadcast %cst_56 : f32 to vector<128x1xf32>
    %138 = arith.divf %136, %137 : vector<128x1xf32>
    %139 = vector.broadcast %138 : vector<128x1xf32> to vector<128x128xf32>
    %140 = arith.subf %130, %139 : vector<128x128xf32>
    %141 = arith.mulf %140, %140 : vector<128x128xf32>
    %cst_57 = arith.constant dense<0.000000e+00> : vector<128xf32>
    %142 = vector.multi_reduction <add>, %141, %cst_57 [1] : vector<128x128xf32> to vector<128xf32>
    %143 = vector.shape_cast %142 : vector<128xf32> to vector<128x1xf32>
    %cst_58 = arith.constant 1.280000e+02 : f32
    %144 = vector.broadcast %cst_58 : f32 to vector<128x1xf32>
    %145 = arith.divf %143, %144 : vector<128x1xf32>
    %cst_59 = arith.constant 9.99999974E-6 : f32
    %146 = vector.broadcast %cst_59 : f32 to vector<128x1xf32>
    %147 = arith.addf %145, %146 : vector<128x1xf32>
    %148 = math.rsqrt %147 : vector<128x1xf32>
    %149 = vector.broadcast %148 : vector<128x1xf32> to vector<128x128xf32>
    %150 = arith.mulf %140, %149 : vector<128x128xf32>
    %151 = vector.broadcast %132 : vector<1x128xf32> to vector<128x128xf32>
    %152 = arith.mulf %150, %151 : vector<128x128xf32>
    %153 = vector.broadcast %134 : vector<1x128xf32> to vector<128x128xf32>
    %154 = arith.addf %152, %153 : vector<128x128xf32>
    %155 = arith.truncf %154 : vector<128x128xf32> to vector<128x128xbf16>
    %c0_60 = arith.constant 0 : index
    %c0_61 = arith.constant 0 : index
    %c0_62 = arith.constant 0 : index
    %156 = vector.load %arg11[%c0_60, %c0_61, %c0_62] : memref<1x128x512xbf16, #tpu.memory_space<vmem>>, vector<1x128x512xbf16>
    %157 = vector.shape_cast %156 : vector<1x128x512xbf16> to vector<128x512xbf16>
    %cst_63 = arith.constant dense<0.000000e+00> : vector<128x512xf32>
    %158 = tpu.matmul %155, %157, %cst_63 {dimension_numbers = #tpu.dot_dimension_numbers<[1], [0], [0], [1], [0, 0, 1, 1], [], []>} : vector<128x128xbf16>, vector<128x512xbf16>, vector<128x512xf32> -> vector<128x512xf32>
    %c0_64 = arith.constant 0 : index
    %c0_65 = arith.constant 0 : index
    %c0_66 = arith.constant 0 : index
    %159 = vector.load %arg12[%c0_64, %c0_65, %c0_66] : memref<1x1x512xf32, #tpu.memory_space<vmem>>, vector<1x1x512xf32>
    %160 = vector.shape_cast %159 : vector<1x1x512xf32> to vector<1x512xf32>
    %161 = vector.broadcast %160 : vector<1x512xf32> to vector<128x512xf32>
    %162 = arith.addf %158, %161 : vector<128x512xf32>
    %cst_67 = arith.constant 5.000000e-01 : f32
    %163 = vector.broadcast %cst_67 : f32 to vector<128x512xf32>
    %164 = arith.mulf %163, %162 : vector<128x512xf32>
    %cst_68 = arith.constant 0.707106769 : f32
    %165 = vector.broadcast %cst_68 : f32 to vector<128x512xf32>
    %166 = arith.mulf %162, %165 : vector<128x512xf32>
    %167 = math.erf %166 : vector<128x512xf32>
    %cst_69 = arith.constant 1.000000e+00 : f32
    %168 = vector.broadcast %cst_69 : f32 to vector<128x512xf32>
    %169 = arith.addf %168, %167 : vector<128x512xf32>
    %170 = arith.mulf %164, %169 : vector<128x512xf32>
    %171 = arith.truncf %170 : vector<128x512xf32> to vector<128x512xbf16>
    %c0_70 = arith.constant 0 : index
    %c0_71 = arith.constant 0 : index
    %c0_72 = arith.constant 0 : index
    %172 = vector.load %arg13[%c0_70, %c0_71, %c0_72] : memref<1x512x128xbf16, #tpu.memory_space<vmem>>, vector<1x512x128xbf16>
    %173 = vector.shape_cast %172 : vector<1x512x128xbf16> to vector<512x128xbf16>
    %cst_73 = arith.constant dense<0.000000e+00> : vector<128x128xf32>
    %174 = tpu.matmul %171, %173, %cst_73 {dimension_numbers = #tpu.dot_dimension_numbers<[1], [0], [0], [1], [0, 0, 1, 1], [], []>} : vector<128x512xbf16>, vector<512x128xbf16>, vector<128x128xf32> -> vector<128x128xf32>
    %c0_74 = arith.constant 0 : index
    %c0_75 = arith.constant 0 : index
    %c0_76 = arith.constant 0 : index
    %175 = vector.load %arg14[%c0_74, %c0_75, %c0_76] : memref<1x1x128xf32, #tpu.memory_space<vmem>>, vector<1x1x128xf32>
    %176 = vector.shape_cast %175 : vector<1x1x128xf32> to vector<1x128xf32>
    %177 = vector.broadcast %176 : vector<1x128xf32> to vector<128x128xf32>
    %178 = arith.addf %174, %177 : vector<128x128xf32>
    %179 = arith.addf %130, %178 : vector<128x128xf32>
    %c0_77 = arith.constant 0 : index
    %c0_78 = arith.constant 0 : index
    %180 = vector.load %arg16[%c0_77, %c0_78] : memref<128x128xf32, #tpu.memory_space<vmem>>, vector<128x128xf32>
    tpu.vector_store %arg16[%c0_77, %c0_78], %179 {strides = array<i32>} : memref<128x128xf32, #tpu.memory_space<vmem>>, vector<128x128xf32>,
    %c1_i32 = arith.constant 1 : i32
    %181 = arith.cmpi eq, %arg1, %c1_i32 : i32
    %182 = arith.extui %181 : i1 to i32
    %c0_i32_79 = arith.constant 0 : i32
    %183 = arith.cmpi ne, %182, %c0_i32_79 : i32
    scf.if %183 {
      %c0_80 = arith.constant 0 : index
      %c0_81 = arith.constant 0 : index
      %184 = vector.load %arg15[%c0_80, %c0_81] : memref<128x128xf32, #tpu.memory_space<vmem>>, vector<128x128xf32>
      tpu.vector_store %arg15[%c0_80, %c0_81], %179 {strides = array<i32>} : memref<128x128xf32, #tpu.memory_space<vmem>>, vector<128x128xf32>,
    } else {
    }
    return
  }
  func.func @transform_0(%arg0: i32, %arg1: i32) -> (i32, i32) {
    %c0_i32 = arith.constant 0 : i32
    %c0_i32_0 = arith.constant 0 : i32
    return %arg0, %c0_i32 : i32, i32
  }
  func.func @transform_1(%arg0: i32, %arg1: i32) -> (i32, i32, i32) {
    %c0_i32 = arith.constant 0 : i32
    %c0_i32_0 = arith.constant 0 : i32
    %c0_i32_1 = arith.constant 0 : i32
    return %arg1, %c0_i32, %c0_i32_0 : i32, i32, i32
  }
  func.func @transform_2(%arg0: i32, %arg1: i32) -> (i32, i32, i32) {
    %c0_i32 = arith.constant 0 : i32
    %c0_i32_0 = arith.constant 0 : i32
    %c0_i32_1 = arith.constant 0 : i32
    return %arg1, %c0_i32, %c0_i32_0 : i32, i32, i32
  }
  func.func @transform_3(%arg0: i32, %arg1: i32) -> (i32, i32, i32) {
    %c0_i32 = arith.constant 0 : i32
    %c0_i32_0 = arith.constant 0 : i32
    %c0_i32_1 = arith.constant 0 : i32
    return %arg1, %c0_i32, %c0_i32_0 : i32, i32, i32
  }
  func.func @transform_4(%arg0: i32, %arg1: i32) -> (i32, i32, i32) {
    %c0_i32 = arith.constant 0 : i32
    %c0_i32_0 = arith.constant 0 : i32
    %c0_i32_1 = arith.constant 0 : i32
    return %arg1, %c0_i32, %c0_i32_0 : i32, i32, i32
  }
  func.func @transform_5(%arg0: i32, %arg1: i32) -> (i32, i32, i32) {
    %c0_i32 = arith.constant 0 : i32
    %c0_i32_0 = arith.constant 0 : i32
    %c0_i32_1 = arith.constant 0 : i32
    return %arg1, %c0_i32, %c0_i32_0 : i32, i32, i32
  }
  func.func @transform_6(%arg0: i32, %arg1: i32) -> (i32, i32, i32) {
    %c0_i32 = arith.constant 0 : i32
    %c0_i32_0 = arith.constant 0 : i32
    %c0_i32_1 = arith.constant 0 : i32
    return %arg1, %c0_i32, %c0_i32_0 : i32, i32, i32
  }
  func.func @transform_7(%arg0: i32, %arg1: i32) -> (i32, i32, i32) {
    %c0_i32 = arith.constant 0 : i32
    %c0_i32_0 = arith.constant 0 : i32
    %c0_i32_1 = arith.constant 0 : i32
    return %arg1, %c0_i32, %c0_i32_0 : i32, i32, i32
  }
  func.func @transform_8(%arg0: i32, %arg1: i32) -> (i32, i32, i32) {
    %c0_i32 = arith.constant 0 : i32
    %c0_i32_0 = arith.constant 0 : i32
    %c0_i32_1 = arith.constant 0 : i32
    return %arg1, %c0_i32, %c0_i32_0 : i32, i32, i32
  }
  func.func @transform_9(%arg0: i32, %arg1: i32) -> (i32, i32, i32) {
    %c0_i32 = arith.constant 0 : i32
    %c0_i32_0 = arith.constant 0 : i32
    %c0_i32_1 = arith.constant 0 : i32
    return %arg1, %c0_i32, %c0_i32_0 : i32, i32, i32
  }
  func.func @transform_10(%arg0: i32, %arg1: i32) -> (i32, i32, i32) {
    %c0_i32 = arith.constant 0 : i32
    %c0_i32_0 = arith.constant 0 : i32
    %c0_i32_1 = arith.constant 0 : i32
    return %arg1, %c0_i32, %c0_i32_0 : i32, i32, i32
  }
  func.func @transform_11(%arg0: i32, %arg1: i32) -> (i32, i32, i32) {
    %c0_i32 = arith.constant 0 : i32
    %c0_i32_0 = arith.constant 0 : i32
    %c0_i32_1 = arith.constant 0 : i32
    return %arg1, %c0_i32, %c0_i32_0 : i32, i32, i32
  }
  func.func @transform_12(%arg0: i32, %arg1: i32) -> (i32, i32, i32) {
    %c0_i32 = arith.constant 0 : i32
    %c0_i32_0 = arith.constant 0 : i32
    %c0_i32_1 = arith.constant 0 : i32
    return %arg1, %c0_i32, %c0_i32_0 : i32, i32, i32
  }
  func.func @transform_13(%arg0: i32, %arg1: i32) -> (i32, i32) {
    %c0_i32 = arith.constant 0 : i32
    %c0_i32_0 = arith.constant 0 : i32
    return %arg0, %c0_i32 : i32, i32
  }
}

module attributes {stable_mosaic.version = 11 : i64} {
  func.func @_head_kernel(%arg0: i32, %arg1: memref<128x128xf32, #tpu.memory_space<vmem>>, %arg2: memref<1x128xf32, #tpu.memory_space<vmem>>, %arg3: memref<1x128xf32, #tpu.memory_space<vmem>>, %arg4: memref<1x16xf32, #tpu.memory_space<vmem>>, %arg5: memref<1x1xf32, #tpu.memory_space<smem>>, %arg6: memref<128x128xbf16, #tpu.memory_space<vmem>>, %arg7: memref<1x128xf32, #tpu.memory_space<vmem>>, %arg8: memref<8x128xf32, #tpu.memory_space<vmem>>) attributes {dimension_semantics = [#tpu.dimension_semantics<parallel>], iteration_bounds = array<i64: 2>, scalar_prefetch = 0 : i64, scratch_operands = 0 : i64, tpu.core_type = #tpu.core_type<tc>, window_params = [{transform_indices = @transform_0, window_bounds = array<i64: 128, 128>}, {pipeline_mode = #tpu.pipeline_mode<synchronous>, transform_indices = @transform_1, window_bounds = array<i64: 1, 128>}, {pipeline_mode = #tpu.pipeline_mode<synchronous>, transform_indices = @transform_2, window_bounds = array<i64: 1, 128>}, {pipeline_mode = #tpu.pipeline_mode<synchronous>, transform_indices = @transform_3, window_bounds = array<i64: 1, 16>}, {transform_indices = @transform_4, window_bounds = array<i64: 1, 1>}, {pipeline_mode = #tpu.pipeline_mode<synchronous>, transform_indices = @transform_5, window_bounds = array<i64: 128, 128>}, {pipeline_mode = #tpu.pipeline_mode<synchronous>, transform_indices = @transform_6, window_bounds = array<i64: 1, 128>}, {transform_indices = @transform_7, window_bounds = array<i64: 8, 128>}]} {
    %c0 = arith.constant 0 : index
    %c0_0 = arith.constant 0 : index
    %0 = vector.load %arg1[%c0, %c0_0] : memref<128x128xf32, #tpu.memory_space<vmem>>, vector<128x128xf32>
    %c0_1 = arith.constant 0 : index
    %c0_2 = arith.constant 0 : index
    %1 = vector.load %arg2[%c0_1, %c0_2] : memref<1x128xf32, #tpu.memory_space<vmem>>, vector<1x128xf32>
    %c0_3 = arith.constant 0 : index
    %c0_4 = arith.constant 0 : index
    %2 = vector.load %arg3[%c0_3, %c0_4] : memref<1x128xf32, #tpu.memory_space<vmem>>, vector<1x128xf32>
    %cst = arith.constant dense<0.000000e+00> : vector<128xf32>
    %3 = vector.multi_reduction <add>, %0, %cst [1] : vector<128x128xf32> to vector<128xf32>
    %4 = vector.shape_cast %3 : vector<128xf32> to vector<128x1xf32>
    %cst_5 = arith.constant 1.280000e+02 : f32
    %5 = vector.broadcast %cst_5 : f32 to vector<128x1xf32>
    %6 = arith.divf %4, %5 : vector<128x1xf32>
    %7 = vector.broadcast %6 : vector<128x1xf32> to vector<128x128xf32>
    %8 = arith.subf %0, %7 : vector<128x128xf32>
    %9 = arith.mulf %8, %8 : vector<128x128xf32>
    %cst_6 = arith.constant dense<0.000000e+00> : vector<128xf32>
    %10 = vector.multi_reduction <add>, %9, %cst_6 [1] : vector<128x128xf32> to vector<128xf32>
    %11 = vector.shape_cast %10 : vector<128xf32> to vector<128x1xf32>
    %cst_7 = arith.constant 1.280000e+02 : f32
    %12 = vector.broadcast %cst_7 : f32 to vector<128x1xf32>
    %13 = arith.divf %11, %12 : vector<128x1xf32>
    %cst_8 = arith.constant 9.99999974E-6 : f32
    %14 = vector.broadcast %cst_8 : f32 to vector<128x1xf32>
    %15 = arith.addf %13, %14 : vector<128x1xf32>
    %16 = math.rsqrt %15 : vector<128x1xf32>
    %17 = vector.broadcast %16 : vector<128x1xf32> to vector<128x128xf32>
    %18 = arith.mulf %8, %17 : vector<128x128xf32>
    %19 = vector.broadcast %1 : vector<1x128xf32> to vector<128x128xf32>
    %20 = arith.mulf %18, %19 : vector<128x128xf32>
    %21 = vector.broadcast %2 : vector<1x128xf32> to vector<128x128xf32>
    %22 = arith.addf %20, %21 : vector<128x128xf32>
    %c0_9 = arith.constant 0 : index
    %c0_10 = arith.constant 0 : index
    %23 = vector.load %arg4[%c0_9, %c0_10] : memref<1x16xf32, #tpu.memory_space<vmem>>, vector<1x16xf32>
    %24 = vector.shape_cast %23 : vector<1x16xf32> to vector<1x16x1xf32>
    %25 = vector.shape_cast %22 : vector<128x128xf32> to vector<8x16x128xf32>
    %26 = vector.broadcast %24 : vector<1x16x1xf32> to vector<8x16x128xf32>
    %27 = arith.mulf %25, %26 : vector<8x16x128xf32>
    %cst_11 = arith.constant dense<0.000000e+00> : vector<8x128xf32>
    %28 = vector.multi_reduction <add>, %27, %cst_11 [1] : vector<8x16x128xf32> to vector<8x128xf32>
    %c0_12 = arith.constant 0 : index
    %c0_13 = arith.constant 0 : index
    %29 = memref.load %arg5[%c0_12, %c0_13] : memref<1x1xf32, #tpu.memory_space<smem>>
    %30 = vector.broadcast %29 : f32 to vector<8x128xf32>
    %31 = arith.addf %28, %30 : vector<8x128xf32>
    %32 = arith.truncf %31 : vector<8x128xf32> to vector<8x128xbf16>
    %c0_14 = arith.constant 0 : index
    %c0_15 = arith.constant 0 : index
    %33 = vector.load %arg6[%c0_14, %c0_15] : memref<128x128xbf16, #tpu.memory_space<vmem>>, vector<128x128xbf16>
    %cst_16 = arith.constant dense<0.000000e+00> : vector<8x128xf32>
    %34 = tpu.matmul %32, %33, %cst_16 {dimension_numbers = #tpu.dot_dimension_numbers<[1], [0], [0], [1], [0, 0, 1, 1], [], []>} : vector<8x128xbf16>, vector<128x128xbf16>, vector<8x128xf32> -> vector<8x128xf32>
    %c0_17 = arith.constant 0 : index
    %c0_18 = arith.constant 0 : index
    %35 = vector.load %arg7[%c0_17, %c0_18] : memref<1x128xf32, #tpu.memory_space<vmem>>, vector<1x128xf32>
    %36 = vector.broadcast %35 : vector<1x128xf32> to vector<8x128xf32>
    %37 = arith.addf %34, %36 : vector<8x128xf32>
    %c0_19 = arith.constant 0 : index
    %c0_20 = arith.constant 0 : index
    %38 = vector.load %arg8[%c0_19, %c0_20] : memref<8x128xf32, #tpu.memory_space<vmem>>, vector<8x128xf32>
    tpu.vector_store %arg8[%c0_19, %c0_20], %37 {strides = array<i32>} : memref<8x128xf32, #tpu.memory_space<vmem>>, vector<8x128xf32>,
    return
  }
  func.func @transform_0(%arg0: i32) -> (i32, i32) {
    %c0_i32 = arith.constant 0 : i32
    %c0_i32_0 = arith.constant 0 : i32
    return %arg0, %c0_i32 : i32, i32
  }
  func.func @transform_1(%arg0: i32) -> (i32, i32) {
    %c0_i32 = arith.constant 0 : i32
    %c0_i32_0 = arith.constant 0 : i32
    %c0_i32_1 = arith.constant 0 : i32
    return %c0_i32, %c0_i32_0 : i32, i32
  }
  func.func @transform_2(%arg0: i32) -> (i32, i32) {
    %c0_i32 = arith.constant 0 : i32
    %c0_i32_0 = arith.constant 0 : i32
    %c0_i32_1 = arith.constant 0 : i32
    return %c0_i32, %c0_i32_0 : i32, i32
  }
  func.func @transform_3(%arg0: i32) -> (i32, i32) {
    %c0_i32 = arith.constant 0 : i32
    %c0_i32_0 = arith.constant 0 : i32
    %c0_i32_1 = arith.constant 0 : i32
    return %c0_i32, %c0_i32_0 : i32, i32
  }
  func.func @transform_4(%arg0: i32) -> (i32, i32) {
    %c0_i32 = arith.constant 0 : i32
    %c0_i32_0 = arith.constant 0 : i32
    %c0_i32_1 = arith.constant 0 : i32
    return %c0_i32, %c0_i32_0 : i32, i32
  }
  func.func @transform_5(%arg0: i32) -> (i32, i32) {
    %c0_i32 = arith.constant 0 : i32
    %c0_i32_0 = arith.constant 0 : i32
    %c0_i32_1 = arith.constant 0 : i32
    return %c0_i32, %c0_i32_0 : i32, i32
  }
  func.func @transform_6(%arg0: i32) -> (i32, i32) {
    %c0_i32 = arith.constant 0 : i32
    %c0_i32_0 = arith.constant 0 : i32
    %c0_i32_1 = arith.constant 0 : i32
    return %c0_i32, %c0_i32_0 : i32, i32
  }
  func.func @transform_7(%arg0: i32) -> (i32, i32) {
    %c0_i32 = arith.constant 0 : i32
    %c0_i32_0 = arith.constant 0 : i32
    return %arg0, %c0_i32 : i32, i32
  }
}

</mosaic_0001>

<bundles_post_ra>
// kernel: styleformer_forward.3
= control target key start
LH: loop header
LB: loop body
LE: loop exit
PB: predicated region body
PF: predicated region fallthrough
CT: control target
= control target key end

     0   :  { %9 = vsyncpa [#allocation3], 0  ;;  %s1067_s0 = inlined_call_operand.vmem [shape: f32[256,192], index: 0, kind: input, shape index: {}]   ;;  %s1068_s1 = inlined_call_operand.vmem [shape: bf16[192,128], index: 1, kind: input, shape index: {}]   ;;  %s1069_s2 = inlined_call_operand.vmem [shape: f32[1,128], index: 2, kind: input, shape index: {}]   ;;  %s1070_s3 = inlined_call_operand.vmem [shape: f32[16,128], index: 3, kind: input, shape index: {}]   ;;  %s1071_s4 = inlined_call_operand.hbm [shape: f32[256,128], index: 4, kind: output, shape index: {}]  }
   0x1   :  { %11 = vsyncpa [#allocation3 + $0x1], 0  ;;  %s793_s15 = smov 0   ;;  %s795_s16 = smov 0  }
   0x2   :  { %s797_s17 = smov 0   ;;  %s799_s18 = smov 0  }
   0x3 LB: > { %s814_s19 = sadd.s32 4294967295, %s762_s18   ;;  %s586_s20 = sadd.s32 4294967294, %s762_s18   ;;  %s762_s18 = sphi %s799_s18, %s1077_s18   ;;  %s758_s17 = sphi %s797_s17, %s1076_s17   ;;  %s754_s16 = sphi %s795_s16, %s1075_s16   ;;  %s750_s15 = sphi %s793_s15, %s1074_s15  }
   0x4   : > { %s818_s21 = sadd.s32 1, %s762_s18   ;;  %s113_s22 = sadd.s32 1, %s758_s17 }
   0x5   : > { %s110_s23 = ssub.s32 %s762_s18, %s818_s21  ;;  %p123_p0 = scmp.ne.s32.totalorder %s758_s17, %s754_s16 }
   0x6   : > { %p111_p1 = scmp.eq.s32.totalorder %s110_s23, 0  ;;  %p124_p2 = scmp.eq.s32.totalorder %s814_s19, 1 }
   0x7   : > { %p129_p3 = scmp.ne.s32.totalorder %s754_s16, %s750_s15  ;;  %p130_p4 = scmp.eq.s32.totalorder %s586_s20, 1 }
   0x8   : > { %s829_s24 = scalar_select %p111_p1, %s758_s17, %s113_s22  }
   0x9   : > { %p831_p5 = por %p124_p2, %p123_p0  ;;  %p835_p6 = por %p130_p4, %p129_p3 }
   0xa   : > { %p589_p7 = scmp.ge.s32.totalorder %s762_s18, 1  ;;  %p167_p8 = scmp.lt.s32.totalorder %s762_s18, 3 }
   0xc   : > { %p168_p9 = pnand %p589_p7, %p167_p8 }
   0xd   : > { %v688_v0 = vld [vmem:[%s1068_s1] sm:$0xff] (!%p168_p9)   ;;  %v764_v1 = vmov (!%p168_p9), 0   ;;  %s591_s29 = sshll.u32 (!%p168_p9), %s814_s19, 4  ;;  %v689_v2 = vld [vmem:[%s1068_s1 + $0x8] sm:$0xff] (!%p168_p9)   ;;  %v690_v3 = vld [vmem:[%s1068_s1 + $0x10] sm:$0xff] (!%p168_p9)   ;;  %vm354_vm0 = vcmask (!%p168_p9), 523264  }
   0xe   : > { %171 = sbr.rel (%p168_p9) target bundleno = 319 (0x13f), region = 36  ;;  %379 = vmatprep.subr.bf16.mxu0 (!%p168_p9), %v764_v1  ;;  %622 = vmatprep.subr.bf16.mxu1 (!%p168_p9), %v764_v1  ;;  %p195_p10 = scmp.lt.s32.totalorder (!%p168_p9), %s591_s29, 31  ;;  %v691_v4 = vld [vmem:[%s1068_s1 + $0x18] sm:$0xff] (!%p168_p9)   ;;  %v692_v10 = vld [vmem:[%s1068_s1 + $0x20] sm:$0xff] (!%p168_p9)   ;;  %v693_v12 = vld [vmem:[%s1068_s1 + $0x28] sm:$0xff] (!%p168_p9)  }
   0xf   : > { %380 = vmatpush1.bf16.msra.mxu0 (!%p168_p9), %v688_v0  ;;  %634 = vmatpush1.bf16.msra.mxu1 (!%p168_p9), %v688_v0  ;;  %v694_v13 = vld [vmem:[%s1068_s1 + $0x30] sm:$0xff] (!%p168_p9)   ;;  %v695_v14 = vld [vmem:[%s1068_s1 + $0x38] sm:$0xff] (!%p168_p9)   ;;  %v696_v15 = vld [vmem:[%s1068_s1 + $0x40] sm:$0xff] (!%p168_p9)   ;;  %s191_s14 = sand.u32 (!%p168_p9), 1, %s754_s16   ;;  %s621_s5 = sshll.u32 (!%p168_p9), %s814_s19, 11 }
  0x10   : > { %381 = vmatprep.subr.bf16.mxu0 (!%p168_p9), %v764_v1  ;;  %623 = vmatprep.subr.bf16.mxu1 (!%p168_p9), %v764_v1  ;;  %v697_v16 = vld [vmem:[%s1068_s1 + $0x48] sm:$0xff] (!%p168_p9)   ;;  %v698_v17 = vld [vmem:[%s1068_s1 + $0x50] sm:$0xff] (!%p168_p9)   ;;  %v699_v18 = vld [vmem:[%s1068_s1 + $0x58] sm:$0xff] (!%p168_p9)   ;;  %s590_s23 = sshll.u32 (!%p168_p9), %s191_s14, 7  ;;  %s1014_s19 = scalar_lea.hbm (!%p168_p9), %s1071_s4, %s621_s5 }
  0x11   : > { %v951_v61 = vld [vmem:[%s1069_s2] ss:$0 sm:$0xff] (!%p168_p9)  ;;  %s971_s30 = scalar_lea.vmem (!%p168_p9), [#allocation2], %s590_s23  ;;  %s1026_s9 = scalar_lea.sflag (!%p168_p9), [#allocation3], %s191_s14 }
  0x12   : > { %v958_v63 = vld [vmem:[%s1070_s3] sm:$0xff] (!%p168_p9)  ;;  %s524_s6 = sshll.u32 (!%p168_p9), %s971_s30, 4  ;;  %s765_s12 = smov (!%p168_p9), [#allocation2]   ;;  %s1016_s6 = int_to_ptr.vmem [resolvable:$true] %s524_s6 }
  0x13   : > { %382 = vmatpush1.bf16.msra.mxu0 (!%p168_p9), %v689_v2  ;;  %635 = vmatpush1.bf16.msra.mxu1 (!%p168_p9), %v689_v2  ;;  %s700_s10 = scalar_lea.vmem (!%p168_p9), %s1016_s6, 2048  ;;  %s704_s13 = sshll.u32 (!%p168_p9), %s765_s12, 4  ;;  %s705_s13 = int_to_ptr.vmem [resolvable:$false] %s704_s13 }
  0x14   : > { %383 = vmatprep.subr.bf16.mxu0 (!%p168_p9), %v764_v1  ;;  %624 = vmatprep.subr.bf16.mxu1 (!%p168_p9), %v764_v1  ;;  %p701_p11 = scmp.ne.s32.totalorder (!%p168_p9), %s1016_s6, %s700_s10  ;;  %s706_s20 = scalar_lea.vmem (!%p168_p9), %s705_s13, 4096 }
  0x15   : > { %s1079_s29 = smov (!%p195_p10, %s591_s29), 31  ;;  %p707_p0 = scmp.lt.s32.totalorder %s1016_s6, %s705_s13 }
  0x16   : > { %s620_s8 = sshll.u32 %s1079_s29, 4  ;;  %p702_p12 = pnand %p701_p11, %p831_p5 }
  0x17   : > { %s860_s11 = scalar_lea.vmem %s1067_s0, %s620_s8  ;;  %384 = vmatpush1.bf16.msra.mxu0 %v690_v3  ;;  %636 = vmatpush1.bf16.msra.mxu1 %v690_v3  ;;  %p708_p1 = scmp.lt.s32.totalorder %s706_s20, %s700_s10 }
  0x18   : > { %385 = vmatprep.subr.bf16.mxu0 %v764_v1  ;;  %625 = vmatprep.subr.bf16.mxu1 %v764_v1  ;;  %v204_v5 = vld [vmem:[%s860_s11 + $0x8] sm:$0xff]  ;;  %v206_v6 = vld [vmem:[%s860_s11 + $0x18] sm:$0xff]  ;;  %v203_v19 = vld [vmem:[%s860_s11] sm:$0xff]  ;;  %p703_p13 = pneg %p702_p12 }
  0x19   : > { %v220_v7 = vld [vmem:[%s860_s11 + $0x88] sm:$0xff]  ;;  %v236_v8 = vpack.c.bf16 %v206_v6, %v204_v5  ;;  %v222_v9 = vld [vmem:[%s860_s11 + $0x98] sm:$0xff]  ;;  %v205_v20 = vld [vmem:[%s860_s11 + $0x10] sm:$0xff]  ;;  %p709_p2 = por %p708_p1, %p707_p0 }
  0x1a   : > { %v244_v11 = vpack.c.bf16 %v222_v9, %v220_v7  ;;  %v219_v21 = vld [vmem:[%s860_s11 + $0x80] sm:$0xff]  ;;  %v221_v22 = vld [vmem:[%s860_s11 + $0x90] sm:$0xff]  ;;  %v208_v23 = vld [vmem:[%s860_s11 + $0x28] sm:$0xff]  ;;  %v235_v27 = vpack.c.bf16 %v205_v20, %v203_v19 }
  0x1b   : > { %386 = vmatpush1.bf16.msra.mxu0 %v691_v4  ;;  %637 = vmatpush1.bf16.msra.mxu1 %v691_v4  ;;  %v210_v24 = vld [vmem:[%s860_s11 + $0x38] sm:$0xff]  ;;  %v224_v25 = vld [vmem:[%s860_s11 + $0xa8] sm:$0xff]  ;;  %v243_v28 = vpack.c.bf16 %v221_v22, %v219_v21  ;;  %v207_v31 = vld [vmem:[%s860_s11 + $0x20] sm:$0xff]  ;;  %p710_p3 = pnand %p709_p2, %p703_p13 }
  0x1c   : > { %387 = vmatprep.subr.bf16.mxu0 %v764_v1  ;;  %626 = vmatprep.subr.bf16.mxu1 %v764_v1  ;;  %v226_v26 = vld [vmem:[%s860_s11 + $0xb8] sm:$0xff]  ;;  %v238_v29 = vpack.c.bf16 %v210_v24, %v208_v23  ;;  %v209_v32 = vld [vmem:[%s860_s11 + $0x30] sm:$0xff]  ;;  %v223_v33 = vld [vmem:[%s860_s11 + $0xa0] sm:$0xff] }
  0x1d   : > { %607 = vmatprep.mubr.msk.bf16.mxu0 %vm354_vm0, %v236_v8  ;;  %611 = vmatprep.mubr.msk.bf16.mxu1 %vm354_vm0, %v244_v11  ;;  %v246_v30 = vpack.c.bf16 %v226_v26, %v224_v25  ;;  %v225_v34 = vld [vmem:[%s860_s11 + $0xb0] sm:$0xff]  ;;  %v212_v35 = vld [vmem:[%s860_s11 + $0x48] sm:$0xff]  ;;  %v214_v36 = vld [vmem:[%s860_s11 + $0x58] sm:$0xff]  ;;  %v237_v39 = vpack.c.bf16 %v209_v32, %v207_v31 }
  0x1e   : > { %v228_v37 = vld [vmem:[%s860_s11 + $0xc8] sm:$0xff]  ;;  %v230_v38 = vld [vmem:[%s860_s11 + $0xd8] sm:$0xff]  ;;  %v245_v40 = vpack.c.bf16 %v225_v34, %v223_v33  ;;  %v240_v41 = vpack.c.bf16 %v214_v36, %v212_v35  ;;  %v211_v43 = vld [vmem:[%s860_s11 + $0x40] sm:$0xff] }
  0x1f   : > { %388 = vmatpush1.bf16.msra.mxu0 %v692_v10  ;;  %638 = vmatpush1.bf16.msra.mxu1 %v692_v10  ;;  %v248_v42 = vpack.c.bf16 %v230_v38, %v228_v37  ;;  %v213_v44 = vld [vmem:[%s860_s11 + $0x50] sm:$0xff]  ;;  %v227_v45 = vld [vmem:[%s860_s11 + $0xc0] sm:$0xff]  ;;  %v216_v47 = vld [vmem:[%s860_s11 + $0x68] sm:$0xff] }
  0x20   : > { %389 = vmatprep.subr.bf16.mxu0 %v764_v1  ;;  %627 = vmatprep.subr.bf16.mxu1 %v764_v1  ;;  %v229_v46 = vld [vmem:[%s860_s11 + $0xd0] sm:$0xff]  ;;  %v218_v48 = vld [vmem:[%s860_s11 + $0x78] sm:$0xff]  ;;  %v232_v49 = vld [vmem:[%s860_s11 + $0xe8] sm:$0xff]  ;;  %v239_v51 = vpack.c.bf16 %v213_v44, %v211_v43 }
  0x21   : > { %v234_v50 = vld [vmem:[%s860_s11 + $0xf8] sm:$0xff]  ;;  %v247_v52 = vpack.c.bf16 %v229_v46, %v227_v45  ;;  %v242_v53 = vpack.c.bf16 %v218_v48, %v216_v47  ;;  %v215_v55 = vld [vmem:[%s860_s11 + $0x60] sm:$0xff]  ;;  %v217_v56 = vld [vmem:[%s860_s11 + $0x70] sm:$0xff] }
  0x22   : > { %v250_v54 = vpack.c.bf16 %v234_v50, %v232_v49  ;;  %v231_v57 = vld [vmem:[%s860_s11 + $0xe0] sm:$0xff]  ;;  %v233_v58 = vld [vmem:[%s860_s11 + $0xf0] sm:$0xff]  ;;  %v241_v59 = vpack.c.bf16 %v217_v56, %v215_v55  ;;  %v965_v6 = vld [vmem:[%s1070_s3 + $0x8] sm:$0xff] }
  0x23   : > { %390 = vmatpush1.bf16.msra.mxu0 %v693_v12  ;;  %639 = vmatpush1.bf16.msra.mxu1 %v693_v12  ;;  %v249_v60 = vpack.c.bf16 %v233_v58, %v231_v57 }
  0x24   : > { %391 = vmatprep.subr.bf16.mxu0 %v764_v1  ;;  %628 = vmatprep.subr.bf16.mxu1 %v764_v1 }
  0x27   : > { %392 = vmatpush1.bf16.msra.mxu0 %v694_v13  ;;  %640 = vmatpush1.bf16.msra.mxu1 %v694_v13 }
  0x28   : > { %393 = vmatprep.subr.bf16.mxu0 %v764_v1  ;;  %629 = vmatprep.subr.bf16.mxu1 %v764_v1 }
  0x2b   : > { %394 = vmatpush1.bf16.msra.mxu0 %v695_v14  ;;  %641 = vmatpush1.bf16.msra.mxu1 %v695_v14 }
  0x2c   : > { %395 = vmatprep.subr.bf16.mxu0 %v764_v1  ;;  %630 = vmatprep.subr.bf16.mxu1 %v764_v1 }
  0x2f   : > { %396 = vmatpush1.bf16.msra.mxu0 %v696_v15  ;;  %642 = vmatpush1.bf16.msra.mxu1 %v696_v15 }
  0x30   : > { %397 = vmatprep.subr.bf16.mxu0 %v764_v1  ;;  %631 = vmatprep.subr.bf16.mxu1 %v764_v1 }
  0x33   : > { %398 = vmatpush1.bf16.msra.mxu0 %v697_v16  ;;  %643 = vmatpush1.bf16.msra.mxu1 %v697_v16 }
  0x34   : > { %399 = vmatprep.subr.bf16.mxu0 %v764_v1  ;;  %632 = vmatprep.subr.bf16.mxu1 %v764_v1 }
  0x37   : > { %400 = vmatpush1.bf16.msra.mxu0 %v698_v17  ;;  %644 = vmatpush1.bf16.msra.mxu1 %v698_v17 }
  0x38   : > { %401 = vmatprep.subr.bf16.mxu0 %v764_v1  ;;  %633 = vmatprep.subr.bf16.mxu1 %v764_v1 }
  0x3b   : > { %402 = vmatpush1.bf16.msra.mxu0 %v699_v18  ;;  %645 = vmatpush1.bf16.msra.mxu1 %v699_v18 }
  0x3e   : > { %412 = vmatmul.mubr.bf16.vlgmr.msra.gmra.mrb[0].mxu0 %v235_v27  ;;  %444 = vmatmul.mubr.bf16.vlgmr.msra.gmra.mrb[0].mxu1 %v243_v28 }
  0x3f   : > { %608 = vmatprep.mubr.msk.bf16.mxu0 %vm354_vm0, %v238_v29  ;;  %612 = vmatprep.mubr.msk.bf16.mxu1 %vm354_vm0, %v246_v30 }
  0x46   : > { %420 = vmatmul.mubr.bf16.gmra.mrb[4].mxu0 %v237_v39  ;;  %452 = vmatmul.mubr.bf16.gmra.mrb[4].mxu1 %v245_v40 }
  0x47   : > { %609 = vmatprep.mubr.msk.bf16.mxu0 %vm354_vm0, %v240_v41  ;;  %613 = vmatprep.mubr.msk.bf16.mxu1 %vm354_vm0, %v248_v42 }
  0x4e   : > { %428 = vmatmul.mubr.bf16.gmra.mrb[8].mxu0 %v239_v51  ;;  %460 = vmatmul.mubr.bf16.gmra.mrb[8].mxu1 %v247_v52 }
  0x4f   : > { %610 = vmatprep.mubr.msk.bf16.mxu0 %vm354_vm0, %v242_v53  ;;  %614 = vmatprep.mubr.msk.bf16.mxu1 %vm354_vm0, %v250_v54 }
  0x56   : > { %436 = vmatmul.mubr.bf16.gmra.mrb[12].mxu0 %v241_v59  ;;  %468 = vmatmul.mubr.bf16.gmra.mrb[12].mxu1 %v249_v60 }
 0x111   : > { %v413_v62 = vpop.f32.mrb[0].mxu0  ;;  %v445_v0 = vpop.f32.mrb[0].mxu1 }
 0x112   : > { %v414_v1 = vadd.f32 %v951_v61, %v413_v62  ;;  %v446_v2 = vadd.f32 %v951_v61, %v445_v0  ;;  %v415_v3 = vpop.f32.mrb[1].mxu0  ;;  %v447_v4 = vpop.f32.mrb[1].mxu1 }
 0x113   : > { %v416_v5 = vpop.f32.mrb[2].mxu0  ;;  %v448_v7 = vpop.f32.mrb[2].mxu1 }
 0x114   : > { %v478_v8 = vadd.f32 %v958_v63, %v414_v1  ;;  %v486_v9 = vadd.f32 %v958_v63, %v446_v2  ;;  %v417_v10 = vadd.f32 %v951_v61, %v416_v5  ;;  %v449_v11 = vadd.f32 %v951_v61, %v448_v7  ;;  %v418_v12 = vpop.f32.mrb[3].mxu0  ;;  %v450_v13 = vpop.f32.mrb[3].mxu1 }
 0x116   : > { %494 = vst [vmem:[%s971_s30] sm:$0xff] %v478_v8  ;;  %502 = vst [vmem:[%s971_s30 + $0x40] sm:$0xff] %v486_v9  ;;  %v479_v14 = vadd.f32 %v965_v6, %v417_v10  ;;  %v487_v15 = vadd.f32 %v965_v6, %v449_v11 }
 0x118   : > { %495 = vst [vmem:[%s971_s30 + $0x8] sm:$0xff] %v479_v14  ;;  %503 = vst [vmem:[%s971_s30 + $0x48] sm:$0xff] %v487_v15 }
 0x119   : > { %v421_v16 = vpop.f32.mrb[4].mxu0  ;;  %v453_v17 = vpop.f32.mrb[4].mxu1 }
 0x11a   : > { %v422_v18 = vadd.f32 %v951_v61, %v421_v16  ;;  %v454_v19 = vadd.f32 %v951_v61, %v453_v17  ;;  %v423_v20 = vpop.f32.mrb[5].mxu0  ;;  %v455_v21 = vpop.f32.mrb[5].mxu1 }
 0x11b   : > { %v424_v22 = vpop.f32.mrb[6].mxu0  ;;  %v456_v23 = vpop.f32.mrb[6].mxu1 }
 0x11c   : > { %v480_v24 = vadd.f32 %v958_v63, %v422_v18  ;;  %v488_v25 = vadd.f32 %v958_v63, %v454_v19  ;;  %v425_v26 = vadd.f32 %v951_v61, %v424_v22  ;;  %v457_v27 = vadd.f32 %v951_v61, %v456_v23  ;;  %v426_v28 = vpop.f32.mrb[7].mxu0  ;;  %v458_v29 = vpop.f32.mrb[7].mxu1 }
 0x11e   : > { %496 = vst [vmem:[%s971_s30 + $0x10] sm:$0xff] %v480_v24  ;;  %504 = vst [vmem:[%s971_s30 + $0x50] sm:$0xff] %v488_v25  ;;  %v481_v30 = vadd.f32 %v965_v6, %v425_v26  ;;  %v489_v31 = vadd.f32 %v965_v6, %v457_v27 }
 0x120   : > { %497 = vst [vmem:[%s971_s30 + $0x18] sm:$0xff] %v481_v30  ;;  %505 = vst [vmem:[%s971_s30 + $0x58] sm:$0xff] %v489_v31 }
 0x121   : > { %v429_v32 = vpop.f32.mrb[8].mxu0  ;;  %v461_v33 = vpop.f32.mrb[8].mxu1 }
 0x122   : > { %v430_v34 = vadd.f32 %v951_v61, %v429_v32  ;;  %v462_v35 = vadd.f32 %v951_v61, %v461_v33  ;;  %v431_v36 = vpop.f32.mrb[9].mxu0  ;;  %v463_v37 = vpop.f32.mrb[9].mxu1 }
 0x123   : > { %v432_v38 = vpop.f32.mrb[10].mxu0  ;;  %v464_v39 = vpop.f32.mrb[10].mxu1 }
 0x124   : > { %v482_v40 = vadd.f32 %v958_v63, %v430_v34  ;;  %v490_v41 = vadd.f32 %v958_v63, %v462_v35  ;;  %v433_v42 = vadd.f32 %v951_v61, %v432_v38  ;;  %v465_v43 = vadd.f32 %v951_v61, %v464_v39  ;;  %v434_v44 = vpop.f32.mrb[11].mxu0  ;;  %v466_v45 = vpop.f32.mrb[11].mxu1 }
 0x126   : > { %498 = vst [vmem:[%s971_s30 + $0x20] sm:$0xff] %v482_v40  ;;  %506 = vst [vmem:[%s971_s30 + $0x60] sm:$0xff] %v490_v41  ;;  %v483_v46 = vadd.f32 %v965_v6, %v433_v42  ;;  %v491_v47 = vadd.f32 %v965_v6, %v465_v43 }
 0x128   : > { %499 = vst [vmem:[%s971_s30 + $0x28] sm:$0xff] %v483_v46  ;;  %507 = vst [vmem:[%s971_s30 + $0x68] sm:$0xff] %v491_v47 }
 0x129   : > { %v437_v48 = vpop.f32.mrb[12].mxu0  ;;  %v469_v49 = vpop.f32.mrb[12].mxu1 }
 0x12a   : > { %v438_v50 = vadd.f32 %v951_v61, %v437_v48  ;;  %v470_v51 = vadd.f32 %v951_v61, %v469_v49  ;;  %v439_v52 = vpop.f32.mrb[13].mxu0  ;;  %v471_v53 = vpop.f32.mrb[13].mxu1 }
 0x12b   : > { %v440_v54 = vpop.f32.mrb[14].mxu0  ;;  %v472_v55 = vpop.f32.mrb[14].mxu1 }
 0x12c   : > { %v484_v56 = vadd.f32 %v958_v63, %v438_v50  ;;  %v492_v57 = vadd.f32 %v958_v63, %v470_v51  ;;  %v441_v58 = vadd.f32 %v951_v61, %v440_v54  ;;  %v473_v59 = vadd.f32 %v951_v61, %v472_v55  ;;  %v442_v60 = vpop.f32.mrb[15].mxu0  ;;  %v474_v62 = vpop.f32.mrb[15].mxu1 }
 0x12e   : > { %500 = vst [vmem:[%s971_s30 + $0x30] sm:$0xff] %v484_v56  ;;  %508 = vst [vmem:[%s971_s30 + $0x70] sm:$0xff] %v492_v57  ;;  %v485_v63 = vadd.f32 %v965_v6, %v441_v58  ;;  %v493_v0 = vadd.f32 %v965_v6, %v473_v59 }
 0x130   : > { %501 = vst [vmem:[%s971_s30 + $0x38] sm:$0xff] %v485_v63  ;;  %509 = vst [vmem:[%s971_s30 + $0x78] sm:$0xff] %v493_v0 }
 0x131   : > { %713 = shalt.err (!%p710_p3)
}
 0x132   : > { %s714_s14 = scalar_lea.hbm %s1014_s19, 2048  ;;  %s718_s27 = scalar_lea.hbm %s1071_s4, 4096 }
 0x133   : > { %p715_p4 = scmp.ne.s32.totalorder %s1014_s19, %s714_s14  ;;  %p719_p9 = scmp.lt.u32.totalorder %s1014_s19, %s1071_s4 }
 0x134   : > { %p720_p10 = scmp.lt.u32.totalorder %s718_s27, %s714_s14  ;;  %p722_p12 = scmp.lt.u32.totalorder %s714_s14, %s1014_s19 }
 0x135   : > { %p716_p7 = pnand %p715_p4, %p831_p5 }
 0x136   : > { %p721_p11 = por %p720_p10, %p719_p9 }
 0x137   : > { %p717_p8 = pneg %p716_p7 }
 0x138   : > { %p723_p13 = por %p722_p12, %p721_p11 }
 0x13a   : > { %p724_p0 = pnand %p723_p13, %p717_p8 }
 0x13c   : > { %727 = shalt.err (!%p724_p0)
}
 0x13d   : > { %s766_s29 = smov 128   ;;  %s767_s30 = smov 8  }
 0x13e   : > { %646 = dma.vmem_to_hbm [thread:$0]  (%p831_p5), %s1016_s6, 2048, %s1014_s19, %s1026_s9, %s766_s29, %s766_s29, %s767_s30  }
 0x13f PF: > { %p652_p1 = scmp.ge.s32.totalorder %s762_s18, 2  ;;  %s539_s5 = sand.u32 1, %s750_s15  }
 0x140   : > { %s540_s7 = scalar_lea.sflag [#allocation3], %s539_s5 }
 0x141   : > { %p649_p2 = pnand %p652_p1, %p835_p6 }
 0x143   : > { %745 = dma.done.wait (!%p649_p2), %s540_s7, 2048  }
 0x144   : > { %747 = vsyncadd (!%p649_p2), %s540_s7, 4294965248  ;;  %p14_p3 = scmp.ge.s32.totalorder %s818_s21, 4   ;;  %s1074_s15 = smov %s754_s16 }
 0x145   : > { %s1075_s16 = smov %s758_s17  ;;  %s1076_s17 = smov %s829_s24 }
 0x146   : > { %s1077_s18 = smov %s818_s21  ;;  %16 = sbr.rel (!%p14_p3) target bundleno = 3 (0x3), region = 71 }
 0x14d   :  { %545 = vsyncpa [#allocation3], 1 }
 0x14e   :  { %547 = vsyncpa [#allocation3 + $0x1], 1 }

// kernel: styleformer_forward.5
= control target key start
LH: loop header
LB: loop body
LE: loop exit
PB: predicated region body
PF: predicated region fallthrough
CT: control target
= control target key end

     0   :  { %s1872_s0 = inlined_call_operand.hbm [shape: f32[256,128], index: 0, kind: input, shape index: {}]   ;;  %s1873_s1 = inlined_call_operand.hbm [shape: f32[1,128], index: 1, kind: input, shape index: {}]   ;;  %s1874_s2 = inlined_call_operand.hbm [shape: f32[1,128], index: 2, kind: input, shape index: {}]   ;;  %s1875_s3 = inlined_call_operand.hbm [shape: f32[1,16], index: 3, kind: input, shape index: {}]   ;;  %s1876_s4 = inlined_call_operand.<no memory space> [shape: f32[1,1], index: 4, kind: input, shape index: {}]   ;;  %s1877_s5 = inlined_call_operand.hbm [shape: bf16[128,128], index: 5, kind: input, shape index: {}]   ;;  %s1878_s6 = inlined_call_operand.hbm [shape: f32[1,128], index: 6, kind: input, shape index: {}]   ;;  %s1879_s7 = inlined_call_operand.vmem [shape: f32[16,128], index: 7, kind: output, shape index: {}]  }
   0x1   :  { %12 = sst [smem:[#allocation2]] %s1876_s4 }
   0x2   :  { %13 = vsyncpa [#allocation4], 0 }
   0x3   :  { %15 = vsyncpa [#allocation4 + $0x1], 0 }
   0x4   :  { %16 = vsyncpa [#allocation6], 0 }
   0x5   :  { %17 = vsyncpa [#allocation9], 0 }
   0x6   :  { %18 = vsyncpa [#allocation12], 0  ;;  %s1435_s26 = smov 0   ;;  %s1437_s27 = smov 0  }
   0x7   :  { %s1439_s28 = smov 0   ;;  %s1441_s29 = smov 0  }
   0x8 LB: > { %s1380_s4 = smov [#allocation5]   ;;  %s1456_s8 = sadd.s32 4294967295, %s1378_s29   ;;  %s1378_s29 = sphi %s1441_s29, %s1898_s29   ;;  %s1374_s28 = sphi %s1439_s28, %s1897_s28   ;;  %s1370_s27 = sphi %s1437_s27, %s1896_s27   ;;  %s1366_s26 = sphi %s1435_s26, %s1895_s26  }
   0x9   : > { %s220_s30 = sshll.u32 %s1380_s4, 4  ;;  %p964_p0 = scmp.ge.s32.totalorder %s1378_s29, 1  ;;  %s1461_s30 = int_to_ptr.vmem [resolvable:$true] %s220_s30 }
   0xa   : > { %p1880_p1 = scmp.eq.s32.totalorder %s1456_s8, 0  ;;  %p207_p2 = scmp.lt.s32.totalorder %s1378_s29, 3 }
   0xb   : > { %s1381_s10 = smov [#allocation8]   ;;  %s1382_s12 = smov [#allocation7]  }
   0xc   : > { %p1463_p3 = pnand %p964_p0, %p207_p2  ;;  %s242_s11 = sshll.u32 %s1381_s10, 4  ;;  %s1469_s11 = int_to_ptr.vmem [resolvable:$true] %s242_s11 }
   0xd   : > { %s231_s13 = sshll.u32 %s1382_s12, 4  ;;  %s1383_s15 = smov [#allocation10]   ;;  %s1477_s13 = int_to_ptr.vmem [resolvable:$true] %s231_s13 }
   0xe   : > { %s1882_s9 = scalar_select %p1463_p3, 1, 0 }
   0xf   : > { %p1048_p4 = pneg %p1463_p3  ;;  %s1479_s16 = sshll.u32 %s1383_s15, 4  ;;  %s256_s16 = int_to_ptr.vmem [resolvable:$true] %s1479_s16 }
  0x10   : > { %s1162_s19 = scalar_lea.hbm %s1873_s1, 16 }
  0x11   : > { %p1473_p5 = pnand %p1048_p4, %p1880_p1  ;;  %p1163_p6 = scmp.ne.s32.totalorder %s1873_s1, %s1162_s19 }
  0x12   : > { %p1169_p10 = scmp.lt.u32.totalorder %s1162_s19, %s1873_s1 }
  0x13   : > { %p1489_p7 = pneg %p1473_p5 }
  0x15   : > { %p1165_p8 = pnand %p1489_p7, %p1163_p6 }
  0x17   : > { %p1166_p9 = pneg %p1165_p8 }
  0x19   : > { %p1171_p11 = pnand %p1169_p10, %p1166_p9 }
  0x1b   : > { %1174 = shalt.err (!%p1171_p11)
}
  0x1c   : > { %s1175_s25 = scalar_lea.vmem %s1461_s30, 16  ;;  %s1182_s4 = scalar_lea.vmem %s1461_s30, 32 }
  0x1d   : > { %p1176_p12 = scmp.ne.s32.totalorder %s1461_s30, %s1175_s25  ;;  %p1183_p2 = scmp.lt.s32.totalorder %s1461_s30, %s1461_s30 }
  0x1e   : > { %p1184_p4 = scmp.lt.s32.totalorder %s1182_s4, %s1175_s25 }
  0x1f   : > { %p1178_p13 = pnand %p1176_p12, %p1489_p7 }
  0x20   : > { %p1185_p6 = por %p1184_p4, %p1183_p2 }
  0x21   : > { %p1179_p0 = pneg %p1178_p13 }
  0x23   : > { %p1186_p8 = pnand %p1185_p6, %p1179_p0 }
  0x25   : > { %1189 = shalt.err (!%p1186_p8)
}
  0x26   : > { %1051 = dma.hbm_to_vmem [thread:$0]  (!%p1473_p5), %s1873_s1, 16, %s1461_s30, [#allocation6]  }
  0x27   : > { %s1190_s18 = scalar_lea.hbm %s1875_s3, 16 }
  0x28   : > { %p1191_p9 = scmp.ne.s32.totalorder %s1875_s3, %s1190_s18  ;;  %p1197_p12 = scmp.lt.u32.totalorder %s1190_s18, %s1875_s3 }
  0x2a   : > { %p1193_p10 = pnand %p1191_p9, %p1489_p7 }
  0x2c   : > { %p1194_p11 = pneg %p1193_p10 }
  0x2e   : > { %p1199_p13 = pnand %p1197_p12, %p1194_p11 }
  0x30   : > { %1202 = shalt.err (!%p1199_p13)
}
  0x31   : > { %s1203_s30 = scalar_lea.vmem %s1469_s11, 16  ;;  %s1210_s24 = scalar_lea.vmem %s1469_s11, 32 }
  0x32   : > { %p1204_p0 = scmp.ne.s32.totalorder %s1469_s11, %s1203_s30  ;;  %p1211_p6 = scmp.lt.s32.totalorder %s1469_s11, %s1469_s11 }
  0x33   : > { %p1212_p8 = scmp.lt.s32.totalorder %s1210_s24, %s1203_s30 }
  0x34   : > { %p1206_p2 = pnand %p1204_p0, %p1489_p7 }
  0x35   : > { %p1213_p9 = por %p1212_p8, %p1211_p6 }
  0x36   : > { %p1207_p4 = pneg %p1206_p2 }
  0x38   : > { %p1214_p10 = pnand %p1213_p9, %p1207_p4 }
  0x3a   : > { %1217 = shalt.err (!%p1214_p10)
}
  0x3b   : > { %1057 = dma.hbm_to_vmem [thread:$0]  (!%p1473_p5), %s1875_s3, 16, %s1469_s11, [#allocation9]  }
  0x3c   : > { %s1218_s15 = scalar_lea.hbm %s1874_s2, 16 }
  0x3d   : > { %p1219_p11 = scmp.ne.s32.totalorder %s1874_s2, %s1218_s15  ;;  %p1225_p0 = scmp.lt.u32.totalorder %s1218_s15, %s1874_s2 }
  0x3f   : > { %p1221_p12 = pnand %p1219_p11, %p1489_p7 }
  0x41   : > { %p1222_p13 = pneg %p1221_p12 }
  0x43   : > { %p1227_p2 = pnand %p1225_p0, %p1222_p13 }
  0x45   : > { %1230 = shalt.err (!%p1227_p2)
}
  0x46   : > { %s1231_s11 = scalar_lea.vmem %s1477_s13, 16  ;;  %s1238_s21 = scalar_lea.vmem %s1477_s13, 32 }
  0x47   : > { %p1232_p4 = scmp.ne.s32.totalorder %s1477_s13, %s1231_s11  ;;  %p1239_p9 = scmp.lt.s32.totalorder %s1477_s13, %s1477_s13 }
  0x48   : > { %p1240_p10 = scmp.lt.s32.totalorder %s1238_s21, %s1231_s11 }
  0x49   : > { %p1234_p6 = pnand %p1232_p4, %p1489_p7 }
  0x4a   : > { %p1241_p11 = por %p1240_p10, %p1239_p9 }
  0x4b   : > { %p1235_p8 = pneg %p1234_p6 }
  0x4d   : > { %p1242_p12 = pnand %p1241_p11, %p1235_p8 }
  0x4f   : > { %1245 = shalt.err (!%p1242_p12)
}
  0x50   : > { %1054 = dma.hbm_to_vmem [thread:$0]  (!%p1473_p5), %s1874_s2, 16, %s1477_s13, [#allocation6]  }
  0x51   : > { %s1246_s4 = scalar_lea.hbm %s1877_s5, 1024 }
  0x52   : > { %p1247_p13 = scmp.ne.s32.totalorder %s1877_s5, %s1246_s4  ;;  %p1253_p4 = scmp.lt.u32.totalorder %s1246_s4, %s1877_s5 }
  0x54   : > { %p1249_p0 = pnand %p1247_p13, %p1489_p7 }
  0x56   : > { %p1250_p2 = pneg %p1249_p0 }
  0x58   : > { %p1255_p6 = pnand %p1253_p4, %p1250_p2 }
  0x5a   : > { %1258 = shalt.err (!%p1255_p6)
}
  0x5b   : > { %s1259_s18 = scalar_lea.vmem %s256_s16, 1024  ;;  %p1267_p11 = scmp.lt.s32.totalorder %s256_s16, %s256_s16 }
  0x5c   : > { %p1260_p8 = scmp.ne.s32.totalorder %s256_s16, %s1259_s18  ;;  %p1268_p12 = scmp.lt.s32.totalorder %s1259_s18, %s1259_s18 }
  0x5e   : > { %p1262_p9 = pnand %p1260_p8, %p1489_p7  ;;  %p1269_p1 = por %p1268_p12, %p1267_p11 }
  0x60   : > { %p1263_p10 = pneg %p1262_p9 }
  0x62   : > { %p1270_p3 = pnand %p1269_p1, %p1263_p10 }
  0x64   : > { %1273 = shalt.err (!%p1270_p3)
}
  0x65   : > { %s1384_s13 = smov 64   ;;  %s1385_s19 = smov 4  }
  0x66   : > { %1060 = dma.hbm_to_vmem [thread:$0]  (!%p1473_p5), %s1877_s5, 1024, %s256_s16, [#allocation9], %s1384_s13, %s1384_s13, %s1385_s19  }
  0x67   : > { %s1386_s21 = smov [#allocation11]   ;;  %s1274_s25 = scalar_lea.hbm %s1878_s6, 16 }
  0x68   : > { %s269_s23 = sshll.u32 %s1386_s21, 4  ;;  %p1275_p1 = scmp.ne.s32.totalorder %s1878_s6, %s1274_s25  ;;  %s270_s23 = int_to_ptr.vmem [resolvable:$true] %s269_s23 }
  0x69   : > { %p1281_p0 = scmp.lt.u32.totalorder %s1274_s25, %s1878_s6 }
  0x6a   : > { %p1277_p3 = pnand %p1275_p1, %p1489_p7 }
  0x6c   : > { %p1278_p13 = pneg %p1277_p3 }
  0x6e   : > { %p1283_p2 = pnand %p1281_p0, %p1278_p13 }
  0x70   : > { %1286 = shalt.err (!%p1283_p2)
}
  0x71   : > { %s1287_s16 = scalar_lea.vmem %s270_s23, 16  ;;  %s1294_s17 = scalar_lea.vmem %s270_s23, 32 }
  0x72   : > { %p1288_p4 = scmp.ne.s32.totalorder %s270_s23, %s1287_s16  ;;  %p1295_p9 = scmp.lt.s32.totalorder %s270_s23, %s270_s23 }
  0x73   : > { %p1296_p10 = scmp.lt.s32.totalorder %s1294_s17, %s1287_s16 }
  0x74   : > { %p1290_p6 = pnand %p1288_p4, %p1489_p7 }
  0x75   : > { %p1297_p11 = por %p1296_p10, %p1295_p9 }
  0x76   : > { %p1291_p8 = pneg %p1290_p6 }
  0x78   : > { %p1298_p12 = pnand %p1297_p11, %p1291_p8 }
  0x7a   : > { %1301 = shalt.err (!%p1298_p12)
}
  0x7b   : > { %1063 = dma.hbm_to_vmem [thread:$0]  (!%p1473_p5), %s1878_s6, 16, %s270_s23, [#allocation12]  }
  0x7c   : > { %s1597_s22 = sadd.s32 1, %s1378_s29   ;;  %s31_s19 = sadd.s32 1, %s1374_s28 }
  0x7d   : > { %s28_s14 = ssub.s32 %s1378_s29, %s1597_s22  ;;  %p38_p1 = scmp.ne.s32.totalorder %s1374_s28, %s1370_s27 }
  0x7e   : > { %p29_p7 = scmp.eq.s32.totalorder %s28_s14, 0  ;;  %p39_p3 = scmp.eq.s32.totalorder %s1378_s29, 0 }
  0x7f   : > { %p44_p13 = scmp.ne.s32.totalorder %s1370_s27, %s1366_s26  ;;  %p1885_p2 = scmp.eq.s32.totalorder %s1456_s8, 0 }
  0x80   : > { %s1608_s20 = scalar_select %p29_p7, %s1374_s28, %s31_s19  }
  0x81   : > { %p40_p0 = por %p39_p3, %p38_p1  ;;  %p1612_p4 = por %p1885_p2, %p44_p13 }
  0x82   : > { %p1073_p6 = scmp.lt.s32.totalorder %s1378_s29, 2  ;;  %s280_s21 = sand.u32 1, %s1374_s28  }
  0x83   : > { %s971_s23 = sshll.u32 %s280_s21, 7  ;;  %s996_s30 = sshll.u32 %s1378_s29, 11 }
  0x84   : > { %s1622_s4 = scalar_lea.hbm %s1872_s0, %s996_s30  ;;  %s284_s26 = scalar_lea.vmem [#allocation3], %s971_s23 }
  0x85   : > { %s291_s10 = sshll.u32 %s284_s26, 4  ;;  %p1626_p5 = pnand %p1073_p6, %p40_p0  ;;  %s1624_s10 = int_to_ptr.vmem [resolvable:$true] %s291_s10 }
  0x86   : > { %s1630_s29 = scalar_lea.sflag [#allocation4], %s280_s21  ;;  %s1302_s15 = scalar_lea.hbm %s1622_s4, 2048 }
  0x87   : > { %p1303_p8 = scmp.ne.s32.totalorder %s1622_s4, %s1302_s15  ;;  %p1304_p9 = pneg %p1626_p5 }
  0x88   : > { %s1307_s18 = scalar_lea.hbm %s1872_s0, 4096  ;;  %p1308_p12 = scmp.lt.u32.totalorder %s1622_s4, %s1872_s0 }
  0x89   : > { %p1305_p10 = pnand %p1304_p9, %p1303_p8  ;;  %p1309_p7 = scmp.lt.u32.totalorder %s1307_s18, %s1302_s15 }
  0x8a   : > { %p1311_p3 = scmp.lt.u32.totalorder %s1302_s15, %s1622_s4 }
  0x8b   : > { %p1306_p11 = pneg %p1305_p10  ;;  %p1310_p1 = por %p1309_p7, %p1308_p12 }
  0x8d   : > { %p1312_p13 = por %p1311_p3, %p1310_p1 }
  0x8f   : > { %p1313_p0 = pnand %p1312_p13, %p1306_p11 }
  0x91   : > { %1316 = shalt.err (!%p1313_p0)
}
  0x92   : > { %s1317_s19 = scalar_lea.vmem %s1624_s10, 2048  ;;  %s1387_s21 = smov [#allocation3]  }
  0x93   : > { %p1318_p2 = scmp.ne.s32.totalorder %s1624_s10, %s1317_s19  ;;  %s1322_s23 = sshll.u32 %s1387_s21, 4  ;;  %s1323_s23 = int_to_ptr.vmem [resolvable:$false] %s1322_s23 }
  0x94   : > { %s1324_s30 = scalar_lea.vmem %s1323_s23, 4096  ;;  %p1325_p10 = scmp.lt.s32.totalorder %s1624_s10, %s1323_s23 }
  0x95   : > { %p1320_p6 = pnand %p1318_p2, %p1304_p9  ;;  %p1326_p12 = scmp.lt.s32.totalorder %s1324_s30, %s1317_s19 }
  0x97   : > { %p1321_p8 = pneg %p1320_p6  ;;  %p1327_p7 = por %p1326_p12, %p1325_p10 }
  0x99   : > { %p1328_p1 = pnand %p1327_p7, %p1321_p8 }
  0x9b   : > { %1331 = shalt.err (!%p1328_p1)
}
  0x9c   : > { %s1388_s24 = smov 128   ;;  %s1389_s25 = smov 8  }
  0x9d   : > { %1067 = dma.hbm_to_vmem [thread:$0]  (!%p1626_p5), %s1622_s4, 2048, %s1624_s10, %s1630_s29, %s1388_s24, %s1388_s24, %s1389_s25  }
  0x9e   : > { %p1888_p9 = scmp.ne.s32.totalorder %s1882_s9, 0 }
  0x9f   : > { %s305_s26 = sand.u32 (!%p1888_p9), 1, %s1370_s27  }
  0xa0   : > { %303 = sbr.rel (%p1888_p9) target bundleno = 762 (0x2fa), region = 48  ;;  %s975_s15 = sshll.u32 (!%p1888_p9), %s305_s26, 7 }
  0xa1   : > { %s306_s16 = scalar_lea.sflag (!%p1888_p9), [#allocation4], %s305_s26  ;;  %s1661_s17 = scalar_lea.vmem (!%p1888_p9), [#allocation3], %s975_s15 }
  0xa7   : > { %1349 = dma.done.wait (%p1612_p4), %s306_s16, 2048  }
  0xa8   : > { %1351 = vsyncadd (%p1612_p4), %s306_s16, 4294965248  ;;  %p1889_p11 = scmp.eq.s32.totalorder %s1456_s8, 0 }
  0xaa   : > { %1353 = dma.done.wait (%p1889_p11), [#allocation6], 32   ;;  %p1890_p5 = pmov %p1889_p11 }
  0xac   : > { %1355 = vsyncadd (%p1890_p5), [#allocation6], 4294967264  ;;  %p1891_p3 = pmov %p1890_p5 }
  0xae   : > { %1357 = dma.done.wait (%p1891_p3), [#allocation9], 1040   ;;  %p1892_p13 = pmov %p1891_p3 }
  0xaf   : > { %p1893_p0 = pmov %p1891_p3 }
  0xb0   : > { %1359 = vsyncadd (%p1892_p13), [#allocation9], 4294966256 }
  0xb1   : > { %1361 = dma.done.wait (%p1893_p0), [#allocation12], 16   ;;  %p1894_p2 = pmov %p1893_p0 }
  0xb2   : > { %v365_v0 = vld [vmem:[%s1661_s17] sm:$0xff]  ;;  %v367_v1 = vld [vmem:[%s1661_s17 + $0x10] sm:$0xff]  ;;  %v366_v2 = vld [vmem:[%s1661_s17 + $0x8] sm:$0xff]  ;;  %vm1391_vm0 = vmmov 0   ;;  %s1835_s9 = sld [smem:[#allocation2]]  ;;  %vm745_vm1 = vcmask 1041409  }
  0xb3   : > { %1363 = vsyncadd (%p1894_p2), [#allocation12], 4294967280  ;;  %383 = vadd.xlane.f32.xlu0 %v365_v0  ;;  %387 = vadd.xlane.f32.xlu1 %v367_v1  ;;  %v368_v3 = vld [vmem:[%s1661_s17 + $0x18] sm:$0xff]  ;;  %v369_v4 = vld [vmem:[%s1661_s17 + $0x20] sm:$0xff]  ;;  %vm747_vm2 = vcmask 1042434   ;;  %vm749_vm3 = vcmask 1043459  }
  0xb4   : > { %v370_v5 = vld [vmem:[%s1661_s17 + $0x28] sm:$0xff]  ;;  %v371_v6 = vld [vmem:[%s1661_s17 + $0x30] sm:$0xff]  ;;  %v372_v7 = vld [vmem:[%s1661_s17 + $0x38] sm:$0xff]  ;;  %vm751_vm4 = vcmask 1044484   ;;  %vm753_vm5 = vcmask 1045509   ;;  %vm755_vm6 = vcmask 1046534  }
  0xb5   : > { %v373_v8 = vld [vmem:[%s1661_s17 + $0x40] sm:$0xff]  ;;  %v374_v9 = vld [vmem:[%s1661_s17 + $0x48] sm:$0xff]  ;;  %v375_v10 = vld [vmem:[%s1661_s17 + $0x50] sm:$0xff]  ;;  %vm757_vm7 = vcmask 1047559   ;;  %p360_p4 = scmp.lt.s32.totalorder %s1456_s8, 1 }
  0xb6   : > { %v1691_v11 = vld [vmem:[%s1661_s17 + $0x58] sm:$0xff]  ;;  %v1695_v12 = vld [vmem:[%s1661_s17 + $0x60] sm:$0xff]  ;;  %v1698_v13 = vld [vmem:[%s1661_s17 + $0x68] sm:$0xff] }
  0xb7   : > { %385 = vadd.xlane.f32.xlu0 %v366_v2  ;;  %389 = vadd.xlane.f32.xlu1 %v368_v3  ;;  %v1703_v14 = vld [vmem:[%s1661_s17 + $0x70] sm:$0xff]  ;;  %v1706_v15 = vld [vmem:[%s1661_s17 + $0x78] sm:$0xff]  ;;  %s1900_s8 = smov (!%p360_p4, %s1456_s8), 1 }
  0xb8   : > { %s981_s11 = sshll.u32 %s1900_s8, 3 }
  0xb9   : > { %s363_s12 = scalar_lea.vmem %s1879_s7, %s981_s11 }
  0xbb   : > { %391 = vadd.xlane.f32.xlu0 %v369_v4  ;;  %393 = vadd.xlane.f32.xlu1 %v370_v5 }
  0xbf   : > { %395 = vadd.xlane.f32.xlu0 %v371_v6  ;;  %397 = vadd.xlane.f32.xlu1 %v372_v7 }
  0xc3   : > { %399 = vadd.xlane.f32.xlu0 %v373_v8  ;;  %401 = vadd.xlane.f32.xlu1 %v374_v9 }
  0xc7   : > { %403 = vadd.xlane.f32.xlu0 %v375_v10  ;;  %405 = vadd.xlane.f32.xlu1 %v1691_v11 }
  0xcb   : > { %407 = vadd.xlane.f32.xlu0 %v1695_v12  ;;  %409 = vadd.xlane.f32.xlu1 %v1698_v13 }
  0xcf   : > { %411 = vadd.xlane.f32.xlu0 %v1703_v14  ;;  %413 = vadd.xlane.f32.xlu1 %v1706_v15 }
 0x140   : > { %v384_v16 = vpop.xlane.xlu0 %383  ;;  %v388_v17 = vpop.xlane.xlu1 %387 }
 0x141   : > { %v416_v18 = vmul.f32 0.0078125, %v384_v16  ;;  %v418_v19 = vmul.f32 0.0078125, %v388_v17 }
 0x143   : > { %v1710_v20 = vsub.f32 %v365_v0, %v416_v18  ;;  %v1712_v21 = vsub.f32 %v367_v1, %v418_v19  ;;  %v984_v18 = vld [vmem:[#allocation8] ss:$0 sm:$0xff]  ;;  %v1390_v19 = vmov 0.0  }
 0x144   : > { %v386_v22 = vpop.xlane.xlu0 %385  ;;  %v390_v23 = vpop.xlane.xlu1 %389  ;;  %1006 = vmatprep.subr.bf16.mxu0 %v1390_v19  ;;  %1022 = vmatprep.mubr.msk.bf16.mxu0 %vm1391_vm0, %v1390_v19 }
 0x145   : > { %v417_v24 = vmul.f32 0.0078125, %v386_v22  ;;  %v448_v25 = vmul.f32 %v1710_v20, %v1710_v20  ;;  %v419_v26 = vmul.f32 0.0078125, %v390_v23  ;;  %v450_v29 = vmul.f32 %v1712_v21, %v1712_v21  ;;  %v1124_v22 = vld [vmem:[#allocation10 + $0x10] sm:$0xff]   ;;  %v1125_v23 = vld [vmem:[#allocation10 + $0x18] sm:$0xff]  }
 0x147   : > { %v1716_v27 = vsub.f32 %v366_v2, %v417_v24  ;;  %464 = vadd.xlane.f32.xlu0 %v448_v25  ;;  %v1718_v28 = vsub.f32 %v368_v3, %v419_v26  ;;  %v1126_v24 = vld [vmem:[#allocation10 + $0x20] sm:$0xff]   ;;  %v1127_v25 = vld [vmem:[#allocation10 + $0x28] sm:$0xff]   ;;  %v1128_v26 = vld [vmem:[#allocation10 + $0x30] sm:$0xff]  }
 0x148   : > { %v392_v30 = vpop.xlane.xlu0 %391  ;;  %v394_v31 = vpop.xlane.xlu1 %393 }
 0x149   : > { %v420_v32 = vmul.f32 0.0078125, %v392_v30  ;;  %v449_v33 = vmul.f32 %v1716_v27, %v1716_v27  ;;  %v421_v34 = vmul.f32 0.0078125, %v394_v31  ;;  %v451_v37 = vmul.f32 %v1718_v28, %v1718_v28 }
 0x14b   : > { %v1724_v35 = vsub.f32 %v369_v4, %v420_v32  ;;  %468 = vadd.xlane.f32.xlu0 %v450_v29  ;;  %466 = vadd.xlane.f32.xlu1 %v449_v33  ;;  %v1726_v36 = vsub.f32 %v370_v5, %v421_v34  ;;  %v1129_v29 = vld [vmem:[#allocation10 + $0x38] sm:$0xff]  }
 0x14c   : > { %v396_v38 = vpop.xlane.xlu0 %395  ;;  %v398_v39 = vpop.xlane.xlu1 %397 }
 0x14d   : > { %v422_v40 = vmul.f32 0.0078125, %v396_v38  ;;  %v452_v41 = vmul.f32 %v1724_v35, %v1724_v35  ;;  %v423_v42 = vmul.f32 0.0078125, %v398_v39  ;;  %v453_v45 = vmul.f32 %v1726_v36, %v1726_v36 }
 0x14f   : > { %v1732_v43 = vsub.f32 %v371_v6, %v422_v40  ;;  %470 = vadd.xlane.f32.xlu1 %v451_v37  ;;  %472 = vadd.xlane.f32.xlu0 %v452_v41  ;;  %v1734_v44 = vsub.f32 %v372_v7, %v423_v42 }
 0x150   : > { %v400_v46 = vpop.xlane.xlu0 %399  ;;  %v402_v47 = vpop.xlane.xlu1 %401 }
 0x151   : > { %v424_v48 = vmul.f32 0.0078125, %v400_v46  ;;  %v454_v49 = vmul.f32 %v1732_v43, %v1732_v43  ;;  %v425_v50 = vmul.f32 0.0078125, %v402_v47  ;;  %v455_v53 = vmul.f32 %v1734_v44, %v1734_v44 }
 0x153   : > { %v1740_v51 = vsub.f32 %v373_v8, %v424_v48  ;;  %474 = vadd.xlane.f32.xlu1 %v453_v45  ;;  %476 = vadd.xlane.f32.xlu0 %v454_v49  ;;  %v1742_v52 = vsub.f32 %v374_v9, %v425_v50 }
 0x154   : > { %v404_v54 = vpop.xlane.xlu0 %403  ;;  %v406_v55 = vpop.xlane.xlu1 %405 }
 0x155   : > { %v426_v56 = vmul.f32 0.0078125, %v404_v54  ;;  %v456_v57 = vmul.f32 %v1740_v51, %v1740_v51  ;;  %v427_v58 = vmul.f32 0.0078125, %v406_v55  ;;  %v457_v61 = vmul.f32 %v1742_v52, %v1742_v52 }
 0x157   : > { %v1748_v59 = vsub.f32 %v375_v10, %v426_v56  ;;  %478 = vadd.xlane.f32.xlu1 %v455_v53  ;;  %480 = vadd.xlane.f32.xlu0 %v456_v57  ;;  %v1751_v60 = vsub.f32 %v1691_v11, %v427_v58 }
 0x158   : > { %v408_v62 = vpop.xlane.xlu0 %407  ;;  %v410_v63 = vpop.xlane.xlu1 %409 }
 0x159   : > { %v428_v0 = vmul.f32 0.0078125, %v408_v62  ;;  %v458_v1 = vmul.f32 %v1748_v59, %v1748_v59  ;;  %v429_v2 = vmul.f32 0.0078125, %v410_v63  ;;  %v459_v5 = vmul.f32 %v1751_v60, %v1751_v60 }
 0x15b   : > { %v1758_v3 = vsub.f32 %v1695_v12, %v428_v0  ;;  %482 = vadd.xlane.f32.xlu1 %v457_v61  ;;  %484 = vadd.xlane.f32.xlu0 %v458_v1  ;;  %v1761_v4 = vsub.f32 %v1698_v13, %v429_v2 }
 0x15c   : > { %v412_v6 = vpop.xlane.xlu0 %411  ;;  %v414_v7 = vpop.xlane.xlu1 %413 }
 0x15d   : > { %v430_v8 = vmul.f32 0.0078125, %v412_v6  ;;  %v460_v9 = vmul.f32 %v1758_v3, %v1758_v3  ;;  %v431_v10 = vmul.f32 0.0078125, %v414_v7  ;;  %v461_v13 = vmul.f32 %v1761_v4, %v1761_v4 }
 0x15f   : > { %v1768_v11 = vsub.f32 %v1703_v14, %v430_v8  ;;  %486 = vadd.xlane.f32.xlu1 %v459_v5  ;;  %488 = vadd.xlane.f32.xlu0 %v460_v9  ;;  %v1771_v12 = vsub.f32 %v1706_v15, %v431_v10  ;;  %v1122_v14 = vld [vmem:[#allocation10] sm:$0xff]   ;;  %v1123_v15 = vld [vmem:[#allocation10 + $0x8] sm:$0xff]  }
 0x160   : > { %1007 = vmatpush3.bf16.msra.mxu0 %v1122_v14  ;;  %v1780_v14 = vld [vmem:[#allocation5] ss:$0 sm:$0xff] }
 0x161   : > { %v462_v16 = vmul.f32 %v1768_v11, %v1768_v11  ;;  %v463_v17 = vmul.f32 %v1771_v12, %v1771_v12  ;;  %1008 = vmatprep.subr.bf16.mxu0 %v1390_v19 }
 0x163   : > { %490 = vadd.xlane.f32.xlu1 %v461_v13  ;;  %492 = vadd.xlane.f32.xlu0 %v462_v16 }
 0x164   : > { %1009 = vmatpush3.bf16.msra.mxu0 %v1123_v15 }
 0x165   : > { %1010 = vmatprep.subr.bf16.mxu0 %v1390_v19 }
 0x167   : > { %494 = vadd.xlane.f32.xlu1 %v463_v17 }
 0x168   : > { %1011 = vmatpush3.bf16.msra.mxu0 %v1124_v22 }
 0x169   : > { %1012 = vmatprep.subr.bf16.mxu0 %v1390_v19 }
 0x16c   : > { %1013 = vmatpush3.bf16.msra.mxu0 %v1125_v23 }
 0x16d   : > { %1014 = vmatprep.subr.bf16.mxu0 %v1390_v19 }
 0x170   : > { %1015 = vmatpush3.bf16.msra.mxu0 %v1126_v24 }
 0x171   : > { %1016 = vmatprep.subr.bf16.mxu0 %v1390_v19 }
 0x174   : > { %1017 = vmatpush3.bf16.msra.mxu0 %v1127_v25 }
 0x175   : > { %1018 = vmatprep.subr.bf16.mxu0 %v1390_v19 }
 0x178   : > { %614 = vbcast.lane.b32.xlu1 %v984_v18, 264  ;;  %1019 = vmatpush3.bf16.msra.mxu0 %v1128_v26 }
 0x179   : > { %610 = vbcast.lane.b32.xlu0 %v984_v18, 256  ;;  %1020 = vmatprep.subr.bf16.mxu0 %v1390_v19 }
 0x17c   : > { %1021 = vmatpush3.bf16.msra.mxu0 %v1129_v29 }
 0x1d4   : > { %v465_v30 = vpop.xlane.xlu0 %464 }
 0x1d5   : > { %v496_v31 = vmul.f32 0.0078125, %v465_v30 }
 0x1d7   : > { %v512_v34 = vadd.f32 1e-05, %v496_v31 }
 0x1d8   : > { %v467_v32 = vpop.xlane.xlu1 %466  ;;  %v469_v33 = vpop.xlane.xlu0 %468 }
 0x1d9   : > { %v497_v37 = vmul.f32 0.0078125, %v467_v32  ;;  %v498_v38 = vmul.f32 0.0078125, %v469_v33  ;;  %1130 = vrsqrt.f32 %v512_v34  ;;  %v1787_v33 = vld [vmem:[#allocation7] ss:$0 sm:$0xff] }
 0x1db   : > { %v513_v39 = vadd.f32 1e-05, %v497_v37  ;;  %v514_v40 = vadd.f32 1e-05, %v498_v38 }
 0x1dc   : > { %v471_v41 = vpop.xlane.xlu1 %470  ;;  %v473_v42 = vpop.xlane.xlu0 %472 }
 0x1dd   : > { %v499_v45 = vmul.f32 0.0078125, %v471_v41  ;;  %v500_v46 = vmul.f32 0.0078125, %v473_v42  ;;  %1132 = vrsqrt.f32 %v513_v39 }
 0x1de   : > { %1134 = vrsqrt.f32 %v514_v40 }
 0x1df   : > { %v515_v47 = vadd.f32 1e-05, %v499_v45  ;;  %v516_v48 = vadd.f32 1e-05, %v500_v46 }
 0x1e0   : > { %v475_v49 = vpop.xlane.xlu1 %474  ;;  %v477_v50 = vpop.xlane.xlu0 %476 }
 0x1e1   : > { %1136 = vrsqrt.f32 %v515_v47  ;;  %v501_v53 = vmul.f32 0.0078125, %v475_v49  ;;  %v502_v54 = vmul.f32 0.0078125, %v477_v50 }
 0x1e2   : > { %1138 = vrsqrt.f32 %v516_v48 }
 0x1e3   : > { %v517_v55 = vadd.f32 1e-05, %v501_v53  ;;  %v518_v56 = vadd.f32 1e-05, %v502_v54  ;;  %v1131_v63 = vpop.eup %1130 }
 0x1e4   : > { %v479_v57 = vpop.xlane.xlu1 %478  ;;  %v481_v58 = vpop.xlane.xlu0 %480  ;;  %v544_v13 = vmul.f32 %v1131_v63, %v1710_v20 }
 0x1e5   : > { %1140 = vrsqrt.f32 %v517_v55  ;;  %v503_v61 = vmul.f32 0.0078125, %v479_v57  ;;  %v504_v62 = vmul.f32 0.0078125, %v481_v58 }
 0x1e6   : > { %1142 = vrsqrt.f32 %v518_v56  ;;  %v566_v30 = vmul.f32 %v1780_v14, %v544_v13 }
 0x1e7   : > { %v519_v0 = vadd.f32 1e-05, %v503_v61  ;;  %v520_v1 = vadd.f32 1e-05, %v504_v62  ;;  %v1133_v2 = vpop.eup %1132 }
 0x1e8   : > { %v483_v5 = vpop.xlane.xlu1 %482  ;;  %v485_v6 = vpop.xlane.xlu0 %484  ;;  %v545_v19 = vmul.f32 %v1133_v2, %v1716_v27  ;;  %v588_v47 = vadd.f32 %v1787_v33, %v566_v30 }
 0x1e9   : > { %v1135_v7 = vpop.eup %1134  ;;  %1144 = vrsqrt.f32 %v519_v0  ;;  %v505_v8 = vmul.f32 0.0078125, %v483_v5  ;;  %v506_v9 = vmul.f32 0.0078125, %v485_v6 }
 0x1ea   : > { %1146 = vrsqrt.f32 %v520_v1  ;;  %v546_v15 = vmul.f32 %v1135_v7, %v1712_v21  ;;  %v567_v27 = vmul.f32 %v1780_v14, %v545_v19 }
 0x1eb   : > { %v1137_v10 = vpop.eup %1136  ;;  %v521_v16 = vadd.f32 1e-05, %v505_v8  ;;  %v522_v17 = vadd.f32 1e-05, %v506_v9 }
 0x1ec   : > { %v1139_v18 = vpop.eup %1138  ;;  %v487_v22 = vpop.xlane.xlu1 %486  ;;  %v547_v24 = vmul.f32 %v1137_v10, %v1718_v28  ;;  %v568_v21 = vmul.f32 %v1780_v14, %v546_v15  ;;  %v589_v50 = vadd.f32 %v1787_v33, %v567_v27 }
 0x1ed   : > { %v489_v23 = vpop.xlane.xlu0 %488  ;;  %1148 = vrsqrt.f32 %v521_v16  ;;  %v507_v25 = vmul.f32 0.0078125, %v487_v22  ;;  %v548_v26 = vmul.f32 %v1139_v18, %v1724_v35 }
 0x1ee   : > { %1150 = vrsqrt.f32 %v522_v17  ;;  %v508_v29 = vmul.f32 0.0078125, %v489_v23  ;;  %v569_v35 = vmul.f32 %v1780_v14, %v547_v24  ;;  %v590_v53 = vadd.f32 %v1787_v33, %v568_v21 }
 0x1ef   : > { %v1141_v20 = vpop.eup %1140  ;;  %v523_v31 = vadd.f32 1e-05, %v507_v25  ;;  %v570_v41 = vmul.f32 %v1780_v14, %v548_v26 }
 0x1f0   : > { %v1143_v32 = vpop.eup %1142  ;;  %v549_v34 = vmul.f32 %v1141_v20, %v1726_v36  ;;  %v524_v28 = vadd.f32 1e-05, %v508_v29  ;;  %v491_v37 = vpop.xlane.xlu1 %490  ;;  %v591_v57 = vadd.f32 %v1787_v33, %v569_v35 }
 0x1f1   : > { %v493_v38 = vpop.xlane.xlu0 %492  ;;  %v550_v39 = vmul.f32 %v1143_v32, %v1732_v43  ;;  %1152 = vrsqrt.f32 %v523_v31  ;;  %v509_v40 = vmul.f32 0.0078125, %v491_v37  ;;  %v592_v62 = vadd.f32 %v1787_v33, %v570_v41 }
 0x1f2   : > { %v571_v42 = vmul.f32 %v1780_v14, %v549_v34  ;;  %1154 = vrsqrt.f32 %v524_v28  ;;  %v510_v45 = vmul.f32 0.0078125, %v493_v38 }
 0x1f3   : > { %v1145_v46 = vpop.eup %1144  ;;  %v572_v36 = vmul.f32 %v1780_v14, %v550_v39  ;;  %v525_v48 = vadd.f32 1e-05, %v509_v40 }
 0x1f4   : > { %v1147_v49 = vpop.eup %1146  ;;  %v551_v43 = vmul.f32 %v1145_v46, %v1734_v44  ;;  %v526_v54 = vadd.f32 1e-05, %v510_v45  ;;  %v495_v55 = vpop.xlane.xlu1 %494  ;;  %v593_v63 = vadd.f32 %v1787_v33, %v571_v42 }
 0x1f5   : > { %v1801_v56 = vpop.permute.xlu0 %610  ;;  %v552_v58 = vmul.f32 %v1147_v49, %v1740_v51  ;;  %1156 = vrsqrt.f32 %v525_v48  ;;  %v511_v61 = vmul.f32 0.0078125, %v495_v55  ;;  %v594_v44 = vadd.f32 %v1787_v33, %v572_v36 }
 0x1f6   : > { %v573_v0 = vmul.f32 %v1780_v14, %v551_v43  ;;  %1158 = vrsqrt.f32 %v526_v54  ;;  %v616_v6 = vmul.f32 %v1801_v56, %v588_v47  ;;  %v618_v9 = vmul.f32 %v1801_v56, %v590_v53 }
 0x1f7   : > { %v1149_v1 = vpop.eup %1148  ;;  %v574_v2 = vmul.f32 %v1780_v14, %v552_v58  ;;  %v527_v5 = vadd.f32 1e-05, %v511_v61  ;;  %v620_v10 = vmul.f32 %v1801_v56, %v592_v62  ;;  %v622_v25 = vmul.f32 %v1801_v56, %v594_v44 }
 0x1f8   : > { %v1151_v7 = vpop.eup %1150  ;;  %v595_v51 = vadd.f32 %v1787_v33, %v573_v0  ;;  %v553_v8 = vmul.f32 %v1149_v1, %v1742_v52  ;;  %v1815_v13 = vpop.permute.xlu1 %614 }
 0x1f9   : > { %v596_v16 = vadd.f32 %v1787_v33, %v574_v2  ;;  %v554_v17 = vmul.f32 %v1151_v7, %v1748_v59  ;;  %1160 = vrsqrt.f32 %v527_v5  ;;  %v617_v18 = vmul.f32 %v1815_v13, %v589_v50 }
 0x1fa   : > { %v575_v19 = vmul.f32 %v1780_v14, %v553_v8  ;;  %v619_v15 = vmul.f32 %v1815_v13, %v591_v57  ;;  %v621_v22 = vmul.f32 %v1815_v13, %v593_v63  ;;  %v623_v52 = vmul.f32 %v1815_v13, %v595_v51 }
 0x1fb   : > { %v1153_v23 = vpop.eup %1152  ;;  %v576_v24 = vmul.f32 %v1780_v14, %v554_v17  ;;  %v624_v26 = vmul.f32 %v1801_v56, %v596_v16  ;;  %v632_v29 = vadd.f32 %v617_v18, %v616_v6 }
 0x1fc   : > { %v1155_v59 = vpop.eup %1154  ;;  %v597_v20 = vadd.f32 %v1787_v33, %v575_v19  ;;  %v555_v30 = vmul.f32 %v1153_v23, %v1751_v60  ;;  %v639_v31 = vadd.f32 %v619_v15, %v618_v9  ;;  %v646_v32 = vadd.f32 %v621_v22, %v620_v10 }
 0x1fd   : > { %v598_v27 = vadd.f32 %v1787_v33, %v576_v24  ;;  %v556_v21 = vmul.f32 %v1155_v59, %v1758_v3  ;;  %v633_v34 = vrot.slane %v632_v29, 4  ;;  %v653_v28 = vadd.f32 %v623_v52, %v622_v25 }
 0x1fe   : > { %v577_v37 = vmul.f32 %v1780_v14, %v555_v30  ;;  %v625_v38 = vmul.f32 %v1815_v13, %v597_v20  ;;  %v640_v35 = vrot.slane %v639_v31, 4  ;;  %v647_v39 = vrot.slane %v646_v32, 4 }
 0x1ff   : > { %v1157_v40 = vpop.eup %1156  ;;  %v578_v41 = vmul.f32 %v1780_v14, %v556_v21  ;;  %v626_v42 = vmul.f32 %v1801_v56, %v598_v27  ;;  %v634_v60 = vadd.f32 %v633_v34, %v632_v29  ;;  %v654_v45 = vrot.slane %v653_v28, 4 }
 0x200   : > { %v1159_v46 = vpop.eup %1158  ;;  %v599_v3 = vadd.f32 %v1787_v33, %v577_v37  ;;  %v557_v47 = vmul.f32 %v1157_v40, %v1761_v4  ;;  %v641_v36 = vadd.f32 %v640_v35, %v639_v31  ;;  %v648_v48 = vadd.f32 %v647_v39, %v646_v32 }
 0x201   : > { %v600_v49 = vadd.f32 %v1787_v33, %v578_v41  ;;  %v558_v50 = vmul.f32 %v1159_v46, %v1768_v11  ;;  %v635_v53 = vrot.slane %v634_v60, 2  ;;  %v655_v43 = vadd.f32 %v654_v45, %v653_v28 }
 0x202   : > { %v579_v54 = vmul.f32 %v1780_v14, %v557_v47  ;;  %v627_v55 = vmul.f32 %v1815_v13, %v599_v3  ;;  %v642_v57 = vrot.slane %v641_v36, 2  ;;  %v649_v58 = vrot.slane %v648_v48, 2 }
 0x203   : > { %v1161_v61 = vpop.eup %1160  ;;  %v580_v62 = vmul.f32 %v1780_v14, %v558_v50  ;;  %v628_v63 = vmul.f32 %v1801_v56, %v600_v49  ;;  %v636_v4 = vadd.f32 %v635_v53, %v634_v60  ;;  %v656_v0 = vrot.slane %v655_v43, 2 }
 0x204   : > { %v601_v1 = vadd.f32 %v1787_v33, %v579_v54  ;;  %v559_v11 = vmul.f32 %v1161_v61, %v1771_v12  ;;  %v643_v44 = vadd.f32 %v642_v57, %v641_v36  ;;  %v650_v2 = vadd.f32 %v649_v58, %v648_v48 }
 0x205   : > { %v602_v5 = vadd.f32 %v1787_v33, %v580_v62  ;;  %v637_v6 = vrot.slane %v636_v4, 1  ;;  %v657_v7 = vadd.f32 %v656_v0, %v655_v43  ;;  %v660_v51 = vadd.f32 %v625_v38, %v624_v26 }
 0x206   : > { %v581_v8 = vmul.f32 %v1780_v14, %v559_v11  ;;  %v629_v9 = vmul.f32 %v1815_v13, %v601_v1  ;;  %v644_v10 = vrot.slane %v643_v44, 1  ;;  %v651_v16 = vrot.slane %v650_v2, 1 }
 0x207   : > { %v638_v17 = vadd.f32 %v637_v6, %v636_v4  ;;  %v661_v18 = vrot.slane %v660_v51, 4  ;;  %v667_v19 = vadd.f32 %v627_v55, %v626_v42  ;;  %v689_v15 = vstv %s1835_s9 }
 0x208   : > { %v603_v22 = vadd.f32 %v1787_v33, %v581_v8  ;;  %v630_v12 = vmul.f32 %v1801_v56, %v602_v5  ;;  %v645_v52 = vadd.f32 %v644_v10, %v643_v44  ;;  %v674_v23 = vadd.f32 %v629_v9, %v628_v63 }
 0x209   : > { %v662_v24 = vadd.f32 %v661_v18, %v660_v51  ;;  %v668_v25 = vrot.slane %v667_v19, 4  ;;  %v652_v29 = vadd.f32 %v651_v16, %v650_v2  ;;  %v658_v26 = vrot.slane %v657_v7, 1 }
 0x20a   : > { %v631_v14 = vmul.f32 %v1815_v13, %v603_v22  ;;  %v675_v59 = vrot.slane %v674_v23, 4  ;;  %v690_v20 = vadd.f32 %v689_v15, %v638_v17  ;;  %v691_v30 = vadd.f32 %v689_v15, %v645_v52 }
 0x20b   : > { %v663_v31 = vrot.slane %v662_v24, 2  ;;  %v669_v32 = vadd.f32 %v668_v25, %v667_v19  ;;  %v659_v21 = vadd.f32 %v658_v26, %v657_v7  ;;  %v692_v37 = vadd.f32 %v689_v15, %v652_v29 }
 0x20c   : > { %v681_v27 = vadd.f32 %v631_v14, %v630_v12  ;;  %v676_v34 = vadd.f32 %v675_v59, %v674_v23  ;;  %v698_v35 = vpack.c.bf16 %v690_v20, %v690_v20  ;;  %v699_v39 = vpack.c.bf16 %v691_v30, %v691_v30 }
 0x20d   : > { %v664_v28 = vadd.f32 %v663_v31, %v662_v24  ;;  %v670_v33 = vrot.slane %v669_v32, 2  ;;  %v693_v13 = vadd.f32 %v689_v15, %v659_v21  ;;  %v700_v3 = vpack.c.bf16 %v692_v37, %v692_v37 }
 0x20e   : > { %v677_v56 = vrot.slane %v676_v34, 2  ;;  %v682_v38 = vrot.slane %v681_v27, 4  ;;  %v737_v48 = vunpack.c.l.b16 %v698_v35  ;;  %v738_v49 = vunpack.c.l.b16 %v699_v39 }
 0x20f   : > { %v665_v40 = vrot.slane %v664_v28, 1  ;;  %v671_v41 = vadd.f32 %v670_v33, %v669_v32  ;;  %v701_v55 = vpack.c.bf16 %v693_v13, %v693_v13  ;;  %v739_v61 = vunpack.c.l.b16 %v700_v3 }
 0x210   : > { %v678_v42 = vadd.f32 %v677_v56, %v676_v34  ;;  %v683_v60 = vadd.f32 %v682_v38, %v681_v27  ;;  %v746_v4 = vsel %vm745_vm1, %v738_v49, %v737_v48 }
 0x211   : > { %v666_v45 = vadd.f32 %v665_v40, %v664_v28  ;;  %v672_v46 = vrot.slane %v671_v41, 1  ;;  %v740_v44 = vunpack.c.l.b16 %v701_v55  ;;  %v748_v5 = vsel %vm747_vm2, %v739_v61, %v746_v4 }
 0x212   : > { %v679_v47 = vrot.slane %v678_v42, 1  ;;  %v684_v36 = vrot.slane %v683_v60, 2 }
 0x213   : > { %v673_v50 = vadd.f32 %v672_v46, %v671_v41  ;;  %v694_v53 = vadd.f32 %v689_v15, %v666_v45  ;;  %v750_v9 = vsel %vm749_vm3, %v740_v44, %v748_v5 }
 0x214   : > { %v680_v43 = vadd.f32 %v679_v47, %v678_v42  ;;  %v685_v54 = vadd.f32 %v684_v36, %v683_v60 }
 0x215   : > { %v695_v57 = vadd.f32 %v689_v15, %v673_v50  ;;  %v702_v58 = vpack.c.bf16 %v694_v53, %v694_v53 }
 0x216   : > { %v686_v62 = vrot.slane %v685_v54, 1  ;;  %v696_v63 = vadd.f32 %v689_v15, %v680_v43 }
 0x217   : > { %v703_v0 = vpack.c.bf16 %v695_v57, %v695_v57  ;;  %v741_v2 = vunpack.c.l.b16 %v702_v58 }
 0x218   : > { %v687_v1 = vadd.f32 %v686_v62, %v685_v54  ;;  %v704_v11 = vpack.c.bf16 %v696_v63, %v696_v63 }
 0x219   : > { %v742_v7 = vunpack.c.l.b16 %v703_v0  ;;  %v752_v10 = vsel %vm751_vm4, %v741_v2, %v750_v9 }
 0x21a   : > { %v697_v6 = vadd.f32 %v689_v15, %v687_v1  ;;  %v743_v51 = vunpack.c.l.b16 %v704_v11  ;;  %v985_v15 = vld [vmem:[#allocation11] ss:$0 sm:$0xff] }
 0x21b   : > { %v754_v17 = vsel %vm753_vm5, %v742_v7, %v752_v10 }
 0x21c   : > { %v705_v8 = vpack.c.bf16 %v697_v6, %v697_v6  ;;  %v756_v18 = vsel %vm755_vm6, %v743_v51, %v754_v17 }
 0x21e   : > { %v744_v16 = vunpack.c.l.b16 %v705_v8 }
 0x220   : > { %v758_v19 = vsel %vm757_vm7, %v744_v16, %v756_v18 }
 0x221   : > { %v759_v22 = vpack.c.b16 %v758_v19, %v758_v19 }
 0x223   : > { %1023 = vmatmul.mubr.bf16.vlgmr.msra.gmra.mrb[0].mxu0 %v759_v22 }
 0x2f6   : > { %v843_v12 = vpop.f32.mrb[0].mxu0 }
 0x2f7   : > { %v844_v52 = vadd.f32 %v985_v15, %v843_v12  ;;  %v1024_v23 = vpop.f32.mrb[1].mxu0 }
 0x2f8   : > { %v846_v24 = vpop.f32.mrb[2].mxu0 }
 0x2f9   : > { %849 = vst [vmem:[%s363_s12] sm:$0xff] %v844_v52  ;;  %v1025_v25 = vpop.f32.mrb[3].mxu0 }
 0x2fa PF: > { %p21_p6 = scmp.ge.s32.totalorder %s1597_s22, 4   ;;  %s1895_s26 = smov %s1370_s27 }
 0x2fb   : > { %s1896_s27 = smov %s1374_s28  ;;  %s1897_s28 = smov %s1608_s20 }
 0x2fc   : > { %s1898_s29 = smov %s1597_s22  ;;  %23 = sbr.rel (!%p21_p6) target bundleno = 8 (0x8), region = 108 }
 0x303   :  { %869 = vsyncpa [#allocation4], 1 }
 0x304   :  { %871 = vsyncpa [#allocation4 + $0x1], 1 }
 0x305   :  { %872 = vsyncpa [#allocation6], 1 }
 0x306   :  { %873 = vsyncpa [#allocation9], 1 }
 0x307   :  { %874 = vsyncpa [#allocation12], 1 }

// kernel: styleformer_forward.4
= control target key start
LH: loop header
LB: loop body
LE: loop exit
PB: predicated region body
PF: predicated region fallthrough
CT: control target
= control target key end

     0   :  { %s13293_s0 = inlined_call_operand.hbm [shape: f32[256,128], index: 0, kind: input, shape index: {}]   ;;  %s13294_s1 = inlined_call_operand.hbm [shape: f32[2,1,128], index: 1, kind: input, shape index: {}]   ;;  %s13295_s2 = inlined_call_operand.hbm [shape: f32[2,1,128], index: 2, kind: input, shape index: {}]   ;;  %s13296_s3 = inlined_call_operand.hbm [shape: bf16[2,128,384], index: 3, kind: input, shape index: {}]   ;;  %s13297_s4 = inlined_call_operand.hbm [shape: f32[2,1,384], index: 4, kind: input, shape index: {}]   ;;  %s13298_s5 = inlined_call_operand.hbm [shape: bf16[2,128,128], index: 5, kind: input, shape index: {}]   ;;  %s13299_s6 = inlined_call_operand.hbm [shape: f32[2,1,128], index: 6, kind: input, shape index: {}]   ;;  %s13300_s7 = inlined_call_operand.hbm [shape: f32[2,1,128], index: 7, kind: input, shape index: {}]   ;;  %s13301_s8 = inlined_call_operand.hbm [shape: f32[2,1,128], index: 8, kind: input, shape index: {}]   ;;  %s13302_s9 = inlined_call_operand.hbm [shape: bf16[2,128,512], index: 9, kind: input, shape index: {}]   ;;  %s13303_s10 = inlined_call_operand.hbm [shape: f32[2,1,512], index: 10, kind: input, shape index: {}]   ;;  %s13304_s11 = inlined_call_operand.hbm [shape: bf16[2,512,128], index: 11, kind: input, shape index: {}]   ;;  %s13305_s12 = inlined_call_operand.hbm [shape: f32[2,1,128], index: 12, kind: input, shape index: {}]   ;;  %s13306_s13 = inlined_call_operand.hbm [shape: f32[256,128], index: 13, kind: output, shape index: {}]  }
   0x1   :  { %13379 = sst [smem:[#allocation94_spill]] %s13293_s0 }
   0x2   :  { %13380 = sst [smem:[#allocation95_spill]] %s13294_s1 }
   0x3   :  { %13381 = sst [smem:[#allocation96_spill]] %s13295_s2 }
   0x4   :  { %13382 = sst [smem:[#allocation97_spill]] %s13296_s3 }
   0x5   :  { %13383 = sst [smem:[#allocation98_spill]] %s13297_s4 }
   0x6   :  { %13384 = sst [smem:[#allocation99_spill]] %s13298_s5 }
   0x7   :  { %13385 = sst [smem:[#allocation100_spill]] %s13299_s6 }
   0x8   :  { %13386 = sst [smem:[#allocation101_spill]] %s13300_s7 }
   0x9   :  { %13387 = sst [smem:[#allocation102_spill]] %s13301_s8 }
   0xa   :  { %13388 = sst [smem:[#allocation103_spill]] %s13302_s9 }
   0xb   :  { %13389 = sst [smem:[#allocation104_spill]] %s13303_s10 }
   0xc   :  { %13390 = sst [smem:[#allocation105_spill]] %s13304_s11 }
   0xd   :  { %13391 = sst [smem:[#allocation106_spill]] %s13305_s12 }
   0xe   :  { %13392 = sst [smem:[#allocation107_spill]] %s13306_s13 }
   0xf   :  { %18 = vsyncpa [#allocation5], 0 }
  0x10   :  { %20 = vsyncpa [#allocation5 + $0x1], 0 }
  0x11   :  { %21 = vsyncpa [#allocation8], 0 }
  0x12   :  { %23 = vsyncpa [#allocation8 + $0x1], 0 }
  0x13   :  { %24 = vsyncpa [#allocation11], 0 }
  0x14   :  { %26 = vsyncpa [#allocation11 + $0x1], 0 }
  0x15   :  { %27 = vsyncpa [#allocation14], 0 }
  0x16   :  { %29 = vsyncpa [#allocation14 + $0x1], 0 }
  0x17   :  { %30 = vsyncpa [#allocation17], 0 }
  0x18   :  { %32 = vsyncpa [#allocation17 + $0x1], 0 }
  0x19   :  { %33 = vsyncpa [#allocation20], 0 }
  0x1a   :  { %35 = vsyncpa [#allocation20 + $0x1], 0 }
  0x1b   :  { %36 = vsyncpa [#allocation23], 0 }
  0x1c   :  { %38 = vsyncpa [#allocation23 + $0x1], 0 }
  0x1d   :  { %39 = vsyncpa [#allocation6], 0 }
  0x1e   :  { %41 = vsyncpa [#allocation6 + $0x1], 0  ;;  %s10139_s25 = smov 0   ;;  %s10141_s26 = smov 0  }
  0x1f   :  { %s10143_s27 = smov 0   ;;  %s10145_s28 = smov 0  }
  0x20   :  { %s10147_s29 = smov 0   ;;  %s10149_s30 = smov 0  }
  0x21   :  { %s10151_s14 = smov 0   ;;  %s10153_s15 = smov 0  }
  0x22   :  { %s10155_s16 = smov 0   ;;  %s10157_s17 = smov 0  }
  0x23   :  { %s10159_s18 = smov 0  }
  0x24 LB: > { %13393 = sst [smem:[#allocation34_spill]] %s10001_s26  ;;  %p13314_p0 = scmp.eq.s32.totalorder %s10037_s18, 0  ;;  %s10037_s18 = sphi %s10159_s18, %s47_s18   ;;  %s10033_s17 = sphi %s10157_s17, %s13599_s17   ;;  %s10029_s16 = sphi %s10155_s16, %s13603_s16   ;;  %s10025_s15 = sphi %s10153_s15, %s13597_s15   ;;  %s10021_s14 = sphi %s10151_s14, %s13602_s14   ;;  %s10017_s30 = sphi %s10149_s30, %s13596_s30   ;;  %s10013_s29 = sphi %s10147_s29, %s13601_s29   ;;  %s10009_s28 = sphi %s10145_s28, %s13600_s28   ;;  %s10005_s27 = sphi %s10143_s27, %s13594_s27   ;;  %s10001_s26 = sphi %s10141_s26, %s13593_s26   ;;  %s9997_s25 = sphi %s10139_s25, %s13592_s25  }
  0x25   : > { %13394 = sst [smem:[#allocation35_spill]] %s10005_s27  ;;  %p99_p1 = scmp.ne.s32.totalorder %s10005_s27, %s10001_s26 }
  0x26   : > { %13395 = sst [smem:[#allocation36_spill]] %s10017_s30  ;;  %p13313_p2 = scmp.lt.s32.totalorder %s10037_s18, 4 }
  0x27   : > { %13396 = sst [smem:[#allocation37_spill]] %s10021_s14  ;;  %p101_p3 = por %p99_p1, %p13314_p0 }
  0x28   : > { %13397 = sst [smem:[#allocation38_spill]] %s10025_s15  ;;  %s10201_s19 = sand.u32 1, %s10037_s18  }
  0x29   : > { %13398 = sst [smem:[#allocation39_spill]] %s10033_s17  ;;  %s10204_s20 = sand.u32 1, %s10005_s27  }
  0x2a   : > { %s10207_s21 = sshll.u32 %s10029_s16, 4  ;;  %s13399_s1 = sld [smem:[#allocation95_spill]] }
  0x2b   : > { %s465_s13 = scalar_lea.vmem [#allocation7], %s10204_s20  ;;  %p10220_p4 = pnand %p13313_p2, %p101_p3 }
  0x2c   : > { %s472_s15 = sshll.u32 %s465_s13, 4  ;;  %s10216_s15 = int_to_ptr.vmem [resolvable:$true] %s472_s15 }
  0x2d   : > { %s13400_s14 = scalar_select %p10220_p4, 1, 0 }
  0x2e   : > { %p10231_p8 = pneg %p10220_p4 }
  0x30   : > { %s10213_s24 = scalar_lea.hbm %s13399_s1, %s10207_s21  ;;  %s9506_s8 = scalar_lea.hbm %s13399_s1, 32 }
  0x31   : > { %s9501_s22 = scalar_lea.hbm %s10213_s24, 16  ;;  %p9507_p11 = scmp.lt.u32.totalorder %s10213_s24, %s13399_s1 }
  0x32   : > { %p9502_p7 = scmp.ne.s32.totalorder %s10213_s24, %s9501_s22  ;;  %p9508_p12 = scmp.lt.u32.totalorder %s9506_s8, %s9501_s22 }
  0x33   : > { %p9510_p1 = scmp.lt.u32.totalorder %s9501_s22, %s10213_s24 }
  0x34   : > { %p9504_p9 = pnand %p10231_p8, %p9502_p7  ;;  %p9509_p13 = por %p9508_p12, %p9507_p11 }
  0x36   : > { %p9505_p10 = pneg %p9504_p9  ;;  %p9511_p3 = por %p9510_p1, %p9509_p13 }
  0x38   : > { %p9512_p2 = pnand %p9511_p3, %p9505_p10 }
  0x3a   : > { %9515 = shalt.err (!%p9512_p2)
}
  0x3b   : > { %s9516_s12 = scalar_lea.vmem %s10216_s15, 16  ;;  %s10039_s10 = smov [#allocation7]  }
  0x3c   : > { %p9517_p7 = scmp.ne.s32.totalorder %s10216_s15, %s9516_s12  ;;  %s9521_s13 = sshll.u32 %s10039_s10, 4  ;;  %s9522_s13 = int_to_ptr.vmem [resolvable:$false] %s9521_s13 }
  0x3d   : > { %s9523_s4 = scalar_lea.vmem %s9522_s13, 32  ;;  %p9524_p5 = scmp.lt.s32.totalorder %s10216_s15, %s9522_s13 }
  0x3e   : > { %p9519_p9 = pnand %p9517_p7, %p10231_p8  ;;  %p9525_p6 = scmp.lt.s32.totalorder %s9523_s4, %s9516_s12 }
  0x40   : > { %p9520_p0 = pneg %p9519_p9  ;;  %p9526_p11 = por %p9525_p6, %p9524_p5 }
  0x42   : > { %p9527_p12 = pnand %p9526_p11, %p9520_p0 }
  0x44   : > { %9530 = shalt.err (!%p9527_p12)
}
  0x45   : > { %s13402_s6 = scalar_lea.sflag [#allocation8], %s10201_s19  ;;  %p13403_p2 = scmp.lt.s32.totalorder %s10037_s18, 5 }
  0x46   : > { %8773 = dma.hbm_to_vmem [thread:$0]  (!%p10220_p4), %s10213_s24, 16, %s10216_s15, %s13402_s6  }
  0x47   : > { %p13404_p10 = scmp.ge.s32.totalorder %s10037_s18, 1  ;;  %s8733_s12 = smul.u32 192, %s10204_s20 }
  0x48   : > { %s8734_s22 = smul.u32 3072, %s10029_s16  ;;  %s13407_s3 = sld [smem:[#allocation97_spill]] }
  0x49   : > { %p10260_p13 = pnand %p13404_p10, %p13403_p2  ;;  %s500_s1 = scalar_lea.vmem [#allocation10], %s8733_s12 }
  0x4a   : > { %s507_s2 = sshll.u32 %s500_s1, 4  ;;  %s13320_s15 = scalar_lea.sflag [#allocation11], %s10201_s19  ;;  %s10271_s2 = int_to_ptr.vmem [resolvable:$true] %s507_s2 }
  0x4b   : > { %s13405_s8 = scalar_select %p10260_p13, 1, 0 }
  0x4d   : > { %13406 = sst [smem:[#allocation40_spill]] %s13405_s8 }
  0x4e   : > { %s10269_s4 = scalar_lea.hbm %s13407_s3, %s8734_s22  ;;  %s9536_s10 = scalar_lea.hbm %s13407_s3, 6144 }
  0x4f   : > { %s9531_s24 = scalar_lea.hbm %s10269_s4, 3072  ;;  %p9537_p1 = scmp.lt.u32.totalorder %s10269_s4, %s13407_s3 }
  0x50   : > { %p9532_p0 = scmp.ne.s32.totalorder %s10269_s4, %s9531_s24  ;;  %p9538_p3 = scmp.lt.u32.totalorder %s9536_s10, %s9531_s24 }
  0x51   : > { %p9540_p9 = scmp.lt.u32.totalorder %s9531_s24, %s10269_s4 }
  0x52   : > { %p9534_p5 = pnand %p9532_p0, %p10231_p8  ;;  %p9539_p7 = por %p9538_p3, %p9537_p1 }
  0x54   : > { %p9535_p6 = pneg %p9534_p5  ;;  %p9541_p11 = por %p9540_p9, %p9539_p7 }
  0x56   : > { %p9542_p12 = pnand %p9541_p11, %p9535_p6 }
  0x58   : > { %9545 = shalt.err (!%p9542_p12)
}
  0x59   : > { %s9546_s1 = scalar_lea.vmem %s10271_s2, 3072  ;;  %s10040_s8 = smov [#allocation10]  }
  0x5a   : > { %p9547_p2 = scmp.ne.s32.totalorder %s10271_s2, %s9546_s1  ;;  %s9551_s12 = sshll.u32 %s10040_s8, 4  ;;  %s9552_s12 = int_to_ptr.vmem [resolvable:$false] %s9551_s12 }
  0x5b   : > { %s9553_s6 = scalar_lea.vmem %s9552_s12, 6144  ;;  %p9554_p5 = scmp.lt.s32.totalorder %s10271_s2, %s9552_s12 }
  0x5c   : > { %p9549_p10 = pnand %p9547_p2, %p10231_p8  ;;  %p9555_p13 = scmp.lt.s32.totalorder %s9553_s6, %s9546_s1 }
  0x5e   : > { %p9550_p0 = pneg %p9549_p10  ;;  %p9556_p1 = por %p9555_p13, %p9554_p5 }
  0x60   : > { %p9557_p3 = pnand %p9556_p1, %p9550_p0 }
  0x62   : > { %9560 = shalt.err (!%p9557_p3)
}
  0x63   : > { %s10041_s24 = smov 192   ;;  %s10042_s10 = smov 12  }
  0x64   : > { %8779 = dma.hbm_to_vmem [thread:$0]  (!%p10220_p4), %s10269_s4, 3072, %s10271_s2, %s13320_s15, %s10041_s24, %s10041_s24, %s10042_s10  }
  0x65   : > { %s7779_s22 = sshll.u32 %s10204_s20, 6  ;;  %s7976_s13 = sshll.u32 %s10029_s16, 10 }
  0x66   : > { %s13408_s5 = sld [smem:[#allocation99_spill]]  ;;  %s540_s6 = scalar_lea.vmem [#allocation13], %s7779_s22 }
  0x67   : > { %s547_s3 = sshll.u32 %s540_s6, 4  ;;  %s13319_s0 = scalar_lea.sflag [#allocation14], %s10201_s19  ;;  %s10304_s3 = int_to_ptr.vmem [resolvable:$true] %s547_s3 }
  0x6c   : > { %s10302_s12 = scalar_lea.hbm %s13408_s5, %s7976_s13  ;;  %s9566_s24 = scalar_lea.hbm %s13408_s5, 2048 }
  0x6d   : > { %s9561_s26 = scalar_lea.hbm %s10302_s12, 1024  ;;  %p9567_p9 = scmp.lt.u32.totalorder %s10302_s12, %s13408_s5 }
  0x6e   : > { %p9562_p13 = scmp.ne.s32.totalorder %s10302_s12, %s9561_s26  ;;  %p9568_p11 = scmp.lt.u32.totalorder %s9566_s24, %s9561_s26 }
  0x6f   : > { %p9570_p2 = scmp.lt.u32.totalorder %s9561_s26, %s10302_s12 }
  0x70   : > { %p9564_p6 = pnand %p9562_p13, %p10231_p8  ;;  %p9569_p12 = por %p9568_p11, %p9567_p9 }
  0x72   : > { %p9565_p7 = pneg %p9564_p6  ;;  %p9571_p10 = por %p9570_p2, %p9569_p12 }
  0x74   : > { %p9572_p0 = pnand %p9571_p10, %p9565_p7 }
  0x76   : > { %9575 = shalt.err (!%p9572_p0)
}
  0x77   : > { %s9576_s22 = scalar_lea.vmem %s10304_s3, 1024  ;;  %s10043_s8 = smov [#allocation13]  }
  0x78   : > { %p9577_p5 = scmp.ne.s32.totalorder %s10304_s3, %s9576_s22  ;;  %s9581_s1 = sshll.u32 %s10043_s8, 4  ;;  %s9582_s1 = int_to_ptr.vmem [resolvable:$false] %s9581_s1 }
  0x79   : > { %s9583_s6 = scalar_lea.vmem %s9582_s1, 2048  ;;  %p9584_p13 = scmp.lt.s32.totalorder %s10304_s3, %s9582_s1 }
  0x7a   : > { %p9579_p1 = pnand %p9577_p5, %p10231_p8  ;;  %p9585_p6 = scmp.lt.s32.totalorder %s9583_s6, %s9576_s22 }
  0x7c   : > { %p9580_p3 = pneg %p9579_p1  ;;  %p9586_p9 = por %p9585_p6, %p9584_p13 }
  0x7e   : > { %p9587_p11 = pnand %p9586_p9, %p9580_p3 }
  0x80   : > { %9590 = shalt.err (!%p9587_p11)
}
  0x81   : > { %s13324_s26 = smov 64   ;;  %s13325_s2 = smov 4  }
  0x82   : > { %8785 = dma.hbm_to_vmem [thread:$0]  (!%p10220_p4), %s10302_s12, 1024, %s10304_s3, %s13319_s0, %s13324_s26, %s13324_s26, %s13325_s2  }
  0x83   : > { %s13409_s7 = sld [smem:[#allocation101_spill]]  ;;  %s577_s13 = scalar_lea.vmem [#allocation16], %s10204_s20 }
  0x84   : > { %s584_s22 = sshll.u32 %s577_s13, 4  ;;  %s13323_s8 = scalar_lea.sflag [#allocation17], %s10201_s19  ;;  %s585_s22 = int_to_ptr.vmem [resolvable:$true] %s584_s22 }
  0x89   : > { %s10337_s10 = scalar_lea.hbm %s13409_s7, %s10207_s21  ;;  %s9596_s12 = scalar_lea.hbm %s13409_s7, 32 }
  0x8a   : > { %s9591_s1 = scalar_lea.hbm %s10337_s10, 16  ;;  %p9597_p10 = scmp.lt.u32.totalorder %s10337_s10, %s13409_s7 }
  0x8b   : > { %p9592_p7 = scmp.ne.s32.totalorder %s10337_s10, %s9591_s1  ;;  %p9598_p0 = scmp.lt.u32.totalorder %s9596_s12, %s9591_s1 }
  0x8c   : > { %p9600_p1 = scmp.lt.u32.totalorder %s9591_s1, %s10337_s10 }
  0x8d   : > { %p9594_p12 = pnand %p9592_p7, %p10231_p8  ;;  %p9599_p5 = por %p9598_p0, %p9597_p10 }
  0x8f   : > { %p9595_p2 = pneg %p9594_p12  ;;  %p9601_p3 = por %p9600_p1, %p9599_p5 }
  0x91   : > { %p9602_p13 = pnand %p9601_p3, %p9595_p2 }
  0x93   : > { %9605 = shalt.err (!%p9602_p13)
}
  0x94   : > { %s9606_s13 = scalar_lea.vmem %s585_s22, 16  ;;  %s10046_s0 = smov [#allocation16]  }
  0x95   : > { %p9607_p6 = scmp.ne.s32.totalorder %s585_s22, %s9606_s13  ;;  %s9611_s15 = sshll.u32 %s10046_s0, 4  ;;  %s9612_s15 = int_to_ptr.vmem [resolvable:$false] %s9611_s15 }
  0x96   : > { %s9613_s6 = scalar_lea.vmem %s9612_s15, 32  ;;  %p9614_p7 = scmp.lt.s32.totalorder %s585_s22, %s9612_s15 }
  0x97   : > { %p9609_p9 = pnand %p9607_p6, %p10231_p8  ;;  %p9615_p12 = scmp.lt.s32.totalorder %s9613_s6, %s9606_s13 }
  0x99   : > { %p9610_p11 = pneg %p9609_p9  ;;  %p9616_p4 = por %p9615_p12, %p9614_p7 }
  0x9b   : > { %p9617_p0 = pnand %p9616_p4, %p9610_p11 }
  0x9d   : > { %9620 = shalt.err (!%p9617_p0)
}
  0x9e   : > { %p13410_p10 = scmp.ne.s32.totalorder %s13400_s14, 0  ;;  %s7785_s0 = sshll.u32 %s10204_s20, 8 }
  0x9f   : > { %s7977_s1 = sshll.u32 %s10029_s16, 12  ;;  %s13411_s9 = sld [smem:[#allocation103_spill]] }
  0xa0   : > { %8791 = dma.hbm_to_vmem [thread:$0]  (!%p13410_p10), %s10337_s10, 16, %s585_s22, %s13323_s8  }
  0xa1   : > { %s612_s4 = scalar_lea.vmem [#allocation19], %s7785_s0  ;;  %s13327_s13 = scalar_lea.sflag [#allocation20], %s10201_s19 }
  0xa2   : > { %s619_s24 = sshll.u32 %s612_s4, 4  ;;  %s10371_s24 = int_to_ptr.vmem [resolvable:$true] %s619_s24 }
  0xa5   : > { %s10367_s12 = scalar_lea.hbm %s13411_s9, %s7977_s1  ;;  %s9626_s15 = scalar_lea.hbm %s13411_s9, 8192 }
  0xa6   : > { %s9621_s6 = scalar_lea.hbm %s10367_s12, 4096  ;;  %p9627_p1 = scmp.lt.u32.totalorder %s10367_s12, %s13411_s9 }
  0xa7   : > { %p9622_p4 = scmp.ne.s32.totalorder %s10367_s12, %s9621_s6  ;;  %p9628_p3 = scmp.lt.u32.totalorder %s9626_s15, %s9621_s6 }
  0xa8   : > { %p9630_p6 = scmp.lt.u32.totalorder %s9621_s6, %s10367_s12 }
  0xa9   : > { %p9624_p2 = pnand %p9622_p4, %p10231_p8  ;;  %p9629_p13 = por %p9628_p3, %p9627_p1 }
  0xab   : > { %p9625_p5 = pneg %p9624_p2  ;;  %p9631_p9 = por %p9630_p6, %p9629_p13 }
  0xad   : > { %p9632_p11 = pnand %p9631_p9, %p9625_p5 }
  0xaf   : > { %9635 = shalt.err (!%p9632_p11)
}
  0xb0   : > { %s9636_s4 = scalar_lea.vmem %s10371_s24, 4096  ;;  %s10047_s10 = smov [#allocation19]  }
  0xb1   : > { %p9637_p7 = scmp.ne.s32.totalorder %s10371_s24, %s9636_s4  ;;  %s9641_s22 = sshll.u32 %s10047_s10, 4  ;;  %s9642_s22 = int_to_ptr.vmem [resolvable:$false] %s9641_s22 }
  0xb2   : > { %s9643_s8 = scalar_lea.vmem %s9642_s22, 8192  ;;  %p9644_p4 = scmp.lt.s32.totalorder %s10371_s24, %s9642_s22 }
  0xb3   : > { %p9639_p12 = pnand %p9637_p7, %p10231_p8  ;;  %p9645_p2 = scmp.lt.s32.totalorder %s9643_s8, %s9636_s4 }
  0xb5   : > { %p9640_p0 = pneg %p9639_p12  ;;  %p9646_p1 = por %p9645_p2, %p9644_p4 }
  0xb7   : > { %p9647_p3 = pnand %p9646_p1, %p9640_p0 }
  0xb9   : > { %9650 = shalt.err (!%p9647_p3)
}
  0xba   : > { %s10048_s6 = smov 256   ;;  %s10049_s15 = smov 16  }
  0xbb   : > { %8797 = dma.hbm_to_vmem [thread:$0]  (!%p13410_p10), %s10367_s12, 4096, %s10371_s24, %s13327_s13, %s10048_s6, %s10048_s6, %s10049_s15  }
  0xbc   : > { %s13412_s11 = sld [smem:[#allocation105_spill]]  ;;  %s652_s22 = scalar_lea.vmem [#allocation22], %s7785_s0 }
  0xbd   : > { %s659_s8 = sshll.u32 %s652_s22, 4  ;;  %s13326_s26 = scalar_lea.sflag [#allocation23], %s10201_s19  ;;  %s10406_s8 = int_to_ptr.vmem [resolvable:$true] %s659_s8 }
  0xc2   : > { %s10402_s4 = scalar_lea.hbm %s13412_s11, %s7977_s1  ;;  %s9656_s1 = scalar_lea.hbm %s13412_s11, 8192 }
  0xc3   : > { %s9651_s2 = scalar_lea.hbm %s10402_s4, 4096  ;;  %p9657_p9 = scmp.lt.u32.totalorder %s10402_s4, %s13412_s11 }
  0xc4   : > { %p9652_p5 = scmp.ne.s32.totalorder %s10402_s4, %s9651_s2  ;;  %p9658_p11 = scmp.lt.u32.totalorder %s9656_s1, %s9651_s2 }
  0xc5   : > { %p9660_p12 = scmp.lt.u32.totalorder %s9651_s2, %s10402_s4 }
  0xc6   : > { %p9654_p13 = pnand %p9652_p5, %p10231_p8  ;;  %p9659_p7 = por %p9658_p11, %p9657_p9 }
  0xc8   : > { %p9655_p6 = pneg %p9654_p13  ;;  %p9661_p0 = por %p9660_p12, %p9659_p7 }
  0xca   : > { %p9662_p4 = pnand %p9661_p0, %p9655_p6 }
  0xcc   : > { %9665 = shalt.err (!%p9662_p4)
}
  0xcd   : > { %s9666_s0 = scalar_lea.vmem %s10406_s8, 4096  ;;  %s10050_s3 = smov [#allocation22]  }
  0xce   : > { %p9667_p2 = scmp.ne.s32.totalorder %s10406_s8, %s9666_s0  ;;  %s9671_s10 = sshll.u32 %s10050_s3, 4  ;;  %s9672_s10 = int_to_ptr.vmem [resolvable:$false] %s9671_s10 }
  0xcf   : > { %s9673_s22 = scalar_lea.vmem %s9672_s10, 8192  ;;  %p9674_p5 = scmp.lt.s32.totalorder %s10406_s8, %s9672_s10 }
  0xd0   : > { %p9669_p1 = pnand %p9667_p2, %p10231_p8  ;;  %p9675_p13 = scmp.lt.s32.totalorder %s9673_s22, %s9666_s0 }
  0xd2   : > { %p9670_p3 = pneg %p9669_p1  ;;  %p9676_p9 = por %p9675_p13, %p9674_p5 }
  0xd4   : > { %p9677_p11 = pnand %p9676_p9, %p9670_p3 }
  0xd6   : > { %9680 = shalt.err (!%p9677_p11)
}
  0xd7   : > { %s13413_s2 = smov 4   ;;  %s13414_s12 = smov 64  }
  0xd8   : > { %8803 = dma.hbm_to_vmem [thread:$0]  (!%p13410_p10), %s10402_s4, 4096, %s10406_s8, %s13326_s26, %s13414_s12, %s13414_s12, %s13413_s2  }
  0xd9   : > { %s10436_s24 = sadd.s32 4294967295, %s10037_s18   ;;  %s7769_s1 = sadd.s32 4294967294, %s10037_s18  }
  0xda   : > { %s56_s6 = sadd.s32 1, %s10029_s16  ;;  %s13415_s15 = sld [smem:[#allocation34_spill]] }
  0xdb   : > { %p57_p6 = scmp.ge.s32.totalorder %s56_s6, 2  ;;  %s59_s0 = sadd.s32 1, %s10033_s17 }
  0xdc   : > { %s66_s3 = sadd.s32 1, %s10017_s30  ;;  %p73_p7 = scmp.ne.s32.totalorder %s10017_s30, %s10013_s29 }
  0xdd   : > { %s13605_s6 = smov (%p57_p6, %s56_s6), 0  ;;  %s13607_s0 = smov (!%p57_p6, %s59_s0), %s10033_s17 }
  0xde   : > { %13416 = sst [smem:[#allocation41_spill]] %s13605_s6  ;;  %p13417_p12 = scmp.eq.s32.totalorder %s10037_s18, 0 }
  0xdf   : > { %p79_p4 = scmp.ne.s32.totalorder %s10013_s29, %s10009_s28  ;;  %p61_p2 = scmp.ge.s32.totalorder %s13607_s0, 2 }
  0xe0   : > { %p10452_p0 = por %p13417_p12, %p73_p7  ;;  %p80_p1 = scmp.eq.s32.totalorder %s10436_s24, 0 }
  0xe1   : > { %s89_s8 = ssub.s32 %s10029_s16, %s13605_s6  ;;  %s92_s10 = sadd.s32 1, %s10005_s27 }
  0xe2   : > { %s13609_s0 = smov (%p61_p2, %s13607_s0), 0  ;;  %p10467_p3 = por %p80_p1, %p79_p4 }
  0xe3   : > { %13419 = sst [smem:[#allocation42_spill]] %s13609_s0  ;;  %p90_p5 = scmp.eq.s32.totalorder %s89_s8, 0 }
  0xe4   : > { %s13420_s22 = scalar_select %p10467_p3, 1, 0 }
  0xe5   : > { %s63_s2 = ssub.s32 %s10033_s17, %s13609_s0  ;;  %p105_p13 = scmp.ne.s32.totalorder %s13415_s15, %s9997_s25 }
  0xe6   : > { %p64_p9 = scmp.eq.s32.totalorder %s63_s2, 0  ;;  %p415_p11 = scmp.eq.s32.totalorder %s10436_s24, 3 }
  0xe7   : > { %s10477_s12 = scalar_select %p90_p5, %s10005_s27, %s92_s10  }
  0xe8   : > { %s10480_s26 = scalar_select %p64_p9, %s10017_s30, %s66_s3  }
  0xe9   : > { %13421 = sst [smem:[#allocation43_spill]] %s10477_s12  ;;  %p10482_p6 = por %p105_p13, %p80_p1 }
  0xea   : > { %13422 = sst [smem:[#allocation44_spill]] %s10480_s26  ;;  %p10489_p12 = por %p415_p11, %p73_p7 }
  0xeb   : > { %s13423_s13 = scalar_select %p10482_p6, 1, 0 }
  0xec   : > { %s13424_s5 = scalar_select %p10489_p12, 1, 0 }
  0xed   : > { %p421_p2 = scmp.eq.s32.totalorder %s7769_s1, 3  ;;  %s441_s25 = sand.u32 1, %s10017_s30  }
  0xee   : > { %s7772_s15 = sshll.u32 %s441_s25, 7  ;;  %s7975_s10 = sshll.u32 %s10033_s17, 11 }
  0xef   : > { %p10497_p3 = por %p421_p2, %p79_p4  ;;  %s445_s3 = scalar_lea.vmem [#allocation4], %s7772_s15 }
  0xf0   : > { %s452_s2 = sshll.u32 %s445_s3, 4  ;;  %s13427_s11 = sld [smem:[#allocation94_spill]]  ;;  %s10507_s2 = int_to_ptr.vmem [resolvable:$true] %s452_s2 }
  0xf1   : > { %s13425_s8 = scalar_select %p10497_p3, 1, 0 }
  0xf2   : > { %p13428_p7 = scmp.lt.s32.totalorder %s10037_s18, 4  ;;  %s13430_s3 = sld [smem:[#allocation96_spill]] }
  0xf3   : > { %13426 = sst [smem:[#allocation45_spill]] %s13425_s8  ;;  %s10523_s9 = scalar_lea.sflag [#allocation5], %s441_s25 }
  0xf4   : > { %p10513_p4 = pnand %p13428_p7, %p10452_p0 }
  0xf6   : > { %s10505_s0 = scalar_lea.hbm %s13427_s11, %s7975_s10  ;;  %p9683_p5 = pneg %p10513_p4 }
  0xf7   : > { %s9681_s10 = scalar_lea.hbm %s10505_s0, 2048  ;;  %s9686_s26 = scalar_lea.hbm %s13427_s11, 4096 }
  0xf8   : > { %s10521_s7 = scalar_lea.hbm %s13430_s3, %s10207_s21  ;;  %p9682_p1 = scmp.ne.s32.totalorder %s10505_s0, %s9681_s10 }
  0xf9   : > { %p9687_p9 = scmp.lt.u32.totalorder %s10505_s0, %s13427_s11  ;;  %p9688_p11 = scmp.lt.u32.totalorder %s9686_s26, %s9681_s10 }
  0xfa   : > { %p9684_p13 = pnand %p9683_p5, %p9682_p1  ;;  %p9690_p7 = scmp.lt.u32.totalorder %s9681_s10, %s10505_s0 }
  0xfb   : > { %p9689_p2 = por %p9688_p11, %p9687_p9 }
  0xfc   : > { %p9685_p0 = pneg %p9684_p13 }
  0xfd   : > { %p9691_p3 = por %p9690_p7, %p9689_p2 }
  0xff   : > { %p9692_p12 = pnand %p9691_p3, %p9685_p0 }
 0x101   : > { %9695 = shalt.err (!%p9692_p12)
}
 0x102   : > { %s9696_s25 = scalar_lea.vmem %s10507_s2, 2048  ;;  %s10051_s17 = smov [#allocation4]  }
 0x103   : > { %p9697_p1 = scmp.ne.s32.totalorder %s10507_s2, %s9696_s25  ;;  %s9701_s15 = sshll.u32 %s10051_s17, 4  ;;  %s9702_s15 = int_to_ptr.vmem [resolvable:$false] %s9701_s15 }
 0x104   : > { %s9703_s30 = scalar_lea.vmem %s9702_s15, 4096  ;;  %p9704_p10 = scmp.lt.s32.totalorder %s10507_s2, %s9702_s15 }
 0x105   : > { %p9699_p13 = pnand %p9697_p1, %p9683_p5  ;;  %p9705_p9 = scmp.lt.s32.totalorder %s9703_s30, %s9696_s25 }
 0x107   : > { %p9700_p6 = pneg %p9699_p13  ;;  %p9706_p11 = por %p9705_p9, %p9704_p10 }
 0x109   : > { %p9707_p2 = pnand %p9706_p11, %p9700_p6 }
 0x10b   : > { %9710 = shalt.err (!%p9707_p2)
}
 0x10c   : > { %s10052_s26 = smov 128   ;;  %s10053_s10 = smov 8  }
 0x10d   : > { %8770 = dma.hbm_to_vmem [thread:$0]  (!%p10513_p4), %s10505_s0, 2048, %s10507_s2, %s10523_s9, %s10052_s26, %s10052_s26, %s10053_s10  }
 0x10e   : > { %s482_s4 = scalar_lea.vmem [#allocation9], %s10204_s20  ;;  %s8735_s25 = smul.u32 3, %s10204_s20 }
 0x10f   : > { %s489_s6 = sshll.u32 %s482_s4, 4  ;;  %s8736_s17 = smul.u32 48, %s10029_s16  ;;  %s490_s6 = int_to_ptr.vmem [resolvable:$true] %s489_s6 }
 0x110   : > { %s9711_s15 = scalar_lea.hbm %s10521_s7, 16  ;;  %s9716_s12 = scalar_lea.hbm %s13430_s3, 32 }
 0x111   : > { %p9712_p10 = scmp.ne.s32.totalorder %s10521_s7, %s9711_s15  ;;  %p9717_p12 = scmp.lt.u32.totalorder %s10521_s7, %s13430_s3 }
 0x112   : > { %p9718_p5 = scmp.lt.u32.totalorder %s9716_s12, %s9711_s15  ;;  %p9720_p0 = scmp.lt.u32.totalorder %s9711_s15, %s10521_s7 }
 0x113   : > { %p9714_p3 = pnand %p9712_p10, %p10231_p8 }
 0x114   : > { %p9719_p4 = por %p9718_p5, %p9717_p12 }
 0x115   : > { %p9715_p6 = pneg %p9714_p3 }
 0x116   : > { %p9721_p7 = por %p9720_p0, %p9719_p4 }
 0x118   : > { %p9722_p1 = pnand %p9721_p7, %p9715_p6 }
 0x11a   : > { %9725 = shalt.err (!%p9722_p1)
}
 0x11b   : > { %s9726_s0 = scalar_lea.vmem %s490_s6, 16  ;;  %s10054_s2 = smov [#allocation9]  }
 0x11c   : > { %p9727_p13 = scmp.ne.s32.totalorder %s490_s6, %s9726_s0  ;;  %s9731_s1 = sshll.u32 %s10054_s2, 4  ;;  %s9732_s1 = int_to_ptr.vmem [resolvable:$false] %s9731_s1 }
 0x11d   : > { %s9733_s11 = scalar_lea.vmem %s9732_s1, 32  ;;  %p9734_p2 = scmp.lt.s32.totalorder %s490_s6, %s9732_s1 }
 0x11e   : > { %p9729_p9 = pnand %p9727_p13, %p10231_p8  ;;  %p9735_p10 = scmp.lt.s32.totalorder %s9733_s11, %s9726_s0 }
 0x120   : > { %p9730_p11 = pneg %p9729_p9  ;;  %p9736_p3 = por %p9735_p10, %p9734_p2 }
 0x122   : > { %p9737_p5 = pnand %p9736_p3, %p9730_p11 }
 0x124   : > { %9740 = shalt.err (!%p9737_p5)
}
 0x125   : > { %p13431_p12 = scmp.ne.s32.totalorder %s13400_s14, 0  ;;  %s13432_s27 = scalar_lea.sflag [#allocation8], %s10201_s19 }
 0x126   : > { %s13433_s9 = sld [smem:[#allocation98_spill]]  ;;  %s521_s10 = scalar_lea.vmem [#allocation12], %s8735_s25 }
 0x127   : > { %8776 = dma.hbm_to_vmem [thread:$0]  (!%p13431_p12), %s10521_s7, 16, %s490_s6, %s13432_s27  }
 0x128   : > { %s529_s4 = sshll.u32 %s521_s10, 4  ;;  %s13434_s0 = sld [smem:[#allocation100_spill]]  ;;  %s530_s4 = int_to_ptr.vmem [resolvable:$true] %s529_s4 }
 0x12c   : > { %s10576_s26 = scalar_lea.hbm %s13433_s9, %s8736_s17  ;;  %s9746_s17 = scalar_lea.hbm %s13433_s9, 96 }
 0x12d   : > { %s9741_s1 = scalar_lea.hbm %s10576_s26, 48  ;;  %p9747_p7 = scmp.lt.u32.totalorder %s10576_s26, %s13433_s9 }
 0x12e   : > { %s10584_s2 = scalar_lea.hbm %s13434_s0, %s10207_s21  ;;  %p9742_p6 = scmp.ne.s32.totalorder %s10576_s26, %s9741_s1 }
 0x12f   : > { %p9748_p1 = scmp.lt.u32.totalorder %s9746_s17, %s9741_s1  ;;  %p9750_p9 = scmp.lt.u32.totalorder %s9741_s1, %s10576_s26 }
 0x130   : > { %p9744_p4 = pnand %p9742_p6, %p10231_p8 }
 0x131   : > { %p9749_p13 = por %p9748_p1, %p9747_p7 }
 0x132   : > { %p9745_p0 = pneg %p9744_p4 }
 0x133   : > { %p9751_p11 = por %p9750_p9, %p9749_p13 }
 0x135   : > { %p9752_p2 = pnand %p9751_p11, %p9745_p0 }
 0x137   : > { %9755 = shalt.err (!%p9752_p2)
}
 0x138   : > { %s9756_s25 = scalar_lea.vmem %s530_s4, 48  ;;  %s10055_s12 = smov [#allocation12]  }
 0x139   : > { %p9757_p10 = scmp.ne.s32.totalorder %s530_s4, %s9756_s25  ;;  %s9761_s8 = sshll.u32 %s10055_s12, 4  ;;  %s9762_s8 = int_to_ptr.vmem [resolvable:$false] %s9761_s8 }
 0x13a   : > { %s9763_s10 = scalar_lea.vmem %s9762_s8, 96  ;;  %p9764_p6 = scmp.lt.s32.totalorder %s530_s4, %s9762_s8 }
 0x13b   : > { %p9759_p3 = pnand %p9757_p10, %p10231_p8  ;;  %p9765_p4 = scmp.lt.s32.totalorder %s9763_s10, %s9756_s25 }
 0x13d   : > { %p9760_p5 = pneg %p9759_p3  ;;  %p9766_p12 = por %p9765_p4, %p9764_p6 }
 0x13f   : > { %p9767_p1 = pnand %p9766_p12, %p9760_p5 }
 0x141   : > { %9770 = shalt.err (!%p9767_p1)
}
 0x142   : > { %p13435_p7 = scmp.ne.s32.totalorder %s13400_s14, 0  ;;  %s13436_s15 = scalar_lea.sflag [#allocation11], %s10201_s19 }
 0x143   : > { %s560_s30 = scalar_lea.vmem [#allocation15], %s10204_s20  ;;  %s13437_s17 = sld [smem:[#allocation102_spill]] }
 0x144   : > { %8782 = dma.hbm_to_vmem [thread:$0]  (!%p13435_p7), %s10576_s26, 48, %s530_s4, %s13436_s15  }
 0x145   : > { %s567_s1 = sshll.u32 %s560_s30, 4  ;;  %s9771_s25 = scalar_lea.hbm %s10584_s2, 16  ;;  %s568_s1 = int_to_ptr.vmem [resolvable:$true] %s567_s1 }
 0x146   : > { %p9772_p12 = scmp.ne.s32.totalorder %s10584_s2, %s9771_s25  ;;  %s9776_s10 = scalar_lea.hbm %s13434_s0, 32 }
 0x147   : > { %p9777_p9 = scmp.lt.u32.totalorder %s10584_s2, %s13434_s0  ;;  %p9778_p11 = scmp.lt.u32.totalorder %s9776_s10, %s9771_s25 }
 0x148   : > { %p9774_p0 = pnand %p9772_p12, %p10231_p8  ;;  %p9780_p10 = scmp.lt.u32.totalorder %s9771_s25, %s10584_s2 }
 0x149   : > { %s13438_s11 = smov %s13437_s17  ;;  %s10610_s27 = scalar_lea.hbm %s13437_s17, %s10207_s21 }
 0x14a   : > { %p9775_p13 = pneg %p9774_p0  ;;  %p9779_p2 = por %p9778_p11, %p9777_p9 }
 0x14c   : > { %p9781_p3 = por %p9780_p10, %p9779_p2 }
 0x14e   : > { %p9782_p5 = pnand %p9781_p3, %p9775_p13 }
 0x150   : > { %9785 = shalt.err (!%p9782_p5)
}
 0x151   : > { %s9786_s26 = scalar_lea.vmem %s568_s1, 16  ;;  %s10056_s4 = smov [#allocation15]  }
 0x152   : > { %p9787_p6 = scmp.ne.s32.totalorder %s568_s1, %s9786_s26  ;;  %s9791_s15 = sshll.u32 %s10056_s4, 4  ;;  %s9792_s15 = int_to_ptr.vmem [resolvable:$false] %s9791_s15 }
 0x153   : > { %s9793_s30 = scalar_lea.vmem %s9792_s15, 32  ;;  %p9794_p12 = scmp.lt.s32.totalorder %s568_s1, %s9792_s15 }
 0x154   : > { %p9789_p4 = pnand %p9787_p6, %p10231_p8  ;;  %p9795_p0 = scmp.lt.s32.totalorder %s9793_s30, %s9786_s26 }
 0x156   : > { %p9790_p1 = pneg %p9789_p4  ;;  %p9796_p7 = por %p9795_p0, %p9794_p12 }
 0x158   : > { %p9797_p9 = pnand %p9796_p7, %p9790_p1 }
 0x15a   : > { %9800 = shalt.err (!%p9797_p9)
}
 0x15b   : > { %p13439_p11 = scmp.ne.s32.totalorder %s13400_s14, 0  ;;  %s13440_s3 = scalar_lea.sflag [#allocation14], %s10201_s19 }
 0x15c   : > { %s594_s9 = scalar_lea.vmem [#allocation18], %s10204_s20  ;;  %s7788_s6 = sshll.u32 %s10204_s20, 2 }
 0x15d   : > { %8788 = dma.hbm_to_vmem [thread:$0]  (!%p13439_p11), %s10584_s2, 16, %s568_s1, %s13440_s3  }
 0x15e   : > { %s601_s7 = sshll.u32 %s594_s9, 4  ;;  %s9801_s17 = scalar_lea.hbm %s10610_s27, 16  ;;  %s602_s7 = int_to_ptr.vmem [resolvable:$true] %s601_s7 }
 0x15f   : > { %p9802_p7 = scmp.ne.s32.totalorder %s10610_s27, %s9801_s17  ;;  %s9806_s8 = scalar_lea.hbm %s13438_s11, 32 }
 0x160   : > { %p9807_p10 = scmp.lt.u32.totalorder %s10610_s27, %s13438_s11  ;;  %p9808_p3 = scmp.lt.u32.totalorder %s9806_s8, %s9801_s17 }
 0x161   : > { %p9804_p13 = pnand %p9802_p7, %p10231_p8  ;;  %p9810_p6 = scmp.lt.u32.totalorder %s9801_s17, %s10610_s27 }
 0x162   : > { %p9809_p5 = por %p9808_p3, %p9807_p10 }
 0x163   : > { %p9805_p2 = pneg %p9804_p13 }
 0x164   : > { %p9811_p4 = por %p9810_p6, %p9809_p5 }
 0x166   : > { %p9812_p1 = pnand %p9811_p4, %p9805_p2 }
 0x168   : > { %9815 = shalt.err (!%p9812_p1)
}
 0x169   : > { %s9816_s2 = scalar_lea.vmem %s602_s7, 16  ;;  %s10057_s1 = smov [#allocation18]  }
 0x16a   : > { %p9817_p12 = scmp.ne.s32.totalorder %s602_s7, %s9816_s2  ;;  %s9821_s4 = sshll.u32 %s10057_s1, 4  ;;  %s9822_s4 = int_to_ptr.vmem [resolvable:$false] %s9821_s4 }
 0x16b   : > { %s9823_s15 = scalar_lea.vmem %s9822_s4, 32  ;;  %p9824_p7 = scmp.lt.s32.totalorder %s602_s7, %s9822_s4 }
 0x16c   : > { %p9819_p0 = pnand %p9817_p12, %p10231_p8  ;;  %p9825_p13 = scmp.lt.s32.totalorder %s9823_s15, %s9816_s2 }
 0x16e   : > { %p9820_p9 = pneg %p9819_p0  ;;  %p9826_p11 = por %p9825_p13, %p9824_p7 }
 0x170   : > { %p9827_p3 = pnand %p9826_p11, %p9820_p9 }
 0x172   : > { %9830 = shalt.err (!%p9827_p3)
}
 0x173   : > { %p13441_p10 = scmp.ne.s32.totalorder %s13400_s14, 0  ;;  %s13442_s30 = scalar_lea.sflag [#allocation17], %s10201_s19 }
 0x174   : > { %s7978_s3 = sshll.u32 %s10029_s16, 6  ;;  %s633_s9 = scalar_lea.vmem [#allocation21], %s7788_s6 }
 0x175   : > { %8794 = dma.hbm_to_vmem [thread:$0]  (!%p13441_p10), %s10610_s27, 16, %s602_s7, %s13442_s30  }
 0x176   : > { %s641_s17 = sshll.u32 %s633_s9, 4  ;;  %s13443_s8 = sld [smem:[#allocation104_spill]]  ;;  %s642_s17 = int_to_ptr.vmem [resolvable:$true] %s641_s17 }
 0x17c   : > { %s639_s10 = scalar_lea.hbm %s13443_s8, %s7978_s3  ;;  %s9836_s4 = scalar_lea.hbm %s13443_s8, 128 }
 0x17d   : > { %s9831_s26 = scalar_lea.hbm %s639_s10, 64  ;;  %p9837_p6 = scmp.lt.u32.totalorder %s639_s10, %s13443_s8 }
 0x17e   : > { %p9832_p11 = scmp.ne.s32.totalorder %s639_s10, %s9831_s26  ;;  %p9838_p4 = scmp.lt.u32.totalorder %s9836_s4, %s9831_s26 }
 0x17f   : > { %p9840_p12 = scmp.lt.u32.totalorder %s9831_s26, %s639_s10 }
 0x180   : > { %p9834_p2 = pnand %p9832_p11, %p10231_p8  ;;  %p9839_p1 = por %p9838_p4, %p9837_p6 }
 0x182   : > { %p9835_p5 = pneg %p9834_p2  ;;  %p9841_p0 = por %p9840_p12, %p9839_p1 }
 0x184   : > { %p9842_p9 = pnand %p9841_p0, %p9835_p5 }
 0x186   : > { %9845 = shalt.err (!%p9842_p9)
}
 0x187   : > { %s9846_s7 = scalar_lea.vmem %s642_s17, 64  ;;  %s10058_s6 = smov [#allocation21]  }
 0x188   : > { %p9847_p7 = scmp.ne.s32.totalorder %s642_s17, %s9846_s7  ;;  %s9851_s30 = sshll.u32 %s10058_s6, 4  ;;  %s9852_s30 = int_to_ptr.vmem [resolvable:$false] %s9851_s30 }
 0x189   : > { %s9853_s3 = scalar_lea.vmem %s9852_s30, 128  ;;  %p9854_p11 = scmp.lt.s32.totalorder %s642_s17, %s9852_s30 }
 0x18a   : > { %p9849_p13 = pnand %p9847_p7, %p10231_p8  ;;  %p9855_p2 = scmp.lt.s32.totalorder %s9853_s3, %s9846_s7 }
 0x18c   : > { %p9850_p3 = pneg %p9849_p13  ;;  %p9856_p10 = por %p9855_p2, %p9854_p11 }
 0x18e   : > { %p9857_p4 = pnand %p9856_p10, %p9850_p3 }
 0x190   : > { %9860 = shalt.err (!%p9857_p4)
}
 0x191   : > { %p13444_p6 = scmp.ne.s32.totalorder %s13400_s14, 0  ;;  %s13445_s9 = scalar_lea.sflag [#allocation20], %s10201_s19 }
 0x192   : > { %s13446_s26 = sld [smem:[#allocation106_spill]]  ;;  %s672_s4 = scalar_lea.vmem [#allocation24], %s10204_s20 }
 0x193   : > { %8800 = dma.hbm_to_vmem [thread:$0]  (!%p13444_p6), %s639_s10, 64, %s642_s17, %s13445_s9  }
 0x194   : > { %s679_s15 = sshll.u32 %s672_s4, 4  ;;  %s680_s15 = int_to_ptr.vmem [resolvable:$true] %s679_s15 }
 0x198   : > { %s13447_s2 = smov %s13446_s26  ;;  %s10676_s1 = scalar_lea.hbm %s13446_s26, %s10207_s21 }
 0x199   : > { %s9861_s27 = scalar_lea.hbm %s10676_s1, 16  ;;  %s9866_s17 = scalar_lea.hbm %s13447_s2, 32 }
 0x19a   : > { %p9862_p10 = scmp.ne.s32.totalorder %s10676_s1, %s9861_s27  ;;  %p9867_p12 = scmp.lt.u32.totalorder %s10676_s1, %s13447_s2 }
 0x19b   : > { %p9868_p0 = scmp.lt.u32.totalorder %s9866_s17, %s9861_s27  ;;  %p9870_p7 = scmp.lt.u32.totalorder %s9861_s27, %s10676_s1 }
 0x19c   : > { %p9864_p5 = pnand %p9862_p10, %p10231_p8 }
 0x19d   : > { %p9869_p9 = por %p9868_p0, %p9867_p12 }
 0x19e   : > { %p9865_p1 = pneg %p9864_p5 }
 0x19f   : > { %p9871_p13 = por %p9870_p7, %p9869_p9 }
 0x1a1   : > { %p9872_p3 = pnand %p9871_p13, %p9865_p1 }
 0x1a3   : > { %9875 = shalt.err (!%p9872_p3)
}
 0x1a4   : > { %s9876_s20 = scalar_lea.vmem %s680_s15, 16  ;;  %s10059_s21 = smov [#allocation24]  }
 0x1a5   : > { %p9877_p11 = scmp.ne.s32.totalorder %s680_s15, %s9876_s20  ;;  %s9881_s3 = sshll.u32 %s10059_s21, 4  ;;  %s9882_s3 = int_to_ptr.vmem [resolvable:$false] %s9881_s3 }
 0x1a6   : > { %s9883_s9 = scalar_lea.vmem %s9882_s3, 32  ;;  %p9884_p10 = scmp.lt.s32.totalorder %s680_s15, %s9882_s3 }
 0x1a7   : > { %p9879_p2 = pnand %p9877_p11, %p10231_p8  ;;  %p9885_p5 = scmp.lt.s32.totalorder %s9883_s9, %s9876_s20 }
 0x1a9   : > { %p9880_p4 = pneg %p9879_p2  ;;  %p9886_p6 = por %p9885_p5, %p9884_p10 }
 0x1ab   : > { %p9887_p0 = pnand %p9886_p6, %p9880_p4 }
 0x1ad   : > { %9890 = shalt.err (!%p9887_p0)
}
 0x1ae   : > { %p13448_p12 = scmp.ne.s32.totalorder %s13400_s14, 0  ;;  %s13449_s25 = scalar_lea.sflag [#allocation23], %s10201_s19 }
 0x1af   : > { %s13450_s12 = sld [smem:[#allocation40_spill]] }
 0x1b0   : > { %8806 = dma.hbm_to_vmem [thread:$0]  (!%p13448_p12), %s10676_s1, 16, %s680_s15, %s13449_s25  }
 0x1b5   : > { %p13451_p1 = scmp.ne.s32.totalorder %s13450_s12, 0 }
 0x1b7   : > { %688 = sbr.rel (%p13451_p1) target bundleno = 4351 (0x10ff), region = 72 }
 0x1be   : > { %s10701_s23 = sand.u32 1, %s10013_s29   ;;  %p13452_p8 = scmp.ne.s32.totalorder %s13420_s22, 0 }
 0x1bf   : > { %s7796_s26 = sshll.u32 %s10701_s23, 7  ;;  %s691_s4 = scalar_lea.sflag [#allocation5], %s10701_s23 }
 0x1c0   : > { %s10707_s27 = scalar_lea.vmem [#allocation4], %s7796_s26 }
 0x1c1   : > { %9964 = dma.done.wait (%p13452_p8), %s691_s4, 2048  }
 0x1c2   : > { %9966 = vsyncadd (%p13452_p8), %s691_s4, 4294965248  ;;  %s13453_s14 = sld [smem:[#allocation34_spill]]  ;;  %s10714_s19 = sand.u32 1, %s10436_s24  }
 0x1c3   : > { %s700_s15 = scalar_lea.sflag [#allocation8], %s10714_s19  ;;  %p13454_p6 = scmp.ne.s32.totalorder %s13423_s13, 0 }
 0x1c8   : > { %s10717_s1 = sand.u32 1, %s13453_s14  }
 0x1c9   : > { %s702_s7 = scalar_lea.vmem [#allocation7], %s10717_s1 }
 0x1ca   : > { %9968 = dma.done.wait (%p13454_p6), %s700_s15, 32  }
 0x1cb   : > { %9970 = vsyncadd (%p13454_p6), %s700_s15, 4294967264  ;;  %s8737_s22 = smul.u32 192, %s10717_s1  ;;  %s710_s6 = scalar_lea.vmem [#allocation9], %s10717_s1 }
 0x1cc   : > { %s716_s17 = scalar_lea.sflag [#allocation11], %s10714_s19 }
 0x1cd   : > { %s10728_s24 = scalar_lea.vmem [#allocation10], %s8737_s22 }
 0x1ce   : > { %9972 = dma.done.wait (%p13454_p6), %s716_s17, 3120  }
 0x1cf   : > { %9974 = vsyncadd (%p13454_p6), %s716_s17, 4294964176  ;;  %s8738_s10 = smul.u32 3, %s10717_s1  ;;  %s7797_s30 = sshll.u32 %s10717_s1, 6 }
 0x1d0   : > { %s734_s21 = scalar_lea.sflag [#allocation14], %s10714_s19  ;;  %s10739_s3 = scalar_lea.vmem [#allocation13], %s7797_s30 }
 0x1d1   : > { %s10736_s20 = scalar_lea.vmem [#allocation12], %s8738_s10 }
 0x1d2   : > { %9976 = dma.done.wait (%p13454_p6), %s734_s21, 1040  }
 0x1d3   : > { %9978 = vsyncadd (%p13454_p6), %s734_s21, 4294966256  ;;  %s745_s9 = scalar_lea.vmem [#allocation15], %s10717_s1  ;;  %s751_s25 = scalar_lea.sflag [#allocation17], %s10714_s19 }
 0x1d4   : > { %s753_s12 = scalar_lea.vmem [#allocation16], %s10717_s1 }
 0x1d5   : > { %9980 = dma.done.wait (%p13454_p6), %s751_s25, 32  }
 0x1d6   : > { %9982 = vsyncadd (%p13454_p6), %s751_s25, 4294967264  ;;  %s7798_s4 = sshll.u32 %s10717_s1, 8  ;;  %s767_s15 = scalar_lea.sflag [#allocation20], %s10714_s19 }
 0x1d7   : > { %s10755_s22 = scalar_lea.vmem [#allocation19], %s7798_s4 }
 0x1d8   : > { %9984 = dma.done.wait (%p13454_p6), %s767_s15, 4160  }
 0x1d9   : > { %9986 = vsyncadd (%p13454_p6), %s767_s15, 4294963136  ;;  %s7799_s17 = sshll.u32 %s10717_s1, 2  ;;  %s785_s30 = scalar_lea.sflag [#allocation23], %s10714_s19 }
 0x1da   : > { %s10762_s10 = scalar_lea.vmem [#allocation21], %s7799_s17  ;;  %s10765_s21 = scalar_lea.vmem [#allocation22], %s7798_s4 }
 0x1db   : > { %9988 = dma.done.wait (%p13454_p6), %s785_s30, 4112  }
 0x1dc   : > { %9990 = vsyncadd (%p13454_p6), %s785_s30, 4294963184  ;;  %s796_s25 = scalar_lea.vmem [#allocation24], %s10717_s1  ;;  %s10774_s14 = scalar_lea.vmem [#allocation25], %s7796_s26 }
 0x1dd   : > { %s13455_s15 = sld [smem:[#allocation37_spill]] }
 0x1e3   : > { %p7802_p9 = scmp.ne.s32.totalorder %s13455_s15, 0 }
 0x1e4   : > { %v900_v0 = vld [vmem:[%s10707_s27] sm:$0xff] (!%p7802_p9)  ;;  %v901_v1 = vld [vmem:[%s10707_s27 + $0x8] sm:$0xff] (!%p7802_p9)  ;;  %v902_v2 = vld [vmem:[%s10707_s27 + $0x10] sm:$0xff] (!%p7802_p9) }
 0x1e5   : > { %899 = sbr.rel (%p7802_p9) target bundleno = 493 (0x1ed), region = 128  ;;  %916 = vst [vmem:[#allocation2] sm:$0xff] (!%p7802_p9), %v900_v0  ;;  %917 = vst [vmem:[#allocation2 + $0x8] sm:$0xff] (!%p7802_p9), %v901_v1  ;;  %v903_v3 = vld [vmem:[%s10707_s27 + $0x18] sm:$0xff] (!%p7802_p9)  ;;  %v904_v4 = vld [vmem:[%s10707_s27 + $0x20] sm:$0xff] (!%p7802_p9) }
 0x1e6   : > { %918 = vst [vmem:[#allocation2 + $0x10] sm:$0xff] (!%p7802_p9), %v902_v2  ;;  %v905_v5 = vld [vmem:[%s10707_s27 + $0x28] sm:$0xff] (!%p7802_p9)  ;;  %919 = vst [vmem:[#allocation2 + $0x18] sm:$0xff] (!%p7802_p9), %v903_v3  ;;  %v906_v6 = vld [vmem:[%s10707_s27 + $0x30] sm:$0xff] (!%p7802_p9) }
 0x1e7   : > { %920 = vst [vmem:[#allocation2 + $0x20] sm:$0xff] (!%p7802_p9), %v904_v4  ;;  %921 = vst [vmem:[#allocation2 + $0x28] sm:$0xff] (!%p7802_p9), %v905_v5  ;;  %v907_v7 = vld [vmem:[%s10707_s27 + $0x38] sm:$0xff] (!%p7802_p9)  ;;  %v908_v8 = vld [vmem:[%s10707_s27 + $0x40] sm:$0xff] (!%p7802_p9) }
 0x1e8   : > { %922 = vst [vmem:[#allocation2 + $0x30] sm:$0xff] (!%p7802_p9), %v906_v6  ;;  %923 = vst [vmem:[#allocation2 + $0x38] sm:$0xff] (!%p7802_p9), %v907_v7  ;;  %v909_v9 = vld [vmem:[%s10707_s27 + $0x48] sm:$0xff] (!%p7802_p9)  ;;  %v910_v10 = vld [vmem:[%s10707_s27 + $0x50] sm:$0xff] (!%p7802_p9) }
 0x1e9   : > { %924 = vst [vmem:[#allocation2 + $0x40] sm:$0xff] (!%p7802_p9), %v908_v8  ;;  %v911_v11 = vld [vmem:[%s10707_s27 + $0x58] sm:$0xff] (!%p7802_p9)  ;;  %925 = vst [vmem:[#allocation2 + $0x48] sm:$0xff] (!%p7802_p9), %v909_v9  ;;  %v912_v12 = vld [vmem:[%s10707_s27 + $0x60] sm:$0xff] (!%p7802_p9) }
 0x1ea   : > { %926 = vst [vmem:[#allocation2 + $0x50] sm:$0xff] (!%p7802_p9), %v910_v10  ;;  %927 = vst [vmem:[#allocation2 + $0x58] sm:$0xff] (!%p7802_p9), %v911_v11  ;;  %v913_v13 = vld [vmem:[%s10707_s27 + $0x68] sm:$0xff] (!%p7802_p9)  ;;  %v914_v14 = vld [vmem:[%s10707_s27 + $0x70] sm:$0xff] (!%p7802_p9) }
 0x1eb   : > { %928 = vst [vmem:[#allocation2 + $0x60] sm:$0xff] (!%p7802_p9), %v912_v12  ;;  %929 = vst [vmem:[#allocation2 + $0x68] sm:$0xff] (!%p7802_p9), %v913_v13  ;;  %v915_v15 = vld [vmem:[%s10707_s27 + $0x78] sm:$0xff] (!%p7802_p9) }
 0x1ec   : > { %930 = vst [vmem:[#allocation2 + $0x70] sm:$0xff] %v914_v14  ;;  %931 = vst [vmem:[#allocation2 + $0x78] sm:$0xff] %v915_v15 }
 0x1ed PF: > { %v932_v16 = vld [vmem:[#allocation2] sm:$0xff]  ;;  %v933_v18 = vld [vmem:[#allocation2 + $0x8] sm:$0xff]  ;;  %vm10062_vm0 = vmmov 0   ;;  %vm1590_vm1 = vcmask 261120   ;;  %vm1967_vm2 = vcmask 130048   ;;  %s10063_s13 = smov 96  }
 0x1ee   : > { %v934_v17 = vld [vmem:[#allocation2 + $0x10] sm:$0xff]  ;;  %950 = vadd.xlane.f32.xlu0 %v932_v16  ;;  %v935_v19 = vld [vmem:[#allocation2 + $0x18] sm:$0xff]  ;;  %v8920_v34 = vld [vmem:[%s10728_s24 + $0x1c] ss:$12 sps:$4 sm:$0xff]   ;;  %s10064_s26 = smov 64   ;;  %s10065_s27 = smov 32  }
 0x1ef   : > { %954 = vadd.xlane.f32.xlu1 %v934_v17  ;;  %v936_v20 = vld [vmem:[#allocation2 + $0x20] sm:$0xff]  ;;  %v937_v21 = vld [vmem:[#allocation2 + $0x28] sm:$0xff]  ;;  %vm3576_vm3 = vcmask 523520   ;;  %vm4625_vm4 = vcmask 785920   ;;  %vm5674_vm5 = vcmask 1048320   ;;  %s13567_s19 = scalar_lea.vmem [#allocation18], %s10717_s1 }
 0x1f0   : > { %v10793_v22 = vld [vmem:[#allocation2 + $0x30] sm:$0xff]  ;;  %v10795_v23 = vld [vmem:[#allocation2 + $0x38] sm:$0xff]  ;;  %s13586_s1 = sld [smem:[#allocation37_spill]] }
 0x1f1   : > { %v10797_v24 = vld [vmem:[#allocation2 + $0x40] sm:$0xff]  ;;  %v10799_v25 = vld [vmem:[#allocation2 + $0x48] sm:$0xff] }
 0x1f2   : > { %952 = vadd.xlane.f32.xlu0 %v933_v18  ;;  %v10803_v26 = vld [vmem:[#allocation2 + $0x50] sm:$0xff]  ;;  %v10805_v27 = vld [vmem:[#allocation2 + $0x58] sm:$0xff] }
 0x1f3   : > { %956 = vadd.xlane.f32.xlu1 %v935_v19  ;;  %v10809_v28 = vld [vmem:[#allocation2 + $0x60] sm:$0xff]  ;;  %v10811_v29 = vld [vmem:[#allocation2 + $0x68] sm:$0xff]  ;;  %v10815_v30 = vld [vmem:[#allocation2 + $0x70] sm:$0xff] }
 0x1f4   : > { %v10817_v31 = vld [vmem:[#allocation2 + $0x78] sm:$0xff]  ;;  %v8917_v32 = vld [vmem:[%s10728_s24 + $0x4] ss:$12 sps:$4 sm:$0xff]   ;;  %v8919_v33 = vld [vmem:[%s10728_s24] ss:$12 sps:$4 sm:$0xff]  }
 0x1f5   : > { %v8922_v35 = vld [vmem:[%s10728_s24 + $0x8] ss:$12 sps:$4 sm:$0xff]   ;;  %1356 = vmatprep.subr.bf16.mxu0 %v8917_v32  ;;  %v8923_v10 = vld [vmem:[%s10728_s24 + $0x18] ss:$12 sps:$4 sm:$0xff]  }
 0x1f6   : > { %958 = vadd.xlane.f32.xlu0 %v936_v20  ;;  %1357 = vmatpush1.bf16.msra.mxu0 %v8919_v33  ;;  %p7969_p7 = scmp.ne.s32.totalorder %s13586_s1, 1 }
 0x1f7   : > { %960 = vadd.xlane.f32.xlu1 %v937_v21  ;;  %8269 = vmatprep.subr.bf16.mxu1 %v8922_v35 }
 0x1f8   : > { %1358 = vmatprep.subr.bf16.mxu0 %v8920_v34  ;;  %8270 = vmatpush3.bf16.msra.mxu1 %v8922_v35  ;;  %v8928_v34 = vld [vmem:[%s10728_s24 + $0x4c] ss:$12 sps:$4 sm:$0xff]  }
 0x1f9   : > { %v8930_v35 = vld [vmem:[%s10728_s24 + $0x38] ss:$12 sps:$4 sm:$0xff]  }
 0x1fa   : > { %962 = vadd.xlane.f32.xlu0 %v10793_v22  ;;  %1359 = vmatpush1.bf16.msra.mxu0 %v8923_v10 }
 0x1fb   : > { %964 = vadd.xlane.f32.xlu1 %v10795_v23 }
 0x1fe   : > { %966 = vadd.xlane.f32.xlu0 %v10797_v24 }
 0x1ff   : > { %968 = vadd.xlane.f32.xlu1 %v10799_v25 }
 0x202   : > { %970 = vadd.xlane.f32.xlu0 %v10803_v26 }
 0x203   : > { %972 = vadd.xlane.f32.xlu1 %v10805_v27 }
 0x206   : > { %974 = vadd.xlane.f32.xlu0 %v10809_v28 }
 0x207   : > { %976 = vadd.xlane.f32.xlu1 %v10811_v29 }
 0x20a   : > { %978 = vadd.xlane.f32.xlu0 %v10815_v30 }
 0x20b   : > { %980 = vadd.xlane.f32.xlu1 %v10817_v31 }
 0x27b   : > { %v951_v36 = vpop.xlane.xlu0 %950 }
 0x27c   : > { %v955_v37 = vpop.xlane.xlu1 %954  ;;  %v983_v38 = vmul.f32 0.0078125, %v951_v36 }
 0x27d   : > { %v985_v39 = vmul.f32 0.0078125, %v955_v37 }
 0x27e   : > { %v10827_v40 = vsub.f32 %v932_v16, %v983_v38  ;;  %v8924_v16 = vld [vmem:[%s10728_s24 + $0x34] ss:$12 sps:$4 sm:$0xff]  }
 0x27f   : > { %v10829_v41 = vsub.f32 %v934_v17, %v985_v39  ;;  %v953_v42 = vpop.xlane.xlu0 %952  ;;  %v8926_v17 = vld [vmem:[%s10728_s24 + $0x20] ss:$12 sps:$4 sm:$0xff]   ;;  %1360 = vmatprep.subr.bf16.mxu0 %v8924_v16  ;;  %v8931_v38 = vld [vmem:[%s10728_s24 + $0x48] ss:$12 sps:$4 sm:$0xff]  }
 0x280   : > { %v957_v43 = vpop.xlane.xlu1 %956  ;;  %v984_v44 = vmul.f32 0.0078125, %v953_v42  ;;  %v1015_v45 = vmul.f32 %v10827_v40, %v10827_v40  ;;  %8271 = vmatprep.subr.bf16.mxu1 %v8926_v17 }
 0x281   : > { %v986_v46 = vmul.f32 0.0078125, %v957_v43  ;;  %v1017_v47 = vmul.f32 %v10829_v41, %v10829_v41  ;;  %8272 = vmatpush3.bf16.msra.mxu1 %v8926_v17 }
 0x282   : > { %1031 = vadd.xlane.f32.xlu0 %v1015_v45  ;;  %v10835_v48 = vsub.f32 %v933_v18, %v984_v44  ;;  %8273 = vmatprep.subr.bf16.mxu1 %v8930_v35  ;;  %v8932_v45 = vld [vmem:[%s10728_s24 + $0x64] ss:$12 sps:$4 sm:$0xff]  }
 0x283   : > { %v10837_v49 = vsub.f32 %v935_v19, %v986_v46  ;;  %v959_v50 = vpop.xlane.xlu0 %958  ;;  %v8934_v46 = vld [vmem:[%s10728_s24 + $0x50] ss:$12 sps:$4 sm:$0xff]  }
 0x284   : > { %v961_v51 = vpop.xlane.xlu1 %960  ;;  %v987_v52 = vmul.f32 0.0078125, %v959_v50  ;;  %v1016_v53 = vmul.f32 %v10835_v48, %v10835_v48 }
 0x285   : > { %v988_v54 = vmul.f32 0.0078125, %v961_v51  ;;  %v1018_v55 = vmul.f32 %v10837_v49, %v10837_v49  ;;  %8274 = vmatpush3.bf16.msra.mxu1 %v8930_v35  ;;  %v8938_v51 = vld [vmem:[%s10728_s24 + $0x68] ss:$12 sps:$4 sm:$0xff]  }
 0x286   : > { %1035 = vadd.xlane.f32.xlu0 %v1017_v47  ;;  %1033 = vadd.xlane.f32.xlu1 %v1016_v53  ;;  %v10843_v56 = vsub.f32 %v936_v20, %v987_v52  ;;  %v8935_v47 = vld [vmem:[%s10728_s24 + $0x60] ss:$12 sps:$4 sm:$0xff]   ;;  %v8939_v52 = vld [vmem:[%s10728_s24 + $0x78] ss:$12 sps:$4 sm:$0xff]  }
 0x287   : > { %v10845_v57 = vsub.f32 %v937_v21, %v988_v54  ;;  %v963_v58 = vpop.xlane.xlu0 %962  ;;  %8275 = vmatprep.subr.bf16.mxu1 %v8934_v46  ;;  %v8940_v53 = vld [vmem:[%s10728_s24 + $0x94] ss:$12 sps:$4 sm:$0xff]  }
 0x288   : > { %v965_v59 = vpop.xlane.xlu1 %964  ;;  %v989_v60 = vmul.f32 0.0078125, %v963_v58  ;;  %v1019_v61 = vmul.f32 %v10843_v56, %v10843_v56  ;;  %v8942_v54 = vld [vmem:[%s10728_s24 + $0x80] ss:$12 sps:$4 sm:$0xff]  }
 0x289   : > { %v990_v62 = vmul.f32 0.0078125, %v965_v59  ;;  %v1020_v63 = vmul.f32 %v10845_v57, %v10845_v57  ;;  %8276 = vmatpush3.bf16.msra.mxu1 %v8934_v46  ;;  %v8944_v58 = vld [vmem:[%s10728_s24 + $0xac] ss:$12 sps:$4 sm:$0xff]  }
 0x28a   : > { %1037 = vadd.xlane.f32.xlu1 %v1018_v55  ;;  %1039 = vadd.xlane.f32.xlu0 %v1019_v61  ;;  %v10852_v0 = vsub.f32 %v10793_v22, %v989_v60  ;;  %v8943_v55 = vld [vmem:[%s10728_s24 + $0x90] ss:$12 sps:$4 sm:$0xff]   ;;  %v8946_v59 = vld [vmem:[%s10728_s24 + $0x98] ss:$12 sps:$4 sm:$0xff]   ;;  %v8947_v60 = vld [vmem:[%s10728_s24 + $0xa8] ss:$12 sps:$4 sm:$0xff]  }
 0x28b   : > { %v10855_v1 = vsub.f32 %v10795_v23, %v990_v62  ;;  %v967_v2 = vpop.xlane.xlu0 %966  ;;  %v8927_v23 = vld [vmem:[%s10728_s24 + $0x30] ss:$12 sps:$4 sm:$0xff]   ;;  %8277 = vmatprep.subr.bf16.mxu1 %v8938_v51  ;;  %v13344_v62 = vmov 0  }
 0x28c   : > { %v969_v3 = vpop.xlane.xlu1 %968  ;;  %v991_v4 = vmul.f32 0.0078125, %v967_v2  ;;  %v1021_v5 = vmul.f32 %v10852_v0, %v10852_v0  ;;  %1361 = vmatpush1.bf16.msra.mxu0 %v8927_v23  ;;  %v8948_v61 = vld [vmem:[%s10728_s24 + $0xb0] ss:$12 sps:$4 sm:$0xff]   ;;  %1388 = vmatprep.mubr.bf16.mxu0 %v13344_v62 }
 0x28d   : > { %v992_v6 = vmul.f32 0.0078125, %v969_v3  ;;  %v1022_v7 = vmul.f32 %v10855_v1, %v10855_v1  ;;  %1362 = vmatprep.subr.bf16.mxu0 %v8928_v34  ;;  %8278 = vmatpush3.bf16.msra.mxu1 %v8938_v51 }
 0x28e   : > { %1041 = vadd.xlane.f32.xlu1 %v1020_v63  ;;  %1043 = vadd.xlane.f32.xlu0 %v1021_v5  ;;  %v10862_v8 = vsub.f32 %v10797_v24, %v991_v4 }
 0x28f   : > { %v10865_v9 = vsub.f32 %v10799_v25, %v992_v6  ;;  %v971_v11 = vpop.xlane.xlu0 %970  ;;  %8279 = vmatprep.subr.bf16.mxu1 %v8942_v54 }
 0x290   : > { %v973_v12 = vpop.xlane.xlu1 %972  ;;  %v993_v13 = vmul.f32 0.0078125, %v971_v11  ;;  %v1023_v14 = vmul.f32 %v10862_v8, %v10862_v8  ;;  %1363 = vmatpush1.bf16.msra.mxu0 %v8931_v38  ;;  %v10925_v38 = vld [vmem:[%s702_s7] ss:$0 sm:$0xff] }
 0x291   : > { %v994_v15 = vmul.f32 0.0078125, %v973_v12  ;;  %v1024_v18 = vmul.f32 %v10865_v9, %v10865_v9  ;;  %1364 = vmatprep.subr.bf16.mxu0 %v8932_v45  ;;  %8280 = vmatpush3.bf16.msra.mxu1 %v8942_v54 }
 0x292   : > { %1045 = vadd.xlane.f32.xlu1 %v1022_v7  ;;  %1047 = vadd.xlane.f32.xlu0 %v1023_v14  ;;  %v10875_v19 = vsub.f32 %v10803_v26, %v993_v13 }
 0x293   : > { %v10878_v20 = vsub.f32 %v10805_v27, %v994_v15  ;;  %v975_v21 = vpop.xlane.xlu0 %974  ;;  %8281 = vmatprep.subr.bf16.mxu1 %v8946_v59 }
 0x294   : > { %v977_v22 = vpop.xlane.xlu1 %976  ;;  %v995_v24 = vmul.f32 0.0078125, %v975_v21  ;;  %v1025_v25 = vmul.f32 %v10875_v19, %v10875_v19  ;;  %1365 = vmatpush1.bf16.msra.mxu0 %v8935_v47 }
 0x295   : > { %v996_v32 = vmul.f32 0.0078125, %v977_v22  ;;  %v1026_v26 = vmul.f32 %v10878_v20, %v10878_v20  ;;  %8282 = vmatpush3.bf16.msra.mxu1 %v8946_v59 }
 0x296   : > { %1049 = vadd.xlane.f32.xlu1 %v1024_v18  ;;  %1051 = vadd.xlane.f32.xlu0 %v1025_v25  ;;  %v10886_v27 = vsub.f32 %v10809_v28, %v995_v24 }
 0x297   : > { %v10889_v33 = vsub.f32 %v10811_v29, %v996_v32  ;;  %v979_v36 = vpop.xlane.xlu0 %978  ;;  %8283 = vmatprep.subr.bf16.mxu1 %v8948_v61 }
 0x298   : > { %v981_v37 = vpop.xlane.xlu1 %980  ;;  %v997_v39 = vmul.f32 0.0078125, %v979_v36  ;;  %v1027_v42 = vmul.f32 %v10886_v27, %v10886_v27 }
 0x299   : > { %v998_v43 = vmul.f32 0.0078125, %v981_v37  ;;  %v1028_v28 = vmul.f32 %v10889_v33, %v10889_v33  ;;  %8284 = vmatpush3.bf16.msra.mxu1 %v8948_v61 }
 0x29a   : > { %1053 = vadd.xlane.f32.xlu1 %v1026_v26  ;;  %1055 = vadd.xlane.f32.xlu0 %v1027_v42  ;;  %v10899_v29 = vsub.f32 %v10815_v30, %v997_v39 }
 0x29b   : > { %v10902_v44 = vsub.f32 %v10817_v31, %v998_v43  ;;  %v8936_v31 = vld [vmem:[%s10728_s24 + $0x7c] ss:$12 sps:$4 sm:$0xff]  }
 0x29c   : > { %v1029_v50 = vmul.f32 %v10899_v29, %v10899_v29  ;;  %1366 = vmatprep.subr.bf16.mxu0 %v8936_v31  ;;  %v10931_v31 = vld [vmem:[%s710_s6] ss:$0 sm:$0xff] }
 0x29d   : > { %v1030_v30 = vmul.f32 %v10902_v44, %v10902_v44  ;;  %1367 = vmatpush1.bf16.msra.mxu0 %v8939_v52 }
 0x29e   : > { %1057 = vadd.xlane.f32.xlu1 %v1028_v28  ;;  %1059 = vadd.xlane.f32.xlu0 %v1029_v50 }
 0x29f   : > { %1368 = vmatprep.subr.bf16.mxu0 %v8940_v53 }
 0x2a1   : > { %1369 = vmatpush1.bf16.msra.mxu0 %v8943_v55 }
 0x2a2   : > { %1061 = vadd.xlane.f32.xlu1 %v1030_v30  ;;  %1370 = vmatprep.subr.bf16.mxu0 %v8944_v58 }
 0x2a5   : > { %1371 = vmatpush1.bf16.msra.mxu0 %v8947_v60 }
 0x30f   : > { %v1032_v63 = vpop.xlane.xlu0 %1031 }
 0x310   : > { %v1063_v2 = vmul.f32 0.0078125, %v1032_v63 }
 0x312   : > { %v1079_v3 = vadd.f32 1e-05, %v1063_v2 }
 0x313   : > { %v1034_v4 = vpop.xlane.xlu1 %1033  ;;  %v1036_v5 = vpop.xlane.xlu0 %1035 }
 0x314   : > { %9037 = vrsqrt.f32 %v1079_v3  ;;  %v1064_v6 = vmul.f32 0.0078125, %v1034_v4  ;;  %v1065_v7 = vmul.f32 0.0078125, %v1036_v5 }
 0x316   : > { %v1080_v10 = vadd.f32 1e-05, %v1064_v6  ;;  %v1081_v11 = vadd.f32 1e-05, %v1065_v7 }
 0x317   : > { %v1038_v12 = vpop.xlane.xlu1 %1037  ;;  %v1040_v13 = vpop.xlane.xlu0 %1039 }
 0x318   : > { %9039 = vrsqrt.f32 %v1080_v10  ;;  %v1066_v14 = vmul.f32 0.0078125, %v1038_v12  ;;  %v1067_v15 = vmul.f32 0.0078125, %v1040_v13 }
 0x319   : > { %9041 = vrsqrt.f32 %v1081_v11 }
 0x31a   : > { %v1082_v16 = vadd.f32 1e-05, %v1066_v14  ;;  %v1083_v17 = vadd.f32 1e-05, %v1067_v15 }
 0x31b   : > { %v1042_v18 = vpop.xlane.xlu1 %1041  ;;  %v1044_v21 = vpop.xlane.xlu0 %1043 }
 0x31c   : > { %9043 = vrsqrt.f32 %v1082_v16  ;;  %v1068_v22 = vmul.f32 0.0078125, %v1042_v18  ;;  %v1069_v23 = vmul.f32 0.0078125, %v1044_v21 }
 0x31d   : > { %9045 = vrsqrt.f32 %v1083_v17 }
 0x31e   : > { %v9038_v24 = vpop.eup %9037  ;;  %v1084_v25 = vadd.f32 1e-05, %v1068_v22  ;;  %v1085_v32 = vadd.f32 1e-05, %v1069_v23 }
 0x31f   : > { %v1046_v26 = vpop.xlane.xlu1 %1045  ;;  %v1048_v34 = vpop.xlane.xlu0 %1047  ;;  %v1111_v35 = vmul.f32 %v9038_v24, %v10827_v40 }
 0x320   : > { %9047 = vrsqrt.f32 %v1084_v25  ;;  %v1070_v36 = vmul.f32 0.0078125, %v1046_v26  ;;  %v1071_v37 = vmul.f32 0.0078125, %v1048_v34 }
 0x321   : > { %9049 = vrsqrt.f32 %v1085_v32  ;;  %v1133_v50 = vmul.f32 %v10925_v38, %v1111_v35 }
 0x322   : > { %v9040_v39 = vpop.eup %9039  ;;  %v1086_v42 = vadd.f32 1e-05, %v1070_v36  ;;  %v1087_v43 = vadd.f32 1e-05, %v1071_v37 }
 0x323   : > { %v9042_v28 = vpop.eup %9041  ;;  %v1050_v45 = vpop.xlane.xlu1 %1049  ;;  %v1112_v47 = vmul.f32 %v9040_v39, %v10835_v48  ;;  %v1155_v61 = vadd.f32 %v10931_v31, %v1133_v50 }
 0x324   : > { %v1052_v46 = vpop.xlane.xlu0 %1051  ;;  %9051 = vrsqrt.f32 %v1086_v42  ;;  %v1072_v40 = vmul.f32 0.0078125, %v1050_v45  ;;  %v1113_v51 = vmul.f32 %v9042_v28, %v10829_v41 }
 0x325   : > { %v1073_v30 = vmul.f32 0.0078125, %v1052_v46  ;;  %9053 = vrsqrt.f32 %v1087_v43  ;;  %v1134_v52 = vmul.f32 %v10925_v38, %v1112_v47 }
 0x326   : > { %v9044_v53 = vpop.eup %9043  ;;  %v1088_v54 = vadd.f32 1e-05, %v1072_v40  ;;  %v1135_v58 = vmul.f32 %v10925_v38, %v1113_v51 }
 0x327   : > { %v1089_v55 = vadd.f32 1e-05, %v1073_v30  ;;  %v9046_v59 = vpop.eup %9045  ;;  %v1054_v48 = vpop.xlane.xlu1 %1053  ;;  %v1156_v63 = vadd.f32 %v10931_v31, %v1134_v52  ;;  %v1114_v2 = vmul.f32 %v9044_v53, %v10837_v49 }
 0x328   : > { %v1056_v60 = vpop.xlane.xlu0 %1055  ;;  %9055 = vrsqrt.f32 %v1088_v54  ;;  %v1074_v3 = vmul.f32 0.0078125, %v1054_v48  ;;  %v1115_v6 = vmul.f32 %v9046_v59, %v10843_v56  ;;  %v1157_v12 = vadd.f32 %v10931_v31, %v1135_v58 }
 0x329   : > { %v1075_v41 = vmul.f32 0.0078125, %v1056_v60  ;;  %9057 = vrsqrt.f32 %v1089_v55  ;;  %v1171_v4 = vpack.c.bf16 %v1156_v63, %v1155_v61  ;;  %v1136_v5 = vmul.f32 %v10925_v38, %v1114_v2 }
 0x32a   : > { %v9048_v7 = vpop.eup %9047  ;;  %v1090_v10 = vadd.f32 1e-05, %v1074_v3  ;;  %v1137_v17 = vmul.f32 %v10925_v38, %v1115_v6 }
 0x32b   : > { %v1091_v11 = vadd.f32 1e-05, %v1075_v41  ;;  %v9050_v13 = vpop.eup %9049  ;;  %v1058_v14 = vpop.xlane.xlu1 %1057  ;;  %1389 = vmatmul.mubr.bf16.vlgmr.msra.gmra.mrb[0].mxu0 %v1171_v4  ;;  %8285 = vmatprep.mubr.bf16.mxu1 %v1171_v4  ;;  %v1158_v49 = vadd.f32 %v10931_v31, %v1136_v5  ;;  %v1116_v16 = vmul.f32 %v9048_v7, %v10845_v57 }
 0x32c   : > { %v1060_v15 = vpop.xlane.xlu0 %1059  ;;  %9059 = vrsqrt.f32 %v1090_v10  ;;  %v1076_v18 = vmul.f32 0.0078125, %v1058_v14  ;;  %1398 = vmatprep.mubr.bf16.mxu0 %v13344_v62  ;;  %v1117_v56 = vmul.f32 %v9050_v13, %v10852_v0  ;;  %v1159_v35 = vadd.f32 %v10931_v31, %v1137_v17 }
 0x32d   : > { %v1077_v21 = vmul.f32 0.0078125, %v1060_v15  ;;  %9061 = vrsqrt.f32 %v1091_v11  ;;  %v1172_v22 = vpack.c.bf16 %v1158_v49, %v1157_v12  ;;  %v1138_v23 = vmul.f32 %v10925_v38, %v1116_v16  ;;  %v1211_v49 = vld [vmem:[%s10736_s20] sm:$0x7] }
 0x32e   : > { %v9052_v24 = vpop.eup %9051  ;;  %v1092_v25 = vadd.f32 1e-05, %v1076_v18  ;;  %v1139_v26 = vmul.f32 %v10925_v38, %v1117_v56 }
 0x32f   : > { %v1093_v32 = vadd.f32 1e-05, %v1077_v21  ;;  %v9054_v34 = vpop.eup %9053  ;;  %v1062_v57 = vpop.xlane.xlu1 %1061  ;;  %8286 = vmatmul.mubr.bf16.vlgmr.msra.gmra.mrb[0].mxu1 %v1172_v22  ;;  %v1160_v36 = vadd.f32 %v10931_v31, %v1138_v23  ;;  %v1118_v37 = vmul.f32 %v9052_v24, %v10855_v1 }
 0x330   : > { %9063 = vrsqrt.f32 %v1092_v25  ;;  %v1078_v0 = vmul.f32 0.0078125, %v1062_v57  ;;  %v1119_v39 = vmul.f32 %v9054_v34, %v10862_v8  ;;  %v1161_v46 = vadd.f32 %v10931_v31, %v1139_v26 }
 0x331   : > { %9065 = vrsqrt.f32 %v1093_v32  ;;  %v1173_v42 = vpack.c.bf16 %v1160_v36, %v1159_v35  ;;  %v1140_v43 = vmul.f32 %v10925_v38, %v1118_v37 }
 0x332   : > { %v9056_v28 = vpop.eup %9055  ;;  %v1094_v45 = vadd.f32 1e-05, %v1078_v0  ;;  %v1141_v1 = vmul.f32 %v10925_v38, %v1119_v39 }
 0x333   : > { %v9058_v47 = vpop.eup %9057  ;;  %1399 = vmatmul.mubr.bf16.gmra.mrb[4].mxu0 %v1172_v22  ;;  %8289 = vmatprep.mubr.bf16.mxu1 %v1173_v42  ;;  %v1162_v50 = vadd.f32 %v10931_v31, %v1140_v43  ;;  %v1120_v40 = vmul.f32 %v9056_v28, %v10865_v9 }
 0x334   : > { %9067 = vrsqrt.f32 %v1094_v45  ;;  %1408 = vmatprep.mubr.bf16.mxu0 %v13344_v62  ;;  %v1121_v8 = vmul.f32 %v9058_v47, %v10875_v19  ;;  %v1163_v55 = vadd.f32 %v10931_v31, %v1141_v1 }
 0x335   : > { %v1174_v30 = vpack.c.bf16 %v1162_v50, %v1161_v46  ;;  %v1142_v51 = vmul.f32 %v10925_v38, %v1120_v40 }
 0x336   : > { %v9060_v52 = vpop.eup %9059  ;;  %v1143_v53 = vmul.f32 %v10925_v38, %v1121_v8 }
 0x337   : > { %v9062_v54 = vpop.eup %9061  ;;  %8290 = vmatmul.mubr.bf16.gmra.mrb[4].mxu1 %v1174_v30  ;;  %v1164_v58 = vadd.f32 %v10931_v31, %v1142_v51  ;;  %v1122_v9 = vmul.f32 %v9060_v52, %v10878_v20 }
 0x338   : > { %v1123_v59 = vmul.f32 %v9062_v54, %v10886_v27  ;;  %v1165_v61 = vadd.f32 %v10931_v31, %v1143_v53 }
 0x339   : > { %v1175_v48 = vpack.c.bf16 %v1164_v58, %v1163_v55  ;;  %v1144_v60 = vmul.f32 %v10925_v38, %v1122_v9 }
 0x33a   : > { %v9064_v19 = vpop.eup %9063  ;;  %v1145_v41 = vmul.f32 %v10925_v38, %v1123_v59 }
 0x33b   : > { %v9066_v63 = vpop.eup %9065  ;;  %1409 = vmatmul.mubr.bf16.gmra.mrb[8].mxu0 %v1173_v42  ;;  %8293 = vmatprep.mubr.bf16.mxu1 %v1175_v48  ;;  %v1166_v2 = vadd.f32 %v10931_v31, %v1144_v60  ;;  %v1124_v3 = vmul.f32 %v9064_v19, %v10889_v33 }
 0x33c   : > { %1418 = vmatprep.mubr.bf16.mxu0 %v13344_v62  ;;  %v1125_v20 = vmul.f32 %v9066_v63, %v10899_v29  ;;  %v1167_v6 = vadd.f32 %v10931_v31, %v1145_v41 }
 0x33d   : > { %v1176_v27 = vpack.c.bf16 %v1166_v2, %v1165_v61  ;;  %v1146_v4 = vmul.f32 %v10925_v38, %v1124_v3 }
 0x33e   : > { %v9068_v5 = vpop.eup %9067  ;;  %v1147_v11 = vmul.f32 %v10925_v38, %v1125_v20 }
 0x33f   : > { %8294 = vmatmul.mubr.bf16.gmra.mrb[8].mxu1 %v1176_v27  ;;  %v1168_v7 = vadd.f32 %v10931_v31, %v1146_v4  ;;  %v1126_v10 = vmul.f32 %v9068_v5, %v10902_v44  ;;  %v13346_v44 = vmov 0.0  }
 0x340   : > { %v1169_v29 = vadd.f32 %v10931_v31, %v1147_v11  ;;  %8301 = vmatprep.subr.bf16.mxu1 %v13346_v44  ;;  %8325 = vmatprep.subr.bf16.mxu0 %v13346_v44 }
 0x341   : > { %v1177_v33 = vpack.c.bf16 %v1168_v7, %v1167_v6  ;;  %v1148_v12 = vmul.f32 %v10925_v38, %v1126_v10  ;;  %v1213_v38 = vlaneseq }
 0x343   : > { %1419 = vmatmul.mubr.bf16.gmra.mrb[12].mxu0 %v1174_v30  ;;  %8297 = vmatprep.mubr.bf16.mxu1 %v1177_v33  ;;  %v1170_v13 = vadd.f32 %v10931_v31, %v1148_v12  ;;  %v10991_v31 = vshrl.u32 %v1213_v38, 7 }
 0x344   : > { %1428 = vmatprep.mubr.bf16.mxu0 %v13344_v62 }
 0x345   : > { %v1178_v14 = vpack.c.bf16 %v1170_v13, %v1169_v29  ;;  %13456 = vst [vmem:[#allocation46_spill] sm:$0xff] %v10991_v31  ;;  %v13343_v15 = vsub.s32 0, %v10991_v31  ;;  %v13341_v16 = vsub.s32 1, %v10991_v31  ;;  %v13342_v18 = vsub.s32 2, %v10991_v31 }
 0x347   : > { %8298 = vmatmul.mubr.bf16.gmra.mrb[12].mxu1 %v1178_v14  ;;  %v10998_v17 = vrot.slane %v1211_v49, %v13343_v15  ;;  %v11003_v56 = vrot.slane %v1211_v49, %v13341_v16  ;;  %v11009_v26 = vrot.slane %v1211_v49, %v13342_v18 }
 0x348   : > { %8303 = vmatprep.mubr.msk.bf16.mxu1 %vm10062_vm0, %v13346_v44 }
 0x34b   : > { %1429 = vmatmul.mubr.bf16.gmra.mrb[16].mxu0 %v1175_v48 }
 0x34c   : > { %1438 = vmatprep.mubr.bf16.mxu0 %v13344_v62 }
 0x353   : > { %1439 = vmatmul.mubr.bf16.gmra.mrb[20].mxu0 %v1176_v27 }
 0x354   : > { %1448 = vmatprep.mubr.bf16.mxu0 %v13344_v62 }
 0x35b   : > { %1449 = vmatmul.mubr.bf16.gmra.mrb[24].mxu0 %v1177_v33 }
 0x35c   : > { %1458 = vmatprep.mubr.bf16.mxu0 %v13344_v62 }
 0x363   : > { %1459 = vmatmul.mubr.bf16.gmra.mrb[28].mxu0 %v1178_v14 }
 0x364   : > { %8327 = vmatprep.mubr.msk.bf16.mxu0 %vm10062_vm0, %v13346_v44 }
 0x3fe   : > { %v1390_v21 = vpop.f32.mrb[0].mxu0 }
 0x3ff   : > { %v1392_v22 = vpop.f32.mrb[1].mxu0  ;;  %v1391_v24 = vadd.f32 %v1390_v21, %v10998_v17 }
 0x400   : > { %v1394_v23 = vpop.f32.mrb[2].mxu0  ;;  %v1393_v34 = vadd.f32 %v1392_v22, %v11003_v56 }
 0x401   : > { %v1395_v25 = vadd.f32 %v1394_v23, %v10998_v17  ;;  %v1396_v32 = vpop.f32.mrb[3].mxu0 }
 0x402   : > { %v1397_v57 = vadd.f32 %v1396_v32, %v11003_v56  ;;  %v8287_v35 = vpop.f32.mrb[0].mxu1 }
 0x403   : > { %v11013_v36 = vpack.c.bf16 %v1395_v25, %v1391_v24  ;;  %v1503_v37 = vpop.f32.mrb[1].mxu1  ;;  %v1512_v42 = vadd.f32 %v8287_v35, %v11009_v26 }
 0x404   : > { %v11015_v0 = vpack.c.bf16 %v1397_v57, %v1393_v34  ;;  %v8288_v39 = vpop.f32.mrb[2].mxu1  ;;  %v1504_v45 = vadd.f32 %v1503_v37, %v11009_v26 }
 0x405   : > { %v1515_v43 = vadd.f32 %v8288_v39, %v11009_v26  ;;  %v1506_v28 = vpop.f32.mrb[3].mxu1 }
 0x406   : > { %v1507_v46 = vadd.f32 %v1506_v28, %v11009_v26  ;;  %v1400_v47 = vpop.f32.mrb[4].mxu0  ;;  %v1595_v50 = vsel %vm1590_vm1, %v11015_v0, 0 }
 0x407   : > { %v11023_v40 = vpack.c.bf16 %v1515_v43, %v1512_v42  ;;  %v1402_v1 = vpop.f32.mrb[5].mxu0  ;;  %8302 = vmatpush3.bf16.xpose.msra.mxu1 %v1595_v50  ;;  %v1401_v51 = vadd.f32 %v1400_v47, %v10998_v17 }
 0x408   : > { %v11025_v8 = vpack.c.bf16 %v1507_v46, %v1504_v45  ;;  %v1404_v30 = vpop.f32.mrb[6].mxu0  ;;  %8307 = vmatprep.subr.bf16.mxu1 %v13346_v44  ;;  %v1403_v54 = vadd.f32 %v1402_v1, %v11003_v56 }
 0x409   : > { %v1405_v52 = vadd.f32 %v1404_v30, %v10998_v17  ;;  %v1406_v53 = vpop.f32.mrb[7].mxu0 }
 0x40a   : > { %v1407_v55 = vadd.f32 %v1406_v53, %v11003_v56  ;;  %v8291_v58 = vpop.f32.mrb[4].mxu1 }
 0x40b   : > { %v11032_v9 = vpack.c.bf16 %v1405_v52, %v1401_v51  ;;  %v1528_v59 = vadd.f32 %v8291_v58, %v11009_v26  ;;  %v1519_v48 = vpop.f32.mrb[5].mxu1 }
 0x40c   : > { %v11035_v60 = vpack.c.bf16 %v1407_v55, %v1403_v54  ;;  %v1520_v19 = vadd.f32 %v1519_v48, %v11009_v26  ;;  %v8292_v61 = vpop.f32.mrb[6].mxu1 }
 0x40d   : > { %v1531_v63 = vadd.f32 %v8292_v61, %v11009_v26  ;;  %v1522_v2 = vpop.f32.mrb[7].mxu1 }
 0x40e   : > { %v1523_v3 = vadd.f32 %v1522_v2, %v11009_v26  ;;  %v1410_v41 = vpop.f32.mrb[8].mxu0  ;;  %8304 = vmatmul.mubr.msk.bf16.vlgmr.msra.gmra.mrb[16].mxu1 %vm1590_vm1, %v11013_v36  ;;  %v1642_v20 = vsel %vm1590_vm1, %v11035_v60, 0 }
 0x40f   : > { %v11044_v27 = vpack.c.bf16 %v1531_v63, %v1528_v59  ;;  %v1412_v4 = vpop.f32.mrb[9].mxu0  ;;  %8308 = vmatpush3.bf16.xpose.msra.mxu1 %v1642_v20  ;;  %8309 = vmatprep.mubr.msk.bf16.mxu1 %vm10062_vm0, %v13346_v44  ;;  %v1411_v7 = vadd.f32 %v1410_v41, %v10998_v17 }
 0x410   : > { %v11048_v5 = vpack.c.bf16 %v1523_v3, %v1520_v19  ;;  %v1414_v6 = vpop.f32.mrb[10].mxu0  ;;  %8313 = vmatprep.subr.bf16.mxu1 %v13346_v44  ;;  %v1413_v33 = vadd.f32 %v1412_v4, %v11003_v56 }
 0x411   : > { %v1415_v10 = vadd.f32 %v1414_v6, %v10998_v17  ;;  %v1416_v11 = vpop.f32.mrb[11].mxu0 }
 0x412   : > { %v1417_v12 = vadd.f32 %v1416_v11, %v11003_v56  ;;  %v8295_v29 = vpop.f32.mrb[8].mxu1 }
 0x413   : > { %v11055_v13 = vpack.c.bf16 %v1415_v10, %v1411_v7  ;;  %v1544_v14 = vadd.f32 %v8295_v29, %v11009_v26  ;;  %v1535_v38 = vpop.f32.mrb[9].mxu1 }
 0x414   : > { %v11058_v49 = vpack.c.bf16 %v1417_v12, %v1413_v33  ;;  %v1536_v21 = vadd.f32 %v1535_v38, %v11009_v26  ;;  %v8296_v22 = vpop.f32.mrb[10].mxu1 }
 0x415   : > { %v1547_v23 = vadd.f32 %v8296_v22, %v11009_v26  ;;  %v1538_v24 = vpop.f32.mrb[11].mxu1 }
 0x416   : > { %v1539_v25 = vadd.f32 %v1538_v24, %v11009_v26  ;;  %v1420_v32 = vpop.f32.mrb[12].mxu0  ;;  %8310 = vmatmul.mubr.msk.bf16.vlgmr.msra.gmra.mrb[20].mxu1 %vm1590_vm1, %v11032_v9  ;;  %v1689_v34 = vsel %vm1590_vm1, %v11058_v49, 0 }
 0x417   : > { %v11067_v57 = vpack.c.bf16 %v1547_v23, %v1544_v14  ;;  %v1422_v35 = vpop.f32.mrb[13].mxu0  ;;  %8314 = vmatpush3.bf16.xpose.msra.mxu1 %v1689_v34  ;;  %8315 = vmatprep.mubr.msk.bf16.mxu1 %vm10062_vm0, %v13346_v44  ;;  %v1421_v42 = vadd.f32 %v1420_v32, %v10998_v17 }
 0x418   : > { %v11071_v37 = vpack.c.bf16 %v1539_v25, %v1536_v21  ;;  %v1424_v39 = vpop.f32.mrb[14].mxu0  ;;  %8319 = vmatprep.subr.bf16.mxu1 %v13346_v44  ;;  %v1423_v45 = vadd.f32 %v1422_v35, %v11003_v56 }
 0x419   : > { %v1425_v43 = vadd.f32 %v1424_v39, %v10998_v17  ;;  %v1426_v28 = vpop.f32.mrb[15].mxu0 }
 0x41a   : > { %v1427_v46 = vadd.f32 %v1426_v28, %v11003_v56  ;;  %v8299_v47 = vpop.f32.mrb[12].mxu1 }
 0x41b   : > { %v11078_v50 = vpack.c.bf16 %v1425_v43, %v1421_v42  ;;  %v1560_v1 = vadd.f32 %v8299_v47, %v11009_v26  ;;  %v1551_v30 = vpop.f32.mrb[13].mxu1 }
 0x41c   : > { %v11081_v51 = vpack.c.bf16 %v1427_v46, %v1423_v45  ;;  %v1552_v52 = vadd.f32 %v1551_v30, %v11009_v26  ;;  %v8300_v53 = vpop.f32.mrb[14].mxu1 }
 0x41d   : > { %v1563_v54 = vadd.f32 %v8300_v53, %v11009_v26  ;;  %v1554_v55 = vpop.f32.mrb[15].mxu1 }
 0x41e   : > { %v1555_v58 = vadd.f32 %v1554_v55, %v11009_v26  ;;  %v1430_v59 = vpop.f32.mrb[16].mxu0  ;;  %8316 = vmatmul.mubr.msk.bf16.vlgmr.msra.gmra.mrb[24].mxu1 %vm1590_vm1, %v11055_v13  ;;  %v1736_v48 = vsel %vm1590_vm1, %v11081_v51, 0 }
 0x41f   : > { %v11090_v19 = vpack.c.bf16 %v1563_v54, %v1560_v1  ;;  %v1432_v61 = vpop.f32.mrb[17].mxu0  ;;  %8320 = vmatpush3.bf16.xpose.msra.mxu1 %v1736_v48  ;;  %8321 = vmatprep.mubr.msk.bf16.mxu1 %vm10062_vm0, %v13346_v44  ;;  %v1431_v26 = vadd.f32 %v1430_v59, %v10998_v17 }
 0x420   : > { %v11094_v63 = vpack.c.bf16 %v1555_v58, %v1552_v52  ;;  %v1434_v2 = vpop.f32.mrb[18].mxu0  ;;  %8331 = vmatprep.subr.bf16.mxu1 %v13346_v44  ;;  %v1433_v20 = vadd.f32 %v1432_v61, %v11003_v56 }
 0x421   : > { %v1435_v3 = vadd.f32 %v1434_v2, %v10998_v17  ;;  %v1436_v41 = vpop.f32.mrb[19].mxu0 }
 0x422   : > { %v1437_v4 = vadd.f32 %v1436_v41, %v11003_v56 }
 0x423   : > { %v11101_v6 = vpack.c.bf16 %v1435_v3, %v1431_v26 }
 0x424   : > { %v11103_v7 = vpack.c.bf16 %v1437_v4, %v1433_v20 }
 0x426   : > { %v1440_v10 = vpop.f32.mrb[20].mxu0  ;;  %8322 = vmatmul.mubr.msk.bf16.vlgmr.msra.gmra.mrb[28].mxu1 %vm1590_vm1, %v11078_v50  ;;  %v1783_v11 = vsel %vm1590_vm1, %v11103_v7, 0 }
 0x427   : > { %v1442_v33 = vpop.f32.mrb[21].mxu0  ;;  %8326 = vmatpush3.bf16.xpose.msra.mxu0 %v1783_v11  ;;  %8333 = vmatprep.mubr.msk.bf16.mxu1 %vm10062_vm0, %v13346_v44  ;;  %v1441_v29 = vadd.f32 %v1440_v10, %v10998_v17 }
 0x428   : > { %v1444_v12 = vpop.f32.mrb[22].mxu0  ;;  %8337 = vmatprep.subr.bf16.mxu0 %v13346_v44  ;;  %v1443_v21 = vadd.f32 %v1442_v33, %v11003_v56 }
 0x429   : > { %v1445_v14 = vadd.f32 %v1444_v12, %v10998_v17  ;;  %v1446_v38 = vpop.f32.mrb[23].mxu0 }
 0x42a   : > { %v1447_v22 = vadd.f32 %v1446_v38, %v11003_v56 }
 0x42b   : > { %v11116_v23 = vpack.c.bf16 %v1445_v14, %v1441_v29 }
 0x42c   : > { %v11118_v24 = vpack.c.bf16 %v1447_v22, %v1443_v21 }
 0x42e   : > { %v1450_v25 = vpop.f32.mrb[24].mxu0  ;;  %8328 = vmatmul.mubr.msk.bf16.vlgmr.msra.gmra.mrb[32].mxu0 %vm1590_vm1, %v11101_v6  ;;  %v1830_v32 = vsel %vm1590_vm1, %v11118_v24, 0 }
 0x42f   : > { %v1452_v34 = vpop.f32.mrb[25].mxu0  ;;  %8332 = vmatpush3.bf16.xpose.msra.mxu1 %v1830_v32  ;;  %8339 = vmatprep.mubr.msk.bf16.mxu0 %vm10062_vm0, %v13346_v44  ;;  %v1451_v39 = vadd.f32 %v1450_v25, %v10998_v17 }
 0x430   : > { %v1454_v35 = vpop.f32.mrb[26].mxu0  ;;  %8343 = vmatprep.subr.bf16.mxu1 %v13346_v44  ;;  %v1453_v28 = vadd.f32 %v1452_v34, %v11003_v56 }
 0x431   : > { %v1455_v42 = vadd.f32 %v1454_v35, %v10998_v17  ;;  %v1456_v43 = vpop.f32.mrb[27].mxu0 }
 0x432   : > { %v1457_v45 = vadd.f32 %v1456_v43, %v11003_v56 }
 0x433   : > { %v11131_v46 = vpack.c.bf16 %v1455_v42, %v1451_v39 }
 0x434   : > { %v11133_v47 = vpack.c.bf16 %v1457_v45, %v1453_v28 }
 0x436   : > { %v1460_v1 = vpop.f32.mrb[28].mxu0  ;;  %8334 = vmatmul.mubr.msk.bf16.vlgmr.msra.gmra.mrb[32].mxu1 %vm1590_vm1, %v11116_v23  ;;  %v1877_v30 = vsel %vm1590_vm1, %v11133_v47, 0 }
 0x437   : > { %v1462_v52 = vpop.f32.mrb[29].mxu0  ;;  %8338 = vmatpush3.bf16.xpose.msra.mxu0 %v1877_v30  ;;  %8345 = vmatprep.mubr.msk.bf16.mxu1 %vm10062_vm0, %v13346_v44  ;;  %v1461_v54 = vadd.f32 %v1460_v1, %v10998_v17 }
 0x438   : > { %v1464_v53 = vpop.f32.mrb[30].mxu0  ;;  %8349 = vmatprep.subr.bf16.mxu0 %v13346_v44  ;;  %v1463_v59 = vadd.f32 %v1462_v52, %v11003_v56 }
 0x439   : > { %v1465_v55 = vadd.f32 %v1464_v53, %v10998_v17  ;;  %v1466_v58 = vpop.f32.mrb[31].mxu0 }
 0x43a   : > { %v1467_v48 = vadd.f32 %v1466_v58, %v11003_v56 }
 0x43b   : > { %v11146_v61 = vpack.c.bf16 %v1465_v55, %v1461_v54 }
 0x43c   : > { %v11148_v2 = vpack.c.bf16 %v1467_v48, %v1463_v59 }
 0x43e   : > { %8340 = vmatmul.mubr.msk.bf16.vlgmr.msra.gmra.mrb[36].mxu0 %vm1590_vm1, %v11131_v46  ;;  %v1924_v26 = vsel %vm1590_vm1, %v11148_v2, 0 }
 0x43f   : > { %8344 = vmatpush3.bf16.xpose.msra.mxu1 %v1924_v26  ;;  %8350 = vmatpush3.bf16.msra.mxu0 %v11025_v8 }
 0x440   : > { %8355 = vmatprep.subr.bf16.mxu1 %v13346_v44  ;;  %8351 = vmatprep.mubr.msk.bf16.mxu0 %vm10062_vm0, %v13346_v44 }
 0x441   : > { %8361 = vmatprep.subr.bf16.mxu0 %v13346_v44 }
 0x446   : > { %8346 = vmatmul.mubr.msk.bf16.vlgmr.msra.gmra.mrb[36].mxu1 %vm1590_vm1, %v11146_v61 }
 0x447   : > { %8356 = vmatpush3.bf16.msra.mxu1 %v11023_v40  ;;  %8357 = vmatprep.mubr.msk.bf16.mxu1 %vm10062_vm0, %v13346_v44 }
 0x448   : > { %8367 = vmatprep.subr.bf16.mxu1 %v13346_v44 }
 0x4e1   : > { %v11165_v17 = vpop.f32.mrb[16].mxu1 }
 0x4e2   : > { %v8305_v56 = vpop.f32.mrb[17].mxu1  ;;  %v1968_v3 = vsel %vm1967_vm2, %v11165_v17, -inf }
 0x4e3   : > { %1969 = vmax.xlane.f32.xlu0 %v1968_v3  ;;  %v11169_v41 = vpop.f32.mrb[18].mxu1 }
 0x4e4   : > { %v8306_v20 = vpop.f32.mrb[19].mxu1  ;;  %v1971_v4 = vsel %vm1967_vm2, %v11169_v41, -inf }
 0x4e5   : > { %1972 = vmax.xlane.f32.xlu1 %v1971_v4 }
 0x4e9   : > { %v11173_v10 = vpop.f32.mrb[20].mxu1 }
 0x4ea   : > { %v8311_v11 = vpop.f32.mrb[21].mxu1  ;;  %v1974_v33 = vsel %vm1967_vm2, %v11173_v10, -inf }
 0x4eb   : > { %1975 = vmax.xlane.f32.xlu0 %v1974_v33  ;;  %v11177_v12 = vpop.f32.mrb[22].mxu1 }
 0x4ec   : > { %v8312_v29 = vpop.f32.mrb[23].mxu1  ;;  %v1977_v14 = vsel %vm1967_vm2, %v11177_v12, -inf }
 0x4ed   : > { %1978 = vmax.xlane.f32.xlu1 %v1977_v14 }
 0x4f1   : > { %v11181_v38 = vpop.f32.mrb[24].mxu1 }
 0x4f2   : > { %v8317_v21 = vpop.f32.mrb[25].mxu1  ;;  %v1980_v22 = vsel %vm1967_vm2, %v11181_v38, -inf }
 0x4f3   : > { %1981 = vmax.xlane.f32.xlu0 %v1980_v22  ;;  %v11185_v25 = vpop.f32.mrb[26].mxu1 }
 0x4f4   : > { %v8318_v32 = vpop.f32.mrb[27].mxu1  ;;  %v1983_v34 = vsel %vm1967_vm2, %v11185_v25, -inf }
 0x4f5   : > { %1984 = vmax.xlane.f32.xlu1 %v1983_v34 }
 0x4f9   : > { %v11189_v35 = vpop.f32.mrb[28].mxu1 }
 0x4fa   : > { %v8323_v39 = vpop.f32.mrb[29].mxu1  ;;  %v1986_v42 = vsel %vm1967_vm2, %v11189_v35, -inf }
 0x4fb   : > { %1987 = vmax.xlane.f32.xlu0 %v1986_v42  ;;  %v11193_v43 = vpop.f32.mrb[30].mxu1 }
 0x4fc   : > { %v8324_v28 = vpop.f32.mrb[31].mxu1  ;;  %v1989_v45 = vsel %vm1967_vm2, %v11193_v43, -inf }
 0x4fd   : > { %1990 = vmax.xlane.f32.xlu1 %v1989_v45 }
 0x501   : > { %v11197_v1 = vpop.f32.mrb[32].mxu0 }
 0x502   : > { %v8329_v30 = vpop.f32.mrb[33].mxu0  ;;  %v1992_v52 = vsel %vm1967_vm2, %v11197_v1, -inf }
 0x503   : > { %1993 = vmax.xlane.f32.xlu0 %v1992_v52  ;;  %v11201_v53 = vpop.f32.mrb[34].mxu0 }
 0x504   : > { %v8330_v54 = vpop.f32.mrb[35].mxu0  ;;  %v1995_v55 = vsel %vm1967_vm2, %v11201_v53, -inf }
 0x505   : > { %1996 = vmax.xlane.f32.xlu1 %v1995_v55 }
 0x509   : > { %v11205_v58 = vpop.f32.mrb[32].mxu1 }
 0x50a   : > { %v8335_v59 = vpop.f32.mrb[33].mxu1  ;;  %v1998_v48 = vsel %vm1967_vm2, %v11205_v58, -inf }
 0x50b   : > { %v11209_v26 = vpop.f32.mrb[34].mxu1  ;;  %1999 = vmax.xlane.f32.xlu0 %v1998_v48 }
 0x50c   : > { %v8336_v56 = vpop.f32.mrb[35].mxu1  ;;  %v2001_v3 = vsel %vm1967_vm2, %v11209_v26, -inf }
 0x50d   : > { %2002 = vmax.xlane.f32.xlu1 %v2001_v3 }
 0x511   : > { %v11213_v20 = vpop.f32.mrb[36].mxu0 }
 0x512   : > { %v8341_v4 = vpop.f32.mrb[37].mxu0  ;;  %v2004_v11 = vsel %vm1967_vm2, %v11213_v20, -inf }
 0x513   : > { %2005 = vmax.xlane.f32.xlu0 %v2004_v11  ;;  %v11217_v33 = vpop.f32.mrb[38].mxu0 }
 0x514   : > { %v8342_v29 = vpop.f32.mrb[39].mxu0  ;;  %v2007_v14 = vsel %vm1967_vm2, %v11217_v33, -inf }
 0x515   : > { %2008 = vmax.xlane.f32.xlu1 %v2007_v14 }
 0x519   : > { %v11221_v21 = vpop.f32.mrb[36].mxu1 }
 0x51a   : > { %v8347_v22 = vpop.f32.mrb[37].mxu1  ;;  %v2010_v32 = vsel %vm1967_vm2, %v11221_v21, -inf }
 0x51b   : > { %2011 = vmax.xlane.f32.xlu0 %v2010_v32  ;;  %v11225_v34 = vpop.f32.mrb[38].mxu1 }
 0x51c   : > { %v8348_v39 = vpop.f32.mrb[39].mxu1  ;;  %v2013_v42 = vsel %vm1967_vm2, %v11225_v34, -inf }
 0x526   : > { %2577 = vrot.lane.b32.xlu1 %v11035_v60, %s10063_s13 }
 0x52a   : > { %2521 = vrot.lane.b32.xlu1 %v11013_v36, %s10063_s13 }
 0x531   : > { %2524 = vrot.lane.b32.xlu0 %v11015_v0, %s10063_s13 }
 0x535   : > { %2574 = vrot.lane.b32.xlu0 %v11032_v9, %s10063_s13 }
 0x539   : > { %2627 = vrot.lane.b32.xlu0 %v11055_v13, %s10063_s13 }
 0x53d   : > { %2680 = vrot.lane.b32.xlu0 %v11078_v50, %s10063_s13 }
 0x541   : > { %2733 = vrot.lane.b32.xlu0 %v11101_v6, %s10063_s13 }
 0x545   : > { %2786 = vrot.lane.b32.xlu0 %v11116_v23, %s10063_s13 }
 0x549   : > { %2839 = vrot.lane.b32.xlu0 %v11131_v46, %s10063_s13 }
 0x54d   : > { %3097 = vrot.lane.b32.xlu0 %v11025_v8, %s10063_s13 }
 0x54e   : > { %2014 = vmax.xlane.f32.xlu1 %v2013_v42 }
 0x551   : > { %3289 = vrot.lane.b32.xlu0 %v11071_v37, %s10063_s13 }
 0x55f   : > { %2630 = vrot.lane.b32.xlu1 %v11058_v49, %s10063_s13 }
 0x563   : > { %2683 = vrot.lane.b32.xlu1 %v11081_v51, %s10063_s13 }
 0x567   : > { %2736 = vrot.lane.b32.xlu1 %v11103_v7, %s10063_s13 }
 0x56b   : > { %2789 = vrot.lane.b32.xlu1 %v11118_v24, %s10063_s13 }
 0x56f   : > { %2842 = vrot.lane.b32.xlu1 %v11133_v47, %s10063_s13 }
 0x570   : > { %v1970_v28 = vpop.xlane.xlu0 %1969 }
 0x571   : > { %v2016_v45 = vsub.f32 %v11165_v17, %v1970_v28 }
 0x572   : > { %v1973_v30 = vpop.xlane.xlu1 %1972 }
 0x573   : > { %v2032_v52 = vmul.f32 1.442695, %v2016_v45  ;;  %v2017_v54 = vsub.f32 %v11169_v41, %v1973_v30  ;;  %2895 = vrot.lane.b32.xlu1 %v11148_v2, %s10063_s13 }
 0x575   : > { %v2034_v55 = vmul.f32 1.442695, %v2017_v54  ;;  %9069 = vpow2.f32 %v2032_v52 }
 0x577   : > { %9071 = vpow2.f32 %v2034_v55  ;;  %2892 = vrot.lane.b32.xlu1 %v11146_v61, %s10063_s13 }
 0x578   : > { %v1976_v59 = vpop.xlane.xlu0 %1975 }
 0x579   : > { %v2018_v48 = vsub.f32 %v11173_v10, %v1976_v59 }
 0x57a   : > { %v1979_v56 = vpop.xlane.xlu1 %1978 }
 0x57b   : > { %v2036_v3 = vmul.f32 1.442695, %v2018_v48  ;;  %v2019_v17 = vsub.f32 %v11177_v12, %v1979_v56  ;;  %3145 = vrot.lane.b32.xlu1 %v11023_v40, %s10063_s13 }
 0x57d   : > { %v2038_v41 = vmul.f32 1.442695, %v2019_v17  ;;  %9073 = vpow2.f32 %v2036_v3 }
 0x57f   : > { %9075 = vpow2.f32 %v2038_v41  ;;  %3193 = vrot.lane.b32.xlu1 %v11048_v5, %s10063_s13  ;;  %v11273_v4 = vpop.eup %9069 }
 0x580   : > { %13457 = vst [vmem:[#allocation47_spill] sm:$0xff] %v11273_v4  ;;  %v1982_v11 = vpop.xlane.xlu0 %1981 }
 0x581   : > { %v11275_v29 = vpop.eup %9071  ;;  %v2020_v10 = vsub.f32 %v11181_v38, %v1982_v11 }
 0x582   : > { %v1985_v14 = vpop.xlane.xlu1 %1984  ;;  %v2112_v12 = vpack.c.bf16 %v11275_v29, %v11273_v4 }
 0x583   : > { %v2040_v22 = vmul.f32 1.442695, %v2020_v10  ;;  %v2021_v32 = vsub.f32 %v11185_v25, %v1985_v14  ;;  %3241 = vrot.lane.b32.xlu1 %v11044_v27, %s10063_s13 }
 0x584   : > { %8352 = vmatmul.mubr.msk.bf16.vlgmr.msra.gmra.mrb[40].mxu0 %vm1967_vm2, %v2112_v12 }
 0x585   : > { %v2042_v39 = vmul.f32 1.442695, %v2021_v32  ;;  %8362 = vmatpush3.bf16.msra.mxu0 %v11048_v5  ;;  %8363 = vmatprep.mubr.msk.bf16.mxu0 %vm10062_vm0, %v13346_v44  ;;  %9077 = vpow2.f32 %v2040_v22 }
 0x586   : > { %8373 = vmatprep.subr.bf16.mxu0 %v13346_v44 }
 0x587   : > { %9079 = vpow2.f32 %v2042_v39  ;;  %3337 = vrot.lane.b32.xlu1 %v11067_v57, %s10063_s13  ;;  %v11290_v38 = vpop.eup %9073 }
 0x588   : > { %13458 = vst [vmem:[#allocation48_spill] sm:$0xff] %v11290_v38  ;;  %v1988_v25 = vpop.xlane.xlu0 %1987 }
 0x589   : > { %v11292_v42 = vpop.eup %9075  ;;  %v2022_v28 = vsub.f32 %v11189_v35, %v1988_v25 }
 0x58a   : > { %13459 = vst [vmem:[#allocation49_spill] sm:$0xff] %v11292_v42  ;;  %v1991_v45 = vpop.xlane.xlu1 %1990  ;;  %v2113_v30 = vpack.c.bf16 %v11292_v42, %v11290_v38 }
 0x58b   : > { %v2044_v52 = vmul.f32 1.442695, %v2022_v28  ;;  %v2023_v54 = vsub.f32 %v11193_v43, %v1991_v45 }
 0x58c   : > { %8358 = vmatmul.mubr.msk.bf16.vlgmr.msra.gmra.mrb[40].mxu1 %vm1967_vm2, %v2113_v30 }
 0x58d   : > { %v2046_v55 = vmul.f32 1.442695, %v2023_v54  ;;  %8368 = vmatpush3.bf16.msra.mxu1 %v11044_v27  ;;  %8369 = vmatprep.mubr.msk.bf16.mxu1 %vm10062_vm0, %v13346_v44  ;;  %9081 = vpow2.f32 %v2044_v52 }
 0x58e   : > { %8379 = vmatprep.subr.bf16.mxu1 %v13346_v44 }
 0x58f   : > { %9083 = vpow2.f32 %v2046_v55  ;;  %v11303_v35 = vpop.eup %9077 }
 0x590   : > { %13460 = vst [vmem:[#allocation50_spill] sm:$0xff] %v11303_v35  ;;  %v1994_v59 = vpop.xlane.xlu0 %1993 }
 0x591   : > { %v11305_v48 = vpop.eup %9079  ;;  %v2024_v56 = vsub.f32 %v11197_v1, %v1994_v59 }
 0x592   : > { %13461 = vst [vmem:[#allocation51_spill] sm:$0xff] %v11305_v48  ;;  %v1997_v43 = vpop.xlane.xlu1 %1996  ;;  %v2114_v3 = vpack.c.bf16 %v11305_v48, %v11303_v35 }
 0x593   : > { %v2048_v17 = vmul.f32 1.442695, %v2024_v56  ;;  %v2025_v41 = vsub.f32 %v11201_v53, %v1997_v43 }
 0x594   : > { %8364 = vmatmul.mubr.msk.bf16.vlgmr.msra.gmra.mrb[44].mxu0 %vm1967_vm2, %v2114_v3 }
 0x595   : > { %v2050_v11 = vmul.f32 1.442695, %v2025_v41  ;;  %8374 = vmatpush3.bf16.msra.mxu0 %v11071_v37  ;;  %8375 = vmatprep.mubr.msk.bf16.mxu0 %vm10062_vm0, %v13346_v44  ;;  %9085 = vpow2.f32 %v2048_v17 }
 0x596   : > { %8385 = vmatprep.subr.bf16.mxu0 %v13346_v44 }
 0x597   : > { %9087 = vpow2.f32 %v2050_v11  ;;  %v11316_v1 = vpop.eup %9081 }
 0x598   : > { %13462 = vst [vmem:[#allocation52_spill] sm:$0xff] %v11316_v1  ;;  %v2000_v10 = vpop.xlane.xlu0 %1999 }
 0x599   : > { %v11318_v14 = vpop.eup %9083  ;;  %v2026_v12 = vsub.f32 %v11205_v58, %v2000_v10 }
 0x59a   : > { %13463 = vst [vmem:[#allocation53_spill] sm:$0xff] %v11318_v14  ;;  %v2003_v53 = vpop.xlane.xlu1 %2002  ;;  %v2115_v22 = vpack.c.bf16 %v11318_v14, %v11316_v1 }
 0x59b   : > { %v2052_v32 = vmul.f32 1.442695, %v2026_v12  ;;  %v2027_v39 = vsub.f32 %v11209_v26, %v2003_v53 }
 0x59c   : > { %8370 = vmatmul.mubr.msk.bf16.vlgmr.msra.gmra.mrb[44].mxu1 %vm1967_vm2, %v2115_v22 }
 0x59d   : > { %v2054_v25 = vmul.f32 1.442695, %v2027_v39  ;;  %8380 = vmatpush3.bf16.msra.mxu1 %v11067_v57  ;;  %8381 = vmatprep.mubr.msk.bf16.mxu1 %vm10062_vm0, %v13346_v44  ;;  %9089 = vpow2.f32 %v2052_v32 }
 0x59e   : > { %8391 = vmatprep.subr.bf16.mxu1 %v13346_v44 }
 0x59f   : > { %9091 = vpow2.f32 %v2054_v25  ;;  %v11329_v58 = vpop.eup %9085 }
 0x5a0   : > { %13464 = vst [vmem:[#allocation54_spill] sm:$0xff] %v11329_v58  ;;  %v2006_v28 = vpop.xlane.xlu0 %2005 }
 0x5a1   : > { %v11331_v45 = vpop.eup %9087  ;;  %v2028_v30 = vsub.f32 %v11213_v20, %v2006_v28 }
 0x5a2   : > { %13465 = vst [vmem:[#allocation55_spill] sm:$0xff] %v11331_v45  ;;  %v2009_v26 = vpop.xlane.xlu1 %2008  ;;  %v2116_v52 = vpack.c.bf16 %v11331_v45, %v11329_v58 }
 0x5a3   : > { %v2056_v54 = vmul.f32 1.442695, %v2028_v30  ;;  %v2029_v55 = vsub.f32 %v11217_v33, %v2009_v26 }
 0x5a4   : > { %8376 = vmatmul.mubr.msk.bf16.vlgmr.msra.gmra.mrb[48].mxu0 %vm1967_vm2, %v2116_v52 }
 0x5a5   : > { %v2058_v59 = vmul.f32 1.442695, %v2029_v55  ;;  %8386 = vmatpush3.bf16.msra.mxu0 %v11094_v63  ;;  %8387 = vmatprep.mubr.msk.bf16.mxu0 %vm10062_vm0, %v13346_v44  ;;  %9093 = vpow2.f32 %v2056_v54 }
 0x5a6   : > { %8397 = vmatprep.subr.bf16.mxu0 %v13346_v44  ;;  %v2578_v12 = vpop.permute.xlu1 %2577 }
 0x5a7   : > { %9095 = vpow2.f32 %v2058_v59  ;;  %v11342_v20 = vpop.eup %9089 }
 0x5a8   : > { %13466 = vst [vmem:[#allocation56_spill] sm:$0xff] %v11342_v20  ;;  %v2012_v33 = vpop.xlane.xlu0 %2011 }
 0x5a9   : > { %v11344_v56 = vpop.eup %9091  ;;  %v2030_v32 = vsub.f32 %v11221_v21, %v2012_v33 }
 0x5aa   : > { %13467 = vst [vmem:[#allocation57_spill] sm:$0xff] %v11344_v56  ;;  %v2117_v43 = vpack.c.bf16 %v11344_v56, %v11342_v20  ;;  %v2522_v53 = vpop.permute.xlu1 %2521 }
 0x5ab   : > { %v2060_v25 = vmul.f32 1.442695, %v2030_v32  ;;  %v2583_v32 = vsel %vm1590_vm1, %v2578_v12, 0 }
 0x5ac   : > { %8382 = vmatmul.mubr.msk.bf16.vlgmr.msra.gmra.mrb[48].mxu1 %vm1967_vm2, %v2117_v43  ;;  %v2525_v41 = vpop.permute.xlu0 %2524 }
 0x5ad   : > { %8392 = vmatpush3.bf16.msra.mxu1 %v11090_v19  ;;  %8393 = vmatprep.mubr.msk.bf16.mxu1 %vm10062_vm0, %v13346_v44  ;;  %v2530_v10 = vsel %vm1590_vm1, %v2525_v41, 0  ;;  %9097 = vpow2.f32 %v2060_v25 }
 0x5ae   : > { %8403 = vmatprep.subr.bf16.mxu1 %v13346_v44 }
 0x5af   : > { %v11353_v3 = vpop.eup %9093 }
 0x5b0   : > { %13468 = vst [vmem:[#allocation58_spill] sm:$0xff] %v11353_v3  ;;  %v2575_v22 = vpop.permute.xlu0 %2574 }
 0x5b1   : > { %v11355_v17 = vpop.eup %9095 }
 0x5b2   : > { %13469 = vst [vmem:[#allocation59_spill] sm:$0xff] %v11355_v17  ;;  %v2118_v11 = vpack.c.bf16 %v11355_v17, %v11353_v3 }
 0x5b4   : > { %8388 = vmatmul.mubr.msk.bf16.vlgmr.msra.gmra.mrb[52].mxu0 %vm1967_vm2, %v2118_v11  ;;  %v2628_v39 = vpop.permute.xlu0 %2627 }
 0x5b5   : > { %8398 = vmatpush3.bf16.xpose.msra.mxu0 %v2530_v10  ;;  %8399 = vmatprep.mubr.msk.bf16.mxu0 %vm10062_vm0, %v13346_v44 }
 0x5b6   : > { %8409 = vmatprep.subr.bf16.mxu0 %v13346_v44 }
 0x5b7   : > { %v11373_v33 = vpop.eup %9097 }
 0x5b8   : > { %v2681_v54 = vpop.permute.xlu0 %2680  ;;  %13470 = vst [vmem:[#allocation60_spill] sm:$0xff] %v11373_v33 }
 0x5bc   : > { %8400 = vmatmul.mubr.msk.bf16.vlgmr.msra.gmra.mrb[56].mxu0 %vm1590_vm1, %v2522_v53  ;;  %v2734_v43 = vpop.permute.xlu0 %2733 }
 0x5bd   : > { %8411 = vmatprep.mubr.msk.bf16.mxu0 %vm10062_vm0, %v13346_v44 }
 0x5c0   : > { %v2787_v53 = vpop.permute.xlu0 %2786 }
 0x5db   : > { %v2015_v28 = vpop.xlane.xlu1 %2014 }
 0x5dc   : > { %v2031_v30 = vsub.f32 %v11225_v34, %v2015_v28  ;;  %v2840_v28 = vpop.permute.xlu0 %2839 }
 0x5de   : > { %v2062_v26 = vmul.f32 1.442695, %v2031_v30 }
 0x5df   : > { %v2631_v52 = vpop.permute.xlu1 %2630 }
 0x5e0   : > { %9099 = vpow2.f32 %v2062_v26  ;;  %v2636_v55 = vsel %vm1590_vm1, %v2631_v52, 0  ;;  %v3098_v30 = vpop.permute.xlu0 %3097 }
 0x5e1   : > { %8410 = vmatpush3.bf16.xpose.msra.mxu0 %v2636_v55 }
 0x5e2   : > { %8421 = vmatprep.subr.bf16.mxu0 %v13346_v44 }
 0x5e3   : > { %v2684_v59 = vpop.permute.xlu1 %2683 }
 0x5e4   : > { %v2689_v12 = vsel %vm1590_vm1, %v2684_v59, 0 }
 0x5e7   : > { %v2737_v41 = vpop.permute.xlu1 %2736 }
 0x5e8   : > { %v2742_v21 = vsel %vm1590_vm1, %v2737_v41, 0  ;;  %8412 = vmatmul.mubr.msk.bf16.vlgmr.msra.gmra.mrb[60].mxu0 %vm1590_vm1, %v2628_v39 }
 0x5e9   : > { %8422 = vmatpush3.bf16.xpose.msra.mxu0 %v2742_v21  ;;  %8423 = vmatprep.mubr.msk.bf16.mxu0 %vm10062_vm0, %v13346_v44 }
 0x5ea   : > { %v11377_v34 = vpop.eup %9099  ;;  %8433 = vmatprep.subr.bf16.mxu0 %v13346_v44 }
 0x5eb   : > { %13471 = vst [vmem:[#allocation61_spill] sm:$0xff] %v11377_v34  ;;  %v2790_v11 = vpop.permute.xlu1 %2789  ;;  %v2119_v10 = vpack.c.bf16 %v11377_v34, %v11373_v33 }
 0x5ec   : > { %v2795_v26 = vsel %vm1590_vm1, %v2790_v11, 0 }
 0x5ed   : > { %8394 = vmatmul.mubr.msk.bf16.vlgmr.msra.gmra.mrb[52].mxu1 %vm1967_vm2, %v2119_v10 }
 0x5ee   : > { %8404 = vmatpush3.bf16.xpose.msra.mxu1 %v2583_v32  ;;  %8405 = vmatprep.mubr.msk.bf16.mxu1 %vm10062_vm0, %v13346_v44 }
 0x5ef   : > { %v2843_v39 = vpop.permute.xlu1 %2842  ;;  %8415 = vmatprep.subr.bf16.mxu1 %v13346_v44 }
 0x5f0   : > { %v2848_v25 = vsel %vm1590_vm1, %v2843_v39, 0  ;;  %8424 = vmatmul.mubr.msk.bf16.vlgmr.msra.gmra.mrb[64].mxu0 %vm1590_vm1, %v2734_v43 }
 0x5f1   : > { %8434 = vmatpush3.bf16.xpose.msra.mxu0 %v2848_v25  ;;  %8435 = vmatprep.mubr.msk.bf16.mxu0 %vm10062_vm0, %v13346_v44 }
 0x5f2   : > { %8445 = vmatprep.subr.bf16.mxu0 %v13346_v44 }
 0x5f5   : > { %8406 = vmatmul.mubr.msk.bf16.vlgmr.msra.gmra.mrb[56].mxu1 %vm1590_vm1, %v2575_v22  ;;  %v2896_v22 = vpop.permute.xlu1 %2895 }
 0x5f6   : > { %8416 = vmatpush3.bf16.xpose.msra.mxu1 %v2689_v12  ;;  %8417 = vmatprep.mubr.msk.bf16.mxu1 %vm10062_vm0, %v13346_v44  ;;  %v2901_v52 = vsel %vm1590_vm1, %v2896_v22, 0 }
 0x5f7   : > { %8427 = vmatprep.subr.bf16.mxu1 %v13346_v44 }
 0x5f8   : > { %8436 = vmatmul.mubr.msk.bf16.vlgmr.msra.gmra.mrb[68].mxu0 %vm1590_vm1, %v2840_v28 }
 0x5f9   : > { %8446 = vmatpush3.bf16.msra.mxu0 %v3098_v30  ;;  %8447 = vmatprep.mubr.msk.bf16.mxu0 %vm10062_vm0, %v13346_v44  ;;  %v2893_v55 = vpop.permute.xlu1 %2892 }
 0x5fa   : > { %8457 = vmatprep.subr.bf16.mxu0 %v13346_v44 }
 0x5fd   : > { %8418 = vmatmul.mubr.msk.bf16.vlgmr.msra.gmra.mrb[60].mxu1 %vm1590_vm1, %v2681_v54  ;;  %v3146_v59 = vpop.permute.xlu1 %3145 }
 0x5fe   : > { %8428 = vmatpush3.bf16.xpose.msra.mxu1 %v2795_v26  ;;  %8429 = vmatprep.mubr.msk.bf16.mxu1 %vm10062_vm0, %v13346_v44 }
 0x5ff   : > { %8439 = vmatprep.subr.bf16.mxu1 %v13346_v44 }
 0x605   : > { %8430 = vmatmul.mubr.msk.bf16.vlgmr.msra.gmra.mrb[64].mxu1 %vm1590_vm1, %v2787_v53 }
 0x606   : > { %8440 = vmatpush3.bf16.xpose.msra.mxu1 %v2901_v52  ;;  %8441 = vmatprep.mubr.msk.bf16.mxu1 %vm10062_vm0, %v13346_v44 }
 0x607   : > { %8451 = vmatprep.subr.bf16.mxu1 %v13346_v44 }
 0x60d   : > { %8442 = vmatmul.mubr.msk.bf16.vlgmr.msra.gmra.mrb[68].mxu1 %vm1590_vm1, %v2893_v55 }
 0x60e   : > { %8452 = vmatpush3.bf16.msra.mxu1 %v3146_v59  ;;  %8453 = vmatprep.mubr.msk.bf16.mxu1 %vm10062_vm0, %v13346_v44 }
 0x60f   : > { %8463 = vmatprep.subr.bf16.mxu1 %v13346_v44 }
 0x657   : > { %v11415_v54 = vpop.f32.mrb[40].mxu0 }
 0x658   : > { %13472 = vst [vmem:[#allocation62_spill] sm:$0xff] %v11415_v54  ;;  %v8353_v43 = vpop.f32.mrb[41].mxu0 }
 0x659   : > { %v11417_v41 = vpop.f32.mrb[42].mxu0 }
 0x65a   : > { %13473 = vst [vmem:[#allocation63_spill] sm:$0xff] %v11417_v41  ;;  %v8354_v21 = vpop.f32.mrb[43].mxu0 }
 0x65f   : > { %v11419_v11 = vpop.f32.mrb[40].mxu1 }
 0x660   : > { %13474 = vst [vmem:[#allocation64_spill] sm:$0xff] %v11419_v11  ;;  %v8359_v10 = vpop.f32.mrb[41].mxu1 }
 0x661   : > { %v11421_v53 = vpop.f32.mrb[42].mxu1 }
 0x662   : > { %13475 = vst [vmem:[#allocation65_spill] sm:$0xff] %v11421_v53  ;;  %v8360_v32 = vpop.f32.mrb[43].mxu1 }
 0x667   : > { %v11423_v39 = vpop.f32.mrb[44].mxu0 }
 0x668   : > { %13476 = vst [vmem:[#allocation66_spill] sm:$0xff] %v11423_v39  ;;  %v8365_v25 = vpop.f32.mrb[45].mxu0 }
 0x669   : > { %v11425_v28 = vpop.f32.mrb[46].mxu0 }
 0x66a   : > { %13477 = vst [vmem:[#allocation67_spill] sm:$0xff] %v11425_v28  ;;  %v8366_v12 = vpop.f32.mrb[47].mxu0 }
 0x66f   : > { %v11427_v30 = vpop.f32.mrb[44].mxu1 }
 0x670   : > { %13478 = vst [vmem:[#allocation68_spill] sm:$0xff] %v11427_v30  ;;  %v8371_v26 = vpop.f32.mrb[45].mxu1 }
 0x671   : > { %v11429_v22 = vpop.f32.mrb[46].mxu1 }
 0x672   : > { %13479 = vst [vmem:[#allocation69_spill] sm:$0xff] %v11429_v22  ;;  %v8372_v52 = vpop.f32.mrb[47].mxu1 }
 0x677   : > { %v11431_v55 = vpop.f32.mrb[48].mxu0 }
 0x678   : > { %13480 = vst [vmem:[#allocation70_spill] sm:$0xff] %v11431_v55  ;;  %v8377_v59 = vpop.f32.mrb[49].mxu0 }
 0x679   : > { %v11433_v43 = vpop.f32.mrb[50].mxu0 }
 0x67a   : > { %13481 = vst [vmem:[#allocation71_spill] sm:$0xff] %v11433_v43  ;;  %v8378_v21 = vpop.f32.mrb[51].mxu0 }
 0x67f   : > { %v11435_v10 = vpop.f32.mrb[48].mxu1 }
 0x680   : > { %13482 = vst [vmem:[#allocation72_spill] sm:$0xff] %v11435_v10  ;;  %v8383_v32 = vpop.f32.mrb[49].mxu1 }
 0x681   : > { %v11437_v16 = vpop.f32.mrb[50].mxu1 }
 0x682   : > { %13483 = vst [vmem:[#allocation73_spill] sm:$0xff] %v11437_v16  ;;  %v8384_v25 = vpop.f32.mrb[51].mxu1 }
 0x687   : > { %v11439_v18 = vpop.f32.mrb[52].mxu0 }
 0x688   : > { %13484 = vst [vmem:[#allocation74_spill] sm:$0xff] %v11439_v18  ;;  %v8389_v12 = vpop.f32.mrb[53].mxu0 }
 0x689   : > { %v11441_v15 = vpop.f32.mrb[54].mxu0 }
 0x68a   : > { %13485 = vst [vmem:[#allocation75_spill] sm:$0xff] %v11441_v15  ;;  %v8390_v26 = vpop.f32.mrb[55].mxu0 }
 0x68f   : > { %v11443_v62 = vpop.f32.mrb[56].mxu0 }
 0x690   : > { %v8401_v52 = vpop.f32.mrb[57].mxu0  ;;  %v2944_v59 = vsel %vm1967_vm2, %v11443_v62, -inf }
 0x691   : > { %2945 = vmax.xlane.f32.xlu0 %v2944_v59  ;;  %v11447_v21 = vpop.f32.mrb[58].mxu0 }
 0x692   : > { %v8402_v44 = vpop.f32.mrb[59].mxu0  ;;  %v2947_v32 = vsel %vm1967_vm2, %v11447_v21, -inf }
 0x693   : > { %2948 = vmax.xlane.f32.xlu1 %v2947_v32 }
 0x6a4   : > { %3433 = vrot.lane.b32.xlu1 %v11090_v19, %s10063_s13 }
 0x6bb   : > { %v11453_v25 = vpop.f32.mrb[60].mxu0 }
 0x6bc   : > { %v8413_v12 = vpop.f32.mrb[61].mxu0 }
 0x6bd   : > { %v11455_v26 = vpop.f32.mrb[62].mxu0 }
 0x6be   : > { %v8414_v52 = vpop.f32.mrb[63].mxu0  ;;  %v2959_v16 = vsel %vm1967_vm2, %v11455_v26, -inf }
 0x6c0   : > { %v11457_v31 = vpop.f32.mrb[52].mxu1 }
 0x6c1   : > { %13486 = vst [vmem:[#allocation76_spill] sm:$0xff] %v11457_v31  ;;  %v8395_v15 = vpop.f32.mrb[53].mxu1 }
 0x6c2   : > { %v11459_v59 = vpop.f32.mrb[54].mxu1 }
 0x6c3   : > { %13487 = vst [vmem:[#allocation77_spill] sm:$0xff] %v11459_v59  ;;  %v8396_v18 = vpop.f32.mrb[55].mxu1  ;;  %v11461_v44 = vpop.f32.mrb[64].mxu0 }
 0x6c4   : > { %v8425_v43 = vpop.f32.mrb[65].mxu0 }
 0x6c5   : > { %v11463_v17 = vpop.f32.mrb[66].mxu0 }
 0x6c6   : > { %v8426_v32 = vpop.f32.mrb[67].mxu0  ;;  %v2971_v33 = vsel %vm1967_vm2, %v11463_v17, -inf }
 0x6c7   : > { %v2956_v32 = vsel %vm1967_vm2, %v11453_v25, -inf }
 0x6c8   : > { %2960 = vmax.xlane.f32.xlu1 %v2959_v16  ;;  %v11467_v12 = vpop.f32.mrb[56].mxu1 }
 0x6c9   : > { %v8407_v10 = vpop.f32.mrb[57].mxu1  ;;  %v2950_v52 = vsel %vm1967_vm2, %v11467_v12, -inf }
 0x6ca   : > { %2951 = vmax.xlane.f32.xlu0 %v2950_v52  ;;  %v11471_v15 = vpop.f32.mrb[58].mxu1 }
 0x6cb   : > { %v8408_v18 = vpop.f32.mrb[59].mxu1  ;;  %v11473_v59 = vpop.f32.mrb[68].mxu0  ;;  %v2953_v34 = vsel %vm1967_vm2, %v11471_v15, -inf }
 0x6cc   : > { %v8437_v43 = vpop.f32.mrb[69].mxu0 }
 0x6cd   : > { %v11475_v31 = vpop.f32.mrb[70].mxu0 }
 0x6ce   : > { %v8438_v55 = vpop.f32.mrb[71].mxu0  ;;  %2957 = vmax.xlane.f32.xlu0 %v2956_v32 }
 0x6d0   : > { %v11479_v16 = vpop.f32.mrb[60].mxu1 }
 0x6d1   : > { %v8419_v10 = vpop.f32.mrb[61].mxu1 }
 0x6d2   : > { %2954 = vmax.xlane.f32.xlu0 %v2953_v34  ;;  %v11483_v52 = vpop.f32.mrb[62].mxu1 }
 0x6d3   : > { %v8420_v18 = vpop.f32.mrb[63].mxu1  ;;  %v2965_v43 = vsel %vm1967_vm2, %v11483_v52, -inf }
 0x6d4   : > { %2966 = vmax.xlane.f32.xlu1 %v2965_v43  ;;  %v2983_v18 = vsel %vm1967_vm2, %v11475_v31, -inf }
 0x6d8   : > { %2972 = vmax.xlane.f32.xlu1 %v2971_v33  ;;  %v11489_v55 = vpop.f32.mrb[64].mxu1 }
 0x6d9   : > { %v8431_v32 = vpop.f32.mrb[65].mxu1 }
 0x6da   : > { %v11491_v3 = vpop.f32.mrb[66].mxu1  ;;  %v2962_v32 = vsel %vm1967_vm2, %v11479_v16, -inf }
 0x6db   : > { %v8432_v10 = vpop.f32.mrb[67].mxu1  ;;  %v2977_v34 = vsel %vm1967_vm2, %v11491_v3, -inf }
 0x6dc   : > { %2978 = vmax.xlane.f32.xlu1 %v2977_v34  ;;  %v2968_v10 = vsel %vm1967_vm2, %v11461_v44, -inf  ;;  %v2974_v34 = vsel %vm1967_vm2, %v11489_v55, -inf }
 0x6e0   : > { %2984 = vmax.xlane.f32.xlu1 %v2983_v18  ;;  %v11497_v30 = vpop.f32.mrb[68].mxu1  ;;  %v3194_v18 = vpop.permute.xlu1 %3193 }
 0x6e1   : > { %v8443_v43 = vpop.f32.mrb[69].mxu1 }
 0x6e2   : > { %v11499_v22 = vpop.f32.mrb[70].mxu1  ;;  %v2980_v43 = vsel %vm1967_vm2, %v11473_v59, -inf }
 0x6e3   : > { %v8444_v33 = vpop.f32.mrb[71].mxu1 }
 0x6e4   : > { %v2989_v33 = vsel %vm1967_vm2, %v11499_v22, -inf  ;;  %v11515_v39 = vpop.permute.xlu1 %3241 }
 0x6e8   : > { %3385 = vrot.lane.b32.xlu0 %v11094_v63, %s10063_s13  ;;  %v11519_v11 = vpop.permute.xlu1 %3337 }
 0x6f1   : > { %3646 = vrot.lane.b32.xlu1 %v11035_v60, %s10064_s26 }
 0x707   : > { %2963 = vmax.xlane.f32.xlu0 %v2962_v32  ;;  %v2986_v32 = vsel %vm1967_vm2, %v11497_v30, -inf }
 0x70b   : > { %2969 = vmax.xlane.f32.xlu0 %v2968_v10  ;;  %v3290_v10 = vpop.permute.xlu0 %3289 }
 0x70f   : > { %2975 = vmax.xlane.f32.xlu0 %v2974_v34 }
 0x713   : > { %2981 = vmax.xlane.f32.xlu0 %v2980_v43 }
 0x715   : > { %2990 = vmax.xlane.f32.xlu1 %v2989_v33 }
 0x717   : > { %2987 = vmax.xlane.f32.xlu0 %v2986_v32 }
 0x71e   : > { %v2946_v28 = vpop.xlane.xlu0 %2945 }
 0x71f   : > { %v2992_v34 = vsub.f32 %v11443_v62, %v2946_v28 }
 0x720   : > { %v2949_v53 = vpop.xlane.xlu1 %2948 }
 0x721   : > { %v3008_v54 = vmul.f32 1.442695, %v2992_v34  ;;  %v2993_v43 = vsub.f32 %v11447_v21, %v2949_v53 }
 0x723   : > { %v3010_v41 = vmul.f32 1.442695, %v2993_v43  ;;  %9101 = vpow2.f32 %v3008_v54 }
 0x724   : > { %v11573_v53 = vpop.permute.xlu1 %3433 }
 0x725   : > { %9103 = vpow2.f32 %v3010_v41  ;;  %v13488_v41 = vmov 0.0  }
 0x726   : > { %3697 = vrot.lane.b32.xlu1 %v11058_v49, %s10064_s26 }
 0x72a   : > { %3748 = vrot.lane.b32.xlu1 %v11081_v51, %s10064_s26 }
 0x72d   : > { %3595 = vrot.lane.b32.xlu0 %v11015_v0, %s10064_s26  ;;  %v11529_v33 = vpop.eup %9101 }
 0x72e   : > { %3799 = vrot.lane.b32.xlu1 %v11103_v7, %s10064_s26 }
 0x72f   : > { %v11533_v62 = vpop.eup %9103 }
 0x730   : > { %v3088_v54 = vpack.c.bf16 %v11533_v62, %v11529_v33 }
 0x731   : > { %3593 = vrot.lane.b32.xlu0 %v11013_v36, %s10064_s26 }
 0x732   : > { %8448 = vmatmul.mubr.msk.bf16.vlgmr.msra.gmra.mrb[72].mxu0 %vm1967_vm2, %v3088_v54  ;;  %3850 = vrot.lane.b32.xlu1 %v11118_v24, %s10064_s26 }
 0x733   : > { %8458 = vmatpush3.bf16.msra.mxu0 %v3194_v18  ;;  %8459 = vmatprep.mubr.msk.bf16.mxu0 %vm10062_vm0, %v13488_v41 }
 0x734   : > { %8469 = vmatprep.subr.bf16.mxu0 %v13488_v41 }
 0x735   : > { %3644 = vrot.lane.b32.xlu0 %v11032_v9, %s10064_s26 }
 0x736   : > { %3901 = vrot.lane.b32.xlu1 %v11133_v47, %s10064_s26 }
 0x739   : > { %3695 = vrot.lane.b32.xlu0 %v11055_v13, %s10064_s26 }
 0x73a   : > { %3952 = vrot.lane.b32.xlu1 %v11148_v2, %s10064_s26 }
 0x73d   : > { %3746 = vrot.lane.b32.xlu0 %v11078_v50, %s10064_s26 }
 0x73e   : > { %3950 = vrot.lane.b32.xlu1 %v11146_v61, %s10064_s26 }
 0x741   : > { %3797 = vrot.lane.b32.xlu0 %v11101_v6, %s10064_s26 }
 0x742   : > { %4200 = vrot.lane.b32.xlu1 %v11023_v40, %s10064_s26 }
 0x745   : > { %3848 = vrot.lane.b32.xlu0 %v11116_v23, %s10064_s26 }
 0x746   : > { %4247 = vrot.lane.b32.xlu1 %v11048_v5, %s10064_s26 }
 0x749   : > { %3899 = vrot.lane.b32.xlu0 %v11131_v46, %s10064_s26 }
 0x74a   : > { %4294 = vrot.lane.b32.xlu1 %v11044_v27, %s10064_s26 }
 0x74d   : > { %4153 = vrot.lane.b32.xlu0 %v11025_v8, %s10064_s26 }
 0x74e   : > { %4388 = vrot.lane.b32.xlu1 %v11067_v57, %s10064_s26 }
 0x751   : > { %4341 = vrot.lane.b32.xlu0 %v11071_v37, %s10064_s26 }
 0x755   : > { %v2961_v28 = vpop.xlane.xlu1 %2960 }
 0x756   : > { %v2997_v21 = vsub.f32 %v11455_v26, %v2961_v28 }
 0x757   : > { %v2952_v18 = vpop.xlane.xlu0 %2951 }
 0x758   : > { %v3018_v32 = vmul.f32 1.442695, %v2997_v21  ;;  %v2994_v34 = vsub.f32 %v11467_v12, %v2952_v18 }
 0x75a   : > { %9105 = vpow2.f32 %v3018_v32  ;;  %v3012_v56 = vmul.f32 1.442695, %v2994_v34 }
 0x75b   : > { %v2958_v43 = vpop.xlane.xlu0 %2957 }
 0x75c   : > { %v2996_v54 = vsub.f32 %v11453_v25, %v2958_v43 }
 0x75e   : > { %v3016_v45 = vmul.f32 1.442695, %v2996_v54 }
 0x75f   : > { %v2955_v20 = vpop.xlane.xlu0 %2954 }
 0x760   : > { %9107 = vpow2.f32 %v3016_v45  ;;  %v2995_v58 = vsub.f32 %v11471_v15, %v2955_v20 }
 0x761   : > { %9109 = vpow2.f32 %v3012_v56 }
 0x762   : > { %v3014_v1 = vmul.f32 1.442695, %v2995_v58  ;;  %v2967_v58 = vpop.xlane.xlu1 %2966 }
 0x763   : > { %v2999_v20 = vsub.f32 %v11483_v52, %v2967_v58  ;;  %v3386_v56 = vpop.permute.xlu0 %3385 }
 0x764   : > { %9111 = vpow2.f32 %v3014_v1  ;;  %v11581_v14 = vpop.eup %9105 }
 0x766   : > { %v2973_v45 = vpop.xlane.xlu1 %2972 }
 0x767   : > { %v3001_v21 = vsub.f32 %v11463_v17, %v2973_v45 }
 0x76a   : > { %v11583_v26 = vpop.eup %9107  ;;  %v2979_v15 = vpop.xlane.xlu1 %2978 }
 0x76b   : > { %v3090_v12 = vpack.c.bf16 %v11581_v14, %v11583_v26  ;;  %v11587_v28 = vpop.eup %9109  ;;  %v3003_v43 = vsub.f32 %v11491_v3, %v2979_v15 }
 0x76d   : > { %8460 = vmatmul.mubr.msk.bf16.vlgmr.msra.gmra.mrb[76].mxu0 %vm1967_vm2, %v3090_v12  ;;  %v3030_v52 = vmul.f32 1.442695, %v3003_v43 }
 0x76e   : > { %v11590_v25 = vpop.eup %9111  ;;  %8470 = vmatpush3.bf16.msra.mxu0 %v3290_v10  ;;  %8471 = vmatprep.mubr.msk.bf16.mxu0 %vm10062_vm0, %v13488_v41  ;;  %v3022_v10 = vmul.f32 1.442695, %v2999_v20  ;;  %v2985_v54 = vpop.xlane.xlu1 %2984 }
 0x76f   : > { %v3089_v1 = vpack.c.bf16 %v11590_v25, %v11587_v28  ;;  %8481 = vmatprep.subr.bf16.mxu0 %v13488_v41  ;;  %v3005_v58 = vsub.f32 %v11475_v31, %v2985_v54 }
 0x770   : > { %9113 = vpow2.f32 %v3022_v10 }
 0x771   : > { %8454 = vmatmul.mubr.msk.bf16.vlgmr.msra.gmra.mrb[72].mxu1 %vm1967_vm2, %v3089_v1  ;;  %v3034_v10 = vmul.f32 1.442695, %v3005_v58 }
 0x772   : > { %8464 = vmatpush3.bf16.msra.mxu1 %v11515_v39  ;;  %8465 = vmatprep.mubr.msk.bf16.mxu1 %vm10062_vm0, %v13488_v41  ;;  %v3026_v39 = vmul.f32 1.442695, %v3001_v21 }
 0x773   : > { %8475 = vmatprep.subr.bf16.mxu1 %v13488_v41 }
 0x77a   : > { %v11610_v15 = vpop.eup %9113 }
 0x794   : > { %v2964_v18 = vpop.xlane.xlu0 %2963 }
 0x795   : > { %v2998_v32 = vsub.f32 %v11479_v16, %v2964_v18  ;;  %v3647_v16 = vpop.permute.xlu1 %3646 }
 0x797   : > { %v3020_v34 = vmul.f32 1.442695, %v2998_v32 }
 0x798   : > { %v2970_v12 = vpop.xlane.xlu0 %2969 }
 0x799   : > { %9115 = vpow2.f32 %v3020_v34  ;;  %v3000_v1 = vsub.f32 %v11461_v44, %v2970_v12 }
 0x79a   : > { %9117 = vpow2.f32 %v3026_v39 }
 0x79b   : > { %v3024_v35 = vmul.f32 1.442695, %v3000_v1 }
 0x79c   : > { %v2976_v20 = vpop.xlane.xlu0 %2975 }
 0x79d   : > { %9119 = vpow2.f32 %v3024_v35  ;;  %v3002_v17 = vsub.f32 %v11489_v55, %v2976_v20 }
 0x79e   : > { %9121 = vpow2.f32 %v3030_v52 }
 0x79f   : > { %v3028_v45 = vmul.f32 1.442695, %v3002_v17 }
 0x7a0   : > { %v2982_v21 = vpop.xlane.xlu0 %2981 }
 0x7a1   : > { %9123 = vpow2.f32 %v3028_v45  ;;  %v3004_v3 = vsub.f32 %v11473_v59, %v2982_v21 }
 0x7a2   : > { %v2991_v44 = vpop.xlane.xlu1 %2990  ;;  %9125 = vpow2.f32 %v3034_v10 }
 0x7a3   : > { %v11612_v18 = vpop.eup %9115  ;;  %v3032_v32 = vmul.f32 1.442695, %v3004_v3  ;;  %v3007_v31 = vsub.f32 %v11499_v22, %v2991_v44 }
 0x7a4   : > { %v2988_v35 = vpop.xlane.xlu0 %2987  ;;  %v3091_v55 = vpack.c.bf16 %v11610_v15, %v11612_v18  ;;  %v11618_v43 = vpop.eup %9117 }
 0x7a5   : > { %9127 = vpow2.f32 %v3032_v32  ;;  %v3038_v34 = vmul.f32 1.442695, %v3007_v31  ;;  %v3006_v39 = vsub.f32 %v11497_v30, %v2988_v35  ;;  %v3652_v31 = vsel %vm1590_vm1, %v3647_v16, 0 }
 0x7a6   : > { %8466 = vmatmul.mubr.msk.bf16.vlgmr.msra.gmra.mrb[76].mxu1 %vm1967_vm2, %v3091_v55  ;;  %v3698_v58 = vpop.permute.xlu1 %3697 }
 0x7a7   : > { %v11621_v59 = vpop.eup %9119  ;;  %v3036_v54 = vmul.f32 1.442695, %v3006_v39  ;;  %8476 = vmatpush3.bf16.msra.mxu1 %v11519_v11  ;;  %8477 = vmatprep.mubr.msk.bf16.mxu1 %vm10062_vm0, %v13488_v41  ;;  %9129 = vpow2.f32 %v3038_v34  ;;  %v3703_v55 = vsel %vm1590_vm1, %v3698_v58, 0 }
 0x7a8   : > { %v3596_v22 = vpop.permute.xlu0 %3595  ;;  %v3092_v12 = vpack.c.bf16 %v11618_v43, %v11621_v59  ;;  %8487 = vmatprep.subr.bf16.mxu1 %v13488_v41  ;;  %v11629_v30 = vpop.eup %9121 }
 0x7a9   : > { %9131 = vpow2.f32 %v3036_v54  ;;  %v3601_v3 = vsel %vm1590_vm1, %v3596_v22, 0 }
 0x7aa   : > { %8472 = vmatmul.mubr.msk.bf16.vlgmr.msra.gmra.mrb[80].mxu0 %vm1967_vm2, %v3092_v12  ;;  %v3749_v44 = vpop.permute.xlu1 %3748 }
 0x7ab   : > { %v11632_v1 = vpop.eup %9123  ;;  %8482 = vmatpush3.bf16.msra.mxu0 %v3386_v56  ;;  %8483 = vmatprep.mubr.msk.bf16.mxu0 %vm10062_vm0, %v13488_v41  ;;  %v3754_v16 = vsel %vm1590_vm1, %v3749_v44, 0 }
 0x7ac   : > { %v3594_v11 = vpop.permute.xlu0 %3593  ;;  %v3093_v52 = vpack.c.bf16 %v11629_v30, %v11632_v1  ;;  %8493 = vmatprep.subr.bf16.mxu0 %v13488_v41  ;;  %v11639_v20 = vpop.eup %9125 }
 0x7ae   : > { %8478 = vmatmul.mubr.msk.bf16.vlgmr.msra.gmra.mrb[80].mxu1 %vm1967_vm2, %v3093_v52  ;;  %v3800_v35 = vpop.permute.xlu1 %3799 }
 0x7af   : > { %v11642_v17 = vpop.eup %9127  ;;  %8488 = vmatpush3.bf16.msra.mxu1 %v11573_v53  ;;  %8489 = vmatprep.mubr.msk.bf16.mxu1 %vm10062_vm0, %v13488_v41  ;;  %v3805_v22 = vsel %vm1590_vm1, %v3800_v35, 0 }
 0x7b0   : > { %v3645_v56 = vpop.permute.xlu0 %3644  ;;  %v3094_v45 = vpack.c.bf16 %v11639_v20, %v11642_v17  ;;  %8499 = vmatprep.subr.bf16.mxu1 %v13488_v41 }
 0x7b1   : > { %v11650_v10 = vpop.eup %9129 }
 0x7b2   : > { %8484 = vmatmul.mubr.msk.bf16.vlgmr.msra.gmra.mrb[84].mxu0 %vm1967_vm2, %v3094_v45  ;;  %v3851_v39 = vpop.permute.xlu1 %3850 }
 0x7b3   : > { %v11653_v21 = vpop.eup %9131  ;;  %8495 = vmatprep.mubr.msk.bf16.mxu0 %vm10062_vm0, %v13488_v41 }
 0x7b4   : > { %8494 = vmatpush3.bf16.xpose.msra.mxu0 %v3601_v3  ;;  %v3095_v53 = vpack.c.bf16 %v11650_v10, %v11653_v21  ;;  %v3696_v32 = vpop.permute.xlu0 %3695 }
 0x7b5   : > { %8505 = vmatprep.subr.bf16.mxu0 %v13488_v41 }
 0x7b6   : > { %8490 = vmatmul.mubr.msk.bf16.vlgmr.msra.gmra.mrb[84].mxu1 %vm1967_vm2, %v3095_v53  ;;  %v3902_v12 = vpop.permute.xlu1 %3901 }
 0x7b7   : > { %8501 = vmatprep.mubr.msk.bf16.mxu1 %vm10062_vm0, %v13488_v41  ;;  %v3907_v58 = vsel %vm1590_vm1, %v3902_v12, 0 }
 0x7b8   : > { %8500 = vmatpush3.bf16.xpose.msra.mxu1 %v3652_v31  ;;  %v3747_v34 = vpop.permute.xlu0 %3746 }
 0x7b9   : > { %8511 = vmatprep.subr.bf16.mxu1 %v13488_v41 }
 0x7bb   : > { %8496 = vmatmul.mubr.msk.bf16.vlgmr.msra.gmra.mrb[88].mxu0 %vm1590_vm1, %v3594_v11  ;;  %v3856_v11 = vsel %vm1590_vm1, %v3851_v39, 0 }
 0x7bc   : > { %8506 = vmatpush3.bf16.xpose.msra.mxu0 %v3703_v55  ;;  %8507 = vmatprep.mubr.msk.bf16.mxu0 %vm10062_vm0, %v13488_v41  ;;  %v3798_v54 = vpop.permute.xlu0 %3797 }
 0x7bd   : > { %8517 = vmatprep.subr.bf16.mxu0 %v13488_v41 }
 0x7bf   : > { %8502 = vmatmul.mubr.msk.bf16.vlgmr.msra.gmra.mrb[88].mxu1 %vm1590_vm1, %v3645_v56  ;;  %v3953_v56 = vpop.permute.xlu1 %3952 }
 0x7c0   : > { %8512 = vmatpush3.bf16.xpose.msra.mxu1 %v3754_v16  ;;  %8513 = vmatprep.mubr.msk.bf16.mxu1 %vm10062_vm0, %v13488_v41  ;;  %v3849_v52 = vpop.permute.xlu0 %3848  ;;  %v3958_v3 = vsel %vm1590_vm1, %v3953_v56, 0 }
 0x7c1   : > { %8523 = vmatprep.subr.bf16.mxu1 %v13488_v41 }
 0x7c3   : > { %8508 = vmatmul.mubr.msk.bf16.vlgmr.msra.gmra.mrb[92].mxu0 %vm1590_vm1, %v3696_v32  ;;  %v3951_v44 = vpop.permute.xlu1 %3950 }
 0x7c4   : > { %8518 = vmatpush3.bf16.xpose.msra.mxu0 %v3805_v22  ;;  %8519 = vmatprep.mubr.msk.bf16.mxu0 %vm10062_vm0, %v13488_v41  ;;  %v3900_v45 = vpop.permute.xlu0 %3899 }
 0x7c5   : > { %8529 = vmatprep.subr.bf16.mxu0 %v13488_v41 }
 0x7c7   : > { %8514 = vmatmul.mubr.msk.bf16.vlgmr.msra.gmra.mrb[92].mxu1 %vm1590_vm1, %v3747_v34  ;;  %v4201_v32 = vpop.permute.xlu1 %4200 }
 0x7c8   : > { %8524 = vmatpush3.bf16.xpose.msra.mxu1 %v3856_v11  ;;  %8525 = vmatprep.mubr.msk.bf16.mxu1 %vm10062_vm0, %v13488_v41  ;;  %v4154_v53 = vpop.permute.xlu0 %4153 }
 0x7c9   : > { %8535 = vmatprep.subr.bf16.mxu1 %v13488_v41 }
 0x7cb   : > { %8520 = vmatmul.mubr.msk.bf16.vlgmr.msra.gmra.mrb[96].mxu0 %vm1590_vm1, %v3798_v54 }
 0x7cc   : > { %8530 = vmatpush3.bf16.xpose.msra.mxu0 %v3907_v58  ;;  %8531 = vmatprep.mubr.msk.bf16.mxu0 %vm10062_vm0, %v13488_v41 }
 0x7cd   : > { %8541 = vmatprep.subr.bf16.mxu0 %v13488_v41 }
 0x7cf   : > { %8526 = vmatmul.mubr.msk.bf16.vlgmr.msra.gmra.mrb[96].mxu1 %vm1590_vm1, %v3849_v52 }
 0x7d0   : > { %8536 = vmatpush3.bf16.xpose.msra.mxu1 %v3958_v3  ;;  %8537 = vmatprep.mubr.msk.bf16.mxu1 %vm10062_vm0, %v13488_v41 }
 0x7d1   : > { %8547 = vmatprep.subr.bf16.mxu1 %v13488_v41 }
 0x7d3   : > { %8532 = vmatmul.mubr.msk.bf16.vlgmr.msra.gmra.mrb[100].mxu0 %vm1590_vm1, %v3900_v45 }
 0x7d4   : > { %8542 = vmatpush3.bf16.msra.mxu0 %v4154_v53  ;;  %8543 = vmatprep.mubr.msk.bf16.mxu0 %vm10062_vm0, %v13488_v41 }
 0x7d5   : > { %8553 = vmatprep.subr.bf16.mxu0 %v13488_v41 }
 0x7d7   : > { %8538 = vmatmul.mubr.msk.bf16.vlgmr.msra.gmra.mrb[100].mxu1 %vm1590_vm1, %v3951_v44 }
 0x7d8   : > { %8548 = vmatpush3.bf16.msra.mxu1 %v4201_v32  ;;  %8549 = vmatprep.mubr.msk.bf16.mxu1 %vm10062_vm0, %v13488_v41 }
 0x7d9   : > { %8559 = vmatprep.subr.bf16.mxu1 %v13488_v41 }
 0x805   : > { %v11704_v31 = vpop.f32.mrb[72].mxu0 }
 0x806   : > { %13489 = vst [vmem:[#allocation78_spill] sm:$0xff] %v11704_v31  ;;  %v8449_v35 = vpop.f32.mrb[73].mxu0 }
 0x807   : > { %v11706_v55 = vpop.f32.mrb[74].mxu0 }
 0x808   : > { %13490 = vst [vmem:[#allocation79_spill] sm:$0xff] %v11706_v55  ;;  %v8450_v34 = vpop.f32.mrb[75].mxu0 }
 0x840   : > { %v11708_v16 = vpop.f32.mrb[76].mxu0 }
 0x841   : > { %13491 = vst [vmem:[#allocation80_spill] sm:$0xff] %v11708_v16  ;;  %v8461_v39 = vpop.f32.mrb[77].mxu0 }
 0x842   : > { %v11710_v54 = vpop.f32.mrb[78].mxu0 }
 0x843   : > { %13492 = vst [vmem:[#allocation81_spill] sm:$0xff] %v11710_v54  ;;  %v8462_v22 = vpop.f32.mrb[79].mxu0 }
 0x844   : > { %v11712_v12 = vpop.f32.mrb[72].mxu1 }
 0x845   : > { %13493 = vst [vmem:[#allocation82_spill] sm:$0xff] %v11712_v12  ;;  %v8455_v11 = vpop.f32.mrb[73].mxu1 }
 0x846   : > { %v11714_v52 = vpop.f32.mrb[74].mxu1 }
 0x847   : > { %13494 = vst [vmem:[#allocation83_spill] sm:$0xff] %v11714_v52  ;;  %v8456_v58 = vpop.f32.mrb[75].mxu1 }
 0x879   : > { %v11716_v56 = vpop.f32.mrb[76].mxu1 }
 0x87a   : > { %13495 = vst [vmem:[#allocation84_spill] sm:$0xff] %v11716_v56  ;;  %v8467_v45 = vpop.f32.mrb[77].mxu1 }
 0x87b   : > { %v11718_v3 = vpop.f32.mrb[78].mxu1 }
 0x87c   : > { %13496 = vst [vmem:[#allocation85_spill] sm:$0xff] %v11718_v3  ;;  %v8468_v44 = vpop.f32.mrb[79].mxu1 }
 0x87d   : > { %v11720_v53 = vpop.f32.mrb[80].mxu0 }
 0x87e   : > { %13497 = vst [vmem:[#allocation86_spill] sm:$0xff] %v11720_v53  ;;  %v8473_v32 = vpop.f32.mrb[81].mxu0 }
 0x87f   : > { %v11722_v35 = vpop.f32.mrb[82].mxu0 }
 0x880   : > { %13498 = vst [vmem:[#allocation87_spill] sm:$0xff] %v11722_v35  ;;  %v8474_v34 = vpop.f32.mrb[83].mxu0 }
 0x881   : > { %v11724_v39 = vpop.f32.mrb[80].mxu1 }
 0x882   : > { %13499 = vst [vmem:[#allocation88_spill] sm:$0xff] %v11724_v39  ;;  %v8479_v22 = vpop.f32.mrb[81].mxu1 }
 0x883   : > { %v11726_v54 = vpop.f32.mrb[82].mxu1 }
 0x884   : > { %13500 = vst [vmem:[#allocation89_spill] sm:$0xff] %v11726_v54  ;;  %v8480_v11 = vpop.f32.mrb[83].mxu1 }
 0x885   : > { %v11728_v16 = vpop.f32.mrb[84].mxu0 }
 0x886   : > { %13501 = vst [vmem:[#allocation90_spill] sm:$0xff] %v11728_v16  ;;  %v8485_v58 = vpop.f32.mrb[85].mxu0 }
 0x887   : > { %v11730_v56 = vpop.f32.mrb[86].mxu0 }
 0x888   : > { %13502 = vst [vmem:[#allocation91_spill] sm:$0xff] %v11730_v56  ;;  %v8486_v45 = vpop.f32.mrb[87].mxu0 }
 0x889   : > { %v11732_v3 = vpop.f32.mrb[84].mxu1 }
 0x88a   : > { %13503 = vst [vmem:[#allocation92_spill] sm:$0xff] %v11732_v3  ;;  %v8491_v44 = vpop.f32.mrb[85].mxu1 }
 0x88b   : > { %v11734_v53 = vpop.f32.mrb[86].mxu1 }
 0x88c   : > { %13504 = vst [vmem:[#allocation93_spill] sm:$0xff] %v11734_v53  ;;  %v8492_v32 = vpop.f32.mrb[87].mxu1 }
 0x88e   : > { %v11736_v35 = vpop.f32.mrb[88].mxu0 }
 0x88f   : > { %v8497_v34 = vpop.f32.mrb[89].mxu0  ;;  %v4001_v22 = vsel %vm1967_vm2, %v11736_v35, -inf }
 0x890   : > { %4002 = vmax.xlane.f32.xlu0 %v4001_v22  ;;  %v11740_v11 = vpop.f32.mrb[90].mxu0 }
 0x891   : > { %v8498_v16 = vpop.f32.mrb[91].mxu0  ;;  %v4004_v58 = vsel %vm1967_vm2, %v11740_v11, -inf }
 0x892   : > { %4005 = vmax.xlane.f32.xlu1 %v4004_v58  ;;  %v11744_v45 = vpop.f32.mrb[88].mxu1 }
 0x893   : > { %v8503_v44 = vpop.f32.mrb[89].mxu1  ;;  %v4007_v32 = vsel %vm1967_vm2, %v11744_v45, -inf }
 0x894   : > { %4008 = vmax.xlane.f32.xlu0 %v4007_v32  ;;  %v11748_v53 = vpop.f32.mrb[90].mxu1 }
 0x895   : > { %v8504_v34 = vpop.f32.mrb[91].mxu1  ;;  %v4010_v39 = vsel %vm1967_vm2, %v11748_v53, -inf }
 0x896   : > { %v11750_v56 = vpop.f32.mrb[92].mxu0 }
 0x897   : > { %v8509_v22 = vpop.f32.mrb[93].mxu0  ;;  %v4013_v16 = vsel %vm1967_vm2, %v11750_v56, -inf }
 0x898   : > { %v11754_v3 = vpop.f32.mrb[94].mxu0  ;;  %4014 = vmax.xlane.f32.xlu0 %v4013_v16 }
 0x899   : > { %v8510_v58 = vpop.f32.mrb[95].mxu0 }
 0x89a   : > { %v11756_v54 = vpop.f32.mrb[92].mxu1 }
 0x89b   : > { %v8515_v44 = vpop.f32.mrb[93].mxu1 }
 0x89c   : > { %4011 = vmax.xlane.f32.xlu0 %v4010_v39  ;;  %v11760_v32 = vpop.f32.mrb[94].mxu1 }
 0x89d   : > { %v8516_v34 = vpop.f32.mrb[95].mxu1 }
 0x89e   : > { %v11762_v31 = vpop.f32.mrb[96].mxu0 }
 0x89f   : > { %v8521_v22 = vpop.f32.mrb[97].mxu0 }
 0x8a0   : > { %v11764_v52 = vpop.f32.mrb[98].mxu0 }
 0x8a1   : > { %v8522_v12 = vpop.f32.mrb[99].mxu0 }
 0x8a2   : > { %v11766_v55 = vpop.f32.mrb[96].mxu1 }
 0x8a3   : > { %4482 = vrot.lane.b32.xlu1 %v11090_v19, %s10064_s26  ;;  %v8527_v16 = vpop.f32.mrb[97].mxu1 }
 0x8a4   : > { %v11770_v58 = vpop.f32.mrb[98].mxu1  ;;  %v4016_v16 = vsel %vm1967_vm2, %v11754_v3, -inf }
 0x8a5   : > { %v8528_v44 = vpop.f32.mrb[99].mxu1 }
 0x8a6   : > { %v11772_v38 = vpop.f32.mrb[100].mxu0  ;;  %v4022_v44 = vsel %vm1967_vm2, %v11760_v32, -inf }
 0x8a7   : > { %v8533_v39 = vpop.f32.mrb[101].mxu0 }
 0x8a8   : > { %v11774_v48 = vpop.f32.mrb[102].mxu0  ;;  %v4028_v39 = vsel %vm1967_vm2, %v11764_v52, -inf }
 0x8a9   : > { %v8534_v34 = vpop.f32.mrb[103].mxu0 }
 0x8aa   : > { %v11776_v42 = vpop.f32.mrb[100].mxu1  ;;  %v4019_v34 = vsel %vm1967_vm2, %v11756_v54, -inf }
 0x8ab   : > { %v8539_v22 = vpop.f32.mrb[101].mxu1 }
 0x8ac   : > { %v11778_v4 = vpop.f32.mrb[102].mxu1  ;;  %v4034_v22 = vsel %vm1967_vm2, %v11770_v58, -inf }
 0x8ad   : > { %v8540_v12 = vpop.f32.mrb[103].mxu1 }
 0x8ae   : > { %v4025_v12 = vsel %vm1967_vm2, %v11762_v31, -inf }
 0x8b2   : > { %4435 = vrot.lane.b32.xlu0 %v11094_v63, %s10064_s26 }
 0x8c7   : > { %4017 = vmax.xlane.f32.xlu1 %v4016_v16  ;;  %v4040_v16 = vsel %vm1967_vm2, %v11774_v48, -inf }
 0x8cb   : > { %4023 = vmax.xlane.f32.xlu1 %v4022_v44  ;;  %v4031_v44 = vsel %vm1967_vm2, %v11766_v55, -inf }
 0x8cf   : > { %4029 = vmax.xlane.f32.xlu1 %v4028_v39  ;;  %v4046_v39 = vsel %vm1967_vm2, %v11778_v4, -inf }
 0x8d1   : > { %4020 = vmax.xlane.f32.xlu0 %v4019_v34  ;;  %v4037_v34 = vsel %vm1967_vm2, %v11772_v38, -inf }
 0x8d3   : > { %4035 = vmax.xlane.f32.xlu1 %v4034_v22  ;;  %v4043_v22 = vsel %vm1967_vm2, %v11776_v42, -inf }
 0x8d5   : > { %4026 = vmax.xlane.f32.xlu0 %v4025_v12 }
 0x8d7   : > { %4041 = vmax.xlane.f32.xlu1 %v4040_v16 }
 0x8d9   : > { %4032 = vmax.xlane.f32.xlu0 %v4031_v44 }
 0x8db   : > { %4047 = vmax.xlane.f32.xlu1 %v4046_v39 }
 0x8dd   : > { %4038 = vmax.xlane.f32.xlu0 %v4037_v34 }
 0x8e1   : > { %4044 = vmax.xlane.f32.xlu0 %v4043_v22 }
 0x8ec   : > { %4695 = vrot.lane.b32.xlu1 %v11035_v60, %s10065_s27 }
 0x8f0   : > { %4693 = vrot.lane.b32.xlu1 %v11032_v9, %s10065_s27 }
 0x8f4   : > { %4797 = vrot.lane.b32.xlu1 %v11081_v51, %s10065_s27 }
 0x8f7   : > { %4644 = vrot.lane.b32.xlu0 %v11015_v0, %s10065_s27 }
 0x8f8   : > { %4795 = vrot.lane.b32.xlu1 %v11078_v50, %s10065_s27 }
 0x8fb   : > { %4642 = vrot.lane.b32.xlu0 %v11013_v36, %s10065_s27  ;;  %v4248_v36 = vpop.permute.xlu1 %4247 }
 0x8fc   : > { %4899 = vrot.lane.b32.xlu1 %v11118_v24, %s10065_s27 }
 0x8ff   : > { %4746 = vrot.lane.b32.xlu0 %v11058_v49, %s10065_s27  ;;  %v4295_v0 = vpop.permute.xlu1 %4294 }
 0x900   : > { %4897 = vrot.lane.b32.xlu1 %v11116_v23, %s10065_s27 }
 0x903   : > { %4744 = vrot.lane.b32.xlu0 %v11055_v13, %s10065_s27  ;;  %v11848_v9 = vpop.permute.xlu1 %4388 }
 0x904   : > { %5001 = vrot.lane.b32.xlu1 %v11148_v2, %s10065_s27  ;;  %v3040_v2 = vsel %vm1967_vm2, %v11529_v33, 0.0  ;;  %v3061_v33 = vsel %vm1967_vm2, %v11610_v15, 0.0 }
 0x907   : > { %4848 = vrot.lane.b32.xlu0 %v11103_v7, %s10065_s27 }
 0x908   : > { %4999 = vrot.lane.b32.xlu1 %v11146_v61, %s10065_s27 }
 0x90b   : > { %4846 = vrot.lane.b32.xlu0 %v11101_v6, %s10065_s27 }
 0x90c   : > { %5249 = vrot.lane.b32.xlu1 %v11023_v40, %s10065_s27  ;;  %v11846_v40 = vpop.permute.xlu0 %4341 }
 0x90f   : > { %4950 = vrot.lane.b32.xlu0 %v11133_v47, %s10065_s27 }
 0x910   : > { %5343 = vrot.lane.b32.xlu1 %v11044_v27, %s10065_s27 }
 0x913   : > { %4948 = vrot.lane.b32.xlu0 %v11131_v46, %s10065_s27 }
 0x914   : > { %5437 = vrot.lane.b32.xlu1 %v11067_v57, %s10065_s27 }
 0x917   : > { %5202 = vrot.lane.b32.xlu0 %v11025_v8, %s10065_s27 }
 0x918   : > { %5484 = vrot.lane.b32.xlu1 %v11094_v63, %s10065_s27 }
 0x91b   : > { %5296 = vrot.lane.b32.xlu0 %v11048_v5, %s10065_s27 }
 0x91c   : > { %5531 = vrot.lane.b32.xlu1 %v11090_v19, %s10065_s27 }
 0x91d   : > { %v4003_v60 = vpop.xlane.xlu0 %4002 }
 0x91e   : > { %v4049_v27 = vsub.f32 %v11736_v35, %v4003_v60  ;;  %v3046_v35 = vsel %vm1967_vm2, %v11587_v28, 0.0  ;;  %v3067_v28 = vsel %vm1967_vm2, %v11618_v43, 0.0 }
 0x91f   : > { %v4006_v13 = vpop.xlane.xlu1 %4005  ;;  %5390 = vrot.lane.b32.xlu0 %v11071_v37, %s10065_s27 }
 0x920   : > { %v4065_v8 = vmul.f32 1.442695, %v4049_v27  ;;  %v4050_v49 = vsub.f32 %v11740_v11, %v4006_v13  ;;  %v3055_v11 = vsel %vm1967_vm2, %v11581_v14, 0.0  ;;  %v3058_v14 = vsel %vm1967_vm2, %v11612_v18, 0.0 }
 0x921   : > { %v4009_v57 = vpop.xlane.xlu0 %4008  ;;  %v3070_v18 = vsel %vm1967_vm2, %v11632_v1, 0.0 }
 0x922   : > { %v4067_v50 = vmul.f32 1.442695, %v4050_v49  ;;  %9133 = vpow2.f32 %v4065_v8  ;;  %v4051_v51 = vsub.f32 %v11744_v45, %v4009_v57  ;;  %v3049_v45 = vsel %vm1967_vm2, %v11590_v25, 0.0 }
 0x923   : > { %v3073_v25 = vsel %vm1967_vm2, %v11629_v30, 0.0  ;;  %v11889_v16 = vpop.permute.xlu1 %4482 }
 0x924   : > { %9135 = vpow2.f32 %v4067_v50  ;;  %v4069_v63 = vmul.f32 1.442695, %v4051_v51 }
 0x925   : > { %v4015_v5 = vpop.xlane.xlu0 %4014 }
 0x926   : > { %9137 = vpow2.f32 %v4069_v63  ;;  %v4053_v12 = vsub.f32 %v11750_v56, %v4015_v5 }
 0x928   : > { %v4073_v15 = vmul.f32 1.442695, %v4053_v12 }
 0x929   : > { %v4012_v6 = vpop.xlane.xlu0 %4011 }
 0x92a   : > { %v4052_v19 = vsub.f32 %v11748_v53, %v4012_v6  ;;  %v3043_v53 = vsel %vm1967_vm2, %v11533_v62, 0.0  ;;  %v3052_v62 = vsel %vm1967_vm2, %v11583_v26, 0.0  ;;  %v3064_v26 = vsel %vm1967_vm2, %v11621_v59, 0.0 }
 0x92c   : > { %v4071_v7 = vmul.f32 1.442695, %v4052_v19  ;;  %v9134_v23 = vpop.eup %9133 }
 0x92d   : > { %v4097_v22 = vsel %vm1967_vm2, %v9134_v23, 0.0 }
 0x92e   : > { %v9136_v24 = vpop.eup %9135  ;;  %9139 = vpow2.f32 %v4071_v7 }
 0x92f   : > { %v4145_v37 = vpack.c.bf16 %v9136_v24, %v9134_v23  ;;  %v4100_v43 = vsel %vm1967_vm2, %v9136_v24, 0.0  ;;  %9141 = vpow2.f32 %v4073_v15 }
 0x930   : > { %v9138_v46 = vpop.eup %9137 }
 0x931   : > { %8544 = vmatmul.mubr.msk.bf16.vlgmr.msra.gmra.mrb[104].mxu0 %vm1967_vm2, %v4145_v37  ;;  %v4103_v1 = vsel %vm1967_vm2, %v9138_v46, 0.0 }
 0x932   : > { %8554 = vmatpush3.bf16.msra.mxu0 %v4248_v36  ;;  %8555 = vmatprep.mubr.msk.bf16.mxu0 %vm10062_vm0, %v13488_v41  ;;  %v11900_v36 = vpop.permute.xlu0 %4435 }
 0x933   : > { %8565 = vmatprep.subr.bf16.mxu0 %v13488_v41 }
 0x938   : > { %v9140_v47 = vpop.eup %9139 }
 0x939   : > { %v4146_v61 = vpack.c.bf16 %v9140_v47, %v9138_v46  ;;  %v4106_v39 = vsel %vm1967_vm2, %v9140_v47, 0.0  ;;  %v9142_v27 = vpop.eup %9141 }
 0x93a   : > { %v4109_v51 = vsel %vm1967_vm2, %v9142_v27, 0.0 }
 0x93b   : > { %8550 = vmatmul.mubr.msk.bf16.vlgmr.msra.gmra.mrb[104].mxu1 %vm1967_vm2, %v4146_v61 }
 0x93c   : > { %8560 = vmatpush3.bf16.msra.mxu1 %v4295_v0  ;;  %8561 = vmatprep.mubr.msk.bf16.mxu1 %vm10062_vm0, %v13488_v41 }
 0x93d   : > { %8571 = vmatprep.subr.bf16.mxu1 %v13488_v41 }
 0x93e   : > { %3041 = vadd.xlane.f32.xlu0 %v3040_v2 }
 0x940   : > { %3044 = vadd.xlane.f32.xlu1 %v3043_v53 }
 0x942   : > { %3047 = vadd.xlane.f32.xlu0 %v3046_v35 }
 0x944   : > { %3056 = vadd.xlane.f32.xlu1 %v3055_v11 }
 0x946   : > { %3050 = vadd.xlane.f32.xlu0 %v3049_v45 }
 0x948   : > { %3062 = vadd.xlane.f32.xlu1 %v3061_v33 }
 0x94a   : > { %3053 = vadd.xlane.f32.xlu0 %v3052_v62 }
 0x94c   : > { %3068 = vadd.xlane.f32.xlu1 %v3067_v28 }
 0x94e   : > { %3059 = vadd.xlane.f32.xlu0 %v3058_v14 }
 0x950   : > { %3074 = vadd.xlane.f32.xlu1 %v3073_v25 }
 0x952   : > { %3065 = vadd.xlane.f32.xlu0 %v3064_v26 }
 0x954   : > { %v4018_v56 = vpop.xlane.xlu1 %4017  ;;  %4101 = vadd.xlane.f32.xlu1 %v4100_v43 }
 0x955   : > { %v4054_v44 = vsub.f32 %v11754_v3, %v4018_v56 }
 0x956   : > { %3071 = vadd.xlane.f32.xlu0 %v3070_v18 }
 0x957   : > { %v4075_v30 = vmul.f32 1.442695, %v4054_v44 }
 0x958   : > { %v4024_v34 = vpop.xlane.xlu1 %4023  ;;  %4107 = vadd.xlane.f32.xlu1 %v4106_v39 }
 0x959   : > { %9143 = vpow2.f32 %v4075_v30  ;;  %v4056_v59 = vsub.f32 %v11760_v32, %v4024_v34 }
 0x95a   : > { %4098 = vadd.xlane.f32.xlu0 %v4097_v22 }
 0x95b   : > { %v4079_v0 = vmul.f32 1.442695, %v4056_v59 }
 0x95c   : > { %v4030_v60 = vpop.xlane.xlu1 %4029 }
 0x95d   : > { %9145 = vpow2.f32 %v4079_v0  ;;  %v4058_v3 = vsub.f32 %v11764_v52, %v4030_v60 }
 0x95e   : > { %v4021_v13 = vpop.xlane.xlu0 %4020  ;;  %4104 = vadd.xlane.f32.xlu0 %v4103_v1 }
 0x95f   : > { %v4083_v8 = vmul.f32 1.442695, %v4058_v3  ;;  %v4055_v49 = vsub.f32 %v11756_v54, %v4021_v13 }
 0x960   : > { %v4036_v57 = vpop.xlane.xlu1 %4035 }
 0x961   : > { %9147 = vpow2.f32 %v4083_v8  ;;  %v4077_v32 = vmul.f32 1.442695, %v4055_v49  ;;  %v4060_v50 = vsub.f32 %v11770_v58, %v4036_v57 }
 0x962   : > { %v4027_v5 = vpop.xlane.xlu0 %4026  ;;  %4110 = vadd.xlane.f32.xlu0 %v4109_v51 }
 0x963   : > { %v9144_v63 = vpop.eup %9143  ;;  %9149 = vpow2.f32 %v4077_v32  ;;  %v4087_v52 = vmul.f32 1.442695, %v4060_v50  ;;  %v4057_v6 = vsub.f32 %v11762_v31, %v4027_v5 }
 0x964   : > { %v4042_v19 = vpop.xlane.xlu1 %4041  ;;  %v4112_v7 = vsel %vm1967_vm2, %v9144_v63, 0.0  ;;  %v4147_v23 = vpack.c.bf16 %v9144_v63, %v9142_v27 }
 0x965   : > { %9151 = vpow2.f32 %v4087_v52  ;;  %v4081_v54 = vmul.f32 1.442695, %v4057_v6  ;;  %4113 = vadd.xlane.f32.xlu1 %v4112_v7  ;;  %v4062_v24 = vsub.f32 %v11774_v48, %v4042_v19 }
 0x966   : > { %8556 = vmatmul.mubr.msk.bf16.vlgmr.msra.gmra.mrb[108].mxu0 %vm1967_vm2, %v4147_v23  ;;  %v4033_v58 = vpop.xlane.xlu0 %4032 }
 0x967   : > { %v9146_v37 = vpop.eup %9145  ;;  %9153 = vpow2.f32 %v4081_v54  ;;  %8566 = vmatpush3.bf16.msra.mxu0 %v11846_v40  ;;  %v4059_v46 = vsub.f32 %v11766_v55, %v4033_v58  ;;  %8567 = vmatprep.mubr.msk.bf16.mxu0 %vm10062_vm0, %v13488_v41  ;;  %v4091_v48 = vmul.f32 1.442695, %v4062_v24 }
 0x968   : > { %v4048_v31 = vpop.xlane.xlu1 %4047  ;;  %v4118_v47 = vsel %vm1967_vm2, %v9146_v37, 0.0  ;;  %8577 = vmatprep.subr.bf16.mxu0 %v13488_v41 }
 0x969   : > { %v4085_v61 = vmul.f32 1.442695, %v4059_v46  ;;  %4119 = vadd.xlane.f32.xlu1 %v4118_v47  ;;  %v4064_v2 = vsub.f32 %v11778_v4, %v4048_v31 }
 0x96a   : > { %v4039_v53 = vpop.xlane.xlu0 %4038 }
 0x96b   : > { %v9148_v35 = vpop.eup %9147  ;;  %9155 = vpow2.f32 %v4085_v61  ;;  %v4061_v40 = vsub.f32 %v11772_v38, %v4039_v53  ;;  %v4095_v33 = vmul.f32 1.442695, %v4064_v2 }
 0x96c   : > { %v4124_v55 = vsel %vm1967_vm2, %v9148_v35, 0.0  ;;  %9157 = vpow2.f32 %v4091_v48  ;;  %v4696_v15 = vpop.permute.xlu1 %4695 }
 0x96d   : > { %v9150_v11 = vpop.eup %9149  ;;  %v4089_v45 = vmul.f32 1.442695, %v4061_v40  ;;  %4125 = vadd.xlane.f32.xlu1 %v4124_v55  ;;  %v4701_v13 = vsel %vm1590_vm1, %v4696_v15, 0 }
 0x96e   : > { %v4045_v62 = vpop.xlane.xlu0 %4044  ;;  %v4115_v28 = vsel %vm1967_vm2, %v9150_v11, 0.0  ;;  %v4148_v12 = vpack.c.bf16 %v9146_v37, %v9150_v11 }
 0x96f   : > { %v9152_v14 = vpop.eup %9151  ;;  %9159 = vpow2.f32 %v4089_v45  ;;  %v4063_v4 = vsub.f32 %v11776_v42, %v4045_v62  ;;  %4116 = vadd.xlane.f32.xlu0 %v4115_v28 }
 0x970   : > { %8562 = vmatmul.mubr.msk.bf16.vlgmr.msra.gmra.mrb[108].mxu1 %vm1967_vm2, %v4148_v12  ;;  %v4130_v38 = vsel %vm1967_vm2, %v9152_v14, 0.0  ;;  %9161 = vpow2.f32 %v4095_v33  ;;  %v4694_v39 = vpop.permute.xlu1 %4693 }
 0x971   : > { %v9154_v25 = vpop.eup %9153  ;;  %v4093_v26 = vmul.f32 1.442695, %v4063_v4  ;;  %8572 = vmatpush3.bf16.msra.mxu1 %v11848_v9  ;;  %4131 = vadd.xlane.f32.xlu1 %v4130_v38 }
 0x972   : > { %v4645_v43 = vpop.permute.xlu0 %4644  ;;  %v4121_v56 = vsel %vm1967_vm2, %v9154_v25, 0.0  ;;  %v4149_v44 = vpack.c.bf16 %v9148_v35, %v9154_v25  ;;  %8573 = vmatprep.mubr.msk.bf16.mxu1 %vm10062_vm0, %v13488_v41  ;;  %8583 = vmatprep.subr.bf16.mxu1 %v13488_v41 }
 0x973   : > { %9163 = vpow2.f32 %v4093_v26  ;;  %4122 = vadd.xlane.f32.xlu0 %v4121_v56  ;;  %v4650_v3 = vsel %vm1590_vm1, %v4645_v43, 0 }
 0x974   : > { %8568 = vmatmul.mubr.msk.bf16.vlgmr.msra.gmra.mrb[112].mxu0 %vm1967_vm2, %v4149_v44  ;;  %v4798_v1 = vpop.permute.xlu1 %4797 }
 0x975   : > { %v9156_v42 = vpop.eup %9155  ;;  %8578 = vmatpush3.bf16.msra.mxu0 %v11900_v36  ;;  %8579 = vmatprep.mubr.msk.bf16.mxu0 %vm10062_vm0, %v13488_v41  ;;  %v4803_v32 = vsel %vm1590_vm1, %v4798_v1, 0 }
 0x976   : > { %v4643_v9 = vpop.permute.xlu0 %4642  ;;  %v4127_v18 = vsel %vm1967_vm2, %v9156_v42, 0.0  ;;  %v4150_v30 = vpack.c.bf16 %v9152_v14, %v9156_v42  ;;  %8589 = vmatprep.subr.bf16.mxu0 %v13488_v41  ;;  %v11935_v34 = vpop.eup %9157 }
 0x977   : > { %4128 = vadd.xlane.f32.xlu0 %v4127_v18 }
 0x978   : > { %8574 = vmatmul.mubr.msk.bf16.vlgmr.msra.gmra.mrb[112].mxu1 %vm1967_vm2, %v4150_v30  ;;  %v4796_v8 = vpop.permute.xlu1 %4795 }
 0x979   : > { %v11938_v59 = vpop.eup %9159  ;;  %8584 = vmatpush3.bf16.msra.mxu1 %v11889_v16  ;;  %8585 = vmatprep.mubr.msk.bf16.mxu1 %vm10062_vm0, %v13488_v41 }
 0x97a   : > { %v4747_v22 = vpop.permute.xlu0 %4746  ;;  %v4151_v36 = vpack.c.bf16 %v11935_v34, %v11938_v59  ;;  %8595 = vmatprep.subr.bf16.mxu1 %v13488_v41  ;;  %v11946_v0 = vpop.eup %9161 }
 0x97b   : > { %v4752_v49 = vsel %vm1590_vm1, %v4747_v22, 0 }
 0x97c   : > { %8580 = vmatmul.mubr.msk.bf16.vlgmr.msra.gmra.mrb[116].mxu0 %vm1967_vm2, %v4151_v36  ;;  %v4900_v50 = vpop.permute.xlu1 %4899 }
 0x97d   : > { %v11949_v60 = vpop.eup %9163  ;;  %8591 = vmatprep.mubr.msk.bf16.mxu0 %vm10062_vm0, %v13488_v41  ;;  %v4905_v52 = vsel %vm1590_vm1, %v4900_v50, 0 }
 0x97e   : > { %8590 = vmatpush3.bf16.xpose.msra.mxu0 %v4650_v3  ;;  %v4152_v16 = vpack.c.bf16 %v11946_v0, %v11949_v60  ;;  %v4745_v27 = vpop.permute.xlu0 %4744 }
 0x97f   : > { %8601 = vmatprep.subr.bf16.mxu0 %v13488_v41 }
 0x980   : > { %8586 = vmatmul.mubr.msk.bf16.vlgmr.msra.gmra.mrb[116].mxu1 %vm1967_vm2, %v4152_v16  ;;  %v4898_v63 = vpop.permute.xlu1 %4897 }
 0x981   : > { %8597 = vmatprep.mubr.msk.bf16.mxu1 %vm10062_vm0, %v13488_v41 }
 0x982   : > { %8596 = vmatpush3.bf16.xpose.msra.mxu1 %v4701_v13  ;;  %v4849_v57 = vpop.permute.xlu0 %4848 }
 0x983   : > { %8607 = vmatprep.subr.bf16.mxu1 %v13488_v41  ;;  %v4854_v5 = vsel %vm1590_vm1, %v4849_v57, 0 }
 0x984   : > { %v5002_v19 = vpop.permute.xlu1 %5001 }
 0x985   : > { %8592 = vmatmul.mubr.msk.bf16.vlgmr.msra.gmra.mrb[120].mxu0 %vm1590_vm1, %v4643_v9  ;;  %v5007_v54 = vsel %vm1590_vm1, %v5002_v19, 0 }
 0x986   : > { %8602 = vmatpush3.bf16.xpose.msra.mxu0 %v4752_v49  ;;  %8603 = vmatprep.mubr.msk.bf16.mxu0 %vm10062_vm0, %v13488_v41  ;;  %v4847_v51 = vpop.permute.xlu0 %4846 }
 0x987   : > { %8613 = vmatprep.subr.bf16.mxu0 %v13488_v41 }
 0x988   : > { %v5000_v24 = vpop.permute.xlu1 %4999 }
 0x989   : > { %8598 = vmatmul.mubr.msk.bf16.vlgmr.msra.gmra.mrb[120].mxu1 %vm1590_vm1, %v4694_v39 }
 0x98a   : > { %8608 = vmatpush3.bf16.xpose.msra.mxu1 %v4803_v32  ;;  %8609 = vmatprep.mubr.msk.bf16.mxu1 %vm10062_vm0, %v13488_v41  ;;  %v4951_v6 = vpop.permute.xlu0 %4950 }
 0x98b   : > { %8619 = vmatprep.subr.bf16.mxu1 %v13488_v41  ;;  %v4956_v7 = vsel %vm1590_vm1, %v4951_v6, 0 }
 0x98c   : > { %v5250_v37 = vpop.permute.xlu1 %5249 }
 0x98d   : > { %8604 = vmatmul.mubr.msk.bf16.vlgmr.msra.gmra.mrb[124].mxu0 %vm1590_vm1, %v4745_v27 }
 0x98e   : > { %8614 = vmatpush3.bf16.xpose.msra.mxu0 %v4854_v5  ;;  %8615 = vmatprep.mubr.msk.bf16.mxu0 %vm10062_vm0, %v13488_v41  ;;  %v4949_v23 = vpop.permute.xlu0 %4948  ;;  %v3079_v5 = vsel %vm1967_vm2, %v11639_v20, 0.0 }
 0x98f   : > { %8625 = vmatprep.subr.bf16.mxu0 %v13488_v41 }
 0x991   : > { %8610 = vmatmul.mubr.msk.bf16.vlgmr.msra.gmra.mrb[124].mxu1 %vm1590_vm1, %v4796_v8 }
 0x992   : > { %8620 = vmatpush3.bf16.xpose.msra.mxu1 %v4905_v52  ;;  %8621 = vmatprep.mubr.msk.bf16.mxu1 %vm10062_vm0, %v13488_v41  ;;  %v5203_v58 = vpop.permute.xlu0 %5202 }
 0x993   : > { %8631 = vmatprep.subr.bf16.mxu1 %v13488_v41 }
 0x995   : > { %8616 = vmatmul.mubr.msk.bf16.vlgmr.msra.gmra.mrb[128].mxu0 %vm1590_vm1, %v4847_v51 }
 0x996   : > { %8626 = vmatpush3.bf16.xpose.msra.mxu0 %v4956_v7  ;;  %8627 = vmatprep.mubr.msk.bf16.mxu0 %vm10062_vm0, %v13488_v41 }
 0x997   : > { %8637 = vmatprep.subr.bf16.mxu0 %v13488_v41 }
 0x999   : > { %8622 = vmatmul.mubr.msk.bf16.vlgmr.msra.gmra.mrb[128].mxu1 %vm1590_vm1, %v4898_v63 }
 0x99a   : > { %8632 = vmatpush3.bf16.xpose.msra.mxu1 %v5007_v54  ;;  %8633 = vmatprep.mubr.msk.bf16.mxu1 %vm10062_vm0, %v13488_v41 }
 0x99b   : > { %8643 = vmatprep.subr.bf16.mxu1 %v13488_v41 }
 0x99d   : > { %8628 = vmatmul.mubr.msk.bf16.vlgmr.msra.gmra.mrb[132].mxu0 %vm1590_vm1, %v4949_v23  ;;  %v3085_v23 = vsel %vm1967_vm2, %v11650_v10, 0.0 }
 0x99e   : > { %8638 = vmatpush3.bf16.msra.mxu0 %v5203_v58  ;;  %8639 = vmatprep.mubr.msk.bf16.mxu0 %vm10062_vm0, %v13488_v41 }
 0x99f   : > { %8649 = vmatprep.subr.bf16.mxu0 %v13488_v41 }
 0x9a1   : > { %8634 = vmatmul.mubr.msk.bf16.vlgmr.msra.gmra.mrb[132].mxu1 %vm1590_vm1, %v5000_v24 }
 0x9a2   : > { %8644 = vmatpush3.bf16.msra.mxu1 %v5250_v37  ;;  %8645 = vmatprep.mubr.msk.bf16.mxu1 %vm10062_vm0, %v13488_v41 }
 0x9a3   : > { %8655 = vmatprep.subr.bf16.mxu1 %v13488_v41 }
 0xa04   : > { %v12000_v46 = vpop.f32.mrb[104].mxu0 }
 0xa05   : > { %v8545_v31 = vpop.f32.mrb[105].mxu0 }
 0xa06   : > { %v12002_v47 = vpop.f32.mrb[106].mxu0  ;;  %v4136_v31 = vsel %vm1967_vm2, %v11935_v34, 0.0 }
 0xa07   : > { %v8546_v61 = vpop.f32.mrb[107].mxu0 }
 0xa0e   : > { %v12004_v48 = vpop.f32.mrb[104].mxu1 }
 0xa0f   : > { %v8551_v2 = vpop.f32.mrb[105].mxu1 }
 0xa10   : > { %v12006_v53 = vpop.f32.mrb[106].mxu1  ;;  %v12066_v2 = vpop.permute.xlu1 %5343 }
 0xa11   : > { %v8552_v35 = vpop.f32.mrb[107].mxu1 }
 0xa12   : > { %v3076_v35 = vsel %vm1967_vm2, %v11642_v17, 0.0 }
 0xa14   : > { %v12082_v17 = vpop.permute.xlu1 %5437 }
 0xa39   : > { %v12008_v40 = vpop.f32.mrb[108].mxu0 }
 0xa3a   : > { %v8557_v55 = vpop.f32.mrb[109].mxu0 }
 0xa3b   : > { %v12010_v11 = vpop.f32.mrb[110].mxu0 }
 0xa3c   : > { %v8558_v45 = vpop.f32.mrb[111].mxu0 }
 0xa43   : > { %v12012_v33 = vpop.f32.mrb[108].mxu1 }
 0xa44   : > { %v8563_v62 = vpop.f32.mrb[109].mxu1 }
 0xa45   : > { %v12014_v28 = vpop.f32.mrb[110].mxu1 }
 0xa46   : > { %v8564_v12 = vpop.f32.mrb[111].mxu1 }
 0xa47   : > { %v12016_v14 = vpop.f32.mrb[112].mxu0 }
 0xa48   : > { %v8569_v4 = vpop.f32.mrb[113].mxu0 }
 0xa49   : > { %v12018_v38 = vpop.f32.mrb[114].mxu0  ;;  %v3082_v4 = vsel %vm1967_vm2, %v11653_v21, 0.0 }
 0xa4a   : > { %v8570_v25 = vpop.f32.mrb[115].mxu0 }
 0xa4b   : > { %v12020_v15 = vpop.f32.mrb[112].mxu1  ;;  %v12078_v25 = vpop.permute.xlu0 %5296 }
 0xa4c   : > { %v8575_v26 = vpop.f32.mrb[113].mxu1 }
 0xa4d   : > { %v12022_v43 = vpop.f32.mrb[114].mxu1 }
 0xa4e   : > { %v8576_v56 = vpop.f32.mrb[115].mxu1 }
 0xa4f   : > { %v12024_v44 = vpop.f32.mrb[116].mxu0 }
 0xa50   : > { %v8581_v42 = vpop.f32.mrb[117].mxu0 }
 0xa51   : > { %v12026_v9 = vpop.f32.mrb[118].mxu0  ;;  %v4142_v42 = vsel %vm1967_vm2, %v11946_v0, 0.0  ;;  %v12098_v0 = vpop.permute.xlu1 %5484 }
 0xa52   : > { %v8582_v18 = vpop.f32.mrb[119].mxu0 }
 0xa53   : > { %v12028_v30 = vpop.f32.mrb[116].mxu1 }
 0xa54   : > { %v8587_v39 = vpop.f32.mrb[117].mxu1 }
 0xa55   : > { %v12030_v22 = vpop.f32.mrb[118].mxu1 }
 0xa56   : > { %v8588_v36 = vpop.f32.mrb[119].mxu1 }
 0xa57   : > { %v4133_v36 = vsel %vm1967_vm2, %v11938_v59, 0.0 }
 0xa58   : > { %v12032_v3 = vpop.f32.mrb[120].mxu0 }
 0xa59   : > { %v8593_v1 = vpop.f32.mrb[121].mxu0  ;;  %v5050_v16 = vsel %vm1967_vm2, %v12032_v3, -inf }
 0xa5a   : > { %5051 = vmax.xlane.f32.xlu0 %v5050_v16  ;;  %v12036_v27 = vpop.f32.mrb[122].mxu0  ;;  %v2067_v16 = vsel %vm1967_vm2, %v11275_v29, 0.0  ;;  %v4139_v29 = vsel %vm1967_vm2, %v11949_v60, 0.0 }
 0xa5b   : > { %v8594_v13 = vpop.f32.mrb[123].mxu0  ;;  %v5053_v8 = vsel %vm1967_vm2, %v12036_v27, -inf }
 0xa5c   : > { %5054 = vmax.xlane.f32.xlu1 %v5053_v8  ;;  %v12040_v49 = vpop.f32.mrb[120].mxu1  ;;  %v12094_v13 = vpop.permute.xlu0 %5390 }
 0xa5d   : > { %v8599_v57 = vpop.f32.mrb[121].mxu1  ;;  %v5056_v32 = vsel %vm1967_vm2, %v12040_v49, -inf }
 0xa5e   : > { %5057 = vmax.xlane.f32.xlu0 %v5056_v32  ;;  %v12044_v50 = vpop.f32.mrb[122].mxu1 }
 0xa5f   : > { %v8600_v51 = vpop.f32.mrb[123].mxu1  ;;  %v5059_v20 = vsel %vm1967_vm2, %v12044_v50, -inf }
 0xa60   : > { %v12048_v63 = vpop.f32.mrb[124].mxu0  ;;  %3080 = vadd.xlane.f32.xlu1 %v3079_v5 }
 0xa61   : > { %v8605_v52 = vpop.f32.mrb[125].mxu0  ;;  %v5062_v6 = vsel %vm1967_vm2, %v12048_v63, -inf }
 0xa62   : > { %v12052_v19 = vpop.f32.mrb[126].mxu0  ;;  %5063 = vmax.xlane.f32.xlu0 %v5062_v6  ;;  %v3042_v52 = vpop.xlane.xlu0 %3041 }
 0xa63   : > { %v8606_v7 = vpop.f32.mrb[127].mxu0  ;;  %v5065_v62 = vsel %vm1967_vm2, %v12052_v19, -inf  ;;  %v12108_v6 = vpop.permute.xlu1 %5531 }
 0xa64   : > { %3086 = vadd.xlane.f32.xlu1 %v3085_v23  ;;  %v12056_v54 = vpop.f32.mrb[124].mxu1  ;;  %v13505_v23 = vld [vmem:[#allocation47_spill] sm:$0xff] }
 0xa65   : > { %v8611_v24 = vpop.f32.mrb[125].mxu1  ;;  %v5068_v32 = vsel %vm1967_vm2, %v12056_v54, -inf }
 0xa66   : > { %5060 = vmax.xlane.f32.xlu0 %v5059_v20  ;;  %v12060_v58 = vpop.f32.mrb[126].mxu1  ;;  %v2064_v24 = vsel %vm1967_vm2, %v13505_v23, 0.0  ;;  %v3048_v20 = vpop.xlane.xlu0 %3047 }
 0xa67   : > { %v8612_v37 = vpop.f32.mrb[127].mxu1  ;;  %v5071_v7 = vsel %vm1967_vm2, %v12060_v58, -inf }
 0xa68   : > { %v12064_v61 = vpop.f32.mrb[128].mxu0  ;;  %4137 = vadd.xlane.f32.xlu1 %v4136_v31  ;;  %v3045_v37 = vpop.xlane.xlu1 %3044  ;;  %v13506_v31 = vld [vmem:[#allocation49_spill] sm:$0xff] }
 0xa69   : > { %v8617_v10 = vpop.f32.mrb[129].mxu0  ;;  %v5074_v5 = vsel %vm1967_vm2, %v12064_v61, -inf  ;;  %9165 = vrcp.f32 %v3045_v37  ;;  %v13512_v37 = vld [vmem:[#allocation79_spill] sm:$0xff] }
 0xa6a   : > { %v12070_v55 = vpop.f32.mrb[130].mxu0  ;;  %3077 = vadd.xlane.f32.xlu0 %v3076_v35  ;;  %v2073_v10 = vsel %vm1967_vm2, %v13506_v31, 0.0  ;;  %v13507_v35 = vld [vmem:[#allocation51_spill] sm:$0xff]  ;;  %9167 = vrcp.f32 %v3048_v20 }
 0xa6b   : > { %v8618_v45 = vpop.f32.mrb[131].mxu0  ;;  %v5077_v60 = vsel %vm1967_vm2, %v12070_v55, -inf }
 0xa6c   : > { %5066 = vmax.xlane.f32.xlu1 %v5065_v62  ;;  %v12074_v12 = vpop.f32.mrb[128].mxu1  ;;  %v2079_v45 = vsel %vm1967_vm2, %v13507_v35, 0.0  ;;  %v3051_v62 = vpop.xlane.xlu0 %3050 }
 0xa6d   : > { %v8623_v34 = vpop.f32.mrb[129].mxu1  ;;  %9169 = vrcp.f32 %v3051_v62  ;;  %v13514_v62 = vld [vmem:[#allocation83_spill] sm:$0xff] }
 0xa6e   : > { %3083 = vadd.xlane.f32.xlu0 %v3082_v4  ;;  %v12080_v26 = vpop.f32.mrb[130].mxu1  ;;  %v12120_v34 = vpop.xlane.xlu1 %3056  ;;  %v5080_v4 = vsel %vm1967_vm2, %v12074_v12, -inf }
 0xa6f   : > { %v8624_v56 = vpop.f32.mrb[131].mxu1 }
 0xa70   : > { %v12086_v18 = vpop.f32.mrb[132].mxu0  ;;  %4143 = vadd.xlane.f32.xlu1 %v4142_v42  ;;  %v13508_v42 = vld [vmem:[#allocation48_spill] sm:$0xff] }
 0xa71   : > { %v8629_v39 = vpop.f32.mrb[133].mxu0  ;;  %v5086_v56 = vsel %vm1967_vm2, %v12086_v18, -inf }
 0xa72   : > { %v12090_v1 = vpop.f32.mrb[134].mxu0  ;;  %4134 = vadd.xlane.f32.xlu0 %v4133_v36  ;;  %v2070_v39 = vsel %vm1967_vm2, %v13508_v42, 0.0  ;;  %v12128_v36 = vpop.xlane.xlu0 %3053 }
 0xa73   : > { %v8630_v21 = vpop.f32.mrb[135].mxu0  ;;  %v5089_v23 = vsel %vm1967_vm2, %v12090_v1, -inf }
 0xa74   : > { %2068 = vadd.xlane.f32.xlu1 %v2067_v16  ;;  %v12096_v8 = vpop.f32.mrb[132].mxu1  ;;  %v12130_v21 = vpop.xlane.xlu1 %3062  ;;  %v5083_v16 = vsel %vm1967_vm2, %v12080_v26, -inf }
 0xa75   : > { %v8635_v57 = vpop.f32.mrb[133].mxu1 }
 0xa76   : > { %5069 = vmax.xlane.f32.xlu0 %v5068_v32  ;;  %v12102_v59 = vpop.f32.mrb[134].mxu1  ;;  %v13509_v57 = vld [vmem:[#allocation50_spill] sm:$0xff] }
 0xa77   : > { %v8636_v51 = vpop.f32.mrb[135].mxu1  ;;  %v2076_v32 = vsel %vm1967_vm2, %v13509_v57, 0.0 }
 0xa78   : > { %5075 = vmax.xlane.f32.xlu1 %v5074_v5  ;;  %v13510_v51 = vld [vmem:[#allocation53_spill] sm:$0xff] }
 0xa79   : > { %v2085_v5 = vsel %vm1967_vm2, %v13510_v51, 0.0 }
 0xa7a   : > { %4140 = vadd.xlane.f32.xlu0 %v4139_v29  ;;  %v12138_v29 = vpop.xlane.xlu0 %3059 }
 0xa7c   : > { %5072 = vmax.xlane.f32.xlu1 %v5071_v7  ;;  %v12140_v7 = vpop.xlane.xlu1 %3068 }
 0xa7e   : > { %2065 = vadd.xlane.f32.xlu0 %v2064_v24  ;;  %v5092_v24 = vsel %vm1967_vm2, %v12096_v8, -inf  ;;  %v12146_v31 = vpop.xlane.xlu0 %3065 }
 0xa80   : > { %2074 = vadd.xlane.f32.xlu1 %v2073_v10  ;;  %v12148_v10 = vpop.xlane.xlu1 %3074 }
 0xa82   : > { %5078 = vmax.xlane.f32.xlu0 %v5077_v60  ;;  %v13511_v60 = vld [vmem:[#allocation52_spill] sm:$0xff] }
 0xa83   : > { %v2082_v35 = vsel %vm1967_vm2, %v13511_v60, 0.0 }
 0xa84   : > { %2080 = vadd.xlane.f32.xlu1 %v2079_v45  ;;  %v9166_v45 = vpop.eup %9165 }
 0xa85   : > { %v3497_v42 = vmul.f32 %v9166_v45, %v13512_v37 }
 0xa86   : > { %5081 = vmax.xlane.f32.xlu0 %v5080_v4  ;;  %v12152_v4 = vpop.xlane.xlu0 %3071 }
 0xa88   : > { %5087 = vmax.xlane.f32.xlu1 %v5086_v56  ;;  %v4102_v56 = vpop.xlane.xlu1 %4101 }
 0xa89   : > { %9171 = vrcp.f32 %v4102_v56 }
 0xa8a   : > { %2071 = vadd.xlane.f32.xlu0 %v2070_v39  ;;  %v9168_v39 = vpop.eup %9167  ;;  %9173 = vrcp.f32 %v3042_v52  ;;  %v4099_v20 = vpop.xlane.xlu0 %4098  ;;  %v13515_v52 = vld [vmem:[#allocation78_spill] sm:$0xff] }
 0xa8b   : > { %9175 = vrcp.f32 %v4099_v20 }
 0xa8c   : > { %5084 = vmax.xlane.f32.xlu1 %v5083_v16  ;;  %v13513_v16 = vld [vmem:[#allocation82_spill] sm:$0xff] }
 0xa8d   : > { %v3498_v57 = vmul.f32 %v9168_v39, %v13513_v16  ;;  %v4108_v39 = vpop.xlane.xlu1 %4107 }
 0xa8e   : > { %2077 = vadd.xlane.f32.xlu0 %v2076_v32  ;;  %v9170_v32 = vpop.eup %9169 }
 0xa8f   : > { %v3499_v51 = vmul.f32 %v9170_v32, %v13514_v62 }
 0xa90   : > { %2086 = vadd.xlane.f32.xlu1 %v2085_v5  ;;  %v4105_v5 = vpop.xlane.xlu0 %4104 }
 0xa91   : > { %9177 = vrcp.f32 %v4105_v5  ;;  %v12170_v16 = vpop.xlane.xlu1 %4113 }
 0xa92   : > { %5090 = vmax.xlane.f32.xlu0 %v5089_v23  ;;  %9179 = vrcp.f32 %v4108_v39 }
 0xa93   : > { %v9172_v23 = vpop.eup %9171  ;;  %9181 = vrcp.f32 %v12128_v36 }
 0xa94   : > { %v4546_v60 = vmul.f32 %v9172_v23, %v12002_v47  ;;  %v5095_v47 = vsel %vm1967_vm2, %v12102_v59, -inf  ;;  %v4111_v20 = vpop.xlane.xlu0 %4110  ;;  %v13518_v23 = vld [vmem:[#allocation57_spill] sm:$0xff] }
 0xa95   : > { %v12176_v62 = vpop.xlane.xlu1 %4119  ;;  %9183 = vrcp.f32 %v4111_v20 }
 0xa96   : > { %5093 = vmax.xlane.f32.xlu0 %v5092_v24  ;;  %v9174_v24 = vpop.eup %9173 }
 0xa97   : > { %v9176_v45 = vpop.eup %9175 }
 0xa98   : > { %v4545_v56 = vmul.f32 %v9176_v45, %v12000_v46  ;;  %v12174_v46 = vpop.xlane.xlu0 %4116 }
 0xa9a   : > { %2083 = vadd.xlane.f32.xlu0 %v2082_v35  ;;  %v3496_v35 = vmul.f32 %v9174_v24, %v13515_v52  ;;  %v2097_v24 = vsel %vm1967_vm2, %v13518_v23, 0.0  ;;  %v12184_v52 = vpop.xlane.xlu1 %4125 }
 0xa9b   : > { %v9178_v37 = vpop.eup %9177 }
 0xa9c   : > { %v12180_v5 = vpop.xlane.xlu0 %4122 }
 0xaa0   : > { %v12188_v45 = vpop.xlane.xlu0 %4128 }
 0xaa1   : > { %3530 = vrot.lane.b32.xlu1 %v3497_v42, %s10065_s27  ;;  %v4547_v42 = vmul.f32 %v9178_v37, %v12004_v48  ;;  %v13517_v48 = vld [vmem:[#allocation56_spill] sm:$0xff] }
 0xaa5   : > { %3532 = vrot.lane.b32.xlu1 %v3498_v57, %s10065_s27  ;;  %v13516_v57 = vld [vmem:[#allocation54_spill] sm:$0xff] }
 0xaa6   : > { %v2088_v32 = vsel %vm1967_vm2, %v13516_v57, 0.0 }
 0xaa9   : > { %3534 = vrot.lane.b32.xlu1 %v3499_v51, %s10065_s27  ;;  %v2094_v51 = vsel %vm1967_vm2, %v13517_v48, 0.0 }
 0xaad   : > { %4579 = vrot.lane.b32.xlu1 %v4546_v60, %s10064_s26  ;;  %v9180_v60 = vpop.eup %9179 }
 0xab0   : > { %3528 = vrot.lane.b32.xlu0 %v3496_v35, %s10065_s27  ;;  %v4548_v35 = vmul.f32 %v9180_v60, %v12006_v53 }
 0xab4   : > { %4577 = vrot.lane.b32.xlu0 %v4545_v56, %s10064_s26  ;;  %v12190_v56 = vpop.xlane.xlu1 %4131 }
 0xab8   : > { %4581 = vrot.lane.b32.xlu0 %v4547_v42, %s10064_s26 }
 0xad1   : > { %5096 = vmax.xlane.f32.xlu1 %v5095_v47 }
 0xad7   : > { %2089 = vadd.xlane.f32.xlu0 %v2088_v32 }
 0xadb   : > { %2095 = vadd.xlane.f32.xlu0 %v2094_v51 }
 0xadf   : > { %2098 = vadd.xlane.f32.xlu0 %v2097_v24  ;;  %v9182_v24 = vpop.eup %9181 }
 0xae2   : > { %4583 = vrot.lane.b32.xlu1 %v4548_v35, %s10064_s26 }
 0xae7   : > { %v5052_v37 = vpop.xlane.xlu0 %5051 }
 0xae8   : > { %v5098_v42 = vsub.f32 %v12032_v3, %v5052_v37  ;;  %v13519_v3 = vld [vmem:[#allocation80_spill] sm:$0xff] }
 0xae9   : > { %v5055_v39 = vpop.xlane.xlu1 %5054  ;;  %v3500_v37 = vmul.f32 %v9182_v24, %v13519_v3 }
 0xaea   : > { %v5114_v47 = vmul.f32 1.442695, %v5098_v42  ;;  %v5099_v57 = vsub.f32 %v12036_v27, %v5055_v39  ;;  %v9184_v39 = vpop.eup %9183 }
 0xaeb   : > { %v5058_v32 = vpop.xlane.xlu0 %5057 }
 0xaec   : > { %v5116_v48 = vmul.f32 1.442695, %v5099_v57  ;;  %9185 = vpow2.f32 %v5114_v47  ;;  %v5100_v51 = vsub.f32 %v12040_v49, %v5058_v32  ;;  %v4549_v49 = vmul.f32 %v9184_v39, %v12008_v40 }
 0xaed   : > { %v12195_v53 = vpop.xlane.xlu1 %3080 }
 0xaee   : > { %9187 = vpow2.f32 %v5116_v48  ;;  %v5118_v36 = vmul.f32 1.442695, %v5100_v51 }
 0xaef   : > { %v5064_v23 = vpop.xlane.xlu0 %5063 }
 0xaf0   : > { %v5102_v27 = vsub.f32 %v12048_v63, %v5064_v23  ;;  %9189 = vpow2.f32 %v5118_v36 }
 0xaf1   : > { %v12198_v60 = vpop.xlane.xlu1 %3086 }
 0xaf2   : > { %v5122_v51 = vmul.f32 1.442695, %v5102_v27 }
 0xaf3   : > { %v5061_v35 = vpop.xlane.xlu0 %5060 }
 0xaf4   : > { %v5101_v42 = vsub.f32 %v12044_v50, %v5061_v35 }
 0xaf5   : > { %v12203_v20 = vpop.xlane.xlu1 %4137  ;;  %3536 = vrot.lane.b32.xlu0 %v3500_v37, %s10065_s27 }
 0xaf6   : > { %v5120_v47 = vmul.f32 1.442695, %v5101_v42  ;;  %v12206_v57 = vpop.eup %9185 }
 0xaf7   : > { %v12209_v32 = vpop.xlane.xlu0 %3077 }
 0xaf8   : > { %v12211_v48 = vpop.eup %9187  ;;  %9191 = vpow2.f32 %v5120_v47  ;;  %v13520_v47 = vld [vmem:[#allocation55_spill] sm:$0xff] }
 0xaf9   : > { %v5067_v50 = vpop.xlane.xlu1 %5066  ;;  %4585 = vrot.lane.b32.xlu0 %v4549_v49, %s10064_s26  ;;  %v5194_v63 = vpack.c.bf16 %v12211_v48, %v12206_v57  ;;  %9193 = vpow2.f32 %v5122_v51  ;;  %v2091_v49 = vsel %vm1967_vm2, %v13520_v47, 0.0 }
 0xafa   : > { %v5103_v23 = vsub.f32 %v12052_v19, %v5067_v50  ;;  %v12228_v3 = vpop.eup %9189 }
 0xafb   : > { %8640 = vmatmul.mubr.msk.bf16.vlgmr.msra.gmra.mrb[136].mxu0 %vm1967_vm2, %v5194_v63  ;;  %v12218_v24 = vpop.xlane.xlu0 %3083 }
 0xafc   : > { %v5124_v40 = vmul.f32 1.442695, %v5103_v23  ;;  %8650 = vmatpush3.bf16.msra.mxu0 %v12078_v25  ;;  %8651 = vmatprep.mubr.msk.bf16.mxu0 %vm10062_vm0, %v13488_v41 }
 0xafd   : > { %v12223_v36 = vpop.xlane.xlu1 %4143  ;;  %8661 = vmatprep.subr.bf16.mxu0 %v13488_v41 }
 0xafe   : > { %9195 = vpow2.f32 %v5124_v40 }
 0xaff   : > { %v12226_v35 = vpop.xlane.xlu0 %4134 }
 0xb01   : > { %v2069_v19 = vpop.xlane.xlu1 %2068 }
 0xb02   : > { %v12230_v37 = vpop.eup %9191  ;;  %9197 = vrcp.f32 %v2069_v19 }
 0xb03   : > { %v5070_v42 = vpop.xlane.xlu0 %5069  ;;  %v5195_v25 = vpack.c.bf16 %v12230_v37, %v12228_v3  ;;  %v12239_v51 = vpop.eup %9193  ;;  %9199 = vrcp.f32 %v12120_v34 }
 0xb04   : > { %v5104_v27 = vsub.f32 %v12056_v54, %v5070_v42  ;;  %9201 = vrcp.f32 %v12138_v29 }
 0xb05   : > { %v5076_v39 = vpop.xlane.xlu1 %5075  ;;  %8646 = vmatmul.mubr.msk.bf16.vlgmr.msra.gmra.mrb[136].mxu1 %vm1967_vm2, %v5195_v25 }
 0xb06   : > { %8656 = vmatpush3.bf16.msra.mxu1 %v12066_v2  ;;  %2092 = vadd.xlane.f32.xlu1 %v2091_v49  ;;  %v5126_v54 = vmul.f32 1.442695, %v5104_v27  ;;  %v5106_v19 = vsub.f32 %v12064_v61, %v5076_v39 }
 0xb07   : > { %v12241_v50 = vpop.xlane.xlu0 %4140  ;;  %8657 = vmatprep.mubr.msk.bf16.mxu1 %vm10062_vm0, %v13488_v41  ;;  %8667 = vmatprep.subr.bf16.mxu1 %v13488_v41 }
 0xb08   : > { %v12246_v63 = vpop.eup %9195  ;;  %v5130_v29 = vmul.f32 1.442695, %v5106_v19  ;;  %v13522_v19 = vld [vmem:[#allocation81_spill] sm:$0xff] }
 0xb09   : > { %v5073_v23 = vpop.xlane.xlu1 %5072  ;;  %v5196_v40 = vpack.c.bf16 %v12246_v63, %v12239_v51 }
 0xb0a   : > { %v5105_v2 = vsub.f32 %v12060_v58, %v5073_v23  ;;  %v13521_v58 = vld [vmem:[#allocation63_spill] sm:$0xff] }
 0xb0b   : > { %8652 = vmatmul.mubr.msk.bf16.vlgmr.msra.gmra.mrb[140].mxu0 %vm1967_vm2, %v5196_v40  ;;  %v2066_v42 = vpop.xlane.xlu0 %2065 }
 0xb0c   : > { %v9198_v25 = vpop.eup %9197  ;;  %v5128_v47 = vmul.f32 1.442695, %v5105_v2  ;;  %8662 = vmatpush3.bf16.msra.mxu0 %v12094_v13  ;;  %9203 = vrcp.f32 %v2066_v42  ;;  %8663 = vmatprep.mubr.msk.bf16.mxu0 %vm10062_vm0, %v13488_v41 }
 0xb0d   : > { %9205 = vpow2.f32 %v5126_v54  ;;  %v2075_v34 = vpop.xlane.xlu1 %2074  ;;  %8673 = vmatprep.subr.bf16.mxu0 %v13488_v41  ;;  %v2489_v27 = vmul.f32 %v9198_v25, %v13521_v58  ;;  %v9200_v49 = vpop.eup %9199  ;;  %v13523_v58 = vld [vmem:[#allocation62_spill] sm:$0xff] }
 0xb0e   : > { %9207 = vpow2.f32 %v5128_v47  ;;  %v9202_v40 = vpop.eup %9201  ;;  %v3501_v25 = vmul.f32 %v9200_v49, %v13522_v19  ;;  %v13524_v49 = vld [vmem:[#allocation84_spill] sm:$0xff]  ;;  %v13525_v19 = vld [vmem:[#allocation65_spill] sm:$0xff] }
 0xb0f   : > { %9209 = vrcp.f32 %v2075_v34  ;;  %v5079_v61 = vpop.xlane.xlu0 %5078  ;;  %2505 = vst.msk [vmem:[#allocation3 + $0x8] sm:$0xff] %vm1590_vm1, %v2489_v27 }
 0xb10   : > { %9211 = vrcp.f32 %v12130_v21  ;;  %v5107_v13 = vsub.f32 %v12070_v55, %v5079_v61  ;;  %v5146_v55 = vsel %vm1967_vm2, %v12206_v57, 0.0 }
 0xb11   : > { %v2081_v39 = vpop.xlane.xlu1 %2080 }
 0xb12   : > { %v5132_v23 = vmul.f32 1.442695, %v5107_v13  ;;  %9213 = vrcp.f32 %v2081_v39 }
 0xb13   : > { %9215 = vpow2.f32 %v5130_v29  ;;  %v5082_v54 = vpop.xlane.xlu0 %5081 }
 0xb14   : > { %9217 = vpow2.f32 %v5132_v23  ;;  %v5108_v2 = vsub.f32 %v12074_v12, %v5082_v54 }
 0xb15   : > { %v5088_v42 = vpop.xlane.xlu1 %5087  ;;  %9219 = vrcp.f32 %v12170_v16  ;;  %v3502_v16 = vmul.f32 %v9202_v40, %v13524_v49  ;;  %v13526_v40 = vld [vmem:[#allocation85_spill] sm:$0xff] }
 0xb16   : > { %v9204_v47 = vpop.eup %9203  ;;  %v5134_v12 = vmul.f32 1.442695, %v5108_v2  ;;  %v5152_v2 = vsel %vm1967_vm2, %v12228_v3, 0.0  ;;  %v13527_v3 = vld [vmem:[#allocation67_spill] sm:$0xff] }
 0xb17   : > { %v9206_v34 = vpop.eup %9205  ;;  %v2072_v21 = vpop.xlane.xlu0 %2071  ;;  %3538 = vrot.lane.b32.xlu1 %v3501_v25, %s10065_s27  ;;  %v2488_v27 = vmul.f32 %v9204_v47, %v13523_v58  ;;  %v5110_v25 = vsub.f32 %v12086_v18, %v5088_v42 }
 0xb18   : > { %v12270_v29 = vpop.eup %9207  ;;  %5147 = vadd.xlane.f32.xlu0 %v5146_v55  ;;  %9221 = vrcp.f32 %v2072_v21 }
 0xb19   : > { %v9210_v61 = vpop.eup %9209  ;;  %v5085_v13 = vpop.xlane.xlu1 %5084  ;;  %v5197_v39 = vpack.c.bf16 %v12270_v29, %v9206_v34  ;;  %2504 = vst.msk [vmem:[#allocation3] sm:$0xff] %vm1590_vm1, %v2488_v27 }
 0xb1a   : > { %v9212_v23 = vpop.eup %9211  ;;  %v5109_v54 = vsub.f32 %v12080_v26, %v5085_v13  ;;  %v2491_v57 = vmul.f32 %v9210_v61, %v13525_v19 }
 0xb1b   : > { %8658 = vmatmul.mubr.msk.bf16.vlgmr.msra.gmra.mrb[140].mxu1 %vm1967_vm2, %v5197_v39  ;;  %v2078_v47 = vpop.xlane.xlu0 %2077  ;;  %3540 = vrot.lane.b32.xlu1 %v3502_v16, %s10065_s27  ;;  %v3503_v42 = vmul.f32 %v9212_v23, %v13526_v40 }
 0xb1c   : > { %v9214_v21 = vpop.eup %9213  ;;  %v5136_v55 = vmul.f32 1.442695, %v5109_v54  ;;  %8668 = vmatpush3.bf16.msra.mxu1 %v12082_v17  ;;  %9223 = vrcp.f32 %v2078_v47  ;;  %5153 = vadd.xlane.f32.xlu0 %v5152_v2  ;;  %2507 = vst.msk [vmem:[#allocation3 + $0x18] sm:$0xff] %vm1590_vm1, %v2491_v57  ;;  %v5138_v17 = vmul.f32 1.442695, %v5110_v25 }
 0xb1d   : > { %v12284_v26 = vpop.eup %9215  ;;  %9225 = vpow2.f32 %v5134_v12  ;;  %v2087_v18 = vpop.xlane.xlu1 %2086  ;;  %8669 = vmatprep.mubr.msk.bf16.mxu1 %vm10062_vm0, %v13488_v41  ;;  %8679 = vmatprep.subr.bf16.mxu1 %v13488_v41  ;;  %v2493_v58 = vmul.f32 %v9214_v21, %v13527_v3  ;;  %v5158_v12 = vsel %vm1967_vm2, %v12239_v51, 0.0  ;;  %v13529_v21 = vld [vmem:[#allocation66_spill] sm:$0xff]  ;;  %v13530_v3 = vld [vmem:[#allocation69_spill] sm:$0xff] }
 0xb1e   : > { %v12291_v27 = vpop.eup %9217  ;;  %9227 = vpow2.f32 %v5136_v55 }
 0xb1f   : > { %9229 = vrcp.f32 %v2087_v18  ;;  %v5091_v61 = vpop.xlane.xlu0 %5090  ;;  %3542 = vrot.lane.b32.xlu1 %v3503_v42, %s10065_s27  ;;  %v5198_v13 = vpack.c.bf16 %v12291_v27, %v12284_v26  ;;  %2509 = vst.msk [vmem:[#allocation3 + $0x28] sm:$0xff] %vm1590_vm1, %v2493_v58  ;;  %v9220_v39 = vpop.eup %9219 }
 0xb20   : > { %v5111_v49 = vsub.f32 %v12090_v1, %v5091_v61  ;;  %5159 = vadd.xlane.f32.xlu0 %v5158_v12  ;;  %v4550_v16 = vmul.f32 %v9220_v39, %v12010_v11  ;;  %9231 = vpow2.f32 %v5138_v17  ;;  %v5164_v1 = vsel %vm1967_vm2, %v9206_v34, 0.0  ;;  %v13528_v11 = vld [vmem:[#allocation64_spill] sm:$0xff] }
 0xb21   : > { %8664 = vmatmul.mubr.msk.bf16.vlgmr.msra.gmra.mrb[144].mxu0 %vm1967_vm2, %v5198_v13  ;;  %v3531_v23 = vpop.permute.xlu1 %3530 }
 0xb22   : > { %v5140_v54 = vmul.f32 1.442695, %v5111_v49  ;;  %8674 = vmatpush3.bf16.msra.mxu0 %v12098_v0  ;;  %3578 = vst.msk [vmem:[#allocation3 + $0x8] sm:$0xff] %vm3576_vm3, %v3531_v23  ;;  %8675 = vmatprep.mubr.msk.bf16.mxu0 %vm10062_vm0, %v13488_v41  ;;  %v9222_v51 = vpop.eup %9221 }
 0xb23   : > { %v5094_v19 = vpop.xlane.xlu0 %5093  ;;  %4587 = vrot.lane.b32.xlu1 %v4550_v16, %s10064_s26  ;;  %v2490_v57 = vmul.f32 %v9222_v51, %v13528_v11  ;;  %v5149_v51 = vsel %vm1967_vm2, %v12211_v48, 0.0  ;;  %v5161_v11 = vsel %vm1967_vm2, %v12246_v63, 0.0  ;;  %v5170_v48 = vsel %vm1967_vm2, %v12284_v26, 0.0  ;;  %v13533_v26 = vld [vmem:[#allocation60_spill] sm:$0xff] }
 0xb24   : > { %9233 = vpow2.f32 %v5140_v54  ;;  %5165 = vadd.xlane.f32.xlu0 %v5164_v1  ;;  %v5155_v1 = vsel %vm1967_vm2, %v12230_v37, 0.0 }
 0xb25   : > { %v3533_v25 = vpop.permute.xlu1 %3532  ;;  %2506 = vst.msk [vmem:[#allocation3 + $0x10] sm:$0xff] %vm1590_vm1, %v2490_v57  ;;  %v13532_v57 = vld [vmem:[#allocation58_spill] sm:$0xff] }
 0xb26   : > { %v9224_v47 = vpop.eup %9223  ;;  %3579 = vst.msk [vmem:[#allocation3 + $0x10] sm:$0xff] %vm3576_vm3, %v3533_v25  ;;  %v2100_v25 = vsel %vm1967_vm2, %v13532_v57, 0.0 }
 0xb27   : > { %v9226_v0 = vpop.eup %9225  ;;  %v2084_v2 = vpop.xlane.xlu0 %2083  ;;  %v2492_v55 = vmul.f32 %v9224_v47, %v13529_v21 }
 0xb28   : > { %v12312_v18 = vpop.eup %9227  ;;  %9235 = vrcp.f32 %v2084_v2 }
 0xb29   : > { %v9230_v40 = vpop.eup %9229  ;;  %v3535_v42 = vpop.permute.xlu1 %3534  ;;  %v5199_v34 = vpack.c.bf16 %v12312_v18, %v9226_v0  ;;  %2508 = vst.msk [vmem:[#allocation3 + $0x20] sm:$0xff] %vm1590_vm1, %v2492_v55  ;;  %9237 = vrcp.f32 %v12174_v46 }
 0xb2a   : > { %3580 = vst.msk [vmem:[#allocation3 + $0x18] sm:$0xff] %vm3576_vm3, %v3535_v42  ;;  %v2495_v58 = vmul.f32 %v9230_v40, %v13530_v3  ;;  %v9232_v61 = vpop.eup %9231  ;;  %9239 = vrcp.f32 %v12176_v62  ;;  %v5176_v62 = vsel %vm1967_vm2, %v9226_v0, 0.0  ;;  %v13534_v42 = vld [vmem:[#allocation61_spill] sm:$0xff] }
 0xb2b   : > { %8670 = vmatmul.mubr.msk.bf16.vlgmr.msra.gmra.mrb[144].mxu1 %vm1967_vm2, %v5199_v34  ;;  %v3529_v17 = vpop.permute.xlu0 %3528  ;;  %v5182_v3 = vsel %vm1967_vm2, %v9232_v61, 0.0 }
 0xb2c   : > { %8680 = vmatpush3.bf16.msra.mxu1 %v12108_v6  ;;  %3577 = vst.msk [vmem:[#allocation3] sm:$0xff] %vm3576_vm3, %v3529_v17  ;;  %8681 = vmatprep.mubr.msk.bf16.mxu1 %vm10062_vm0, %v13488_v41  ;;  %v13531_v41 = vld [vmem:[#allocation68_spill] sm:$0xff] }
 0xb2d   : > { %2511 = vst.msk [vmem:[#allocation3 + $0x38] sm:$0xff] %vm1590_vm1, %v2495_v58  ;;  %v4580_v12 = vpop.permute.xlu1 %4579 }
 0xb2e   : > { %v12325_v13 = vpop.eup %9233  ;;  %4627 = vst.msk [vmem:[#allocation3 + $0x8] sm:$0xff] %vm4625_vm4, %v4580_v12 }
 0xb2f   : > { %v4578_v39 = vpop.permute.xlu0 %4577  ;;  %v5200_v49 = vpack.c.bf16 %v12325_v13, %v9232_v61 }
 0xb30   : > { %4626 = vst.msk [vmem:[#allocation3] sm:$0xff] %vm4625_vm4, %v4578_v39 }
 0xb31   : > { %8676 = vmatmul.mubr.msk.bf16.vlgmr.msra.gmra.mrb[148].mxu0 %vm1967_vm2, %v5200_v49 }
 0xb32   : > { %v9236_v6 = vpop.eup %9235 }
 0xb33   : > { %v4582_v16 = vpop.permute.xlu0 %4581  ;;  %v2494_v23 = vmul.f32 %v9236_v6, %v13531_v41  ;;  %v9238_v46 = vpop.eup %9237  ;;  %v13535_v6 = vld [vmem:[#allocation70_spill] sm:$0xff]  ;;  %v13536_v41 = vmov 0  }
 0xb34   : > { %4628 = vst.msk [vmem:[#allocation3 + $0x10] sm:$0xff] %vm4625_vm4, %v4582_v16  ;;  %v4551_v54 = vmul.f32 %v9238_v46, %v12012_v33  ;;  %v5112_v33 = vsub.f32 %v12096_v8, %v5094_v19  ;;  %v9240_v47 = vpop.eup %9239  ;;  %v2106_v19 = vsel %vm1967_vm2, %v13533_v26, 0.0  ;;  %v13537_v46 = vld [vmem:[#allocation72_spill] sm:$0xff] }
 0xb35   : > { %2510 = vst.msk [vmem:[#allocation3 + $0x30] sm:$0xff] %vm1590_vm1, %v2494_v23  ;;  %v4552_v37 = vmul.f32 %v9240_v47, %v12014_v28 }
 0xb36   : > { %v5142_v2 = vmul.f32 1.442695, %v5112_v33 }
 0xb38   : > { %9241 = vpow2.f32 %v5142_v2  ;;  %v5179_v2 = vsel %vm1967_vm2, %v12312_v18, 0.0 }
 0xb3a   : > { %4589 = vrot.lane.b32.xlu0 %v4551_v54, %s10064_s26 }
 0xb42   : > { %v9242_v0 = vpop.eup %9241 }
 0xb43   : > { %v5188_v49 = vsel %vm1967_vm2, %v9242_v0, 0.0 }
 0xb47   : > { %5150 = vadd.xlane.f32.xlu1 %v5149_v51 }
 0xb4b   : > { %5156 = vadd.xlane.f32.xlu1 %v5155_v1  ;;  %v13538_v1 = vld [vmem:[#allocation73_spill] sm:$0xff] }
 0xb4f   : > { %5162 = vadd.xlane.f32.xlu1 %v5161_v11 }
 0xb59   : > { %2101 = vadd.xlane.f32.xlu0 %v2100_v25  ;;  %v13539_v25 = vld [vmem:[#allocation59_spill] sm:$0xff] }
 0xb5a   : > { %v2103_v33 = vsel %vm1967_vm2, %v13539_v25, 0.0 }
 0xb5d   : > { %5171 = vadd.xlane.f32.xlu0 %v5170_v48  ;;  %v13540_v48 = vld [vmem:[#allocation86_spill] sm:$0xff] }
 0xb5e   : > { %v5097_v21 = vpop.xlane.xlu1 %5096 }
 0xb5f   : > { %v5113_v63 = vsub.f32 %v12102_v59, %v5097_v21  ;;  %v2109_v59 = vsel %vm1967_vm2, %v13534_v42, 0.0 }
 0xb60   : > { %4591 = vrot.lane.b32.xlu1 %v4552_v37, %s10064_s26  ;;  %v5167_v37 = vsel %vm1967_vm2, %v12270_v29, 0.0 }
 0xb61   : > { %v5144_v55 = vmul.f32 1.442695, %v5113_v63  ;;  %5177 = vadd.xlane.f32.xlu0 %v5176_v62  ;;  %v5185_v63 = vsel %vm1967_vm2, %v12325_v13, 0.0  ;;  %v13542_v13 = vld [vmem:[#allocation87_spill] sm:$0xff] }
 0xb62   : > { %v4584_v40 = vpop.permute.xlu1 %4583 }
 0xb63   : > { %9243 = vpow2.f32 %v5144_v55  ;;  %4629 = vst.msk [vmem:[#allocation3 + $0x18] sm:$0xff] %vm4625_vm4, %v4584_v40  ;;  %v13541_v55 = vld [vmem:[#allocation71_spill] sm:$0xff] }
 0xb64   : > { %v2090_v8 = vpop.xlane.xlu0 %2089 }
 0xb65   : > { %9245 = vrcp.f32 %v2090_v8  ;;  %2107 = vadd.xlane.f32.xlu0 %v2106_v19 }
 0xb68   : > { %v2096_v28 = vpop.xlane.xlu0 %2095 }
 0xb69   : > { %9247 = vrcp.f32 %v2096_v28  ;;  %2110 = vadd.xlane.f32.xlu0 %v2109_v59  ;;  %v13543_v28 = vld [vmem:[#allocation88_spill] sm:$0xff] }
 0xb6c   : > { %v2099_v34 = vpop.xlane.xlu0 %2098 }
 0xb6d   : > { %v12358_v58 = vpop.eup %9243  ;;  %9249 = vrcp.f32 %v2099_v34  ;;  %5183 = vadd.xlane.f32.xlu0 %v5182_v3 }
 0xb6e   : > { %v5201_v17 = vpack.c.bf16 %v12358_v58, %v9242_v0  ;;  %9251 = vrcp.f32 %v12146_v31  ;;  %v5173_v31 = vsel %vm1967_vm2, %v12291_v27, 0.0  ;;  %v13544_v0 = vld [vmem:[#allocation89_spill] sm:$0xff] }
 0xb6f   : > { %v9246_v12 = vpop.eup %9245 }
 0xb70   : > { %v3537_v39 = vpop.permute.xlu0 %3536  ;;  %8682 = vmatmul.mubr.msk.bf16.vlgmr.msra.gmra.mrb[148].mxu1 %vm1967_vm2, %v5201_v17  ;;  %v2496_v16 = vmul.f32 %v9246_v12, %v13535_v6  ;;  %v8949_v6 = vld [vmem:[%s10739_s3] sm:$0xff]  }
 0xb71   : > { %3581 = vst.msk [vmem:[#allocation3 + $0x20] sm:$0xff] %vm3576_vm3, %v3537_v39  ;;  %5189 = vadd.xlane.f32.xlu0 %v5188_v49  ;;  %6375 = vmatprep.mubr.bf16.mxu1 %v13536_v41 }
 0xb72   : > { %2512 = vst.msk [vmem:[#allocation3 + $0x40] sm:$0xff] %vm1590_vm1, %v2496_v16  ;;  %8685 = vmatprep.subr.bf16.mxu0 %v8949_v6 }
 0xb73   : > { %v9248_v61 = vpop.eup %9247  ;;  %8686 = vmatpush3.bf16.msra.mxu0 %v8949_v6 }
 0xb74   : > { %v4586_v23 = vpop.permute.xlu0 %4585  ;;  %v2498_v54 = vmul.f32 %v9248_v61, %v13537_v46  ;;  %v5191_v46 = vsel %vm1967_vm2, %v12358_v58, 0.0 }
 0xb75   : > { %4630 = vst.msk [vmem:[#allocation3 + $0x20] sm:$0xff] %vm4625_vm4, %v4586_v23 }
 0xb76   : > { %2514 = vst.msk [vmem:[#allocation3 + $0x50] sm:$0xff] %vm1590_vm1, %v2498_v54 }
 0xb77   : > { %v9250_v51 = vpop.eup %9249 }
 0xb78   : > { %v2499_v11 = vmul.f32 %v9250_v51, %v13538_v1  ;;  %v9252_v57 = vpop.eup %9251  ;;  %v8950_v51 = vld [vmem:[%s10739_s3 + $0x8] sm:$0xff]  }
 0xb79   : > { %v3504_v47 = vmul.f32 %v9252_v57, %v13540_v48  ;;  %8687 = vmatprep.subr.bf16.mxu0 %v8950_v51 }
 0xb7a   : > { %2515 = vst.msk [vmem:[#allocation3 + $0x58] sm:$0xff] %vm1590_vm1, %v2499_v11  ;;  %8688 = vmatpush3.bf16.msra.mxu0 %v8950_v51  ;;  %v8951_v11 = vld [vmem:[%s10739_s3 + $0x10] sm:$0xff]  }
 0xb7b   : > { %8689 = vmatprep.subr.bf16.mxu0 %v8951_v11 }
 0xb7e   : > { %8690 = vmatpush3.bf16.msra.mxu0 %v8951_v11 }
 0xb84   : > { %2104 = vadd.xlane.f32.xlu1 %v2103_v33 }
 0xb87   : > { %3544 = vrot.lane.b32.xlu0 %v3504_v47, %s10065_s27  ;;  %v8952_v47 = vld [vmem:[%s10739_s3 + $0x18] sm:$0xff]  }
 0xb88   : > { %5168 = vadd.xlane.f32.xlu1 %v5167_v37  ;;  %8691 = vmatprep.subr.bf16.mxu0 %v8952_v47 }
 0xb89   : > { %8692 = vmatpush3.bf16.msra.mxu0 %v8952_v47  ;;  %v13547_v47 = vld [vmem:[#allocation92_spill] sm:$0xff] }
 0xb8c   : > { %5174 = vadd.xlane.f32.xlu1 %v5173_v31 }
 0xb90   : > { %5180 = vadd.xlane.f32.xlu1 %v5179_v2 }
 0xb93   : > { %v2093_v21 = vpop.xlane.xlu1 %2092 }
 0xb94   : > { %9253 = vrcp.f32 %v2093_v21  ;;  %5186 = vadd.xlane.f32.xlu1 %v5185_v63 }
 0xb95   : > { %9255 = vrcp.f32 %v12140_v7 }
 0xb96   : > { %9257 = vrcp.f32 %v12152_v4 }
 0xb97   : > { %v3539_v62 = vpop.permute.xlu1 %3538  ;;  %9259 = vrcp.f32 %v12148_v10 }
 0xb98   : > { %3582 = vst.msk [vmem:[#allocation3 + $0x28] sm:$0xff] %vm3576_vm3, %v3539_v62 }
 0xb9b   : > { %v3541_v29 = vpop.permute.xlu1 %3540 }
 0xb9c   : > { %3583 = vst.msk [vmem:[#allocation3 + $0x30] sm:$0xff] %vm3576_vm3, %v3541_v29 }
 0xb9e   : > { %v9254_v27 = vpop.eup %9253 }
 0xb9f   : > { %v3543_v18 = vpop.permute.xlu1 %3542  ;;  %v2497_v40 = vmul.f32 %v9254_v27, %v13541_v55  ;;  %v9256_v8 = vpop.eup %9255 }
 0xba0   : > { %3584 = vst.msk [vmem:[#allocation3 + $0x38] sm:$0xff] %vm3576_vm3, %v3543_v18  ;;  %v3505_v26 = vmul.f32 %v9256_v8, %v13542_v13  ;;  %v9258_v19 = vpop.eup %9257 }
 0xba1   : > { %2513 = vst.msk [vmem:[#allocation3 + $0x48] sm:$0xff] %vm1590_vm1, %v2497_v40  ;;  %v3506_v10 = vmul.f32 %v9258_v19, %v13543_v28  ;;  %v9260_v42 = vpop.eup %9259 }
 0xba2   : > { %v3507_v34 = vmul.f32 %v9260_v42, %v13544_v0 }
 0xba3   : > { %v4588_v7 = vpop.permute.xlu1 %4587 }
 0xba4   : > { %4631 = vst.msk [vmem:[#allocation3 + $0x28] sm:$0xff] %vm4625_vm4, %v4588_v7 }
 0xba5   : > { %v5148_v4 = vpop.xlane.xlu0 %5147  ;;  %3546 = vrot.lane.b32.xlu1 %v3505_v26, %s10065_s27  ;;  %v8954_v26 = vld [vmem:[%s10739_s3 + $0x28] sm:$0xff]  }
 0xba6   : > { %9261 = vrcp.f32 %v5148_v4 }
 0xba9   : > { %v5154_v59 = vpop.xlane.xlu0 %5153  ;;  %3548 = vrot.lane.b32.xlu1 %v3506_v10, %s10065_s27  ;;  %v8955_v10 = vld [vmem:[%s10739_s3 + $0x30] sm:$0xff]  }
 0xbaa   : > { %9263 = vrcp.f32 %v5154_v59  ;;  %v8956_v59 = vld [vmem:[%s10739_s3 + $0x38] sm:$0xff]  }
 0xbab   : > { %9265 = vrcp.f32 %v12180_v5 }
 0xbad   : > { %v5160_v3 = vpop.xlane.xlu0 %5159  ;;  %3550 = vrot.lane.b32.xlu1 %v3507_v34, %s10065_s27 }
 0xbb0   : > { %v9262_v39 = vpop.eup %9261 }
 0xbb1   : > { %v12400_v17 = vpop.xlane.xlu0 %5165 }
 0xbb4   : > { %v9264_v57 = vpop.eup %9263 }
 0xbb5   : > { %v4590_v12 = vpop.permute.xlu0 %4589  ;;  %v9266_v31 = vpop.eup %9265 }
 0xbb6   : > { %4632 = vst.msk [vmem:[#allocation3 + $0x30] sm:$0xff] %vm4625_vm4, %v4590_v12  ;;  %v4553_v21 = vmul.f32 %v9266_v31, %v12016_v14 }
 0xbce   : > { %v5242_v49 = vpop.f32.mrb[136].mxu0 }
 0xbcf   : > { %v5594_v16 = vmul.f32 %v9262_v39, %v5242_v49  ;;  %v8641_v61 = vpop.f32.mrb[137].mxu0 }
 0xbd0   : > { %v5245_v23 = vpop.f32.mrb[138].mxu0 }
 0xbd1   : > { %v8642_v54 = vpop.f32.mrb[139].mxu0  ;;  %5626 = vrot.lane.b32.xlu0 %v5594_v16, %s10063_s13  ;;  %5192 = vadd.xlane.f32.xlu1 %v5191_v46  ;;  %v13546_v46 = vld [vmem:[#allocation90_spill] sm:$0xff] }
 0xbd4   : > { %v5151_v1 = vpop.xlane.xlu1 %5150 }
 0xbd5   : > { %9267 = vrcp.f32 %v5151_v1 }
 0xbd6   : > { %9269 = vrcp.f32 %v5160_v3 }
 0xbd8   : > { %v5157_v25 = vpop.xlane.xlu1 %5156  ;;  %v5289_v33 = vpop.f32.mrb[136].mxu1 }
 0xbd9   : > { %9271 = vrcp.f32 %v5157_v25  ;;  %v5596_v58 = vmul.f32 %v9264_v57, %v5289_v33  ;;  %v8647_v48 = vpop.f32.mrb[137].mxu1 }
 0xbda   : > { %9273 = vrcp.f32 %v12188_v45  ;;  %v5292_v5 = vpop.f32.mrb[138].mxu1  ;;  %v8953_v45 = vld [vmem:[%s10739_s3 + $0x20] sm:$0xff]  }
 0xbdb   : > { %5630 = vrot.lane.b32.xlu0 %v5596_v58, %s10063_s13  ;;  %v8648_v37 = vpop.f32.mrb[139].mxu1  ;;  %9275 = vrcp.f32 %v12184_v52  ;;  %8693 = vmatprep.subr.bf16.mxu0 %v8953_v45 }
 0xbdc   : > { %v5163_v2 = vpop.xlane.xlu1 %5162  ;;  %9277 = vrcp.f32 %v12190_v56  ;;  %8694 = vmatpush3.bf16.msra.mxu0 %v8953_v45 }
 0xbdd   : > { %9279 = vrcp.f32 %v5163_v2  ;;  %8695 = vmatprep.subr.bf16.mxu0 %v8954_v26 }
 0xbde   : > { %v5336_v63 = vpop.f32.mrb[140].mxu0  ;;  %9281 = vrcp.f32 %v12400_v17 }
 0xbdf   : > { %v9268_v62 = vpop.eup %9267  ;;  %v8653_v29 = vpop.f32.mrb[141].mxu0  ;;  %4593 = vrot.lane.b32.xlu0 %v4553_v21, %s10064_s26  ;;  %9283 = vrcp.f32 %v12209_v32 }
 0xbe0   : > { %v9270_v27 = vpop.eup %9269  ;;  %v5339_v18 = vpop.f32.mrb[142].mxu0  ;;  %v5595_v40 = vmul.f32 %v9268_v62, %v5245_v23  ;;  %8696 = vmatpush3.bf16.msra.mxu0 %v8954_v26 }
 0xbe1   : > { %v4592_v55 = vpop.permute.xlu1 %4591  ;;  %v5598_v8 = vmul.f32 %v9270_v27, %v5336_v63  ;;  %v8654_v52 = vpop.f32.mrb[143].mxu0  ;;  %8697 = vmatprep.subr.bf16.mxu0 %v8955_v10  ;;  %v13548_v63 = vld [vmem:[#allocation76_spill] sm:$0xff] }
 0xbe2   : > { %4633 = vst.msk [vmem:[#allocation3 + $0x38] sm:$0xff] %vm4625_vm4, %v4592_v55  ;;  %5628 = vrot.lane.b32.xlu1 %v5595_v40, %s10063_s13 }
 0xbe3   : > { %v9272_v14 = vpop.eup %9271  ;;  %5634 = vrot.lane.b32.xlu0 %v5598_v8, %s10063_s13  ;;  %v13549_v8 = vld [vmem:[#allocation77_spill] sm:$0xff] }
 0xbe4   : > { %v9274_v7 = vpop.eup %9273  ;;  %v5597_v13 = vmul.f32 %v9272_v14, %v5292_v5  ;;  %8698 = vmatpush3.bf16.msra.mxu0 %v8955_v10 }
 0xbe5   : > { %v4555_v56 = vmul.f32 %v9274_v7, %v12020_v15  ;;  %v9276_v4 = vpop.eup %9275  ;;  %8699 = vmatprep.subr.bf16.mxu0 %v8956_v59 }
 0xbe6   : > { %v2102_v19 = vpop.xlane.xlu0 %2101  ;;  %5632 = vrot.lane.b32.xlu1 %v5597_v13, %s10063_s13  ;;  %v4554_v28 = vmul.f32 %v9276_v4, %v12018_v38  ;;  %v9278_v15 = vpop.eup %9277 }
 0xbe7   : > { %9285 = vrcp.f32 %v2102_v19  ;;  %4597 = vrot.lane.b32.xlu0 %v4555_v56, %s10064_s26  ;;  %v4556_v32 = vmul.f32 %v9278_v15, %v12022_v43  ;;  %v9280_v0 = vpop.eup %9279 }
 0xbe8   : > { %v9282_v34 = vpop.eup %9281  ;;  %8700 = vmatpush3.bf16.msra.mxu0 %v8956_v59  ;;  %v5599_v49 = vmul.f32 %v9280_v0, %v5339_v18  ;;  %v13550_v0 = vld [vmem:[#allocation75_spill] sm:$0xff] }
 0xbe9   : > { %v9284_v39 = vpop.eup %9283 }
 0xbea   : > { %v5172_v42 = vpop.xlane.xlu0 %5171  ;;  %4595 = vrot.lane.b32.xlu1 %v4554_v28, %s10064_s26  ;;  %v3508_v54 = vmul.f32 %v9284_v39, %v13546_v46 }
 0xbeb   : > { %9287 = vrcp.f32 %v5172_v42 }
 0xbec   : > { %9289 = vrcp.f32 %v12218_v24  ;;  %v13545_v24 = vld [vmem:[#allocation74_spill] sm:$0xff] }
 0xbee   : > { %v5178_v3 = vpop.xlane.xlu0 %5177  ;;  %4599 = vrot.lane.b32.xlu1 %v4556_v32, %s10064_s26  ;;  %v5383_v17 = vpop.f32.mrb[140].mxu1 }
 0xbef   : > { %v5600_v38 = vmul.f32 %v9282_v34, %v5383_v17  ;;  %v8659_v12 = vpop.f32.mrb[141].mxu1 }
 0xbf0   : > { %v12434_v6 = vpop.f32.mrb[142].mxu1 }
 0xbf1   : > { %v9286_v16 = vpop.eup %9285  ;;  %5638 = vrot.lane.b32.xlu0 %v5600_v38, %s10063_s13  ;;  %v8660_v43 = vpop.f32.mrb[143].mxu1 }
 0xbf2   : > { %v2108_v61 = vpop.xlane.xlu0 %2107  ;;  %5636 = vrot.lane.b32.xlu1 %v5599_v49, %s10063_s13  ;;  %v2500_v23 = vmul.f32 %v9286_v16, %v13545_v24  ;;  %v13552_v16 = vld [vmem:[#allocation93_spill] sm:$0xff] }
 0xbf3   : > { %9291 = vrcp.f32 %v2108_v61 }
 0xbf4   : > { %9293 = vrcp.f32 %v5178_v3  ;;  %v5430_v51 = vpop.f32.mrb[144].mxu0  ;;  %2516 = vst.msk [vmem:[#allocation3 + $0x60] sm:$0xff] %vm1590_vm1, %v2500_v23 }
 0xbf5   : > { %v9288_v1 = vpop.eup %9287  ;;  %v8665_v11 = vpop.f32.mrb[145].mxu0  ;;  %3552 = vrot.lane.b32.xlu0 %v3508_v54, %s10065_s27  ;;  %9295 = vrcp.f32 %v12226_v35 }
 0xbf6   : > { %v5602_v57 = vmul.f32 %v9288_v1, %v5430_v51  ;;  %v12443_v25 = vpop.f32.mrb[146].mxu0  ;;  %v2111_v33 = vpop.xlane.xlu0 %2110 }
 0xbf7   : > { %9297 = vrcp.f32 %v2111_v33  ;;  %v8666_v58 = vpop.f32.mrb[147].mxu0  ;;  %v9290_v48 = vpop.eup %9289 }
 0xbf8   : > { %9299 = vrcp.f32 %v12241_v50  ;;  %v3510_v37 = vmul.f32 %v9290_v48, %v13547_v47 }
 0xbf9   : > { %5642 = vrot.lane.b32.xlu0 %v5602_v57, %s10063_s13 }
 0xbfa   : > { %v5184_v5 = vpop.xlane.xlu0 %5183 }
 0xbfb   : > { %9301 = vrcp.f32 %v5184_v5 }
 0xbfd   : > { %v9292_v31 = vpop.eup %9291  ;;  %3556 = vrot.lane.b32.xlu0 %v3510_v37, %s10065_s27 }
 0xbfe   : > { %v9294_v2 = vpop.eup %9293  ;;  %v12449_v35 = vpop.xlane.xlu0 %5189  ;;  %v2502_v62 = vmul.f32 %v9292_v31, %v13548_v63 }
 0xbff   : > { %v5477_v21 = vpop.f32.mrb[144].mxu1  ;;  %v9296_v27 = vpop.eup %9295 }
 0xc00   : > { %v5604_v29 = vmul.f32 %v9294_v2, %v5477_v21  ;;  %v8671_v45 = vpop.f32.mrb[145].mxu1  ;;  %2518 = vst.msk [vmem:[#allocation3 + $0x70] sm:$0xff] %vm1590_vm1, %v2502_v62  ;;  %v4557_v14 = vmul.f32 %v9296_v27, %v12024_v44 }
 0xc01   : > { %v5480_v18 = vpop.f32.mrb[146].mxu1  ;;  %v9298_v50 = vpop.eup %9297 }
 0xc02   : > { %5646 = vrot.lane.b32.xlu0 %v5604_v29, %s10063_s13  ;;  %v8672_v55 = vpop.f32.mrb[147].mxu1  ;;  %v3545_v40 = vpop.permute.xlu0 %3544  ;;  %v2503_v52 = vmul.f32 %v9298_v50, %v13549_v8 }
 0xc03   : > { %3585 = vst.msk [vmem:[#allocation3 + $0x40] sm:$0xff] %vm3576_vm3, %v3545_v40  ;;  %v9300_v7 = vpop.eup %9299 }
 0xc04   : > { %v5524_v13 = vpop.f32.mrb[148].mxu0  ;;  %2519 = vst.msk [vmem:[#allocation3 + $0x78] sm:$0xff] %vm1590_vm1, %v2503_v52  ;;  %v4559_v4 = vmul.f32 %v9300_v7, %v12028_v30 }
 0xc05   : > { %v8677_v26 = vpop.f32.mrb[149].mxu0  ;;  %v9302_v28 = vpop.eup %9301 }
 0xc06   : > { %4601 = vrot.lane.b32.xlu0 %v4557_v14, %s10064_s26  ;;  %v5527_v56 = vpop.f32.mrb[150].mxu0  ;;  %v5606_v10 = vmul.f32 %v9302_v28, %v5524_v13 }
 0xc07   : > { %v8678_v19 = vpop.f32.mrb[151].mxu0 }
 0xc0a   : > { %4605 = vrot.lane.b32.xlu0 %v4559_v4, %s10064_s26 }
 0xc0e   : > { %5650 = vrot.lane.b32.xlu0 %v5606_v10, %s10063_s13 }
 0xc11   : > { %v2105_v42 = vpop.xlane.xlu1 %2104 }
 0xc12   : > { %9303 = vrcp.f32 %v2105_v42 }
 0xc15   : > { %v5169_v44 = vpop.xlane.xlu1 %5168 }
 0xc16   : > { %9305 = vrcp.f32 %v5169_v44 }
 0xc17   : > { %9307 = vrcp.f32 %v12195_v53  ;;  %v13551_v53 = vld [vmem:[#allocation91_spill] sm:$0xff] }
 0xc18   : > { %9309 = vrcp.f32 %v12198_v60 }
 0xc19   : > { %v5175_v15 = vpop.xlane.xlu1 %5174 }
 0xc1a   : > { %9311 = vrcp.f32 %v5175_v15 }
 0xc1c   : > { %v9304_v32 = vpop.eup %9303 }
 0xc1d   : > { %v5181_v59 = vpop.xlane.xlu1 %5180  ;;  %v2501_v34 = vmul.f32 %v9304_v32, %v13550_v0 }
 0xc1e   : > { %9313 = vrcp.f32 %v5181_v59 }
 0xc1f   : > { %2517 = vst.msk [vmem:[#allocation3 + $0x68] sm:$0xff] %vm1590_vm1, %v2501_v34  ;;  %9315 = vrcp.f32 %v12203_v20 }
 0xc20   : > { %v9306_v30 = vpop.eup %9305  ;;  %9317 = vrcp.f32 %v12223_v36 }
 0xc21   : > { %v5187_v3 = vpop.xlane.xlu1 %5186  ;;  %v5601_v17 = vmul.f32 %v9306_v30, %v12434_v6  ;;  %v9308_v38 = vpop.eup %9307 }
 0xc22   : > { %v3509_v39 = vmul.f32 %v9308_v38, %v13551_v53  ;;  %v9310_v49 = vpop.eup %9309  ;;  %9319 = vrcp.f32 %v5187_v3 }
 0xc23   : > { %5640 = vrot.lane.b32.xlu1 %v5601_v17, %s10063_s13  ;;  %v3511_v43 = vmul.f32 %v9310_v49, %v13552_v16  ;;  %9321 = vrcp.f32 %v12449_v35 }
 0xc24   : > { %v9312_v61 = vpop.eup %9311 }
 0xc25   : > { %v3547_v12 = vpop.permute.xlu1 %3546  ;;  %v5603_v24 = vmul.f32 %v9312_v61, %v12443_v25 }
 0xc26   : > { %3586 = vst.msk [vmem:[#allocation3 + $0x48] sm:$0xff] %vm3576_vm3, %v3547_v12 }
 0xc27   : > { %3554 = vrot.lane.b32.xlu1 %v3509_v39, %s10065_s27 }
 0xc28   : > { %v9314_v23 = vpop.eup %9313 }
 0xc29   : > { %v3549_v60 = vpop.permute.xlu1 %3548  ;;  %v5605_v20 = vmul.f32 %v9314_v23, %v5480_v18  ;;  %v9316_v46 = vpop.eup %9315 }
 0xc2a   : > { %3587 = vst.msk [vmem:[#allocation3 + $0x50] sm:$0xff] %vm3576_vm3, %v3549_v60  ;;  %v4558_v54 = vmul.f32 %v9316_v46, %v12026_v9  ;;  %v9318_v51 = vpop.eup %9317 }
 0xc2b   : > { %3558 = vrot.lane.b32.xlu1 %v3511_v43, %s10065_s27  ;;  %v4560_v36 = vmul.f32 %v9318_v51, %v12030_v22 }
 0xc2c   : > { %v9320_v1 = vpop.eup %9319 }
 0xc2d   : > { %v3551_v6 = vpop.permute.xlu1 %3550  ;;  %v5607_v11 = vmul.f32 %v9320_v1, %v5527_v56  ;;  %v9322_v57 = vpop.eup %9321  ;;  %v12519_v1 = vld [vmem:[%s745_s9] ss:$0 sm:$0xff] }
 0xc2e   : > { %3588 = vst.msk [vmem:[#allocation3 + $0x58] sm:$0xff] %vm3576_vm3, %v3551_v6 }
 0xc2f   : > { %5644 = vrot.lane.b32.xlu1 %v5603_v24, %s10063_s13 }
 0xc33   : > { %5648 = vrot.lane.b32.xlu1 %v5605_v20, %s10063_s13 }
 0xc37   : > { %4603 = vrot.lane.b32.xlu1 %v4558_v54, %s10064_s26 }
 0xc3b   : > { %4607 = vrot.lane.b32.xlu1 %v4560_v36, %s10064_s26 }
 0xc3f   : > { %5652 = vrot.lane.b32.xlu1 %v5607_v11, %s10063_s13 }
 0xc43   : > { %v5627_v25 = vpop.permute.xlu0 %5626  ;;  %v5571_v33 = vpop.f32.mrb[148].mxu1 }
 0xc44   : > { %5675 = vst.msk [vmem:[#allocation3] sm:$0xff] %vm5674_vm5, %v5627_v25  ;;  %v5608_v9 = vmul.f32 %v9322_v57, %v5571_v33  ;;  %v8683_v58 = vpop.f32.mrb[149].mxu1 }
 0xc45   : > { %v5574_v48 = vpop.f32.mrb[150].mxu1 }
 0xc46   : > { %5654 = vrot.lane.b32.xlu0 %v5608_v9, %s10063_s13  ;;  %v8684_v5 = vpop.f32.mrb[151].mxu1 }
 0xc4b   : > { %v5691_v18 = vld [vmem:[#allocation3] sm:$0xff] }
 0xc4d   : > { %v5631_v47 = vpop.permute.xlu0 %5630 }
 0xc4e   : > { %5677 = vst.msk [vmem:[#allocation3 + $0x10] sm:$0xff] %vm5674_vm5, %v5631_v47 }
 0xc51   : > { %v4594_v22 = vpop.permute.xlu0 %4593 }
 0xc52   : > { %4634 = vst.msk [vmem:[#allocation3 + $0x40] sm:$0xff] %vm4625_vm4, %v4594_v22  ;;  %v9486_v22 = vld [vmem:[#allocation2 + $0x8] sm:$0xff] }
 0xc55   : > { %v5635_v37 = vpop.permute.xlu0 %5634  ;;  %v5693_v52 = vld [vmem:[#allocation3 + $0x10] sm:$0xff] }
 0xc56   : > { %5679 = vst.msk [vmem:[#allocation3 + $0x20] sm:$0xff] %vm5674_vm5, %v5635_v37 }
 0xc59   : > { %v4598_v31 = vpop.permute.xlu0 %4597 }
 0xc5a   : > { %4636 = vst.msk [vmem:[#allocation3 + $0x50] sm:$0xff] %vm4625_vm4, %v4598_v31  ;;  %v9487_v31 = vld [vmem:[#allocation2 + $0x10] sm:$0xff] }
 0xc5d   : > { %v5695_v4 = vld [vmem:[#allocation3 + $0x20] sm:$0xff] }
 0xc5e   : > { %v5193_v2 = vpop.xlane.xlu1 %5192 }
 0xc5f   : > { %9323 = vrcp.f32 %v5193_v2 }
 0xc62   : > { %v5629_v35 = vpop.permute.xlu1 %5628 }
 0xc63   : > { %5676 = vst.msk [vmem:[#allocation3 + $0x8] sm:$0xff] %vm5674_vm5, %v5629_v35  ;;  %v5639_v21 = vpop.permute.xlu0 %5638 }
 0xc64   : > { %5681 = vst.msk [vmem:[#allocation3 + $0x30] sm:$0xff] %vm5674_vm5, %v5639_v21  ;;  %v9488_v21 = vld [vmem:[#allocation2 + $0x18] sm:$0xff] }
 0xc66   : > { %v5633_v63 = vpop.permute.xlu1 %5632 }
 0xc67   : > { %5678 = vst.msk [vmem:[#allocation3 + $0x18] sm:$0xff] %vm5674_vm5, %v5633_v63  ;;  %v3553_v62 = vpop.permute.xlu0 %3552 }
 0xc68   : > { %3589 = vst.msk [vmem:[#allocation3 + $0x60] sm:$0xff] %vm3576_vm3, %v3553_v62 }
 0xc69   : > { %v9324_v29 = vpop.eup %9323 }
 0xc6a   : > { %v4596_v45 = vpop.permute.xlu1 %4595  ;;  %v5609_v27 = vmul.f32 %v9324_v29, %v5574_v48  ;;  %v5692_v50 = vld [vmem:[#allocation3 + $0x8] sm:$0xff]  ;;  %v9485_v48 = vld [vmem:[#allocation2] sm:$0xff] }
 0xc6b   : > { %4635 = vst.msk [vmem:[#allocation3 + $0x48] sm:$0xff] %vm4625_vm4, %v4596_v45  ;;  %v5643_v55 = vpop.permute.xlu0 %5642  ;;  %v5707_v40 = vpack.c.bf16 %v5692_v50, %v5691_v18  ;;  %v5697_v0 = vld [vmem:[#allocation3 + $0x30] sm:$0xff] }
 0xc6c   : > { %5683 = vst.msk [vmem:[#allocation3 + $0x40] sm:$0xff] %vm5674_vm5, %v5643_v55  ;;  %5656 = vrot.lane.b32.xlu1 %v5609_v27, %s10063_s13  ;;  %v9489_v55 = vld [vmem:[#allocation2 + $0x20] sm:$0xff] }
 0xc6d   : > { %8701 = vmatprep.mubr.bf16.mxu0 %v5707_v40 }
 0xc6e   : > { %v4600_v8 = vpop.permute.xlu1 %4599  ;;  %v5694_v14 = vld [vmem:[#allocation3 + $0x18] sm:$0xff] }
 0xc6f   : > { %4637 = vst.msk [vmem:[#allocation3 + $0x58] sm:$0xff] %vm4625_vm4, %v4600_v8  ;;  %v3557_v7 = vpop.permute.xlu0 %3556  ;;  %v5708_v13 = vpack.c.bf16 %v5694_v14, %v5693_v52  ;;  %v9490_v14 = vld [vmem:[#allocation2 + $0x28] sm:$0xff] }
 0xc70   : > { %3591 = vst.msk [vmem:[#allocation3 + $0x70] sm:$0xff] %vm3576_vm3, %v3557_v7 }
 0xc71   : > { %8702 = vmatmul.mubr.bf16.vlgmr.msra.gmra.mrb[152].mxu0 %v5708_v13  ;;  %v9491_v13 = vld [vmem:[#allocation2 + $0x30] sm:$0xff] }
 0xc72   : > { %v5637_v26 = vpop.permute.xlu1 %5636 }
 0xc73   : > { %5680 = vst.msk [vmem:[#allocation3 + $0x28] sm:$0xff] %vm5674_vm5, %v5637_v26  ;;  %v5699_v12 = vld [vmem:[#allocation3 + $0x40] sm:$0xff] }
 0xc74   : > { %v5647_v56 = vpop.permute.xlu0 %5646 }
 0xc75   : > { %5685 = vst.msk [vmem:[#allocation3 + $0x50] sm:$0xff] %vm5674_vm5, %v5647_v56  ;;  %v9492_v56 = vld [vmem:[#allocation2 + $0x38] sm:$0xff] }
 0xc78   : > { %v4602_v19 = vpop.permute.xlu0 %4601 }
 0xc79   : > { %4638 = vst.msk [vmem:[#allocation3 + $0x60] sm:$0xff] %vm4625_vm4, %v4602_v19 }
 0xc7a   : > { %v5696_v28 = vld [vmem:[#allocation3 + $0x28] sm:$0xff] }
 0xc7b   : > { %v5709_v42 = vpack.c.bf16 %v5696_v28, %v5695_v4 }
 0xc7c   : > { %v4606_v10 = vpop.permute.xlu0 %4605  ;;  %v5701_v60 = vld [vmem:[#allocation3 + $0x50] sm:$0xff] }
 0xc7d   : > { %4640 = vst.msk [vmem:[#allocation3 + $0x70] sm:$0xff] %vm4625_vm4, %v4606_v10  ;;  %8705 = vmatprep.mubr.bf16.mxu0 %v5709_v42 }
 0xc80   : > { %v5651_v44 = vpop.permute.xlu0 %5650 }
 0xc81   : > { %5687 = vst.msk [vmem:[#allocation3 + $0x60] sm:$0xff] %vm5674_vm5, %v5651_v44 }
 0xc88   : > { %v5703_v24 = vld [vmem:[#allocation3 + $0x60] sm:$0xff] }
 0xc95   : > { %v5641_v15 = vpop.permute.xlu1 %5640 }
 0xc96   : > { %5682 = vst.msk [vmem:[#allocation3 + $0x38] sm:$0xff] %vm5674_vm5, %v5641_v15 }
 0xc99   : > { %v3555_v32 = vpop.permute.xlu1 %3554 }
 0xc9a   : > { %3590 = vst.msk [vmem:[#allocation3 + $0x68] sm:$0xff] %vm3576_vm3, %v3555_v32  ;;  %v9493_v32 = vld [vmem:[#allocation2 + $0x40] sm:$0xff] }
 0xc9d   : > { %v3559_v59 = vpop.permute.xlu1 %3558  ;;  %v5698_v34 = vld [vmem:[#allocation3 + $0x38] sm:$0xff] }
 0xc9e   : > { %3592 = vst.msk [vmem:[#allocation3 + $0x78] sm:$0xff] %vm3576_vm3, %v3559_v59  ;;  %v5710_v30 = vpack.c.bf16 %v5698_v34, %v5697_v0 }
 0xca0   : > { %8706 = vmatmul.mubr.bf16.gmra.mrb[156].mxu0 %v5710_v30  ;;  %v9494_v30 = vld [vmem:[#allocation2 + $0x48] sm:$0xff] }
 0xca1   : > { %v5645_v3 = vpop.permute.xlu1 %5644 }
 0xca2   : > { %5684 = vst.msk [vmem:[#allocation3 + $0x48] sm:$0xff] %vm5674_vm5, %v5645_v3 }
 0xca5   : > { %v5649_v17 = vpop.permute.xlu1 %5648 }
 0xca6   : > { %5686 = vst.msk [vmem:[#allocation3 + $0x58] sm:$0xff] %vm5674_vm5, %v5649_v17  ;;  %v9495_v17 = vld [vmem:[#allocation2 + $0x50] sm:$0xff] }
 0xca9   : > { %v4604_v38 = vpop.permute.xlu1 %4603  ;;  %v5700_v53 = vld [vmem:[#allocation3 + $0x48] sm:$0xff] }
 0xcaa   : > { %4639 = vst.msk [vmem:[#allocation3 + $0x68] sm:$0xff] %vm4625_vm4, %v4604_v38  ;;  %v5711_v39 = vpack.c.bf16 %v5700_v53, %v5699_v12  ;;  %v9496_v12 = vld [vmem:[#allocation2 + $0x58] sm:$0xff] }
 0xcac   : > { %8709 = vmatprep.mubr.bf16.mxu0 %v5711_v39 }
 0xcad   : > { %v4608_v49 = vpop.permute.xlu1 %4607  ;;  %v5702_v16 = vld [vmem:[#allocation3 + $0x58] sm:$0xff] }
 0xcae   : > { %4641 = vst.msk [vmem:[#allocation3 + $0x78] sm:$0xff] %vm4625_vm4, %v4608_v49  ;;  %v5712_v43 = vpack.c.bf16 %v5702_v16, %v5701_v60 }
 0xcb0   : > { %8710 = vmatmul.mubr.bf16.gmra.mrb[160].mxu0 %v5712_v43 }
 0xcb1   : > { %v5653_v61 = vpop.permute.xlu1 %5652 }
 0xcb2   : > { %5688 = vst.msk [vmem:[#allocation3 + $0x68] sm:$0xff] %vm5674_vm5, %v5653_v61 }
 0xcb8   : > { %v5655_v6 = vpop.permute.xlu0 %5654 }
 0xcb9   : > { %5689 = vst.msk [vmem:[#allocation3 + $0x70] sm:$0xff] %vm5674_vm5, %v5655_v6  ;;  %v5704_v23 = vld [vmem:[#allocation3 + $0x68] sm:$0xff]  ;;  %v9497_v6 = vld [vmem:[#allocation2 + $0x60] sm:$0xff] }
 0xcba   : > { %v5713_v20 = vpack.c.bf16 %v5704_v23, %v5703_v24 }
 0xcbc   : > { %8713 = vmatprep.mubr.bf16.mxu0 %v5713_v20 }
 0xcc0   : > { %v5705_v54 = vld [vmem:[#allocation3 + $0x70] sm:$0xff] }
 0xcde   : > { %v5657_v46 = vpop.permute.xlu1 %5656 }
 0xcdf   : > { %5690 = vst.msk [vmem:[#allocation3 + $0x78] sm:$0xff] %vm5674_vm5, %v5657_v46  ;;  %v9498_v46 = vld [vmem:[#allocation2 + $0x68] sm:$0xff] }
 0xce6   : > { %v5706_v51 = vld [vmem:[#allocation3 + $0x78] sm:$0xff] }
 0xce7   : > { %v5714_v36 = vpack.c.bf16 %v5706_v51, %v5705_v54  ;;  %v9499_v51 = vld [vmem:[#allocation2 + $0x70] sm:$0xff] }
 0xce9   : > { %8714 = vmatmul.mubr.bf16.gmra.mrb[164].mxu0 %v5714_v36 }
 0xcea   : > { %6488 = vmatprep.mubr.bf16.mxu0 %v13536_v41 }
 0xd44   : > { %v8703_v11 = vpop.f32.mrb[152].mxu0 }
 0xd45   : > { %v5820_v57 = vpop.f32.mrb[153].mxu0  ;;  %v5829_v58 = vadd.f32 %v8703_v11, %v12519_v1  ;;  %v9500_v11 = vld [vmem:[#allocation2 + $0x78] sm:$0xff] }
 0xd46   : > { %v5821_v25 = vadd.f32 %v12519_v1, %v5820_v57  ;;  %v8704_v33 = vpop.f32.mrb[154].mxu0 }
 0xd47   : > { %v5823_v9 = vpop.f32.mrb[155].mxu0  ;;  %v12529_v2 = vadd.f32 %v9487_v31, %v5829_v58  ;;  %v5832_v35 = vadd.f32 %v8704_v33, %v12519_v1 }
 0xd48   : > { %v12523_v5 = vadd.f32 %v9485_v48, %v5821_v25  ;;  %v5824_v47 = vadd.f32 %v12519_v1, %v5823_v9 }
 0xd49   : > { %13553 = vst [vmem:[#allocation47_spill] sm:$0xff] %v12529_v2  ;;  %v12534_v63 = vadd.f32 %v9488_v21, %v5832_v35  ;;  %v8957_v35 = vld [vmem:[%s10755_s22] ss:$16 sps:$4 sm:$0xff]   ;;  %v8959_v21 = vld [vmem:[%s10755_s22 + $0x4] ss:$16 sps:$4 sm:$0xff]  }
 0xd4a   : > { %v12526_v37 = vadd.f32 %v9486_v22, %v5824_v47  ;;  %5901 = vadd.xlane.f32.xlu0 %v12523_v5  ;;  %6343 = vmatprep.subr.bf16.mxu1 %v8959_v21 }
 0xd4b   : > { %13554 = vst [vmem:[#allocation49_spill] sm:$0xff] %v12534_v63  ;;  %6344 = vmatpush1.bf16.msra.mxu1 %v8957_v35 }
 0xd4c   : > { %5903 = vadd.xlane.f32.xlu1 %v12526_v37 }
 0xd4e   : > { %5905 = vadd.xlane.f32.xlu0 %v12529_v2 }
 0xd52   : > { %5907 = vadd.xlane.f32.xlu0 %v12534_v63 }
 0xd73   : > { %v8707_v62 = vpop.f32.mrb[156].mxu0 }
 0xd74   : > { %v5836_v29 = vpop.f32.mrb[157].mxu0  ;;  %v5845_v50 = vadd.f32 %v8707_v62, %v12519_v1  ;;  %v8960_v62 = vld [vmem:[%s10755_s22 + $0x8] ss:$16 sps:$4 sm:$0xff]  }
 0xd75   : > { %v5837_v45 = vadd.f32 %v12519_v1, %v5836_v29  ;;  %v8708_v27 = vpop.f32.mrb[158].mxu0  ;;  %v8962_v29 = vld [vmem:[%s10755_s22 + $0xc] ss:$16 sps:$4 sm:$0xff]  }
 0xd76   : > { %v5839_v18 = vpop.f32.mrb[159].mxu0  ;;  %v5848_v52 = vadd.f32 %v8708_v27, %v12519_v1  ;;  %v12546_v26 = vadd.f32 %v9491_v13, %v5845_v50  ;;  %v8968_v50 = vld [vmem:[%s10755_s22 + $0x2c] ss:$16 sps:$4 sm:$0xff]   ;;  %6456 = vmatprep.subr.bf16.mxu0 %v8962_v29  ;;  %v8966_v13 = vld [vmem:[%s10755_s22 + $0x28] ss:$16 sps:$4 sm:$0xff]  }
 0xd77   : > { %v12539_v40 = vadd.f32 %v9489_v55, %v5837_v45  ;;  %v5840_v8 = vadd.f32 %v12519_v1, %v5839_v18  ;;  %v8965_v18 = vld [vmem:[%s10755_s22 + $0x24] ss:$16 sps:$4 sm:$0xff]   ;;  %6457 = vmatpush1.bf16.msra.mxu0 %v8960_v62 }
 0xd78   : > { %13557 = vst [vmem:[#allocation50_spill] sm:$0xff] %v12546_v26  ;;  %v12549_v19 = vadd.f32 %v9492_v56, %v5848_v52  ;;  %6345 = vmatprep.subr.bf16.mxu1 %v8965_v18  ;;  %6458 = vmatprep.subr.bf16.mxu0 %v8968_v50 }
 0xd79   : > { %13555 = vst [vmem:[#allocation51_spill] sm:$0xff] %v12539_v40  ;;  %v12543_v7 = vadd.f32 %v9490_v14, %v5840_v8  ;;  %5909 = vadd.xlane.f32.xlu0 %v12539_v40  ;;  %v8963_v8 = vld [vmem:[%s10755_s22 + $0x20] ss:$16 sps:$4 sm:$0xff]  }
 0xd7a   : > { %13558 = vst [vmem:[#allocation53_spill] sm:$0xff] %v12549_v19  ;;  %6346 = vmatpush1.bf16.msra.mxu1 %v8963_v8 }
 0xd7b   : > { %13556 = vst [vmem:[#allocation48_spill] sm:$0xff] %v12543_v7  ;;  %5911 = vadd.xlane.f32.xlu1 %v12543_v7  ;;  %6459 = vmatpush1.bf16.msra.mxu0 %v8966_v13 }
 0xd7d   : > { %5913 = vadd.xlane.f32.xlu0 %v12546_v26 }
 0xd7f   : > { %5915 = vadd.xlane.f32.xlu1 %v12549_v19 }
 0xd83   : > { %v8711_v4 = vpop.f32.mrb[160].mxu0 }
 0xd84   : > { %v5852_v28 = vpop.f32.mrb[161].mxu0  ;;  %v5861_v15 = vadd.f32 %v8711_v4, %v12519_v1 }
 0xd85   : > { %v5853_v10 = vadd.f32 %v12519_v1, %v5852_v28  ;;  %v8712_v42 = vpop.f32.mrb[162].mxu0  ;;  %v8971_v28 = vld [vmem:[%s10755_s22 + $0x44] ss:$16 sps:$4 sm:$0xff]  }
 0xd86   : > { %v5855_v44 = vpop.f32.mrb[163].mxu0  ;;  %v5864_v34 = vadd.f32 %v8712_v42, %v12519_v1  ;;  %v12562_v38 = vadd.f32 %v9495_v17, %v5861_v15  ;;  %v8969_v42 = vld [vmem:[%s10755_s22 + $0x40] ss:$16 sps:$4 sm:$0xff]   ;;  %6347 = vmatprep.subr.bf16.mxu1 %v8971_v28  ;;  %v8977_v15 = vld [vmem:[%s10755_s22 + $0x64] ss:$16 sps:$4 sm:$0xff]  }
 0xd87   : > { %v12555_v59 = vadd.f32 %v9493_v32, %v5853_v10  ;;  %v5856_v0 = vadd.f32 %v12519_v1, %v5855_v44  ;;  %v8974_v10 = vld [vmem:[%s10755_s22 + $0x4c] ss:$16 sps:$4 sm:$0xff]   ;;  %v8972_v44 = vld [vmem:[%s10755_s22 + $0x48] ss:$16 sps:$4 sm:$0xff]   ;;  %6348 = vmatpush1.bf16.msra.mxu1 %v8969_v42 }
 0xd88   : > { %13561 = vst [vmem:[#allocation82_spill] sm:$0xff] %v12562_v38  ;;  %v12565_v53 = vadd.f32 %v9496_v12, %v5864_v34  ;;  %6460 = vmatprep.subr.bf16.mxu0 %v8974_v10  ;;  %v8980_v32 = vld [vmem:[%s10755_s22 + $0x6c] ss:$16 sps:$4 sm:$0xff]   ;;  %v8978_v34 = vld [vmem:[%s10755_s22 + $0x68] ss:$16 sps:$4 sm:$0xff]   ;;  %6349 = vmatprep.subr.bf16.mxu1 %v8977_v15 }
 0xd89   : > { %13559 = vst [vmem:[#allocation52_spill] sm:$0xff] %v12555_v59  ;;  %v12559_v3 = vadd.f32 %v9494_v30, %v5856_v0  ;;  %5917 = vadd.xlane.f32.xlu0 %v12555_v59  ;;  %6461 = vmatpush1.bf16.msra.mxu0 %v8972_v44  ;;  %v8975_v0 = vld [vmem:[%s10755_s22 + $0x60] ss:$16 sps:$4 sm:$0xff]   ;;  %v8983_v30 = vld [vmem:[%s10755_s22 + $0x84] ss:$16 sps:$4 sm:$0xff]  }
 0xd8a   : > { %13562 = vst [vmem:[#allocation83_spill] sm:$0xff] %v12565_v53  ;;  %6462 = vmatprep.subr.bf16.mxu0 %v8980_v32  ;;  %v8986_v17 = vld [vmem:[%s10755_s22 + $0x8c] ss:$16 sps:$4 sm:$0xff]   ;;  %v8981_v12 = vld [vmem:[%s10755_s22 + $0x80] ss:$16 sps:$4 sm:$0xff]  }
 0xd8b   : > { %13560 = vst [vmem:[#allocation79_spill] sm:$0xff] %v12559_v3  ;;  %5919 = vadd.xlane.f32.xlu1 %v12559_v3  ;;  %6350 = vmatpush1.bf16.msra.mxu1 %v8975_v0 }
 0xd8c   : > { %6351 = vmatprep.subr.bf16.mxu1 %v8983_v30 }
 0xd8d   : > { %5921 = vadd.xlane.f32.xlu0 %v12562_v38  ;;  %6463 = vmatpush1.bf16.msra.mxu0 %v8978_v34 }
 0xd8e   : > { %6464 = vmatprep.subr.bf16.mxu0 %v8986_v17 }
 0xd8f   : > { %5923 = vadd.xlane.f32.xlu1 %v12565_v53  ;;  %6352 = vmatpush1.bf16.msra.mxu1 %v8981_v12 }
 0xdbc   : > { %v8715_v39 = vpop.f32.mrb[164].mxu0 }
 0xdbd   : > { %v5868_v49 = vpop.f32.mrb[165].mxu0  ;;  %v5877_v61 = vadd.f32 %v8715_v39, %v12519_v1  ;;  %v8984_v39 = vld [vmem:[%s10755_s22 + $0x88] ss:$16 sps:$4 sm:$0xff]  }
 0xdbe   : > { %v5869_v60 = vadd.f32 %v12519_v1, %v5868_v49  ;;  %v8716_v16 = vpop.f32.mrb[166].mxu0  ;;  %6465 = vmatpush1.bf16.msra.mxu0 %v8984_v39  ;;  %v8989_v49 = vld [vmem:[%s10755_s22 + $0xa4] ss:$16 sps:$4 sm:$0xff]  }
 0xdbf   : > { %v5871_v43 = vpop.f32.mrb[167].mxu0  ;;  %v5880_v20 = vadd.f32 %v8716_v16, %v12519_v1  ;;  %v12578_v36 = vadd.f32 %v9499_v51, %v5877_v61  ;;  %v8987_v16 = vld [vmem:[%s10755_s22 + $0xa0] ss:$16 sps:$4 sm:$0xff]   ;;  %6353 = vmatprep.subr.bf16.mxu1 %v8989_v49  ;;  %v8995_v61 = vld [vmem:[%s10755_s22 + $0xc4] ss:$16 sps:$4 sm:$0xff]  }
 0xdc0   : > { %v12571_v24 = vadd.f32 %v9497_v6, %v5869_v60  ;;  %v5872_v23 = vadd.f32 %v12519_v1, %v5871_v43  ;;  %v8992_v60 = vld [vmem:[%s10755_s22 + $0xac] ss:$16 sps:$4 sm:$0xff]   ;;  %v8990_v43 = vld [vmem:[%s10755_s22 + $0xa8] ss:$16 sps:$4 sm:$0xff]   ;;  %6354 = vmatpush1.bf16.msra.mxu1 %v8987_v16 }
 0xdc1   : > { %13565 = vst [vmem:[#allocation56_spill] sm:$0xff] %v12578_v36  ;;  %v12581_v57 = vadd.f32 %v9500_v11, %v5880_v20  ;;  %6466 = vmatprep.subr.bf16.mxu0 %v8992_v60  ;;  %v8998_v6 = vld [vmem:[%s10755_s22 + $0xcc] ss:$16 sps:$4 sm:$0xff]   ;;  %v8996_v20 = vld [vmem:[%s10755_s22 + $0xc8] ss:$16 sps:$4 sm:$0xff]   ;;  %6355 = vmatprep.subr.bf16.mxu1 %v8995_v61 }
 0xdc2   : > { %13563 = vst [vmem:[#allocation78_spill] sm:$0xff] %v12571_v24  ;;  %v12575_v54 = vadd.f32 %v9498_v46, %v5872_v23  ;;  %5925 = vadd.xlane.f32.xlu0 %v12571_v24  ;;  %6467 = vmatpush1.bf16.msra.mxu0 %v8990_v43  ;;  %v8993_v23 = vld [vmem:[%s10755_s22 + $0xc0] ss:$16 sps:$4 sm:$0xff]   ;;  %v9001_v46 = vld [vmem:[%s10755_s22 + $0xe4] ss:$16 sps:$4 sm:$0xff]  }
 0xdc3   : > { %13566 = vst [vmem:[#allocation57_spill] sm:$0xff] %v12581_v57  ;;  %6468 = vmatprep.subr.bf16.mxu0 %v8998_v6  ;;  %v9004_v51 = vld [vmem:[%s10755_s22 + $0xec] ss:$16 sps:$4 sm:$0xff]   ;;  %v8999_v11 = vld [vmem:[%s10755_s22 + $0xe0] ss:$16 sps:$4 sm:$0xff]  }
 0xdc4   : > { %13564 = vst [vmem:[#allocation54_spill] sm:$0xff] %v12575_v54  ;;  %5927 = vadd.xlane.f32.xlu1 %v12575_v54  ;;  %6356 = vmatpush1.bf16.msra.mxu1 %v8993_v23 }
 0xdc5   : > { %6357 = vmatprep.subr.bf16.mxu1 %v9001_v46 }
 0xdc6   : > { %5929 = vadd.xlane.f32.xlu0 %v12578_v36  ;;  %6469 = vmatpush1.bf16.msra.mxu0 %v8996_v20 }
 0xdc7   : > { %6470 = vmatprep.subr.bf16.mxu0 %v9004_v51 }
 0xdc8   : > { %5931 = vadd.xlane.f32.xlu1 %v12581_v57  ;;  %6358 = vmatpush1.bf16.msra.mxu1 %v8999_v11 }
 0xdd7   : > { %v5902_v1 = vpop.xlane.xlu0 %5901 }
 0xdd8   : > { %v5933_v25 = vmul.f32 0.0078125, %v5902_v1  ;;  %v9002_v1 = vld [vmem:[%s10755_s22 + $0xe8] ss:$16 sps:$4 sm:$0xff]  }
 0xdd9   : > { %v5904_v33 = vpop.xlane.xlu1 %5903  ;;  %6471 = vmatpush1.bf16.msra.mxu0 %v9002_v1 }
 0xdda   : > { %v12586_v9 = vsub.f32 %v12523_v5, %v5933_v25  ;;  %v5934_v58 = vmul.f32 0.0078125, %v5904_v33 }
 0xddb   : > { %v5906_v48 = vpop.xlane.xlu0 %5905 }
 0xddc   : > { %v12589_v47 = vsub.f32 %v12526_v37, %v5934_v58  ;;  %v5935_v22 = vmul.f32 0.0078125, %v5906_v48  ;;  %v5965_v31 = vmul.f32 %v12586_v9, %v12586_v9 }
 0xdde   : > { %v12598_v45 = vsub.f32 %v12529_v2, %v5935_v22  ;;  %5981 = vadd.xlane.f32.xlu0 %v5965_v31  ;;  %v5966_v27 = vmul.f32 %v12589_v47, %v12589_v47 }
 0xddf   : > { %v5908_v55 = vpop.xlane.xlu0 %5907 }
 0xde0   : > { %v5936_v52 = vmul.f32 0.0078125, %v5908_v55  ;;  %5983 = vadd.xlane.f32.xlu1 %v5966_v27  ;;  %v5967_v14 = vmul.f32 %v12598_v45, %v12598_v45 }
 0xde2   : > { %v12609_v56 = vsub.f32 %v12534_v63, %v5936_v52  ;;  %5985 = vadd.xlane.f32.xlu0 %v5967_v14 }
 0xde4   : > { %v5968_v4 = vmul.f32 %v12609_v56, %v12609_v56 }
 0xde6   : > { %5987 = vadd.xlane.f32.xlu1 %v5968_v4 }
 0xe06   : > { %v5910_v25 = vpop.xlane.xlu0 %5909 }
 0xe07   : > { %v5937_v33 = vmul.f32 0.0078125, %v5910_v25 }
 0xe08   : > { %v5912_v58 = vpop.xlane.xlu1 %5911 }
 0xe09   : > { %v12638_v48 = vsub.f32 %v12539_v40, %v5937_v33  ;;  %v5938_v22 = vmul.f32 0.0078125, %v5912_v58 }
 0xe0a   : > { %v5914_v31 = vpop.xlane.xlu0 %5913 }
 0xe0b   : > { %v12641_v35 = vsub.f32 %v12543_v7, %v5938_v22  ;;  %v5939_v21 = vmul.f32 0.0078125, %v5914_v31  ;;  %v5969_v62 = vmul.f32 %v12638_v48, %v12638_v48 }
 0xe0c   : > { %v5916_v29 = vpop.xlane.xlu1 %5915 }
 0xe0d   : > { %v12646_v27 = vsub.f32 %v12546_v26, %v5939_v21  ;;  %v5940_v18 = vmul.f32 0.0078125, %v5916_v29  ;;  %5989 = vadd.xlane.f32.xlu0 %v5969_v62  ;;  %v5970_v50 = vmul.f32 %v12641_v35, %v12641_v35 }
 0xe0f   : > { %v12651_v55 = vsub.f32 %v12549_v19, %v5940_v18  ;;  %5991 = vadd.xlane.f32.xlu1 %v5970_v50  ;;  %v5971_v8 = vmul.f32 %v12646_v27, %v12646_v27 }
 0xe11   : > { %5993 = vadd.xlane.f32.xlu0 %v5971_v8  ;;  %v5972_v52 = vmul.f32 %v12651_v55, %v12651_v55 }
 0xe13   : > { %5995 = vadd.xlane.f32.xlu1 %v5972_v52 }
 0xe16   : > { %v5918_v14 = vpop.xlane.xlu0 %5917 }
 0xe17   : > { %v5941_v13 = vmul.f32 0.0078125, %v5918_v14 }
 0xe18   : > { %v5920_v4 = vpop.xlane.xlu1 %5919 }
 0xe19   : > { %v12658_v28 = vsub.f32 %v12555_v59, %v5941_v13  ;;  %v5942_v10 = vmul.f32 0.0078125, %v5920_v4 }
 0xe1a   : > { %v5922_v42 = vpop.xlane.xlu0 %5921 }
 0xe1b   : > { %v12661_v44 = vsub.f32 %v12559_v3, %v5942_v10  ;;  %v5943_v15 = vmul.f32 0.0078125, %v5922_v42  ;;  %v5973_v32 = vmul.f32 %v12658_v28, %v12658_v28 }
 0xe1c   : > { %v5924_v0 = vpop.xlane.xlu1 %5923 }
 0xe1d   : > { %v12666_v34 = vsub.f32 %v12562_v38, %v5943_v15  ;;  %v5944_v30 = vmul.f32 0.0078125, %v5924_v0  ;;  %5997 = vadd.xlane.f32.xlu0 %v5973_v32  ;;  %v5974_v17 = vmul.f32 %v12661_v44, %v12661_v44  ;;  %v12699_v32 = vld [vmem:[%s753_s12] ss:$0 sm:$0xff] }
 0xe1f   : > { %v12671_v12 = vsub.f32 %v12565_v53, %v5944_v30  ;;  %5999 = vadd.xlane.f32.xlu1 %v5974_v17  ;;  %v5975_v39 = vmul.f32 %v12666_v34, %v12666_v34 }
 0xe21   : > { %6001 = vadd.xlane.f32.xlu0 %v5975_v39  ;;  %v5976_v49 = vmul.f32 %v12671_v12, %v12671_v12 }
 0xe23   : > { %6003 = vadd.xlane.f32.xlu1 %v5976_v49 }
 0xe4f   : > { %v5926_v60 = vpop.xlane.xlu0 %5925 }
 0xe50   : > { %v5945_v16 = vmul.f32 0.0078125, %v5926_v60  ;;  %v12706_v60 = vld [vmem:[%s13567_s19] ss:$0 sm:$0xff] }
 0xe51   : > { %v5928_v43 = vpop.xlane.xlu1 %5927 }
 0xe52   : > { %v12678_v61 = vsub.f32 %v12571_v24, %v5945_v16  ;;  %v5946_v6 = vmul.f32 0.0078125, %v5928_v43 }
 0xe53   : > { %v5930_v23 = vpop.xlane.xlu0 %5929 }
 0xe54   : > { %v12681_v20 = vsub.f32 %v12575_v54, %v5946_v6  ;;  %v5947_v46 = vmul.f32 0.0078125, %v5930_v23  ;;  %v5977_v51 = vmul.f32 %v12678_v61, %v12678_v61 }
 0xe55   : > { %v5932_v11 = vpop.xlane.xlu1 %5931 }
 0xe56   : > { %v12686_v1 = vsub.f32 %v12578_v36, %v5947_v46  ;;  %v5948_v25 = vmul.f32 0.0078125, %v5932_v11  ;;  %6005 = vadd.xlane.f32.xlu0 %v5977_v51  ;;  %v5978_v33 = vmul.f32 %v12681_v20, %v12681_v20 }
 0xe58   : > { %v12691_v58 = vsub.f32 %v12581_v57, %v5948_v25  ;;  %6007 = vadd.xlane.f32.xlu1 %v5978_v33  ;;  %v5979_v22 = vmul.f32 %v12686_v1, %v12686_v1  ;;  %v9005_v25 = vld [vmem:[%s10765_s21 + $0x40] sm:$0xff]  }
 0xe59   : > { %v12717_v33 = vld [vmem:[%s10765_s21 + $0xc0] sm:$0xff]   ;;  %8141 = vmatprep.subr.bf16.mxu1 %v9005_v25 }
 0xe5a   : > { %6009 = vadd.xlane.f32.xlu0 %v5979_v22  ;;  %v5980_v31 = vmul.f32 %v12691_v58, %v12691_v58  ;;  %v9007_v22 = vld [vmem:[%s10765_s21] sm:$0xff]   ;;  %8205 = vmatprep.subr.bf16.mxu0 %v12717_v33 }
 0xe5c   : > { %6011 = vadd.xlane.f32.xlu1 %v5980_v31  ;;  %v9009_v31 = vld [vmem:[%s10765_s21 + $0x48] sm:$0xff]  }
 0xe6b   : > { %v5982_v21 = vpop.xlane.xlu0 %5981 }
 0xe6c   : > { %v6013_v62 = vmul.f32 0.0078125, %v5982_v21 }
 0xe6d   : > { %v5984_v29 = vpop.xlane.xlu1 %5983 }
 0xe6e   : > { %v6029_v18 = vadd.f32 1e-05, %v6013_v62  ;;  %v6014_v50 = vmul.f32 0.0078125, %v5984_v29  ;;  %v9011_v62 = vld [vmem:[%s10765_s21 + $0x8] sm:$0xff]  }
 0xe6f   : > { %v5986_v8 = vpop.xlane.xlu0 %5985  ;;  %v12734_v29 = vld [vmem:[%s10765_s21 + $0x88] sm:$0xff]  }
 0xe70   : > { %9325 = vrsqrt.f32 %v6029_v18  ;;  %v6030_v52 = vadd.f32 1e-05, %v6014_v50  ;;  %v6015_v14 = vmul.f32 0.0078125, %v5986_v8 }
 0xe72   : > { %9327 = vrsqrt.f32 %v6030_v52  ;;  %v6031_v13 = vadd.f32 1e-05, %v6015_v14 }
 0xe73   : > { %v5988_v4 = vpop.xlane.xlu1 %5987 }
 0xe74   : > { %9329 = vrsqrt.f32 %v6031_v13  ;;  %v6016_v10 = vmul.f32 0.0078125, %v5988_v4 }
 0xe76   : > { %v6032_v42 = vadd.f32 1e-05, %v6016_v10 }
 0xe78   : > { %9331 = vrsqrt.f32 %v6032_v42 }
 0xe7a   : > { %v9326_v15 = vpop.eup %9325 }
 0xe7b   : > { %v6061_v0 = vmul.f32 %v9326_v15, %v12586_v9 }
 0xe7c   : > { %v9328_v30 = vpop.eup %9327 }
 0xe7d   : > { %v6062_v17 = vmul.f32 %v9328_v30, %v12589_v47  ;;  %v6083_v39 = vmul.f32 %v12699_v32, %v6061_v0 }
 0xe7e   : > { %v9330_v49 = vpop.eup %9329 }
 0xe7f   : > { %v6084_v16 = vmul.f32 %v12699_v32, %v6062_v17  ;;  %v6105_v43 = vadd.f32 %v12706_v60, %v6083_v39  ;;  %v6063_v6 = vmul.f32 %v9330_v49, %v12598_v45  ;;  %v12723_v45 = vld [vmem:[%s10765_s21 + $0x80] sm:$0xff]  }
 0xe81   : > { %v6106_v9 = vadd.f32 %v12706_v60, %v6084_v16  ;;  %v6085_v51 = vmul.f32 %v12699_v32, %v6063_v6 }
 0xe82   : > { %v9332_v47 = vpop.eup %9331 }
 0xe83   : > { %v6121_v23 = vpack.c.bf16 %v6106_v9, %v6105_v43  ;;  %v6064_v46 = vmul.f32 %v9332_v47, %v12609_v56  ;;  %v12727_v56 = vld [vmem:[%s10765_s21 + $0xc8] sm:$0xff]   ;;  %v6107_v18 = vadd.f32 %v12706_v60, %v6085_v51 }
 0xe85   : > { %6376 = vmatmul.mubr.bf16.vlgmr.msra.gmra.mrb[152].mxu1 %v6121_v23  ;;  %6489 = vmatmul.mubr.bf16.vlgmr.msra.gmra.mrb[168].mxu0 %v6121_v23  ;;  %v6086_v11 = vmul.f32 %v12699_v32, %v6064_v46 }
 0xe86   : > { %6385 = vmatprep.mubr.bf16.mxu1 %v13536_v41  ;;  %6498 = vmatprep.mubr.bf16.mxu0 %v13536_v41 }
 0xe87   : > { %v6108_v21 = vadd.f32 %v12706_v60, %v6086_v11  ;;  %8142 = vmatpush3.bf16.msra.mxu1 %v9007_v22  ;;  %8206 = vmatpush3.bf16.msra.mxu0 %v12723_v45 }
 0xe88   : > { %8143 = vmatprep.subr.bf16.mxu1 %v9009_v31  ;;  %8207 = vmatprep.subr.bf16.mxu0 %v12727_v56 }
 0xe89   : > { %v6122_v50 = vpack.c.bf16 %v6108_v21, %v6107_v18 }
 0xe8b   : > { %8144 = vmatpush3.bf16.msra.mxu1 %v9011_v62  ;;  %8208 = vmatpush3.bf16.msra.mxu0 %v12734_v29 }
 0xe8d   : > { %6386 = vmatmul.mubr.bf16.gmra.mrb[156].mxu1 %v6122_v50  ;;  %6499 = vmatmul.mubr.bf16.gmra.mrb[172].mxu0 %v6122_v50 }
 0xe8e   : > { %6395 = vmatprep.mubr.bf16.mxu1 %v13536_v41  ;;  %6508 = vmatprep.mubr.bf16.mxu0 %v13536_v41 }
 0xe9a   : > { %v5990_v8 = vpop.xlane.xlu0 %5989 }
 0xe9b   : > { %v6017_v52 = vmul.f32 0.0078125, %v5990_v8 }
 0xe9c   : > { %v5992_v14 = vpop.xlane.xlu1 %5991 }
 0xe9d   : > { %v6033_v13 = vadd.f32 1e-05, %v6017_v52  ;;  %v6018_v4 = vmul.f32 0.0078125, %v5992_v14 }
 0xe9e   : > { %v5994_v10 = vpop.xlane.xlu0 %5993 }
 0xe9f   : > { %9333 = vrsqrt.f32 %v6033_v13  ;;  %v6034_v42 = vadd.f32 1e-05, %v6018_v4  ;;  %v6019_v15 = vmul.f32 0.0078125, %v5994_v10 }
 0xea0   : > { %v5996_v0 = vpop.xlane.xlu1 %5995 }
 0xea1   : > { %9335 = vrsqrt.f32 %v6034_v42  ;;  %v6035_v30 = vadd.f32 1e-05, %v6019_v15  ;;  %v6020_v17 = vmul.f32 0.0078125, %v5996_v0 }
 0xea3   : > { %9337 = vrsqrt.f32 %v6035_v30  ;;  %v6036_v39 = vadd.f32 1e-05, %v6020_v17 }
 0xea5   : > { %9339 = vrsqrt.f32 %v6036_v39 }
 0xea9   : > { %v9334_v49 = vpop.eup %9333 }
 0xeaa   : > { %v5998_v16 = vpop.xlane.xlu0 %5997  ;;  %v6065_v43 = vmul.f32 %v9334_v49, %v12638_v48 }
 0xeab   : > { %v9336_v9 = vpop.eup %9335  ;;  %v6021_v6 = vmul.f32 0.0078125, %v5998_v16 }
 0xeac   : > { %v6000_v47 = vpop.xlane.xlu1 %5999  ;;  %v6066_v23 = vmul.f32 %v9336_v9, %v12641_v35  ;;  %v6087_v46 = vmul.f32 %v12699_v32, %v6065_v43 }
 0xead   : > { %v9338_v51 = vpop.eup %9337  ;;  %v6037_v11 = vadd.f32 1e-05, %v6021_v6  ;;  %v6022_v25 = vmul.f32 0.0078125, %v6000_v47 }
 0xeae   : > { %v6002_v22 = vpop.xlane.xlu0 %6001  ;;  %v6088_v31 = vmul.f32 %v12699_v32, %v6066_v23  ;;  %v6109_v48 = vadd.f32 %v12706_v60, %v6087_v46  ;;  %v6067_v52 = vmul.f32 %v9338_v51, %v12646_v27 }
 0xeaf   : > { %v9340_v21 = vpop.eup %9339  ;;  %9341 = vrsqrt.f32 %v6037_v11  ;;  %v6038_v62 = vadd.f32 1e-05, %v6022_v25  ;;  %v6023_v18 = vmul.f32 0.0078125, %v6002_v22  ;;  %v9013_v22 = vld [vmem:[%s10765_s21 + $0x50] sm:$0xff]  }
 0xeb0   : > { %v6004_v50 = vpop.xlane.xlu1 %6003  ;;  %v6110_v8 = vadd.f32 %v12706_v60, %v6088_v31  ;;  %v6068_v35 = vmul.f32 %v9340_v21, %v12651_v55  ;;  %v6089_v15 = vmul.f32 %v12699_v32, %v6067_v52  ;;  %v12775_v31 = vld [vmem:[%s10765_s21 + $0xd0] sm:$0xff]   ;;  %8145 = vmatprep.subr.bf16.mxu1 %v9013_v22  ;;  %v12830_v22 = vld [vmem:[%s10765_s21 + $0xb8] sm:$0xff]  }
 0xeb1   : > { %9343 = vrsqrt.f32 %v6038_v62  ;;  %v6039_v14 = vadd.f32 1e-05, %v6023_v18  ;;  %v6024_v13 = vmul.f32 0.0078125, %v6004_v50  ;;  %8209 = vmatprep.subr.bf16.mxu0 %v12775_v31  ;;  %v9015_v21 = vld [vmem:[%s10765_s21 + $0x10] sm:$0xff]   ;;  %v9017_v18 = vld [vmem:[%s10765_s21 + $0x58] sm:$0xff]  }
 0xeb2   : > { %v6123_v4 = vpack.c.bf16 %v6110_v8, %v6109_v48  ;;  %v6090_v10 = vmul.f32 %v12699_v32, %v6068_v35  ;;  %v6111_v55 = vadd.f32 %v12706_v60, %v6089_v15  ;;  %v12780_v62 = vld [vmem:[%s10765_s21 + $0x90] sm:$0xff]   ;;  %8146 = vmatpush3.bf16.msra.mxu1 %v9015_v21  ;;  %v12785_v50 = vld [vmem:[%s10765_s21 + $0xd8] sm:$0xff]  }
 0xeb3   : > { %9345 = vrsqrt.f32 %v6039_v14  ;;  %v6040_v42 = vadd.f32 1e-05, %v6024_v13  ;;  %8210 = vmatpush3.bf16.msra.mxu0 %v12780_v62  ;;  %v9019_v48 = vld [vmem:[%s10765_s21 + $0x18] sm:$0xff]   ;;  %8147 = vmatprep.subr.bf16.mxu1 %v9017_v18  ;;  %v9021_v14 = vld [vmem:[%s10765_s21 + $0x60] sm:$0xff]  }
 0xeb4   : > { %6396 = vmatmul.mubr.bf16.gmra.mrb[160].mxu1 %v6123_v4  ;;  %6509 = vmatmul.mubr.bf16.gmra.mrb[176].mxu0 %v6123_v4  ;;  %v6112_v27 = vadd.f32 %v12706_v60, %v6090_v10  ;;  %v12789_v8 = vld [vmem:[%s10765_s21 + $0x98] sm:$0xff]   ;;  %v12795_v13 = vld [vmem:[%s10765_s21 + $0xe0] sm:$0xff]  }
 0xeb5   : > { %9347 = vrsqrt.f32 %v6040_v42  ;;  %6405 = vmatprep.mubr.bf16.mxu1 %v13536_v41  ;;  %6518 = vmatprep.mubr.bf16.mxu0 %v13536_v41 }
 0xeb6   : > { %v6124_v30 = vpack.c.bf16 %v6112_v27, %v6111_v55  ;;  %8211 = vmatprep.subr.bf16.mxu0 %v12785_v50  ;;  %8148 = vmatpush3.bf16.msra.mxu1 %v9019_v48  ;;  %v9023_v27 = vld [vmem:[%s10765_s21 + $0x20] sm:$0xff]  }
 0xeb7   : > { %8212 = vmatpush3.bf16.msra.mxu0 %v12789_v8  ;;  %8149 = vmatprep.subr.bf16.mxu1 %v9021_v14  ;;  %v12800_v55 = vld [vmem:[%s10765_s21 + $0xa0] sm:$0xff]  }
 0xeb8   : > { %8213 = vmatprep.subr.bf16.mxu0 %v12795_v13 }
 0xeb9   : > { %v9342_v0 = vpop.eup %9341 }
 0xeba   : > { %v6069_v17 = vmul.f32 %v9342_v0, %v12658_v28  ;;  %8150 = vmatpush3.bf16.msra.mxu1 %v9023_v27 }
 0xebb   : > { %v9344_v39 = vpop.eup %9343  ;;  %8214 = vmatpush3.bf16.msra.mxu0 %v12800_v55 }
 0xebc   : > { %6406 = vmatmul.mubr.bf16.gmra.mrb[164].mxu1 %v6124_v30  ;;  %6519 = vmatmul.mubr.bf16.gmra.mrb[180].mxu0 %v6124_v30  ;;  %v6070_v49 = vmul.f32 %v9344_v39, %v12661_v44  ;;  %v6091_v16 = vmul.f32 %v12699_v32, %v6069_v17 }
 0xebd   : > { %v9346_v43 = vpop.eup %9345  ;;  %6415 = vmatprep.mubr.bf16.mxu1 %v13536_v41  ;;  %6528 = vmatprep.mubr.bf16.mxu0 %v13536_v41 }
 0xebe   : > { %v6092_v9 = vmul.f32 %v12699_v32, %v6070_v49  ;;  %v6113_v47 = vadd.f32 %v12706_v60, %v6091_v16  ;;  %v6071_v28 = vmul.f32 %v9346_v43, %v12666_v34  ;;  %v9025_v16 = vld [vmem:[%s10765_s21 + $0x68] sm:$0xff]  }
 0xebf   : > { %v9348_v6 = vpop.eup %9347  ;;  %v12805_v43 = vld [vmem:[%s10765_s21 + $0xe8] sm:$0xff]   ;;  %8151 = vmatprep.subr.bf16.mxu1 %v9025_v16 }
 0xec0   : > { %v6114_v23 = vadd.f32 %v12706_v60, %v6092_v9  ;;  %v6072_v46 = vmul.f32 %v9348_v6, %v12671_v12  ;;  %v6093_v11 = vmul.f32 %v12699_v32, %v6071_v28  ;;  %v9027_v9 = vld [vmem:[%s10765_s21 + $0x28] sm:$0xff]   ;;  %8215 = vmatprep.subr.bf16.mxu0 %v12805_v43  ;;  %v12815_v28 = vld [vmem:[%s10765_s21 + $0xf0] sm:$0xff]  }
 0xec1   : > { %v12809_v6 = vld [vmem:[%s10765_s21 + $0xa8] sm:$0xff]   ;;  %8152 = vmatpush3.bf16.msra.mxu1 %v9027_v9 }
 0xec2   : > { %v6125_v44 = vpack.c.bf16 %v6114_v23, %v6113_v47  ;;  %v6094_v51 = vmul.f32 %v12699_v32, %v6072_v46  ;;  %v6115_v12 = vadd.f32 %v12706_v60, %v6093_v11  ;;  %8216 = vmatpush3.bf16.msra.mxu0 %v12809_v6  ;;  %v9029_v23 = vld [vmem:[%s10765_s21 + $0x70] sm:$0xff]   ;;  %v9033_v11 = vld [vmem:[%s10765_s21 + $0x78] sm:$0xff]  }
 0xec3   : > { %v9031_v46 = vld [vmem:[%s10765_s21 + $0x30] sm:$0xff]   ;;  %8153 = vmatprep.subr.bf16.mxu1 %v9029_v23  ;;  %8217 = vmatprep.subr.bf16.mxu0 %v12815_v28 }
 0xec4   : > { %6416 = vmatmul.mubr.bf16.gmra.mrb[168].mxu1 %v6125_v44  ;;  %6529 = vmatmul.mubr.bf16.gmra.mrb[184].mxu0 %v6125_v44  ;;  %v6116_v34 = vadd.f32 %v12706_v60, %v6094_v51  ;;  %v12819_v44 = vld [vmem:[%s10765_s21 + $0xb0] sm:$0xff]  }
 0xec5   : > { %6425 = vmatprep.mubr.bf16.mxu1 %v13536_v41  ;;  %6538 = vmatprep.mubr.bf16.mxu0 %v13536_v41 }
 0xec6   : > { %v6126_v25 = vpack.c.bf16 %v6116_v34, %v6115_v12  ;;  %8154 = vmatpush3.bf16.msra.mxu1 %v9031_v46  ;;  %8218 = vmatpush3.bf16.msra.mxu0 %v12819_v44  ;;  %v12825_v34 = vld [vmem:[%s10765_s21 + $0xf8] sm:$0xff]  }
 0xec7   : > { %8155 = vmatprep.subr.bf16.mxu1 %v9033_v11  ;;  %8219 = vmatprep.subr.bf16.mxu0 %v12825_v34 }
 0xeca   : > { %8220 = vmatpush3.bf16.msra.mxu0 %v12830_v22 }
 0xecc   : > { %6426 = vmatmul.mubr.bf16.gmra.mrb[172].mxu1 %v6126_v25  ;;  %6539 = vmatmul.mubr.bf16.gmra.mrb[188].mxu0 %v6126_v25  ;;  %v9035_v25 = vld [vmem:[%s10765_s21 + $0x38] sm:$0xff]  }
 0xecd   : > { %6435 = vmatprep.mubr.bf16.mxu1 %v13536_v41  ;;  %6548 = vmatprep.mubr.bf16.mxu0 %v13536_v41 }
 0xece   : > { %8156 = vmatpush3.bf16.msra.mxu1 %v9035_v25 }
 0xecf   : > { %8717 = vmatprep.subr.bf16.mxu1 %v12717_v33 }
 0xee3   : > { %v6006_v52 = vpop.xlane.xlu0 %6005 }
 0xee4   : > { %v6025_v35 = vmul.f32 0.0078125, %v6006_v52 }
 0xee5   : > { %v6008_v4 = vpop.xlane.xlu1 %6007 }
 0xee6   : > { %v6041_v10 = vadd.f32 1e-05, %v6025_v35  ;;  %v6026_v42 = vmul.f32 0.0078125, %v6008_v4 }
 0xee7   : > { %v6010_v15 = vpop.xlane.xlu0 %6009 }
 0xee8   : > { %9349 = vrsqrt.f32 %v6041_v10  ;;  %v6042_v0 = vadd.f32 1e-05, %v6026_v42  ;;  %v6027_v30 = vmul.f32 0.0078125, %v6010_v15 }
 0xee9   : > { %v6012_v17 = vpop.xlane.xlu1 %6011 }
 0xeea   : > { %9351 = vrsqrt.f32 %v6042_v0  ;;  %v6043_v39 = vadd.f32 1e-05, %v6027_v30  ;;  %v6028_v49 = vmul.f32 0.0078125, %v6012_v17 }
 0xeec   : > { %9353 = vrsqrt.f32 %v6043_v39  ;;  %v6044_v47 = vadd.f32 1e-05, %v6028_v49 }
 0xeee   : > { %9355 = vrsqrt.f32 %v6044_v47 }
 0xef2   : > { %v9350_v51 = vpop.eup %9349 }
 0xef3   : > { %v6073_v12 = vmul.f32 %v9350_v51, %v12678_v61 }
 0xef4   : > { %v9352_v21 = vpop.eup %9351 }
 0xef5   : > { %v6074_v18 = vmul.f32 %v9352_v21, %v12681_v20  ;;  %v6095_v48 = vmul.f32 %v12699_v32, %v6073_v12 }
 0xef6   : > { %v9354_v52 = vpop.eup %9353 }
 0xef7   : > { %v6096_v35 = vmul.f32 %v12699_v32, %v6074_v18  ;;  %v6117_v14 = vadd.f32 %v12706_v60, %v6095_v48  ;;  %v6075_v10 = vmul.f32 %v9354_v52, %v12686_v1  ;;  %v6161_v1 = vld [vmem:[%s10762_s10] sm:$0xf] }
 0xef8   : > { %v9356_v61 = vpop.eup %9355 }
 0xef9   : > { %v6118_v4 = vadd.f32 %v12706_v60, %v6096_v35  ;;  %v6076_v20 = vmul.f32 %v9356_v61, %v12691_v58  ;;  %v6097_v27 = vmul.f32 %v12699_v32, %v6075_v10  ;;  %v13568_v58 = vld [vmem:[#allocation46_spill] sm:$0xff] }
 0xefa   : > { %v6177_v17 = vsub.s32 3, %v13568_v58  ;;  %v13569_v39 = vsub.s32 0, %v13568_v58 }
 0xefb   : > { %v6127_v42 = vpack.c.bf16 %v6118_v4, %v6117_v14  ;;  %v6098_v15 = vmul.f32 %v12699_v32, %v6076_v20  ;;  %v6119_v0 = vadd.f32 %v12706_v60, %v6097_v27  ;;  %v13570_v32 = vsub.s32 2, %v13568_v58 }
 0xefc   : > { %v12852_v49 = vrot.slane %v6161_v1, %v13569_v39  ;;  %v12862_v47 = vrot.slane %v6161_v1, %v6177_v17 }
 0xefd   : > { %6436 = vmatmul.mubr.bf16.gmra.mrb[176].mxu1 %v6127_v42  ;;  %6549 = vmatmul.mubr.bf16.gmra.mrb[192].mxu0 %v6127_v42  ;;  %v6120_v33 = vadd.f32 %v12706_v60, %v6098_v15  ;;  %v12856_v16 = vrot.slane %v6161_v1, %v13570_v32 }
 0xefe   : > { %6445 = vmatprep.mubr.bf16.mxu1 %v13536_v41  ;;  %6558 = vmatprep.mubr.bf16.mxu0 %v13536_v41  ;;  %v13571_v41 = vsub.s32 1, %v13568_v58 }
 0xeff   : > { %v6128_v30 = vpack.c.bf16 %v6120_v33, %v6119_v0 }
 0xf00   : > { %v12860_v9 = vrot.slane %v6161_v1, %v13571_v41 }
 0xf05   : > { %6446 = vmatmul.mubr.bf16.gmra.mrb[180].mxu1 %v6128_v30  ;;  %6559 = vmatmul.mubr.bf16.gmra.mrb[196].mxu0 %v6128_v30 }
 0xf58   : > { %v6377_v60 = vpop.f32.mrb[152].mxu1  ;;  %v6490_v23 = vpop.f32.mrb[168].mxu0 }
 0xf59   : > { %v6378_v46 = vadd.f32 %v6377_v60, %v12852_v49  ;;  %v6491_v51 = vadd.f32 %v6490_v23, %v12856_v16  ;;  %v6379_v11 = vpop.f32.mrb[153].mxu1  ;;  %v6492_v12 = vpop.f32.mrb[169].mxu0 }
 0xf5a   : > { %v6380_v25 = vadd.f32 %v6379_v11, %v12860_v9  ;;  %v6493_v21 = vadd.f32 %v6492_v12, %v12862_v47  ;;  %v6381_v18 = vpop.f32.mrb[154].mxu1  ;;  %v6494_v48 = vpop.f32.mrb[170].mxu0 }
 0xf5b   : > { %v6633_v52 = vmul.f32 0.70710677, %v6378_v46  ;;  %v6635_v35 = vmul.f32 0.70710677, %v6491_v51  ;;  %v6382_v4 = vadd.f32 %v6381_v18, %v12852_v49  ;;  %v12870_v10 = vadd.f32 %v6494_v48, %v12856_v16  ;;  %v6383_v20 = vpop.f32.mrb[155].mxu1  ;;  %v6496_v42 = vpop.f32.mrb[171].mxu0 }
 0xf5c   : > { %v6634_v61 = vmul.f32 0.70710677, %v6380_v25  ;;  %v6636_v14 = vmul.f32 0.70710677, %v6493_v21  ;;  %v6384_v15 = vadd.f32 %v6383_v20, %v12860_v9  ;;  %v12874_v27 = vadd.f32 %v6496_v42, %v12862_v47 }
 0xf5d   : > { %9357 = verf.f32 %v6633_v52  ;;  %v6637_v33 = vmul.f32 0.70710677, %v6382_v4  ;;  %v6639_v0 = vmul.f32 0.70710677, %v12870_v10  ;;  %v6571_v57 = vmul.f32 0.5, %v6491_v51 }
 0xf5e   : > { %9359 = verf.f32 %v6635_v35  ;;  %v6638_v30 = vmul.f32 0.70710677, %v6384_v15  ;;  %v6640_v58 = vmul.f32 0.70710677, %v12874_v27  ;;  %v6570_v36 = vmul.f32 0.5, %v6380_v25 }
 0xf5f   : > { %9361 = verf.f32 %v6634_v61  ;;  %v6572_v24 = vmul.f32 0.5, %v6493_v21  ;;  %v6575_v3 = vmul.f32 0.5, %v12870_v10  ;;  %v6574_v25 = vmul.f32 0.5, %v6384_v15 }
 0xf60   : > { %9363 = verf.f32 %v6636_v14  ;;  %v6387_v1 = vpop.f32.mrb[156].mxu1  ;;  %v6500_v39 = vpop.f32.mrb[172].mxu0 }
 0xf61   : > { %9365 = verf.f32 %v6637_v33  ;;  %v12879_v17 = vadd.f32 %v6387_v1, %v12852_v49  ;;  %v6389_v32 = vpop.f32.mrb[157].mxu1  ;;  %v12882_v41 = vadd.f32 %v6500_v39, %v12856_v16  ;;  %v6502_v23 = vpop.f32.mrb[173].mxu0 }
 0xf62   : > { %9367 = verf.f32 %v6639_v0  ;;  %v12885_v60 = vadd.f32 %v6389_v32, %v12860_v9  ;;  %v6391_v11 = vpop.f32.mrb[158].mxu1  ;;  %v12889_v18 = vadd.f32 %v6502_v23, %v12862_v47  ;;  %v6504_v48 = vpop.f32.mrb[174].mxu0  ;;  %v6569_v23 = vmul.f32 0.5, %v6378_v46 }
 0xf63   : > { %9369 = verf.f32 %v6638_v30  ;;  %v6641_v12 = vmul.f32 0.70710677, %v12879_v17  ;;  %v6393_v52 = vpop.f32.mrb[159].mxu1  ;;  %v6643_v35 = vmul.f32 0.70710677, %v12882_v41  ;;  %v6506_v61 = vpop.f32.mrb[175].mxu0  ;;  %v6392_v42 = vadd.f32 %v6391_v11, %v12852_v49 }
 0xf64   : > { %9371 = verf.f32 %v6640_v58  ;;  %v6642_v14 = vmul.f32 0.70710677, %v12885_v60  ;;  %v6644_v20 = vmul.f32 0.70710677, %v12889_v18  ;;  %v12896_v33 = vadd.f32 %v6504_v48, %v12856_v16 }
 0xf65   : > { %9373 = verf.f32 %v6641_v12  ;;  %v12899_v0 = vadd.f32 %v6393_v52, %v12860_v9  ;;  %v6645_v58 = vmul.f32 0.70710677, %v6392_v42  ;;  %v12902_v39 = vadd.f32 %v6506_v61, %v12862_v47 }
 0xf66   : > { %9375 = verf.f32 %v6643_v35  ;;  %v6647_v11 = vmul.f32 0.70710677, %v12896_v33 }
 0xf67   : > { %v9358_v30 = vpop.eup %9357  ;;  %9377 = verf.f32 %v6642_v14  ;;  %v6646_v52 = vmul.f32 0.70710677, %v12899_v0  ;;  %v6573_v14 = vmul.f32 0.5, %v6382_v4  ;;  %v6648_v46 = vmul.f32 0.70710677, %v12902_v39 }
 0xf68   : > { %v9360_v1 = vpop.eup %9359  ;;  %9379 = verf.f32 %v6644_v20  ;;  %v6761_v48 = vadd.f32 1.0, %v9358_v30 }
 0xf69   : > { %v9362_v32 = vpop.eup %9361  ;;  %9381 = verf.f32 %v6645_v58  ;;  %v6763_v35 = vadd.f32 1.0, %v9360_v1  ;;  %v6576_v1 = vmul.f32 0.5, %v12874_v27 }
 0xf6a   : > { %v9364_v12 = vpop.eup %9363  ;;  %9383 = verf.f32 %v6647_v11  ;;  %v6762_v61 = vadd.f32 1.0, %v9362_v32  ;;  %v6825_v59 = vmul.f32 %v6761_v48, %v6569_v23 }
 0xf6b   : > { %v9366_v54 = vpop.eup %9365  ;;  %9385 = verf.f32 %v6646_v52  ;;  %v6764_v20 = vadd.f32 1.0, %v9364_v12  ;;  %v6827_v21 = vmul.f32 %v6763_v35, %v6571_v57  ;;  %v6577_v57 = vmul.f32 0.5, %v12879_v17 }
 0xf6c   : > { %v9368_v53 = vpop.eup %9367  ;;  %v6765_v38 = vadd.f32 1.0, %v9366_v54  ;;  %9387 = verf.f32 %v6648_v46  ;;  %v6826_v11 = vmul.f32 %v6762_v61, %v6570_v36  ;;  %v6579_v35 = vmul.f32 0.5, %v12882_v41 }
 0xf6d   : > { %v9370_v51 = vpop.eup %9369  ;;  %v6767_v30 = vadd.f32 1.0, %v9368_v53  ;;  %v6828_v12 = vmul.f32 %v6764_v20, %v6572_v24  ;;  %v6578_v24 = vmul.f32 0.5, %v12885_v60  ;;  %v6582_v61 = vmul.f32 0.5, %v12899_v0 }
 0xf6e   : > { %v9372_v58 = vpop.eup %9371  ;;  %v6829_v19 = vmul.f32 %v6765_v38, %v6573_v14  ;;  %v6766_v26 = vadd.f32 1.0, %v9370_v51  ;;  %v6580_v20 = vmul.f32 0.5, %v12889_v18  ;;  %v6584_v60 = vmul.f32 0.5, %v12902_v39 }
 0xf6f   : > { %v6831_v4 = vmul.f32 %v6767_v30, %v6575_v3  ;;  %v6768_v32 = vadd.f32 1.0, %v9372_v58  ;;  %v9374_v54 = vpop.eup %9373 }
 0xf70   : > { %v6889_v52 = vpack.c.bf16 %v6829_v19, %v6825_v59  ;;  %v6830_v7 = vmul.f32 %v6766_v26, %v6574_v25  ;;  %v9376_v40 = vpop.eup %9375  ;;  %v6769_v23 = vadd.f32 1.0, %v9374_v54  ;;  %v6581_v19 = vmul.f32 0.5, %v6392_v42 }
 0xf71   : > { %v6891_v63 = vpack.c.bf16 %v6831_v4, %v6827_v21  ;;  %v6832_v10 = vmul.f32 %v6768_v32, %v6576_v1  ;;  %v9378_v53 = vpop.eup %9377  ;;  %v6771_v3 = vadd.f32 1.0, %v9376_v40 }
 0xf72   : > { %v6890_v15 = vpack.c.bf16 %v6830_v7, %v6826_v11  ;;  %v9380_v2 = vpop.eup %9379  ;;  %v6770_v36 = vadd.f32 1.0, %v9378_v53  ;;  %v6583_v7 = vmul.f32 0.5, %v12896_v33  ;;  %v6833_v40 = vmul.f32 %v6769_v23, %v6577_v57 }
 0xf73   : > { %v6892_v38 = vpack.c.bf16 %v6832_v10, %v6828_v12  ;;  %v9382_v48 = vpop.eup %9381  ;;  %v6772_v17 = vadd.f32 1.0, %v9380_v2  ;;  %v6835_v51 = vmul.f32 %v6771_v3, %v6579_v35 }
 0xf74   : > { %7216 = vmatprep.mubr.bf16.mxu1 %v6890_v15  ;;  %v9384_v27 = vpop.eup %9383  ;;  %v6773_v26 = vadd.f32 1.0, %v9382_v48  ;;  %v6834_v33 = vmul.f32 %v6770_v36, %v6578_v24 }
 0xf75   : > { %7313 = vmatprep.mubr.bf16.mxu0 %v6892_v38  ;;  %7217 = vmatmul.mubr.bf16.vlgmr.msra.gmra.mrb[184].mxu1 %v6889_v52  ;;  %v9386_v59 = vpop.eup %9385  ;;  %v6775_v14 = vadd.f32 1.0, %v9384_v27 }
 0xf76   : > { %7314 = vmatmul.mubr.bf16.vlgmr.msra.gmra.mrb[200].mxu0 %v6891_v63  ;;  %8725 = vmatpush3.bf16.msra.mxu1 %v12723_v45  ;;  %v6837_v46 = vmul.f32 %v6773_v26, %v6581_v19  ;;  %v6774_v41 = vadd.f32 1.0, %v9386_v59  ;;  %v9388_v42 = vpop.eup %9387  ;;  %v6836_v45 = vmul.f32 %v6772_v17, %v6580_v20 }
 0xf77   : > { %8718 = vmatprep.subr.bf16.mxu1 %v12727_v56  ;;  %v6839_v30 = vmul.f32 %v6775_v14, %v6583_v7  ;;  %v6776_v58 = vadd.f32 1.0, %v9388_v42 }
 0xf78   : > { %v6838_v25 = vmul.f32 %v6774_v41, %v6582_v61  ;;  %v6893_v0 = vpack.c.bf16 %v6837_v46, %v6833_v40 }
 0xf79   : > { %v6895_v63 = vpack.c.bf16 %v6839_v30, %v6835_v51  ;;  %v6840_v2 = vmul.f32 %v6776_v58, %v6584_v60 }
 0xf7a   : > { %8726 = vmatpush3.bf16.msra.mxu1 %v12734_v29  ;;  %v6894_v21 = vpack.c.bf16 %v6838_v25, %v6834_v33 }
 0xf7b   : > { %8719 = vmatprep.subr.bf16.mxu1 %v12775_v31  ;;  %v6896_v56 = vpack.c.bf16 %v6840_v2, %v6836_v45 }
 0xf7c   : > { %7224 = vmatprep.mubr.bf16.mxu1 %v6894_v21 }
 0xf7d   : > { %7225 = vmatmul.mubr.bf16.gmra.mrb[188].mxu1 %v6893_v0  ;;  %7321 = vmatprep.mubr.bf16.mxu0 %v6896_v56 }
 0xf7e   : > { %8727 = vmatpush3.bf16.msra.mxu1 %v12780_v62  ;;  %7322 = vmatmul.mubr.bf16.gmra.mrb[204].mxu0 %v6895_v63 }
 0xf7f   : > { %8720 = vmatprep.subr.bf16.mxu1 %v12785_v50 }
 0xf82   : > { %8728 = vmatpush3.bf16.msra.mxu1 %v12789_v8 }
 0xf83   : > { %8721 = vmatprep.subr.bf16.mxu1 %v12795_v13 }
 0xf86   : > { %8729 = vmatpush3.bf16.msra.mxu1 %v12800_v55 }
 0xf87   : > { %v6397_v18 = vpop.f32.mrb[160].mxu1  ;;  %v6510_v29 = vpop.f32.mrb[176].mxu0  ;;  %8722 = vmatprep.subr.bf16.mxu1 %v12805_v43 }
 0xf88   : > { %v6398_v39 = vadd.f32 %v6397_v18, %v12852_v49  ;;  %v6511_v31 = vadd.f32 %v6510_v29, %v12856_v16  ;;  %v6399_v4 = vpop.f32.mrb[161].mxu1  ;;  %v6512_v1 = vpop.f32.mrb[177].mxu0 }
 0xf89   : > { %v6400_v62 = vadd.f32 %v6399_v4, %v12860_v9  ;;  %v6513_v50 = vadd.f32 %v6512_v1, %v12862_v47  ;;  %v6401_v32 = vpop.f32.mrb[162].mxu1  ;;  %v6514_v8 = vpop.f32.mrb[178].mxu0 }
 0xf8a   : > { %v6649_v54 = vmul.f32 0.70710677, %v6398_v39  ;;  %v6651_v13 = vmul.f32 0.70710677, %v6511_v31  ;;  %8730 = vmatpush3.bf16.msra.mxu1 %v12809_v6  ;;  %v6402_v55 = vadd.f32 %v6401_v32, %v12852_v49  ;;  %v6515_v12 = vadd.f32 %v6514_v8, %v12856_v16  ;;  %v6403_v10 = vpop.f32.mrb[163].mxu1  ;;  %v6516_v53 = vpop.f32.mrb[179].mxu0 }
 0xf8b   : > { %v6650_v11 = vmul.f32 0.70710677, %v6400_v62  ;;  %v6652_v52 = vmul.f32 0.70710677, %v6513_v50  ;;  %8723 = vmatprep.subr.bf16.mxu1 %v12815_v28  ;;  %v6404_v43 = vadd.f32 %v6403_v10, %v12860_v9  ;;  %v6517_v15 = vadd.f32 %v6516_v53, %v12862_v47 }
 0xf8c   : > { %9389 = verf.f32 %v6649_v54  ;;  %v6653_v23 = vmul.f32 0.70710677, %v6402_v55  ;;  %v6655_v38 = vmul.f32 0.70710677, %v6515_v12  ;;  %v6585_v40 = vmul.f32 0.5, %v6398_v39 }
 0xf8d   : > { %9391 = verf.f32 %v6651_v13  ;;  %v6654_v48 = vmul.f32 0.70710677, %v6404_v43  ;;  %v6656_v57 = vmul.f32 0.70710677, %v6517_v15  ;;  %v6587_v20 = vmul.f32 0.5, %v6511_v31 }
 0xf8e   : > { %9393 = verf.f32 %v6650_v11  ;;  %8731 = vmatpush3.bf16.msra.mxu1 %v12819_v44  ;;  %v6586_v30 = vmul.f32 0.5, %v6400_v62  ;;  %v6588_v60 = vmul.f32 0.5, %v6513_v50  ;;  %v6589_v25 = vmul.f32 0.5, %v6402_v55 }
 0xf8f   : > { %9395 = verf.f32 %v6652_v52  ;;  %v6407_v6 = vpop.f32.mrb[164].mxu1  ;;  %v6520_v27 = vpop.f32.mrb[180].mxu0  ;;  %8724 = vmatprep.subr.bf16.mxu1 %v12825_v34  ;;  %v12946_v58 = vmul.f32 0.5, %v6515_v12  ;;  %v12949_v21 = vmul.f32 0.5, %v6404_v43  ;;  %v12951_v56 = vmul.f32 0.5, %v6517_v15 }
 0xf90   : > { %9397 = verf.f32 %v6653_v23  ;;  %v6408_v3 = vadd.f32 %v6407_v6, %v12852_v49  ;;  %v6409_v35 = vpop.f32.mrb[165].mxu1  ;;  %v6521_v28 = vadd.f32 %v6520_v27, %v12856_v16  ;;  %v6522_v19 = vpop.f32.mrb[181].mxu0 }
 0xf91   : > { %9399 = verf.f32 %v6655_v38  ;;  %v6410_v36 = vadd.f32 %v6409_v35, %v12860_v9  ;;  %v6411_v26 = vpop.f32.mrb[166].mxu1  ;;  %v6523_v24 = vadd.f32 %v6522_v19, %v12862_v47  ;;  %v6524_v44 = vpop.f32.mrb[182].mxu0 }
 0xf92   : > { %9401 = verf.f32 %v6654_v48  ;;  %v6657_v59 = vmul.f32 0.70710677, %v6408_v3  ;;  %v6413_v7 = vpop.f32.mrb[167].mxu1  ;;  %v6659_v14 = vmul.f32 0.70710677, %v6521_v28  ;;  %v6526_v61 = vpop.f32.mrb[183].mxu0  ;;  %8732 = vmatpush3.bf16.msra.mxu1 %v12830_v22  ;;  %v6412_v46 = vadd.f32 %v6411_v26, %v12852_v49 }
 0xf93   : > { %9403 = verf.f32 %v6656_v57  ;;  %v6658_v34 = vmul.f32 0.70710677, %v6410_v36  ;;  %v6660_v17 = vmul.f32 0.70710677, %v6523_v24  ;;  %v6525_v41 = vadd.f32 %v6524_v44, %v12856_v16 }
 0xf94   : > { %9405 = verf.f32 %v6657_v59  ;;  %v6414_v42 = vadd.f32 %v6413_v7, %v12860_v9  ;;  %v6661_v22 = vmul.f32 0.70710677, %v6412_v46  ;;  %v6527_v0 = vadd.f32 %v6526_v61, %v12862_v47 }
 0xf95   : > { %9407 = verf.f32 %v6659_v14  ;;  %v6663_v18 = vmul.f32 0.70710677, %v6525_v41  ;;  %v12953_v31 = vmul.f32 0.5, %v6408_v3  ;;  %v12955_v4 = vmul.f32 0.5, %v6521_v28 }
 0xf96   : > { %v9390_v51 = vpop.eup %9389  ;;  %9409 = verf.f32 %v6658_v34  ;;  %v6662_v1 = vmul.f32 0.70710677, %v6414_v42  ;;  %v12957_v54 = vmul.f32 0.5, %v6410_v36  ;;  %v12959_v13 = vmul.f32 0.5, %v6523_v24 }
 0xf97   : > { %v9392_v33 = vpop.eup %9391  ;;  %v6417_v63 = vpop.f32.mrb[168].mxu1  ;;  %9411 = verf.f32 %v6660_v17  ;;  %v6777_v8 = vadd.f32 1.0, %v9390_v51  ;;  %v6664_v53 = vmul.f32 0.70710677, %v6527_v0  ;;  %v12965_v3 = vmul.f32 0.5, %v6412_v46 }
 0xf98   : > { %v6530_v45 = vpop.f32.mrb[184].mxu0  ;;  %v9394_v2 = vpop.eup %9393  ;;  %9413 = verf.f32 %v6661_v22  ;;  %v6779_v12 = vadd.f32 1.0, %v9392_v33  ;;  %v6418_v48 = vadd.f32 %v6417_v63, %v12852_v49  ;;  %v12967_v27 = vmul.f32 0.5, %v6525_v41 }
 0xf99   : > { %v6419_v29 = vpop.f32.mrb[169].mxu1  ;;  %v9396_v39 = vpop.eup %9395  ;;  %9415 = verf.f32 %v6663_v18  ;;  %v6778_v10 = vadd.f32 1.0, %v9394_v2  ;;  %v6531_v6 = vadd.f32 %v6530_v45, %v12856_v16  ;;  %v12970_v36 = vmul.f32 %v6777_v8, %v6585_v40 }
 0xf9a   : > { %v6532_v62 = vpop.f32.mrb[185].mxu0  ;;  %v6421_v50 = vpop.f32.mrb[170].mxu1  ;;  %9417 = verf.f32 %v6662_v1  ;;  %v6780_v23 = vadd.f32 1.0, %v9396_v39  ;;  %v6420_v35 = vadd.f32 %v6419_v29, %v12860_v9  ;;  %v12972_v26 = vmul.f32 0.5, %v6414_v42 }
 0xf9b   : > { %v9398_v32 = vpop.eup %9397  ;;  %v6534_v11 = vpop.f32.mrb[186].mxu0  ;;  %9419 = verf.f32 %v6664_v53  ;;  %v6665_v59 = vmul.f32 0.70710677, %v6418_v48  ;;  %v12974_v44 = vmul.f32 %v6779_v12, %v6587_v20  ;;  %v12976_v7 = vmul.f32 %v6778_v10, %v6586_v30 }
 0xf9c   : > { %v6423_v52 = vpop.f32.mrb[171].mxu1  ;;  %v9400_v55 = vpop.eup %9399  ;;  %v6781_v38 = vadd.f32 1.0, %v9398_v32  ;;  %v12978_v14 = vmul.f32 0.5, %v6527_v0  ;;  %v6667_v61 = vmul.f32 0.70710677, %v6531_v6  ;;  %v12980_v41 = vmul.f32 %v6780_v23, %v6588_v60 }
 0xf9d   : > { %v12961_v43 = vpop.f32.mrb[187].mxu0  ;;  %v9402_v15 = vpop.eup %9401  ;;  %v6783_v19 = vadd.f32 1.0, %v9400_v55  ;;  %9421 = verf.f32 %v6665_v59  ;;  %v6666_v20 = vmul.f32 0.70710677, %v6420_v35  ;;  %v6422_v18 = vadd.f32 %v6421_v50, %v12852_v49 }
 0xf9e   : > { %v9404_v57 = vpop.eup %9403  ;;  %v12982_v51 = vmul.f32 %v6781_v38, %v6589_v25  ;;  %v6782_v40 = vadd.f32 1.0, %v9402_v15  ;;  %9423 = verf.f32 %v6667_v61  ;;  %v6533_v25 = vadd.f32 %v6532_v62, %v12862_v47 }
 0xf9f   : > { %v9406_v28 = vpop.eup %9405  ;;  %v6427_v34 = vpop.f32.mrb[172].mxu1  ;;  %v6784_v22 = vadd.f32 1.0, %v9404_v57  ;;  %v12989_v2 = vmul.f32 %v6783_v19, %v12946_v58  ;;  %9425 = verf.f32 %v6666_v20  ;;  %v6535_v8 = vadd.f32 %v6534_v11, %v12856_v16 }
 0xfa0   : > { %v9408_v24 = vpop.eup %9407  ;;  %v6540_v17 = vpop.f32.mrb[188].mxu0  ;;  %v6785_v63 = vadd.f32 1.0, %v9406_v28  ;;  %v6424_v55 = vadd.f32 %v6423_v52, %v12860_v9  ;;  %v6846_v58 = vmul.f32 %v6782_v40, %v12949_v21  ;;  %v6601_v10 = vmul.f32 0.5, %v6418_v48 }
 0xfa1   : > { %v9410_v46 = vpop.eup %9409  ;;  %v6429_v42 = vpop.f32.mrb[173].mxu1  ;;  %v6787_v60 = vadd.f32 1.0, %v9408_v24  ;;  %v13000_v53 = vmul.f32 0.5, %v6531_v6  ;;  %v6668_v62 = vmul.f32 0.70710677, %v6533_v25  ;;  %v6848_v50 = vmul.f32 %v6784_v22, %v12951_v56 }
 0xfa2   : > { %v6542_v33 = vpop.f32.mrb[189].mxu0  ;;  %v12984_v30 = vpop.f32.mrb[174].mxu1  ;;  %v6786_v32 = vadd.f32 1.0, %v9410_v46  ;;  %v13004_v23 = vmul.f32 %v6785_v63, %v12953_v31  ;;  %v13006_v38 = vmul.f32 0.5, %v6420_v35  ;;  %v6669_v57 = vmul.f32 0.70710677, %v6422_v18 }
 0xfa3   : > { %v12986_v0 = vpop.f32.mrb[190].mxu0  ;;  %v9412_v45 = vpop.eup %9411  ;;  %v13009_v11 = vmul.f32 %v6787_v60, %v12955_v4  ;;  %9427 = verf.f32 %v6668_v62  ;;  %v6671_v28 = vmul.f32 0.70710677, %v6535_v8  ;;  %v6670_v19 = vmul.f32 0.70710677, %v6424_v55 }
 0xfa4   : > { %v12993_v29 = vpop.f32.mrb[175].mxu1  ;;  %v12995_v39 = vpop.f32.mrb[191].mxu0  ;;  %v6788_v52 = vadd.f32 1.0, %v9412_v45  ;;  %v13012_v48 = vmul.f32 %v6786_v32, %v12957_v54  ;;  %9429 = verf.f32 %v6669_v57  ;;  %v6537_v31 = vadd.f32 %v12961_v43, %v12862_v47 }
 0xfa5   : > { %v9414_v1 = vpop.eup %9413  ;;  %9431 = verf.f32 %v6671_v28  ;;  %v13017_v4 = vadd.f32 %v6427_v34, %v12852_v49  ;;  %v13020_v35 = vadd.f32 %v6540_v17, %v12856_v16  ;;  %v13023_v24 = vadd.f32 %v6429_v42, %v12860_v9 }
 0xfa6   : > { %v9416_v12 = vpop.eup %9415  ;;  %v6789_v6 = vadd.f32 1.0, %v9414_v1  ;;  %9433 = verf.f32 %v6670_v19  ;;  %v13026_v61 = vmul.f32 %v6788_v52, %v12959_v13  ;;  %v6672_v40 = vmul.f32 0.70710677, %v6537_v31 }
 0xfa7   : > { %v9418_v15 = vpop.eup %9417  ;;  %v6791_v56 = vadd.f32 1.0, %v9416_v12  ;;  %v13029_v22 = vadd.f32 %v6542_v33, %v12862_v47  ;;  %v13031_v63 = vmul.f32 0.5, %v6533_v25  ;;  %v6605_v34 = vmul.f32 0.5, %v6422_v18 }
 0xfa8   : > { %v9420_v21 = vpop.eup %9419  ;;  %v6790_v59 = vadd.f32 1.0, %v9418_v15  ;;  %v6607_v20 = vmul.f32 0.5, %v6535_v8  ;;  %v6673_v17 = vmul.f32 0.70710677, %v13017_v4  ;;  %v13035_v45 = vmul.f32 %v6789_v6, %v12965_v3 }
 0xfa9   : > { %v9422_v54 = vpop.eup %9421  ;;  %v6792_v46 = vadd.f32 1.0, %v9420_v21  ;;  %v13038_v42 = vmul.f32 %v6791_v56, %v12967_v27  ;;  %9435 = verf.f32 %v6672_v40  ;;  %v6675_v13 = vmul.f32 0.70710677, %v13020_v35 }
 0xfaa   : > { %v9424_v43 = vpop.eup %9423  ;;  %v6854_v33 = vmul.f32 %v6790_v59, %v12972_v26  ;;  %v6793_v1 = vadd.f32 1.0, %v9422_v54  ;;  %v6606_v32 = vmul.f32 0.5, %v6424_v55  ;;  %v6674_v25 = vmul.f32 0.70710677, %v13023_v24 }
 0xfab   : > { %v9426_v60 = vpop.eup %9425  ;;  %v6856_v18 = vmul.f32 %v6792_v46, %v12978_v14  ;;  %v6795_v8 = vadd.f32 1.0, %v9424_v43  ;;  %v6608_v12 = vmul.f32 0.5, %v6537_v31  ;;  %v6676_v3 = vmul.f32 0.70710677, %v13029_v22 }
 0xfac   : > { %9437 = verf.f32 %v6673_v17  ;;  %v6898_v27 = vpack.c.bf16 %v6846_v58, %v12976_v7  ;;  %v6900_v62 = vpack.c.bf16 %v6848_v50, %v12980_v41  ;;  %v6432_v15 = vadd.f32 %v12984_v30, %v12852_v49 }
 0xfad   : > { %v9428_v57 = vpop.eup %9427  ;;  %v6794_v26 = vadd.f32 1.0, %v9426_v60  ;;  %9439 = verf.f32 %v6675_v13  ;;  %v6545_v55 = vadd.f32 %v12986_v0, %v12856_v16  ;;  %v6897_v14 = vpack.c.bf16 %v12982_v51, %v12970_v36 }
 0xfae   : > { %v9430_v52 = vpop.eup %9429  ;;  %v13053_v28 = vmul.f32 %v6793_v1, %v6601_v10  ;;  %9441 = verf.f32 %v6674_v25  ;;  %7232 = vmatprep.mubr.bf16.mxu1 %v6898_v27  ;;  %7329 = vmatprep.mubr.bf16.mxu0 %v6900_v62  ;;  %v6677_v7 = vmul.f32 0.70710677, %v6432_v15  ;;  %v6899_v41 = vpack.c.bf16 %v12989_v2, %v12974_v44 }
 0xfaf   : > { %v9432_v30 = vpop.eup %9431  ;;  %v6797_v58 = vadd.f32 1.0, %v9430_v52  ;;  %9443 = verf.f32 %v6676_v3  ;;  %v6679_v50 = vmul.f32 0.70710677, %v6545_v55  ;;  %7233 = vmatmul.mubr.bf16.gmra.mrb[192].mxu1 %v6897_v14  ;;  %v6434_v0 = vadd.f32 %v12993_v29, %v12860_v9 }
 0xfb0   : > { %v9434_v21 = vpop.eup %9433  ;;  %v13060_v36 = vmul.f32 %v6795_v8, %v13000_v53  ;;  %v6799_v51 = vadd.f32 1.0, %v9432_v30  ;;  %9445 = verf.f32 %v6677_v7  ;;  %7330 = vmatmul.mubr.bf16.gmra.mrb[208].mxu0 %v6899_v41  ;;  %v6547_v10 = vadd.f32 %v12995_v39, %v12862_v47 }
 0xfb1   : > { %v6858_v44 = vmul.f32 %v6794_v26, %v13006_v38  ;;  %v6861_v2 = vmul.f32 %v6797_v58, %v6605_v34  ;;  %v6798_v6 = vadd.f32 1.0, %v9434_v21  ;;  %9447 = verf.f32 %v6679_v50 }
 0xfb2   : > { %v6796_v19 = vadd.f32 1.0, %v9428_v57  ;;  %v6863_v56 = vmul.f32 %v6799_v51, %v6607_v20  ;;  %v6678_v59 = vmul.f32 0.70710677, %v6434_v0  ;;  %v6680_v31 = vmul.f32 0.70710677, %v6547_v10 }
 0xfb3   : > { %v9436_v29 = vpop.eup %9435  ;;  %v6862_v54 = vmul.f32 %v6798_v6, %v6606_v32  ;;  %v6902_v53 = vpack.c.bf16 %v6854_v33, %v13012_v48  ;;  %v6904_v46 = vpack.c.bf16 %v6856_v18, %v13026_v61  ;;  %v6901_v40 = vpack.c.bf16 %v13035_v45, %v13004_v23 }
 0xfb4   : > { %v6800_v43 = vadd.f32 1.0, %v9436_v29  ;;  %9449 = verf.f32 %v6678_v59  ;;  %v6903_v39 = vpack.c.bf16 %v13038_v42, %v13009_v11  ;;  %v6905_v38 = vpack.c.bf16 %v6861_v2, %v13053_v28 }
 0xfb5   : > { %9451 = verf.f32 %v6680_v31  ;;  %7240 = vmatprep.mubr.bf16.mxu1 %v6902_v53  ;;  %7337 = vmatprep.mubr.bf16.mxu0 %v6904_v46  ;;  %v6906_v34 = vpack.c.bf16 %v6862_v54, %v6858_v44  ;;  %v6907_v20 = vpack.c.bf16 %v6863_v56, %v13060_v36  ;;  %v6860_v48 = vmul.f32 %v6796_v19, %v13031_v63 }
 0xfb6   : > { %v9438_v17 = vpop.eup %9437  ;;  %v6864_v61 = vmul.f32 %v6800_v43, %v6608_v12  ;;  %v6609_v32 = vmul.f32 0.5, %v13017_v4  ;;  %v6613_v25 = vmul.f32 0.5, %v6432_v15  ;;  %v6611_v8 = vmul.f32 0.5, %v13020_v35 }
 0xfb7   : > { %v9440_v13 = vpop.eup %9439  ;;  %7241 = vmatmul.mubr.bf16.gmra.mrb[196].mxu1 %v6901_v40  ;;  %v6801_v11 = vadd.f32 1.0, %v9438_v17  ;;  %v6615_v63 = vmul.f32 0.5, %v6545_v55  ;;  %v6610_v7 = vmul.f32 0.5, %v13023_v24  ;;  %v6614_v41 = vmul.f32 0.5, %v6434_v0 }
 0xfb8   : > { %v9442_v23 = vpop.eup %9441  ;;  %7338 = vmatmul.mubr.bf16.gmra.mrb[212].mxu0 %v6903_v39  ;;  %7248 = vmatprep.mubr.bf16.mxu1 %v6906_v34  ;;  %v6908_v45 = vpack.c.bf16 %v6864_v61, %v6860_v48  ;;  %v6803_v33 = vadd.f32 1.0, %v9440_v13  ;;  %v6612_v15 = vmul.f32 0.5, %v13029_v22  ;;  %v6616_v58 = vmul.f32 0.5, %v6547_v10 }
 0xfb9   : > { %v9444_v60 = vpop.eup %9443  ;;  %v6865_v3 = vmul.f32 %v6801_v11, %v6609_v32  ;;  %v6802_v27 = vadd.f32 1.0, %v9442_v23 }
 0xfba   : > { %v9446_v42 = vpop.eup %9445  ;;  %7345 = vmatprep.mubr.bf16.mxu0 %v6908_v45  ;;  %v6867_v26 = vmul.f32 %v6803_v33, %v6611_v8  ;;  %v6804_v14 = vadd.f32 1.0, %v9444_v60 }
 0xfbb   : > { %v9448_v1 = vpop.eup %9447  ;;  %v6805_v18 = vadd.f32 1.0, %v9446_v42  ;;  %v6866_v50 = vmul.f32 %v6802_v27, %v6610_v7 }
 0xfbc   : > { %v6807_v12 = vadd.f32 1.0, %v9448_v1  ;;  %v6868_v36 = vmul.f32 %v6804_v14, %v6612_v15 }
 0xfbd   : > { %v6869_v62 = vmul.f32 %v6805_v18, %v6613_v25 }
 0xfbe   : > { %v9450_v57 = vpop.eup %9449  ;;  %v6871_v52 = vmul.f32 %v6807_v12, %v6615_v63 }
 0xfbf   : > { %v9452_v28 = vpop.eup %9451  ;;  %v6806_v30 = vadd.f32 1.0, %v9450_v57  ;;  %7249 = vmatmul.mubr.bf16.gmra.mrb[200].mxu1 %v6905_v38  ;;  %v6909_v4 = vpack.c.bf16 %v6869_v62, %v6865_v3 }
 0xfc0   : > { %v6808_v35 = vadd.f32 1.0, %v9452_v28  ;;  %7346 = vmatmul.mubr.bf16.gmra.mrb[216].mxu0 %v6907_v20  ;;  %v6911_v55 = vpack.c.bf16 %v6871_v52, %v6867_v26 }
 0xfc1   : > { %v6870_v21 = vmul.f32 %v6806_v30, %v6614_v41 }
 0xfc2   : > { %v6872_v51 = vmul.f32 %v6808_v35, %v6616_v58 }
 0xfc3   : > { %v6910_v44 = vpack.c.bf16 %v6870_v21, %v6866_v50 }
 0xfc4   : > { %v6912_v2 = vpack.c.bf16 %v6872_v51, %v6868_v36 }
 0xfc5   : > { %7256 = vmatprep.mubr.bf16.mxu1 %v6910_v44 }
 0xfc6   : > { %7353 = vmatprep.mubr.bf16.mxu0 %v6912_v2 }
 0xfc7   : > { %7257 = vmatmul.mubr.bf16.gmra.mrb[204].mxu1 %v6909_v4 }
 0xfc8   : > { %7354 = vmatmul.mubr.bf16.gmra.mrb[220].mxu0 %v6911_v55 }
 0xfd0   : > { %v6437_v24 = vpop.f32.mrb[176].mxu1  ;;  %v6550_v0 = vpop.f32.mrb[192].mxu0 }
 0xfd1   : > { %v6438_v6 = vadd.f32 %v6437_v24, %v12852_v49  ;;  %v6551_v22 = vadd.f32 %v6550_v0, %v12856_v16  ;;  %v6439_v10 = vpop.f32.mrb[177].mxu1  ;;  %v6552_v19 = vpop.f32.mrb[193].mxu0 }
 0xfd2   : > { %v6440_v56 = vadd.f32 %v6439_v10, %v12860_v9  ;;  %v6553_v59 = vadd.f32 %v6552_v19, %v12862_v47  ;;  %v6441_v31 = vpop.f32.mrb[178].mxu1  ;;  %v6554_v29 = vpop.f32.mrb[194].mxu0 }
 0xfd3   : > { %v6681_v54 = vmul.f32 0.70710677, %v6438_v6  ;;  %v6683_v53 = vmul.f32 0.70710677, %v6551_v22  ;;  %v6442_v43 = vadd.f32 %v6441_v31, %v12852_v49  ;;  %v13084_v39 = vadd.f32 %v6554_v29, %v12856_v16  ;;  %v6443_v38 = vpop.f32.mrb[179].mxu1  ;;  %v6556_v34 = vpop.f32.mrb[195].mxu0 }
 0xfd4   : > { %v6682_v46 = vmul.f32 0.70710677, %v6440_v56  ;;  %v6684_v40 = vmul.f32 0.70710677, %v6553_v59  ;;  %v6444_v20 = vadd.f32 %v6443_v38, %v12860_v9  ;;  %v13088_v17 = vadd.f32 %v6556_v34, %v12862_v47 }
 0xfd5   : > { %9453 = verf.f32 %v6681_v54  ;;  %v6685_v48 = vmul.f32 0.70710677, %v6442_v43  ;;  %v6687_v61 = vmul.f32 0.70710677, %v13084_v39  ;;  %v6617_v15 = vmul.f32 0.5, %v6438_v6 }
 0xfd6   : > { %9455 = verf.f32 %v6683_v53  ;;  %v6686_v13 = vmul.f32 0.70710677, %v6444_v20  ;;  %v6688_v45 = vmul.f32 0.70710677, %v13088_v17  ;;  %v6619_v58 = vmul.f32 0.5, %v6551_v22 }
 0xfd7   : > { %9457 = verf.f32 %v6682_v46  ;;  %v6618_v55 = vmul.f32 0.5, %v6440_v56  ;;  %v6620_v36 = vmul.f32 0.5, %v6553_v59  ;;  %v6621_v51 = vmul.f32 0.5, %v6442_v43 }
 0xfd8   : > { %9459 = verf.f32 %v6684_v40  ;;  %v6447_v23 = vpop.f32.mrb[180].mxu1  ;;  %v6560_v11 = vpop.f32.mrb[196].mxu0  ;;  %v6623_v22 = vmul.f32 0.5, %v13084_v39  ;;  %v6622_v19 = vmul.f32 0.5, %v6444_v20  ;;  %v6624_v46 = vmul.f32 0.5, %v13088_v17 }
 0xfd9   : > { %9461 = verf.f32 %v6685_v48  ;;  %v13093_v60 = vadd.f32 %v6447_v23, %v12852_v49  ;;  %v6449_v42 = vpop.f32.mrb[181].mxu1  ;;  %v13096_v33 = vadd.f32 %v6560_v11, %v12856_v16  ;;  %v6562_v32 = vpop.f32.mrb[197].mxu0 }
 0xfda   : > { %9463 = verf.f32 %v6687_v61  ;;  %v13099_v1 = vadd.f32 %v6449_v42, %v12860_v9  ;;  %v6451_v25 = vpop.f32.mrb[182].mxu1  ;;  %v13103_v8 = vadd.f32 %v6562_v32, %v12862_v47  ;;  %v6564_v63 = vpop.f32.mrb[198].mxu0 }
 0xfdb   : > { %9465 = verf.f32 %v6686_v13  ;;  %v6689_v18 = vmul.f32 0.70710677, %v13093_v60  ;;  %v6453_v12 = vpop.f32.mrb[183].mxu1  ;;  %v6691_v3 = vmul.f32 0.70710677, %v13096_v33  ;;  %v6566_v27 = vpop.f32.mrb[199].mxu0  ;;  %v6452_v26 = vadd.f32 %v6451_v25, %v12852_v49 }
 0xfdc   : > { %9467 = verf.f32 %v6688_v45  ;;  %v6690_v62 = vmul.f32 0.70710677, %v13099_v1  ;;  %v6692_v57 = vmul.f32 0.70710677, %v13103_v8  ;;  %v13110_v14 = vadd.f32 %v6564_v63, %v12856_v16 }
 0xfdd   : > { %9469 = verf.f32 %v6689_v18  ;;  %v13113_v52 = vadd.f32 %v6453_v12, %v12860_v9  ;;  %v6693_v41 = vmul.f32 0.70710677, %v6452_v26  ;;  %v13116_v30 = vadd.f32 %v6566_v27, %v12862_v47 }
 0xfde   : > { %9471 = verf.f32 %v6691_v3  ;;  %v6695_v49 = vmul.f32 0.70710677, %v13110_v14  ;;  %v6625_v18 = vmul.f32 0.5, %v13093_v60  ;;  %v6627_v12 = vmul.f32 0.5, %v13096_v33 }
 0xfdf   : > { %v9454_v28 = vpop.eup %9453  ;;  %9473 = verf.f32 %v6690_v62  ;;  %v6694_v9 = vmul.f32 0.70710677, %v13113_v52  ;;  %v6696_v24 = vmul.f32 0.70710677, %v13116_v30  ;;  %v6629_v27 = vmul.f32 0.5, %v6452_v26 }
 0xfe0   : > { %v9456_v7 = vpop.eup %9455  ;;  %9475 = verf.f32 %v6692_v57  ;;  %v6809_v16 = vadd.f32 1.0, %v9454_v28  ;;  %v6626_v28 = vmul.f32 0.5, %v13099_v1  ;;  %v6628_v33 = vmul.f32 0.5, %v13103_v8 }
 0xfe1   : > { %v9458_v4 = vpop.eup %9457  ;;  %9477 = verf.f32 %v6693_v41  ;;  %v6811_v21 = vadd.f32 1.0, %v9456_v7  ;;  %v6631_v7 = vmul.f32 0.5, %v13110_v14  ;;  %v6632_v26 = vmul.f32 0.5, %v13116_v30  ;;  %v13132_v30 = vld [vmem:[%s796_s25] ss:$0 sm:$0xff] }
 0xfe2   : > { %v9460_v35 = vpop.eup %9459  ;;  %9479 = verf.f32 %v6695_v49  ;;  %v6810_v47 = vadd.f32 1.0, %v9458_v4  ;;  %v6873_v31 = vmul.f32 %v6809_v16, %v6617_v15  ;;  %v6630_v4 = vmul.f32 0.5, %v13113_v52 }
 0xfe3   : > { %v9462_v50 = vpop.eup %9461  ;;  %9481 = verf.f32 %v6694_v9  ;;  %v6812_v6 = vadd.f32 1.0, %v9460_v35  ;;  %v6875_v59 = vmul.f32 %v6811_v21, %v6619_v58 }
 0xfe4   : > { %v9464_v44 = vpop.eup %9463  ;;  %v6813_v2 = vadd.f32 1.0, %v9462_v50  ;;  %9483 = verf.f32 %v6696_v24  ;;  %v6874_v38 = vmul.f32 %v6810_v47, %v6618_v55 }
 0xfe5   : > { %v9466_v0 = vpop.eup %9465  ;;  %v6815_v10 = vadd.f32 1.0, %v9464_v44  ;;  %v6876_v13 = vmul.f32 %v6812_v6, %v6620_v36 }
 0xfe6   : > { %v9468_v56 = vpop.eup %9467  ;;  %v6877_v29 = vmul.f32 %v6813_v2, %v6621_v51  ;;  %v6814_v54 = vadd.f32 1.0, %v9466_v0 }
 0xfe7   : > { %v6879_v53 = vmul.f32 %v6815_v10, %v6623_v22  ;;  %v6816_v40 = vadd.f32 1.0, %v9468_v56  ;;  %v9470_v43 = vpop.eup %9469 }
 0xfe8   : > { %v6878_v34 = vmul.f32 %v6814_v54, %v6622_v19  ;;  %v6913_v48 = vpack.c.bf16 %v6877_v29, %v6873_v31  ;;  %v9472_v61 = vpop.eup %9471  ;;  %v6817_v42 = vadd.f32 1.0, %v9470_v43 }
 0xfe9   : > { %v6915_v23 = vpack.c.bf16 %v6879_v53, %v6875_v59  ;;  %v6880_v39 = vmul.f32 %v6816_v40, %v6624_v46  ;;  %v9474_v45 = vpop.eup %9473  ;;  %v6819_v63 = vadd.f32 1.0, %v9472_v61 }
 0xfea   : > { %v6914_v20 = vpack.c.bf16 %v6878_v34, %v6874_v38  ;;  %v9476_v11 = vpop.eup %9475  ;;  %v6818_v3 = vadd.f32 1.0, %v9474_v45  ;;  %v6881_v15 = vmul.f32 %v6817_v42, %v6625_v18 }
 0xfeb   : > { %v6916_v32 = vpack.c.bf16 %v6880_v39, %v6876_v13  ;;  %v9478_v25 = vpop.eup %9477  ;;  %v6820_v58 = vadd.f32 1.0, %v9476_v11  ;;  %v6883_v16 = vmul.f32 %v6819_v63, %v6627_v12  ;;  %v13573_v12 = vld [vmem:[#allocation49_spill] sm:$0xff] }
 0xfec   : > { %7264 = vmatprep.mubr.bf16.mxu1 %v6914_v20  ;;  %v9480_v17 = vpop.eup %9479  ;;  %v6821_v62 = vadd.f32 1.0, %v9478_v25  ;;  %v6882_v9 = vmul.f32 %v6818_v3, %v6626_v28 }
 0xfed   : > { %7265 = vmatmul.mubr.bf16.gmra.mrb[208].mxu1 %v6913_v48  ;;  %v9482_v57 = vpop.eup %9481  ;;  %v6823_v41 = vadd.f32 1.0, %v9480_v17  ;;  %v6884_v36 = vmul.f32 %v6820_v58, %v6628_v33 }
 0xfee   : > { %v6885_v60 = vmul.f32 %v6821_v62, %v6629_v27  ;;  %v6822_v49 = vadd.f32 1.0, %v9482_v57  ;;  %v9484_v35 = vpop.eup %9483 }
 0xfef   : > { %v6887_v55 = vmul.f32 %v6823_v41, %v6631_v7  ;;  %v6824_v1 = vadd.f32 1.0, %v9484_v35 }
 0xff0   : > { %v6886_v50 = vmul.f32 %v6822_v49, %v6630_v4  ;;  %v6917_v21 = vpack.c.bf16 %v6885_v60, %v6881_v15 }
 0xff1   : > { %v6919_v14 = vpack.c.bf16 %v6887_v55, %v6883_v16  ;;  %v6888_v51 = vmul.f32 %v6824_v1, %v6632_v26  ;;  %v13574_v26 = vld [vmem:[#allocation51_spill] sm:$0xff] }
 0xff2   : > { %v6918_v52 = vpack.c.bf16 %v6886_v50, %v6882_v9 }
 0xff3   : > { %v6920_v44 = vpack.c.bf16 %v6888_v51, %v6884_v36  ;;  %v13575_v36 = vld [vmem:[#allocation48_spill] sm:$0xff] }
 0xff4   : > { %7272 = vmatprep.mubr.bf16.mxu1 %v6918_v52 }
 0xff5   : > { %7273 = vmatmul.mubr.bf16.gmra.mrb[212].mxu1 %v6917_v21 }
 0xff6   : > { %7361 = vmatprep.mubr.bf16.mxu1 %v6916_v32 }
 0xffd   : > { %7362 = vmatmul.mubr.bf16.vlgmr.msra.gmra.mrb[216].mxu1 %v6915_v23 }
 0xffe   : > { %7369 = vmatprep.mubr.bf16.mxu1 %v6920_v44 }
0x1005   : > { %7370 = vmatmul.mubr.bf16.gmra.mrb[220].mxu1 %v6919_v14 }
0x1048   : > { %v8157_v8 = vpop.f32.mrb[184].mxu1 }
0x1049   : > { %v8221_v47 = vpop.f32.mrb[200].mxu0  ;;  %v8158_v2 = vpop.f32.mrb[185].mxu1 }
0x104a   : > { %v8159_v24 = vadd.f32 %v8158_v2, %v8157_v8  ;;  %v8222_v0 = vpop.f32.mrb[201].mxu0  ;;  %v8160_v6 = vpop.f32.mrb[186].mxu1 }
0x104b   : > { %v8223_v22 = vadd.f32 %v8222_v0, %v8221_v47  ;;  %v8224_v10 = vpop.f32.mrb[202].mxu0  ;;  %v8161_v19 = vpop.f32.mrb[187].mxu1 }
0x104c   : > { %v7219_v56 = vadd.f32 %v8159_v24, %v13132_v30  ;;  %v8162_v31 = vadd.f32 %v8161_v19, %v8160_v6  ;;  %v8225_v29 = vpop.f32.mrb[203].mxu0 }
0x104d   : > { %v8226_v54 = vadd.f32 %v8225_v29, %v8224_v10 }
0x104e   : > { %v7316_v59 = vadd.f32 %v8223_v22, %v7219_v56  ;;  %v7222_v53 = vadd.f32 %v8162_v31, %v13132_v30  ;;  %v13576_v31 = vld [vmem:[#allocation50_spill] sm:$0xff] }
0x1050   : > { %v13137_v46 = vadd.f32 %v7316_v59, %v12523_v5  ;;  %v7319_v40 = vadd.f32 %v8226_v54, %v7222_v53  ;;  %v8163_v43 = vpop.f32.mrb[188].mxu1 }
0x1051   : > { %v8164_v34 = vpop.f32.mrb[189].mxu1  ;;  %v8227_v48 = vpop.f32.mrb[204].mxu0 }
0x1052   : > { %7394 = vst [vmem:[#allocation2] sm:$0xff] %v13137_v46  ;;  %v13141_v38 = vadd.f32 %v7319_v40, %v12526_v37  ;;  %v8165_v61 = vadd.f32 %v8164_v34, %v8163_v43  ;;  %v8166_v13 = vpop.f32.mrb[190].mxu1  ;;  %v8228_v23 = vpop.f32.mrb[205].mxu0  ;;  %v13572_v37 = vld [vmem:[#allocation47_spill] sm:$0xff]  ;;  %v13577_v43 = vld [vmem:[#allocation53_spill] sm:$0xff]  ;;  %7414 = vst [vmem:[%s10774_s14] sm:$0xff] (!%p7969_p7), %v13137_v46 }
0x1053   : > { %v8167_v39 = vpop.f32.mrb[191].mxu1  ;;  %v8229_v20 = vadd.f32 %v8228_v23, %v8227_v48  ;;  %v8230_v5 = vpop.f32.mrb[206].mxu0 }
0x1054   : > { %7395 = vst [vmem:[#allocation2 + $0x8] sm:$0xff] %v13141_v38  ;;  %v7227_v45 = vadd.f32 %v8165_v61, %v13132_v30  ;;  %v8168_v11 = vadd.f32 %v8167_v39, %v8166_v13  ;;  %v8231_v42 = vpop.f32.mrb[207].mxu0  ;;  %7415 = vst [vmem:[%s10774_s14 + $0x8] sm:$0xff] (!%p7969_p7), %v13141_v38 }
0x1055   : > { %v8232_v18 = vadd.f32 %v8231_v42, %v8230_v5 }
0x1056   : > { %v7324_v32 = vadd.f32 %v8229_v20, %v7227_v45  ;;  %v7230_v25 = vadd.f32 %v8168_v11, %v13132_v30 }
0x1058   : > { %v13147_v63 = vadd.f32 %v7324_v32, %v13572_v37  ;;  %v7327_v17 = vadd.f32 %v8232_v18, %v7230_v25  ;;  %v13578_v18 = vld [vmem:[#allocation52_spill] sm:$0xff] }
0x105a   : > { %7396 = vst [vmem:[#allocation2 + $0x10] sm:$0xff] %v13147_v63  ;;  %v13151_v3 = vadd.f32 %v7327_v17, %v13573_v12  ;;  %7416 = vst [vmem:[%s10774_s14 + $0x10] sm:$0xff] (!%p7969_p7), %v13147_v63 }
0x105c   : > { %7397 = vst [vmem:[#allocation2 + $0x18] sm:$0xff] %v13151_v3  ;;  %7417 = vst [vmem:[%s10774_s14 + $0x18] sm:$0xff] (!%p7969_p7), %v13151_v3 }
0x1082   : > { %v8169_v27 = vpop.f32.mrb[192].mxu1 }
0x1083   : > { %v8233_v62 = vpop.f32.mrb[208].mxu0  ;;  %v8170_v57 = vpop.f32.mrb[193].mxu1 }
0x1084   : > { %v8171_v28 = vadd.f32 %v8170_v57, %v8169_v27  ;;  %v8234_v7 = vpop.f32.mrb[209].mxu0  ;;  %v8172_v41 = vpop.f32.mrb[194].mxu1  ;;  %v13579_v57 = vld [vmem:[#allocation79_spill] sm:$0xff] }
0x1085   : > { %v8235_v4 = vadd.f32 %v8234_v7, %v8233_v62  ;;  %v8236_v15 = vpop.f32.mrb[210].mxu0  ;;  %v8173_v58 = vpop.f32.mrb[195].mxu1 }
0x1086   : > { %v7235_v60 = vadd.f32 %v8171_v28, %v13132_v30  ;;  %v8174_v49 = vadd.f32 %v8173_v58, %v8172_v41  ;;  %v8237_v35 = vpop.f32.mrb[211].mxu0 }
0x1087   : > { %v8238_v16 = vadd.f32 %v8237_v35, %v8236_v15 }
0x1088   : > { %v7332_v33 = vadd.f32 %v8235_v4, %v7235_v60  ;;  %v7238_v55 = vadd.f32 %v8174_v49, %v13132_v30 }
0x108a   : > { %v13157_v9 = vadd.f32 %v7332_v33, %v13574_v26  ;;  %v7335_v50 = vadd.f32 %v8238_v16, %v7238_v55  ;;  %v8175_v1 = vpop.f32.mrb[196].mxu1 }
0x108b   : > { %v8239_v21 = vpop.f32.mrb[212].mxu0  ;;  %v8176_v14 = vpop.f32.mrb[197].mxu1 }
0x108c   : > { %7398 = vst [vmem:[#allocation2 + $0x20] sm:$0xff] %v13157_v9  ;;  %v13161_v51 = vadd.f32 %v7335_v50, %v13575_v36  ;;  %v8177_v52 = vadd.f32 %v8176_v14, %v8175_v1  ;;  %v8240_v44 = vpop.f32.mrb[213].mxu0  ;;  %v8178_v8 = vpop.f32.mrb[198].mxu1  ;;  %v13580_v50 = vld [vmem:[#allocation82_spill] sm:$0xff]  ;;  %v13581_v14 = vld [vmem:[#allocation83_spill] sm:$0xff]  ;;  %7418 = vst [vmem:[%s10774_s14 + $0x20] sm:$0xff] (!%p7969_p7), %v13157_v9 }
0x108d   : > { %v8241_v47 = vadd.f32 %v8240_v44, %v8239_v21  ;;  %v8242_v2 = vpop.f32.mrb[214].mxu0  ;;  %v8179_v24 = vpop.f32.mrb[199].mxu1 }
0x108e   : > { %7399 = vst [vmem:[#allocation2 + $0x28] sm:$0xff] %v13161_v51  ;;  %v7243_v0 = vadd.f32 %v8177_v52, %v13132_v30  ;;  %v8180_v6 = vadd.f32 %v8179_v24, %v8178_v8  ;;  %v8243_v22 = vpop.f32.mrb[215].mxu0  ;;  %7419 = vst [vmem:[%s10774_s14 + $0x28] sm:$0xff] (!%p7969_p7), %v13161_v51 }
0x108f   : > { %v8244_v10 = vadd.f32 %v8243_v22, %v8242_v2 }
0x1090   : > { %v7340_v19 = vadd.f32 %v8241_v47, %v7243_v0  ;;  %v7246_v56 = vadd.f32 %v8180_v6, %v13132_v30 }
0x1092   : > { %v13167_v29 = vadd.f32 %v7340_v19, %v13576_v31  ;;  %v7343_v54 = vadd.f32 %v8244_v10, %v7246_v56  ;;  %v8181_v59 = vpop.f32.mrb[200].mxu1 }
0x1093   : > { %v8245_v53 = vpop.f32.mrb[216].mxu0  ;;  %v8182_v40 = vpop.f32.mrb[201].mxu1 }
0x1094   : > { %7400 = vst [vmem:[#allocation2 + $0x30] sm:$0xff] %v13167_v29  ;;  %v13171_v34 = vadd.f32 %v7343_v54, %v13577_v43  ;;  %v8183_v48 = vadd.f32 %v8182_v40, %v8181_v59  ;;  %v8246_v61 = vpop.f32.mrb[217].mxu0  ;;  %v8184_v13 = vpop.f32.mrb[202].mxu1  ;;  %7420 = vst [vmem:[%s10774_s14 + $0x30] sm:$0xff] (!%p7969_p7), %v13167_v29 }
0x1095   : > { %v8247_v23 = vadd.f32 %v8246_v61, %v8245_v53  ;;  %v8248_v39 = vpop.f32.mrb[218].mxu0  ;;  %v8185_v45 = vpop.f32.mrb[203].mxu1 }
0x1096   : > { %7401 = vst [vmem:[#allocation2 + $0x38] sm:$0xff] %v13171_v34  ;;  %v7251_v20 = vadd.f32 %v8183_v48, %v13132_v30  ;;  %v8186_v5 = vadd.f32 %v8185_v45, %v8184_v13  ;;  %v8249_v11 = vpop.f32.mrb[219].mxu0  ;;  %7421 = vst [vmem:[%s10774_s14 + $0x38] sm:$0xff] (!%p7969_p7), %v13171_v34 }
0x1097   : > { %v8250_v42 = vadd.f32 %v8249_v11, %v8248_v39 }
0x1098   : > { %v7348_v32 = vadd.f32 %v8247_v23, %v7251_v20  ;;  %v7254_v25 = vadd.f32 %v8186_v5, %v13132_v30  ;;  %v13582_v23 = vld [vmem:[#allocation78_spill] sm:$0xff] }
0x1099   : > { %v13583_v20 = vld [vmem:[#allocation54_spill] sm:$0xff] }
0x109a   : > { %v13177_v37 = vadd.f32 %v7348_v32, %v13578_v18  ;;  %v7351_v17 = vadd.f32 %v8250_v42, %v7254_v25  ;;  %v8187_v12 = vpop.f32.mrb[204].mxu1 }
0x109b   : > { %v8251_v27 = vpop.f32.mrb[220].mxu0  ;;  %v8188_v62 = vpop.f32.mrb[205].mxu1 }
0x109c   : > { %7402 = vst [vmem:[#allocation2 + $0x40] sm:$0xff] %v13177_v37  ;;  %v13181_v28 = vadd.f32 %v7351_v17, %v13579_v57  ;;  %v8189_v7 = vadd.f32 %v8188_v62, %v8187_v12  ;;  %v8252_v41 = vpop.f32.mrb[221].mxu0  ;;  %v8190_v4 = vpop.f32.mrb[206].mxu1  ;;  %v13584_v57 = vld [vmem:[#allocation56_spill] sm:$0xff]  ;;  %7422 = vst [vmem:[%s10774_s14 + $0x40] sm:$0xff] (!%p7969_p7), %v13177_v37 }
0x109d   : > { %v8253_v15 = vadd.f32 %v8252_v41, %v8251_v27  ;;  %v8254_v58 = vpop.f32.mrb[222].mxu0  ;;  %v8191_v60 = vpop.f32.mrb[207].mxu1 }
0x109e   : > { %7403 = vst [vmem:[#allocation2 + $0x48] sm:$0xff] %v13181_v28  ;;  %v7259_v49 = vadd.f32 %v8189_v7, %v13132_v30  ;;  %v8192_v35 = vadd.f32 %v8191_v60, %v8190_v4  ;;  %v8255_v16 = vpop.f32.mrb[223].mxu0  ;;  %v13585_v4 = vld [vmem:[#allocation57_spill] sm:$0xff]  ;;  %7423 = vst [vmem:[%s10774_s14 + $0x48] sm:$0xff] (!%p7969_p7), %v13181_v28 }
0x109f   : > { %v8256_v33 = vadd.f32 %v8255_v16, %v8254_v58 }
0x10a0   : > { %v7356_v55 = vadd.f32 %v8253_v15, %v7259_v49  ;;  %v7262_v26 = vadd.f32 %v8192_v35, %v13132_v30 }
0x10a2   : > { %v7388_v1 = vadd.f32 %v7356_v55, %v13580_v50  ;;  %v7359_v21 = vadd.f32 %v8256_v33, %v7262_v26 }
0x10a4   : > { %7404 = vst [vmem:[#allocation2 + $0x50] sm:$0xff] %v7388_v1  ;;  %v7389_v36 = vadd.f32 %v7359_v21, %v13581_v14  ;;  %7424 = vst [vmem:[%s10774_s14 + $0x50] sm:$0xff] (!%p7969_p7), %v7388_v1 }
0x10a6   : > { %7405 = vst [vmem:[#allocation2 + $0x58] sm:$0xff] %v7389_v36  ;;  %7425 = vst [vmem:[%s10774_s14 + $0x58] sm:$0xff] (!%p7969_p7), %v7389_v36 }
0x10c0   : > { %v8193_v52 = vpop.f32.mrb[208].mxu1 }
0x10c1   : > { %v8194_v44 = vpop.f32.mrb[209].mxu1 }
0x10c2   : > { %v8195_v8 = vadd.f32 %v8194_v44, %v8193_v52  ;;  %v8196_v47 = vpop.f32.mrb[210].mxu1 }
0x10c3   : > { %v8197_v2 = vpop.f32.mrb[211].mxu1 }
0x10c4   : > { %v8198_v24 = vadd.f32 %v8197_v2, %v8196_v47  ;;  %v7267_v59 = vadd.f32 %v8195_v8, %v13132_v30 }
0x10c6   : > { %v7270_v48 = vadd.f32 %v8198_v24, %v13132_v30 }
0x10c8   : > { %v8199_v0 = vpop.f32.mrb[212].mxu1 }
0x10c9   : > { %v8200_v6 = vpop.f32.mrb[213].mxu1 }
0x10ca   : > { %v8201_v22 = vadd.f32 %v8200_v6, %v8199_v0  ;;  %v8202_v10 = vpop.f32.mrb[214].mxu1 }
0x10cb   : > { %v8203_v19 = vpop.f32.mrb[215].mxu1 }
0x10cc   : > { %v8204_v56 = vadd.f32 %v8203_v19, %v8202_v10  ;;  %v7275_v32 = vadd.f32 %v8201_v22, %v13132_v30 }
0x10ce   : > { %v7278_v12 = vadd.f32 %v8204_v56, %v13132_v30 }
0x10d0   : > { %v8257_v31 = vpop.f32.mrb[216].mxu1 }
0x10d1   : > { %v8258_v54 = vpop.f32.mrb[217].mxu1 }
0x10d2   : > { %v8259_v53 = vadd.f32 %v8258_v54, %v8257_v31  ;;  %v8260_v40 = vpop.f32.mrb[218].mxu1 }
0x10d3   : > { %v8261_v43 = vpop.f32.mrb[219].mxu1 }
0x10d4   : > { %v7364_v61 = vadd.f32 %v8259_v53, %v7267_v59  ;;  %v8262_v13 = vadd.f32 %v8261_v43, %v8260_v40 }
0x10d6   : > { %v7390_v39 = vadd.f32 %v7364_v61, %v13582_v23  ;;  %v7367_v45 = vadd.f32 %v8262_v13, %v7270_v48 }
0x10d8   : > { %7406 = vst [vmem:[#allocation2 + $0x60] sm:$0xff] %v7390_v39  ;;  %v7391_v5 = vadd.f32 %v7367_v45, %v13583_v20  ;;  %v8263_v11 = vpop.f32.mrb[220].mxu1  ;;  %7426 = vst [vmem:[%s10774_s14 + $0x60] sm:$0xff] (!%p7969_p7), %v7390_v39 }
0x10d9   : > { %v8264_v42 = vpop.f32.mrb[221].mxu1 }
0x10da   : > { %7407 = vst [vmem:[#allocation2 + $0x68] sm:$0xff] %v7391_v5  ;;  %v8265_v25 = vadd.f32 %v8264_v42, %v8263_v11  ;;  %v8266_v18 = vpop.f32.mrb[222].mxu1  ;;  %7427 = vst [vmem:[%s10774_s14 + $0x68] sm:$0xff] (!%p7969_p7), %v7391_v5 }
0x10db   : > { %v8267_v17 = vpop.f32.mrb[223].mxu1 }
0x10dc   : > { %v7372_v27 = vadd.f32 %v8265_v25, %v7275_v32  ;;  %v8268_v62 = vadd.f32 %v8267_v17, %v8266_v18  ;;  %7413 = sbr.rel (%p7969_p7) target bundleno = 4323 (0x10e3), region = 132 }
0x10de   : > { %v7392_v7 = vadd.f32 %v7372_v27, %v13584_v57  ;;  %v7375_v41 = vadd.f32 %v8268_v62, %v7278_v12 }
0x10e0   : > { %7408 = vst [vmem:[#allocation2 + $0x70] sm:$0xff] %v7392_v7  ;;  %v7393_v15 = vadd.f32 %v7375_v41, %v13585_v4  ;;  %7428 = vst [vmem:[%s10774_s14 + $0x70] sm:$0xff] (!%p7969_p7), %v7392_v7 }
0x10e2   : > { %7409 = vst [vmem:[#allocation2 + $0x78] sm:$0xff] %v7393_v15  ;;  %7429 = vst [vmem:[%s10774_s14 + $0x78] sm:$0xff] (!%p7969_p7), %v7393_v15 }
0x10e3 PF: > { %s13587_s7 = sld [smem:[#allocation38_spill]]  ;;  %s13588_s3 = sld [smem:[#allocation107_spill]] }
0x10e4   : > { %s7444_s12 = sshll.u32 %s10774_s14, 4  ;;  %s7431_s4 = scalar_lea.sflag [#allocation6], %s10701_s23  ;;  %s13230_s12 = int_to_ptr.vmem [resolvable:$true] %s7444_s12 }
0x10e5   : > { %s9891_s22 = scalar_lea.vmem %s13230_s12, 2048  ;;  %p13589_p3 = scmp.ne.s32.totalorder %s13424_s5, 0 }
0x10e6   : > { %p9892_p13 = scmp.ne.s32.totalorder %s13230_s12, %s9891_s22  ;;  %s10066_s17 = smov [#allocation25]  }
0x10e7   : > { %s9895_s10 = sshll.u32 %s10066_s17, 4  ;;  %s9896_s10 = int_to_ptr.vmem [resolvable:$false] %s9895_s10 }
0x10e8   : > { %p9893_p11 = pnand %p9892_p13, %p13589_p3  ;;  %s9897_s30 = scalar_lea.vmem %s9896_s10, 4096 }
0x10e9   : > { %s7980_s6 = sshll.u32 %s13587_s7, 11  ;;  %p9898_p4 = scmp.lt.s32.totalorder %s13230_s12, %s9896_s10 }
0x10ea   : > { %s13227_s9 = scalar_lea.hbm %s13588_s3, %s7980_s6  ;;  %p9894_p2 = pneg %p9893_p11 }
0x10eb   : > { %p9899_p10 = scmp.lt.s32.totalorder %s9897_s30, %s9891_s22 }
0x10ed   : > { %p9900_p5 = por %p9899_p10, %p9898_p4 }
0x10ef   : > { %p9901_p0 = pnand %p9900_p5, %p9894_p2 }
0x10f1   : > { %9904 = shalt.err (!%p9901_p0)
}
0x10f2   : > { %s9905_s14 = scalar_lea.hbm %s13227_s9, 2048  ;;  %s9909_s15 = scalar_lea.hbm %s13588_s3, 4096 }
0x10f3   : > { %p9906_p12 = scmp.ne.s32.totalorder %s13227_s9, %s9905_s14  ;;  %p9910_p6 = scmp.lt.u32.totalorder %s13227_s9, %s13588_s3 }
0x10f4   : > { %p9911_p9 = scmp.lt.u32.totalorder %s9909_s15, %s9905_s14  ;;  %p9913_p13 = scmp.lt.u32.totalorder %s9905_s14, %s13227_s9 }
0x10f5   : > { %p9907_p1 = pnand %p9906_p12, %p13589_p3 }
0x10f6   : > { %p9912_p7 = por %p9911_p9, %p9910_p6 }
0x10f7   : > { %p9908_p8 = pneg %p9907_p1 }
0x10f8   : > { %p9914_p11 = por %p9913_p13, %p9912_p7 }
0x10fa   : > { %p9915_p2 = pnand %p9914_p11, %p9908_p8 }
0x10fc   : > { %9918 = shalt.err (!%p9915_p2)
}
0x10fd   : > { %s10067_s27 = smov 128   ;;  %s10068_s19 = smov 8  }
0x10fe   : > { %8765 = dma.vmem_to_hbm [thread:$0]  (%p13589_p3), %s13230_s12, 2048, %s13227_s9, %s7431_s4, %s10067_s27, %s10067_s27, %s10068_s19  }
0x10ff PF: > { %s13590_s1 = sld [smem:[#allocation45_spill]]  ;;  %p8812_p4 = scmp.ge.s32.totalorder %s10037_s18, 2 }
0x1100   : > { %s7459_s7 = sand.u32 1, %s10009_s28  }
0x1101   : > { %s7460_s6 = scalar_lea.sflag [#allocation6], %s7459_s7 }
0x1105   : > { %p13591_p10 = scmp.ne.s32.totalorder %s13590_s1, 0 }
0x1107   : > { %p8808_p5 = pnand %p8812_p4, %p13591_p10 }
0x1109   : > { %9992 = dma.done.wait (!%p8808_p5), %s7460_s6, 2048  }
0x110a   : > { %9994 = vsyncadd (!%p8808_p5), %s7460_s6, 4294965248  ;;  %s47_s18 = sadd.s32 1, %s10037_s18   ;;  %s13592_s25 = sld [smem:[#allocation34_spill]] }
0x110b   : > { %p44_p0 = scmp.ge.s32.totalorder %s47_s18, 6   ;;  %s13593_s26 = sld [smem:[#allocation35_spill]] }
0x110c   : > { %s13594_s27 = sld [smem:[#allocation43_spill]]  ;;  %s13595_s5 = sld [smem:[#allocation36_spill]] }
0x110d   : > { %s13596_s30 = sld [smem:[#allocation44_spill]]  ;;  %s13597_s15 = sld [smem:[#allocation39_spill]] }
0x110e   : > { %s13598_s23 = sld [smem:[#allocation41_spill]]  ;;  %s13599_s17 = sld [smem:[#allocation42_spill]] }
0x110f   : > { %s13600_s28 = smov %s10013_s29  ;;  %s13602_s14 = smov %s10029_s16 }
0x1110   :  { %46 = sbr.rel (!%p44_p0) target bundleno = 36 (0x24), region = 269 }
0x1112   : > { %s13601_s29 = smov %s13595_s5 }
0x1114   : > { %s13603_s16 = smov %s13598_s23 }
0x1117   :  { %7465 = vsyncpa [#allocation5], 1 }
0x1118   :  { %7467 = vsyncpa [#allocation5 + $0x1], 1 }
0x1119   :  { %7468 = vsyncpa [#allocation8], 1 }
0x111a   :  { %7470 = vsyncpa [#allocation8 + $0x1], 1 }
0x111b   :  { %7471 = vsyncpa [#allocation11], 1 }
0x111c   :  { %7473 = vsyncpa [#allocation11 + $0x1], 1 }
0x111d   :  { %7474 = vsyncpa [#allocation14], 1 }
0x111e   :  { %7476 = vsyncpa [#allocation14 + $0x1], 1 }
0x111f   :  { %7477 = vsyncpa [#allocation17], 1 }
0x1120   :  { %7479 = vsyncpa [#allocation17 + $0x1], 1 }
0x1121   :  { %7480 = vsyncpa [#allocation20], 1 }
0x1122   :  { %7482 = vsyncpa [#allocation20 + $0x1], 1 }
0x1123   :  { %7483 = vsyncpa [#allocation23], 1 }
0x1124   :  { %7485 = vsyncpa [#allocation23 + $0x1], 1 }
0x1125   :  { %7486 = vsyncpa [#allocation6], 1 }
0x1126   :  { %7488 = vsyncpa [#allocation6 + $0x1], 1 }

</bundles_post_ra>
